<compile_context>
chip_gen: v7x
topology: tpu7x:2x2x1
jax: 0.10.0
libtpu: 0.0.40
codegen_flags: <defaults>
</compile_context>

<pallas_src>
import functools

import numpy as np

import jax
import jax.numpy as jnp
from jax.experimental import pallas as pl
from jax.experimental.pallas import tpu as pltpu


# ----------------------------------------------------------------------------
# Pallas kernel 1: conv1 im2col matmul,  y = relu(p @ w + b)
# ----------------------------------------------------------------------------
def _conv1_kernel(p_ref, w_ref, b_ref, o_ref):
    y = jnp.dot(p_ref[...], w_ref[...], preferred_element_type=jnp.float32)
    o_ref[...] = jnp.maximum(y + b_ref[...], 0.0).astype(o_ref.dtype)


def conv1_matmul(p, w, b):
    """p:(M,256) bf16, w:(256,32) bf16, b:(1,32) f32 -> (M,32) bf16."""
    M = p.shape[0]
    N = w.shape[1]
    # Single full-array block: M=1600 easily fits VMEM on every generation.
    # TODO(synk): on v7x a 2-way CORE_PARALLEL M-split could occupy the second
    # TensorCore, but the matmul is ~26 MFLOP so launch overhead dominates.
    return pl.pallas_call(
        _conv1_kernel,
        out_shape=jax.ShapeDtypeStruct((M, N), jnp.bfloat16),
    )(p, w, b)


# ----------------------------------------------------------------------------
# Pallas kernel 2: conv2 + conv3 + flatten + FC tail + losses, VMEM-resident.
#
# Row order of p2 / y2 / y3 is (pixel, image):  r = (i*5 + j) * n_img + n,
# so the per-image regroup into the (n_img, 1600) fc1 input needs only
# contiguous static slices.
#
# Packed output (rows, 128) f32:
#   row 0            : forward_loss
#   row 1            : action_loss
#   rows 2 .. 2+B-1  : intrinsic_reward per batch element
# ----------------------------------------------------------------------------
def _icm_core_kernel(p2_ref, g3_ref, act_ref,
                     c2w_ref, c2b_ref, c3w_ref, c3b_ref,
                     e1w_ref, e1b_ref, e2w_ref, e2b_ref,
                     s1wl_ref, s1wa_ref, s1b_ref, s2w_ref, s2b_ref,
                     d1wx_ref, d1wn_ref, d1b_ref, d2w_ref, d2b_ref,
                     out_ref, pfeat_ref, *, batch):
    f32 = jnp.float32
    bf16 = jnp.bfloat16
    n_img = 2 * batch          # x and next_x go through the conv stack together
    PIX = 25                   # 5x5 conv3 output pixels per image

    # ---- conv2: (n_img*25, 512) @ (512, 64), bias + ReLU ----
    y2 = jnp.dot(p2_ref[...], c2w_ref[...], preferred_element_type=f32)
    y2 = jnp.maximum(y2 + c2b_ref[...], 0.0)
    y2b = y2.astype(bf16)

    # ---- conv3 (k=3, s=1, replicate pad) via constant 0/1 gather matmuls ----
    # g3_ref[p] @ y2b selects, for every output pixel, the neighbour pixel at
    # tap p (index clamping == replicate padding); the 9 taps are concatenated
    # along lanes and contracted with the (576, 64) conv3 weight in one matmul.
    pieces = []
    for p in range(9):
        sel = jnp.dot(g3_ref[p], y2b, preferred_element_type=f32)
        pieces.append(sel.astype(bf16))
    patches3 = jnp.concatenate(pieces, axis=1)               # (n_img*25, 576)
    y3 = jnp.dot(patches3, c3w_ref[...], preferred_element_type=f32)
    y3 = jnp.maximum(y3 + c3b_ref[...], 0.0)                  # (n_img*25, 64)

    # ---- regroup (pixel-major rows) -> per-image 1600-feature rows ----
    for s in range(PIX):
        pfeat_ref[:, 64 * s:64 * (s + 1)] = y3[s * n_img:(s + 1) * n_img, :]

    # ---- Encoder fc1 / fc2, both latents (x and next_x) in one matmul ----
    h1 = jnp.maximum(
        jnp.dot(pfeat_ref[...].astype(bf16), e1w_ref[...],
                preferred_element_type=f32) + e1b_ref[...], 0.0)
    lat = (jnp.dot(h1.astype(bf16), e2w_ref[...], preferred_element_type=f32)
           + e2b_ref[...])                                    # (n_img, L)
    x_l = lat[:batch]
    nx_l = lat[batch:]

    act = act_ref[...]                                        # (B, A) f32

    # ---- Step: relu(fc1(cat[x_l, action])) -> relu(fc2)  (fc1 pre-split) ----
    s1 = jnp.maximum(
        jnp.dot(x_l.astype(bf16), s1wl_ref[...], preferred_element_type=f32)
        + jnp.dot(act.astype(bf16), s1wa_ref[...], preferred_element_type=f32)
        + s1b_ref[...], 0.0)
    nx_l_p = jnp.maximum(
        jnp.dot(s1.astype(bf16), s2w_ref[...], preferred_element_type=f32)
        + s2b_ref[...], 0.0)

    # ---- Decoder: relu(fc1(cat[x_l, nx_l])) -> relu(fc2)  (fc1 pre-split) ----
    d1 = jnp.maximum(
        jnp.dot(x_l.astype(bf16), d1wx_ref[...], preferred_element_type=f32)
        + jnp.dot(nx_l.astype(bf16), d1wn_ref[...], preferred_element_type=f32)
        + d1b_ref[...], 0.0)
    # NOTE: final ReLU on the decoder output is in the PyTorch reference.
    logits = jnp.maximum(
        jnp.dot(d1.astype(bf16), d2w_ref[...], preferred_element_type=f32)
        + d2b_ref[...], 0.0)

    # ---- losses ----
    diff = nx_l_p - nx_l
    row_mean = jnp.sum(diff * diff, axis=1, keepdims=True) * (1.0 / diff.shape[1])
    intrinsic = 0.5 * row_mean                                          # (B,1)
    fwd_loss = jnp.sum(row_mean, axis=0, keepdims=True) * (1.0 / batch)  # (1,1)

    m = jnp.max(logits, axis=1, keepdims=True)
    z = logits - m
    lse = jnp.log(jnp.sum(jnp.exp(z), axis=1, keepdims=True))
    ce = -jnp.sum(act * (z - lse), axis=1, keepdims=True)               # (B,1)
    act_loss = jnp.sum(ce, axis=0, keepdims=True) * (1.0 / batch)       # (1,1)

    # ---- packed, lane-dense output written with slice stores ----
    out_ref[...] = jnp.zeros(out_ref.shape, out_ref.dtype)
    out_ref[0:1, :] = jnp.broadcast_to(fwd_loss, (1, 128))
    out_ref[1:2, :] = jnp.broadcast_to(act_loss, (1, 128))
    out_ref[2:2 + batch, :] = jnp.broadcast_to(intrinsic, (batch, 128))


def _conv3_gather_mats(n_img):
    """(9, 25*n_img, 25*n_img) 0/1 bf16 selection matrices for the 3x3 taps of
    conv3 over a 5x5 grid with replicate padding, row order (pixel, image)."""
    idx = np.arange(25)
    ii, jj = idx // 5, idx % 5
    eye = np.eye(n_img, dtype=np.float32)
    mats = []
    for di in range(3):
        for dj in range(3):
            si = np.clip(ii + di - 1, 0, 4)
            sj = np.clip(jj + dj - 1, 0, 4)
            g = np.zeros((25, 25), np.float32)
            g[np.arange(25), si * 5 + sj] = 1.0
            mats.append(np.kron(g, eye))
    return jnp.asarray(np.stack(mats), jnp.bfloat16)


def icm_core(params, p2, action, batch):
    n_img = 2 * batch
    rows = max(8, ((batch + 2 + 7) // 8) * 8)
    g3 = _conv3_gather_mats(n_img)
    out = pl.pallas_call(
        functools.partial(_icm_core_kernel, batch=batch),
        out_shape=jax.ShapeDtypeStruct((rows, 128), jnp.float32),
        scratch_shapes=[pltpu.VMEM((n_img, 1600), jnp.float32)],
    )(p2, g3, action,
      params["c2_w"], params["c2_b"], params["c3_w"], params["c3_b"],
      params["e1_w"], params["e1_b"], params["e2_w"], params["e2_b"],
      params["s1_wl"], params["s1_wa"], params["s1_b"],
      params["s2_w"], params["s2_b"],
      params["d1_wx"], params["d1_wn"], params["d1_b"],
      params["d2_w"], params["d2_b"])
    return out[2:2 + batch, 0], out[0, 0], out[1, 0]


# ----------------------------------------------------------------------------
# Model: parameters + forward
# ----------------------------------------------------------------------------
def init_params(key, action_dim, latent_dim):
    # TODO(synk): PyTorch uses orthogonal_(gain=sqrt(2)) + zero bias; here a
    # deterministic scaled-normal init of identical layer shapes (architecture
    # and forward math unchanged).  All weights are bf16 for the MXU path;
    # biases stay f32 (f32 accumulation everywhere).
    def lin(k, fan_in, fan_out):
        w = (jax.random.normal(k, (fan_in, fan_out), jnp.float32)
             * jnp.sqrt(2.0 / fan_in)).astype(jnp.bfloat16)
        return w, jnp.zeros((1, fan_out), jnp.float32)

    ks = jax.random.split(key, 11)
    p = {}
    # Conv weights: rows ordered (kh, kw, C_in) to match the NHWC im2col.
    p["c1_w"], p["c1_b"] = lin(ks[0], 8 * 8 * 4, 32)    # Conv2d(4,32,8,4,1, replicate)
    p["c2_w"], p["c2_b"] = lin(ks[1], 4 * 4 * 32, 64)   # Conv2d(32,64,4,2,1, replicate)
    p["c3_w"], p["c3_b"] = lin(ks[2], 3 * 3 * 64, 64)   # Conv2d(64,64,3,1,1, replicate)
    # Encoder.fc1: rows ordered (pixel i*5+j, channel) -> no transpose needed.
    p["e1_w"], p["e1_b"] = lin(ks[3], 1600, 512)
    p["e2_w"], p["e2_b"] = lin(ks[4], 512, latent_dim)  # Encoder.fc2
    # Step.fc1 (latent+action -> 512), stored pre-split to avoid a tiny-K concat.
    p["s1_wl"], p["s1_b"] = lin(ks[5], latent_dim, 512)
    p["s1_wa"], _ = lin(ks[6], action_dim, 512)
    p["s2_w"], p["s2_b"] = lin(ks[7], 512, latent_dim)  # Step.fc2
    # Decoder.fc1 (latent+latent -> 512), stored pre-split.
    p["d1_wx"], p["d1_b"] = lin(ks[8], latent_dim, 512)
    p["d1_wn"], _ = lin(ks[9], latent_dim, 512)
    p["d2_w"], p["d2_b"] = lin(ks[10], 512, action_dim)  # Decoder.fc2
    return p


def icm_forward(params, x, next_x, action):
    B = x.shape[0]
    n_img = 2 * B

    # ---- XLA prep: concat, NHWC, bf16, replicate pad, conv1 im2col --------
    both = jnp.concatenate([x, next_x], axis=0)                    # (2B,4,84,84)
    h = jnp.transpose(both, (0, 2, 3, 1)).astype(jnp.bfloat16)     # NHWC bf16
    hp = jnp.pad(h, ((0, 0), (1, 1), (1, 1), (0, 0)), mode="edge")  # (2B,86,86,4)
    cols = [hp[:, i:i + 77:4, j:j + 77:4, :]                       # k=8, stride=4
            for i in range(8) for j in range(8)]
    p1 = jnp.stack(cols, axis=3).reshape(n_img * 400, 8 * 8 * 4)   # (2B*400,256)

    # ---- Pallas kernel 1: conv1 ----
    y1 = conv1_matmul(p1, params["c1_w"], params["c1_b"])          # (2B*400,32) bf16
    a1 = y1.reshape(n_img, 20, 20, 32)

    # ---- XLA: MaxPool2d(2,2,padding=1) + conv2 im2col (single small fusion) --
    ap = jnp.pad(a1, ((0, 0), (1, 1), (1, 1), (0, 0)),
                 constant_values=-jnp.inf)                          # (2B,22,22,32)
    pooled = jnp.maximum(
        jnp.maximum(ap[:, 0::2, 0::2, :], ap[:, 0::2, 1::2, :]),
        jnp.maximum(ap[:, 1::2, 0::2, :], ap[:, 1::2, 1::2, :]))    # (2B,11,11,32)
    pp = jnp.pad(pooled, ((0, 0), (1, 1), (1, 1), (0, 0)), mode="edge")  # (2B,13,13,32)
    cols2 = [pp[:, i:i + 9:2, j:j + 9:2, :]                          # k=4, stride=2
             for i in range(4) for j in range(4)]
    stk = jnp.stack(cols2, axis=3)                                   # (2B,5,5,16,32)
    # Row order (pixel, image) so kernel 2 can regroup with contiguous slices.
    p2 = jnp.transpose(stk, (1, 2, 0, 3, 4)).reshape(25 * n_img, 4 * 4 * 32)

    # ---- Pallas kernel 2: conv2 + conv3 + FC tail + losses ----
    return icm_core(params, p2, action, B)


# ----------------------------------------------------------------------------
if __name__ == "__main__":
    B, C, H, W = 2, 4, 84, 84      # 84x84 is what Encoder.fc1(1600) = 64*5*5 implies
    ACTION_DIM, LATENT_DIM = 7, 32

    root = jax.random.PRNGKey(0)
    kp, kx, kn, ka = jax.random.split(root, 4)

    params = init_params(kp, ACTION_DIM, LATENT_DIM)
    x = jax.random.normal(kx, (B, C, H, W), jnp.float32)
    next_x = jax.random.normal(kn, (B, C, H, W), jnp.float32)
    act_idx = jax.random.randint(ka, (B,), 0, ACTION_DIM)
    action = jax.nn.one_hot(act_idx, ACTION_DIM, dtype=jnp.float32)  # soft CE target

    fwd = jax.jit(icm_forward)
    intrinsic_reward, forward_loss, action_loss = fwd(params, x, next_x, action)
    jax.block_until_ready((intrinsic_reward, forward_loss, action_loss))

    assert intrinsic_reward.shape == (B,)
    assert forward_loss.shape == () and action_loss.shape == ()
    assert bool(jnp.isfinite(forward_loss)) and bool(jnp.isfinite(action_loss))
    print("KERNEL_OK")
</pallas_src>

<mosaic_0001>
module attributes {stable_mosaic.version = 11 : i64} {
  func.func @_conv1_kernel(%arg0: memref<1600x256xbf16, #tpu.memory_space<vmem>>, %arg1: memref<256x32xbf16, #tpu.memory_space<vmem>>, %arg2: memref<1x32xf32, #tpu.memory_space<vmem>>, %arg3: memref<1600x32xbf16, #tpu.memory_space<vmem>>) attributes {dimension_semantics = [], scalar_prefetch = 0 : i64, scratch_operands = 0 : i64, tpu.core_type = #tpu.core_type<tc>} {
    %c0 = arith.constant 0 : index
    %c0_0 = arith.constant 0 : index
    %0 = vector.load %arg0[%c0, %c0_0] : memref<1600x256xbf16, #tpu.memory_space<vmem>>, vector<1600x256xbf16>
    %c0_1 = arith.constant 0 : index
    %c0_2 = arith.constant 0 : index
    %1 = vector.load %arg1[%c0_1, %c0_2] : memref<256x32xbf16, #tpu.memory_space<vmem>>, vector<256x32xbf16>
    %cst = arith.constant dense<0.000000e+00> : vector<1600x32xf32>
    %2 = tpu.matmul %0, %1, %cst {dimension_numbers = #tpu.dot_dimension_numbers<[1], [0], [0], [1], [0, 0, 1, 1], [], []>} : vector<1600x256xbf16>, vector<256x32xbf16>, vector<1600x32xf32> -> vector<1600x32xf32>
    %c0_3 = arith.constant 0 : index
    %c0_4 = arith.constant 0 : index
    %3 = vector.load %arg2[%c0_3, %c0_4] : memref<1x32xf32, #tpu.memory_space<vmem>>, vector<1x32xf32>
    %4 = vector.broadcast %3 : vector<1x32xf32> to vector<1600x32xf32>
    %5 = arith.addf %2, %4 : vector<1600x32xf32>
    %cst_5 = arith.constant 0.000000e+00 : f32
    %6 = vector.broadcast %cst_5 : f32 to vector<1600x32xf32>
    %7 = arith.maximumf %5, %6 : vector<1600x32xf32>
    %8 = arith.truncf %7 : vector<1600x32xf32> to vector<1600x32xbf16>
    %c0_6 = arith.constant 0 : index
    %c0_7 = arith.constant 0 : index
    %9 = vector.load %arg3[%c0_6, %c0_7] : memref<1600x32xbf16, #tpu.memory_space<vmem>>, vector<1600x32xbf16>
    tpu.vector_store %arg3[%c0_6, %c0_7], %8 {strides = array<i32>} : memref<1600x32xbf16, #tpu.memory_space<vmem>>, vector<1600x32xbf16>,
    return
  }
}

module attributes {stable_mosaic.version = 11 : i64} {
  func.func @_icm_core_kernel(%arg0: memref<100x512xbf16, #tpu.memory_space<vmem>>, %arg1: memref<9x100x100xbf16, #tpu.memory_space<vmem>>, %arg2: memref<2x7xf32, #tpu.memory_space<vmem>>, %arg3: memref<512x64xbf16, #tpu.memory_space<vmem>>, %arg4: memref<1x64xf32, #tpu.memory_space<vmem>>, %arg5: memref<576x64xbf16, #tpu.memory_space<vmem>>, %arg6: memref<1x64xf32, #tpu.memory_space<vmem>>, %arg7: memref<1600x512xbf16, #tpu.memory_space<vmem>>, %arg8: memref<1x512xf32, #tpu.memory_space<vmem>>, %arg9: memref<512x32xbf16, #tpu.memory_space<vmem>>, %arg10: memref<1x32xf32, #tpu.memory_space<vmem>>, %arg11: memref<32x512xbf16, #tpu.memory_space<vmem>>, %arg12: memref<7x512xbf16, #tpu.memory_space<vmem>>, %arg13: memref<1x512xf32, #tpu.memory_space<vmem>>, %arg14: memref<512x32xbf16, #tpu.memory_space<vmem>>, %arg15: memref<1x32xf32, #tpu.memory_space<vmem>>, %arg16: memref<32x512xbf16, #tpu.memory_space<vmem>>, %arg17: memref<32x512xbf16, #tpu.memory_space<vmem>>, %arg18: memref<1x512xf32, #tpu.memory_space<vmem>>, %arg19: memref<512x7xbf16, #tpu.memory_space<vmem>>, %arg20: memref<1x7xf32, #tpu.memory_space<vmem>>, %arg21: memref<8x128xf32, #tpu.memory_space<vmem>>, %arg22: memref<4x1600xf32, #tpu.memory_space<vmem>>) attributes {dimension_semantics = [], scalar_prefetch = 0 : i64, scratch_operands = 1 : i64, tpu.core_type = #tpu.core_type<tc>} {
    %c0 = arith.constant 0 : index
    %c0_0 = arith.constant 0 : index
    %0 = vector.load %arg0[%c0, %c0_0] : memref<100x512xbf16, #tpu.memory_space<vmem>>, vector<100x512xbf16>
    %c0_1 = arith.constant 0 : index
    %c0_2 = arith.constant 0 : index
    %1 = vector.load %arg3[%c0_1, %c0_2] : memref<512x64xbf16, #tpu.memory_space<vmem>>, vector<512x64xbf16>
    %cst = arith.constant dense<0.000000e+00> : vector<100x64xf32>
    %2 = tpu.matmul %0, %1, %cst {dimension_numbers = #tpu.dot_dimension_numbers<[1], [0], [0], [1], [0, 0, 1, 1], [], []>} : vector<100x512xbf16>, vector<512x64xbf16>, vector<100x64xf32> -> vector<100x64xf32>
    %c0_3 = arith.constant 0 : index
    %c0_4 = arith.constant 0 : index
    %3 = vector.load %arg4[%c0_3, %c0_4] : memref<1x64xf32, #tpu.memory_space<vmem>>, vector<1x64xf32>
    %4 = vector.broadcast %3 : vector<1x64xf32> to vector<100x64xf32>
    %5 = arith.addf %2, %4 : vector<100x64xf32>
    %cst_5 = arith.constant 0.000000e+00 : f32
    %6 = vector.broadcast %cst_5 : f32 to vector<100x64xf32>
    %7 = arith.maximumf %5, %6 : vector<100x64xf32>
    %8 = arith.truncf %7 : vector<100x64xf32> to vector<100x64xbf16>
    %c0_6 = arith.constant 0 : index
    %c0_7 = arith.constant 0 : index
    %c0_8 = arith.constant 0 : index
    %9 = vector.load %arg1[%c0_6, %c0_7, %c0_8] : memref<9x100x100xbf16, #tpu.memory_space<vmem>>, vector<1x100x100xbf16>
    %10 = vector.shape_cast %9 : vector<1x100x100xbf16> to vector<100x100xbf16>
    %cst_9 = arith.constant dense<0.000000e+00> : vector<100x64xf32>
    %11 = tpu.matmul %10, %8, %cst_9 {dimension_numbers = #tpu.dot_dimension_numbers<[1], [0], [0], [1], [0, 0, 1, 1], [], []>} : vector<100x100xbf16>, vector<100x64xbf16>, vector<100x64xf32> -> vector<100x64xf32>
    %12 = arith.truncf %11 : vector<100x64xf32> to vector<100x64xbf16>
    %c1 = arith.constant 1 : index
    %c0_10 = arith.constant 0 : index
    %c0_11 = arith.constant 0 : index
    %13 = vector.load %arg1[%c1, %c0_10, %c0_11] : memref<9x100x100xbf16, #tpu.memory_space<vmem>>, vector<1x100x100xbf16>
    %14 = vector.shape_cast %13 : vector<1x100x100xbf16> to vector<100x100xbf16>
    %cst_12 = arith.constant dense<0.000000e+00> : vector<100x64xf32>
    %15 = tpu.matmul %14, %8, %cst_12 {dimension_numbers = #tpu.dot_dimension_numbers<[1], [0], [0], [1], [0, 0, 1, 1], [], []>} : vector<100x100xbf16>, vector<100x64xbf16>, vector<100x64xf32> -> vector<100x64xf32>
    %16 = arith.truncf %15 : vector<100x64xf32> to vector<100x64xbf16>
    %c2 = arith.constant 2 : index
    %c0_13 = arith.constant 0 : index
    %c0_14 = arith.constant 0 : index
    %17 = vector.load %arg1[%c2, %c0_13, %c0_14] : memref<9x100x100xbf16, #tpu.memory_space<vmem>>, vector<1x100x100xbf16>
    %18 = vector.shape_cast %17 : vector<1x100x100xbf16> to vector<100x100xbf16>
    %cst_15 = arith.constant dense<0.000000e+00> : vector<100x64xf32>
    %19 = tpu.matmul %18, %8, %cst_15 {dimension_numbers = #tpu.dot_dimension_numbers<[1], [0], [0], [1], [0, 0, 1, 1], [], []>} : vector<100x100xbf16>, vector<100x64xbf16>, vector<100x64xf32> -> vector<100x64xf32>
    %20 = arith.truncf %19 : vector<100x64xf32> to vector<100x64xbf16>
    %c3 = arith.constant 3 : index
    %c0_16 = arith.constant 0 : index
    %c0_17 = arith.constant 0 : index
    %21 = vector.load %arg1[%c3, %c0_16, %c0_17] : memref<9x100x100xbf16, #tpu.memory_space<vmem>>, vector<1x100x100xbf16>
    %22 = vector.shape_cast %21 : vector<1x100x100xbf16> to vector<100x100xbf16>
    %cst_18 = arith.constant dense<0.000000e+00> : vector<100x64xf32>
    %23 = tpu.matmul %22, %8, %cst_18 {dimension_numbers = #tpu.dot_dimension_numbers<[1], [0], [0], [1], [0, 0, 1, 1], [], []>} : vector<100x100xbf16>, vector<100x64xbf16>, vector<100x64xf32> -> vector<100x64xf32>
    %24 = arith.truncf %23 : vector<100x64xf32> to vector<100x64xbf16>
    %c4 = arith.constant 4 : index
    %c0_19 = arith.constant 0 : index
    %c0_20 = arith.constant 0 : index
    %25 = vector.load %arg1[%c4, %c0_19, %c0_20] : memref<9x100x100xbf16, #tpu.memory_space<vmem>>, vector<1x100x100xbf16>
    %26 = vector.shape_cast %25 : vector<1x100x100xbf16> to vector<100x100xbf16>
    %cst_21 = arith.constant dense<0.000000e+00> : vector<100x64xf32>
    %27 = tpu.matmul %26, %8, %cst_21 {dimension_numbers = #tpu.dot_dimension_numbers<[1], [0], [0], [1], [0, 0, 1, 1], [], []>} : vector<100x100xbf16>, vector<100x64xbf16>, vector<100x64xf32> -> vector<100x64xf32>
    %28 = arith.truncf %27 : vector<100x64xf32> to vector<100x64xbf16>
    %c5 = arith.constant 5 : index
    %c0_22 = arith.constant 0 : index
    %c0_23 = arith.constant 0 : index
    %29 = vector.load %arg1[%c5, %c0_22, %c0_23] : memref<9x100x100xbf16, #tpu.memory_space<vmem>>, vector<1x100x100xbf16>
    %30 = vector.shape_cast %29 : vector<1x100x100xbf16> to vector<100x100xbf16>
    %cst_24 = arith.constant dense<0.000000e+00> : vector<100x64xf32>
    %31 = tpu.matmul %30, %8, %cst_24 {dimension_numbers = #tpu.dot_dimension_numbers<[1], [0], [0], [1], [0, 0, 1, 1], [], []>} : vector<100x100xbf16>, vector<100x64xbf16>, vector<100x64xf32> -> vector<100x64xf32>
    %32 = arith.truncf %31 : vector<100x64xf32> to vector<100x64xbf16>
    %c6 = arith.constant 6 : index
    %c0_25 = arith.constant 0 : index
    %c0_26 = arith.constant 0 : index
    %33 = vector.load %arg1[%c6, %c0_25, %c0_26] : memref<9x100x100xbf16, #tpu.memory_space<vmem>>, vector<1x100x100xbf16>
    %34 = vector.shape_cast %33 : vector<1x100x100xbf16> to vector<100x100xbf16>
    %cst_27 = arith.constant dense<0.000000e+00> : vector<100x64xf32>
    %35 = tpu.matmul %34, %8, %cst_27 {dimension_numbers = #tpu.dot_dimension_numbers<[1], [0], [0], [1], [0, 0, 1, 1], [], []>} : vector<100x100xbf16>, vector<100x64xbf16>, vector<100x64xf32> -> vector<100x64xf32>
    %36 = arith.truncf %35 : vector<100x64xf32> to vector<100x64xbf16>
    %c7 = arith.constant 7 : index
    %c0_28 = arith.constant 0 : index
    %c0_29 = arith.constant 0 : index
    %37 = vector.load %arg1[%c7, %c0_28, %c0_29] : memref<9x100x100xbf16, #tpu.memory_space<vmem>>, vector<1x100x100xbf16>
    %38 = vector.shape_cast %37 : vector<1x100x100xbf16> to vector<100x100xbf16>
    %cst_30 = arith.constant dense<0.000000e+00> : vector<100x64xf32>
    %39 = tpu.matmul %38, %8, %cst_30 {dimension_numbers = #tpu.dot_dimension_numbers<[1], [0], [0], [1], [0, 0, 1, 1], [], []>} : vector<100x100xbf16>, vector<100x64xbf16>, vector<100x64xf32> -> vector<100x64xf32>
    %40 = arith.truncf %39 : vector<100x64xf32> to vector<100x64xbf16>
    %c8 = arith.constant 8 : index
    %c0_31 = arith.constant 0 : index
    %c0_32 = arith.constant 0 : index
    %41 = vector.load %arg1[%c8, %c0_31, %c0_32] : memref<9x100x100xbf16, #tpu.memory_space<vmem>>, vector<1x100x100xbf16>
    %42 = vector.shape_cast %41 : vector<1x100x100xbf16> to vector<100x100xbf16>
    %cst_33 = arith.constant dense<0.000000e+00> : vector<100x64xf32>
    %43 = tpu.matmul %42, %8, %cst_33 {dimension_numbers = #tpu.dot_dimension_numbers<[1], [0], [0], [1], [0, 0, 1, 1], [], []>} : vector<100x100xbf16>, vector<100x64xbf16>, vector<100x64xf32> -> vector<100x64xf32>
    %44 = arith.truncf %43 : vector<100x64xf32> to vector<100x64xbf16>
    %45 = tpu.concatenate %12, %16, %20, %24, %28, %32, %36, %40, %44 in 1 : vector<100x64xbf16>, vector<100x64xbf16>, vector<100x64xbf16>, vector<100x64xbf16>, vector<100x64xbf16>, vector<100x64xbf16>, vector<100x64xbf16>, vector<100x64xbf16>, vector<100x64xbf16> -> vector<100x576xbf16>
    %c0_34 = arith.constant 0 : index
    %c0_35 = arith.constant 0 : index
    %46 = vector.load %arg5[%c0_34, %c0_35] : memref<576x64xbf16, #tpu.memory_space<vmem>>, vector<576x64xbf16>
    %cst_36 = arith.constant dense<0.000000e+00> : vector<100x64xf32>
    %47 = tpu.matmul %45, %46, %cst_36 {dimension_numbers = #tpu.dot_dimension_numbers<[1], [0], [0], [1], [0, 0, 1, 1], [], []>} : vector<100x576xbf16>, vector<576x64xbf16>, vector<100x64xf32> -> vector<100x64xf32>
    %c0_37 = arith.constant 0 : index
    %c0_38 = arith.constant 0 : index
    %48 = vector.load %arg6[%c0_37, %c0_38] : memref<1x64xf32, #tpu.memory_space<vmem>>, vector<1x64xf32>
    %49 = vector.broadcast %48 : vector<1x64xf32> to vector<100x64xf32>
    %50 = arith.addf %47, %49 : vector<100x64xf32>
    %cst_39 = arith.constant 0.000000e+00 : f32
    %51 = vector.broadcast %cst_39 : f32 to vector<100x64xf32>
    %52 = arith.maximumf %50, %51 : vector<100x64xf32>
    %53 = vector.extract_strided_slice %52 {offsets = [0, 0], sizes = [4, 64], strides = [1, 1]} : vector<100x64xf32> to vector<4x64xf32>
    %c0_40 = arith.constant 0 : index
    %c0_41 = arith.constant 0 : index
    %54 = vector.load %arg22[%c0_40, %c0_41] : memref<4x1600xf32, #tpu.memory_space<vmem>>, vector<4x64xf32>
    tpu.vector_store %arg22[%c0_40, %c0_41], %53 {strides = array<i32>} : memref<4x1600xf32, #tpu.memory_space<vmem>>, vector<4x64xf32>,
    %55 = vector.extract_strided_slice %52 {offsets = [4, 0], sizes = [4, 64], strides = [1, 1]} : vector<100x64xf32> to vector<4x64xf32>
    %c0_42 = arith.constant 0 : index
    %c64 = arith.constant 64 : index
    %56 = vector.load %arg22[%c0_42, %c64] : memref<4x1600xf32, #tpu.memory_space<vmem>>, vector<4x64xf32>
    tpu.vector_store %arg22[%c0_42, %c64], %55 {strides = array<i32>} : memref<4x1600xf32, #tpu.memory_space<vmem>>, vector<4x64xf32>,
    %57 = vector.extract_strided_slice %52 {offsets = [8, 0], sizes = [4, 64], strides = [1, 1]} : vector<100x64xf32> to vector<4x64xf32>
    %c0_43 = arith.constant 0 : index
    %c128 = arith.constant 128 : index
    %58 = vector.load %arg22[%c0_43, %c128] : memref<4x1600xf32, #tpu.memory_space<vmem>>, vector<4x64xf32>
    tpu.vector_store %arg22[%c0_43, %c128], %57 {strides = array<i32>} : memref<4x1600xf32, #tpu.memory_space<vmem>>, vector<4x64xf32>,
    %59 = vector.extract_strided_slice %52 {offsets = [12, 0], sizes = [4, 64], strides = [1, 1]} : vector<100x64xf32> to vector<4x64xf32>
    %c0_44 = arith.constant 0 : index
    %c192 = arith.constant 192 : index
    %60 = vector.load %arg22[%c0_44, %c192] : memref<4x1600xf32, #tpu.memory_space<vmem>>, vector<4x64xf32>
    tpu.vector_store %arg22[%c0_44, %c192], %59 {strides = array<i32>} : memref<4x1600xf32, #tpu.memory_space<vmem>>, vector<4x64xf32>,
    %61 = vector.extract_strided_slice %52 {offsets = [16, 0], sizes = [4, 64], strides = [1, 1]} : vector<100x64xf32> to vector<4x64xf32>
    %c0_45 = arith.constant 0 : index
    %c256 = arith.constant 256 : index
    %62 = vector.load %arg22[%c0_45, %c256] : memref<4x1600xf32, #tpu.memory_space<vmem>>, vector<4x64xf32>
    tpu.vector_store %arg22[%c0_45, %c256], %61 {strides = array<i32>} : memref<4x1600xf32, #tpu.memory_space<vmem>>, vector<4x64xf32>,
    %63 = vector.extract_strided_slice %52 {offsets = [20, 0], sizes = [4, 64], strides = [1, 1]} : vector<100x64xf32> to vector<4x64xf32>
    %c0_46 = arith.constant 0 : index
    %c320 = arith.constant 320 : index
    %64 = vector.load %arg22[%c0_46, %c320] : memref<4x1600xf32, #tpu.memory_space<vmem>>, vector<4x64xf32>
    tpu.vector_store %arg22[%c0_46, %c320], %63 {strides = array<i32>} : memref<4x1600xf32, #tpu.memory_space<vmem>>, vector<4x64xf32>,
    %65 = vector.extract_strided_slice %52 {offsets = [24, 0], sizes = [4, 64], strides = [1, 1]} : vector<100x64xf32> to vector<4x64xf32>
    %c0_47 = arith.constant 0 : index
    %c384 = arith.constant 384 : index
    %66 = vector.load %arg22[%c0_47, %c384] : memref<4x1600xf32, #tpu.memory_space<vmem>>, vector<4x64xf32>
    tpu.vector_store %arg22[%c0_47, %c384], %65 {strides = array<i32>} : memref<4x1600xf32, #tpu.memory_space<vmem>>, vector<4x64xf32>,
    %67 = vector.extract_strided_slice %52 {offsets = [28, 0], sizes = [4, 64], strides = [1, 1]} : vector<100x64xf32> to vector<4x64xf32>
    %c0_48 = arith.constant 0 : index
    %c448 = arith.constant 448 : index
    %68 = vector.load %arg22[%c0_48, %c448] : memref<4x1600xf32, #tpu.memory_space<vmem>>, vector<4x64xf32>
    tpu.vector_store %arg22[%c0_48, %c448], %67 {strides = array<i32>} : memref<4x1600xf32, #tpu.memory_space<vmem>>, vector<4x64xf32>,
    %69 = vector.extract_strided_slice %52 {offsets = [32, 0], sizes = [4, 64], strides = [1, 1]} : vector<100x64xf32> to vector<4x64xf32>
    %c0_49 = arith.constant 0 : index
    %c512 = arith.constant 512 : index
    %70 = vector.load %arg22[%c0_49, %c512] : memref<4x1600xf32, #tpu.memory_space<vmem>>, vector<4x64xf32>
    tpu.vector_store %arg22[%c0_49, %c512], %69 {strides = array<i32>} : memref<4x1600xf32, #tpu.memory_space<vmem>>, vector<4x64xf32>,
    %71 = vector.extract_strided_slice %52 {offsets = [36, 0], sizes = [4, 64], strides = [1, 1]} : vector<100x64xf32> to vector<4x64xf32>
    %c0_50 = arith.constant 0 : index
    %c576 = arith.constant 576 : index
    %72 = vector.load %arg22[%c0_50, %c576] : memref<4x1600xf32, #tpu.memory_space<vmem>>, vector<4x64xf32>
    tpu.vector_store %arg22[%c0_50, %c576], %71 {strides = array<i32>} : memref<4x1600xf32, #tpu.memory_space<vmem>>, vector<4x64xf32>,
    %73 = vector.extract_strided_slice %52 {offsets = [40, 0], sizes = [4, 64], strides = [1, 1]} : vector<100x64xf32> to vector<4x64xf32>
    %c0_51 = arith.constant 0 : index
    %c640 = arith.constant 640 : index
    %74 = vector.load %arg22[%c0_51, %c640] : memref<4x1600xf32, #tpu.memory_space<vmem>>, vector<4x64xf32>
    tpu.vector_store %arg22[%c0_51, %c640], %73 {strides = array<i32>} : memref<4x1600xf32, #tpu.memory_space<vmem>>, vector<4x64xf32>,
    %75 = vector.extract_strided_slice %52 {offsets = [44, 0], sizes = [4, 64], strides = [1, 1]} : vector<100x64xf32> to vector<4x64xf32>
    %c0_52 = arith.constant 0 : index
    %c704 = arith.constant 704 : index
    %76 = vector.load %arg22[%c0_52, %c704] : memref<4x1600xf32, #tpu.memory_space<vmem>>, vector<4x64xf32>
    tpu.vector_store %arg22[%c0_52, %c704], %75 {strides = array<i32>} : memref<4x1600xf32, #tpu.memory_space<vmem>>, vector<4x64xf32>,
    %77 = vector.extract_strided_slice %52 {offsets = [48, 0], sizes = [4, 64], strides = [1, 1]} : vector<100x64xf32> to vector<4x64xf32>
    %c0_53 = arith.constant 0 : index
    %c768 = arith.constant 768 : index
    %78 = vector.load %arg22[%c0_53, %c768] : memref<4x1600xf32, #tpu.memory_space<vmem>>, vector<4x64xf32>
    tpu.vector_store %arg22[%c0_53, %c768], %77 {strides = array<i32>} : memref<4x1600xf32, #tpu.memory_space<vmem>>, vector<4x64xf32>,
    %79 = vector.extract_strided_slice %52 {offsets = [52, 0], sizes = [4, 64], strides = [1, 1]} : vector<100x64xf32> to vector<4x64xf32>
    %c0_54 = arith.constant 0 : index
    %c832 = arith.constant 832 : index
    %80 = vector.load %arg22[%c0_54, %c832] : memref<4x1600xf32, #tpu.memory_space<vmem>>, vector<4x64xf32>
    tpu.vector_store %arg22[%c0_54, %c832], %79 {strides = array<i32>} : memref<4x1600xf32, #tpu.memory_space<vmem>>, vector<4x64xf32>,
    %81 = vector.extract_strided_slice %52 {offsets = [56, 0], sizes = [4, 64], strides = [1, 1]} : vector<100x64xf32> to vector<4x64xf32>
    %c0_55 = arith.constant 0 : index
    %c896 = arith.constant 896 : index
    %82 = vector.load %arg22[%c0_55, %c896] : memref<4x1600xf32, #tpu.memory_space<vmem>>, vector<4x64xf32>
    tpu.vector_store %arg22[%c0_55, %c896], %81 {strides = array<i32>} : memref<4x1600xf32, #tpu.memory_space<vmem>>, vector<4x64xf32>,
    %83 = vector.extract_strided_slice %52 {offsets = [60, 0], sizes = [4, 64], strides = [1, 1]} : vector<100x64xf32> to vector<4x64xf32>
    %c0_56 = arith.constant 0 : index
    %c960 = arith.constant 960 : index
    %84 = vector.load %arg22[%c0_56, %c960] : memref<4x1600xf32, #tpu.memory_space<vmem>>, vector<4x64xf32>
    tpu.vector_store %arg22[%c0_56, %c960], %83 {strides = array<i32>} : memref<4x1600xf32, #tpu.memory_space<vmem>>, vector<4x64xf32>,
    %85 = vector.extract_strided_slice %52 {offsets = [64, 0], sizes = [4, 64], strides = [1, 1]} : vector<100x64xf32> to vector<4x64xf32>
    %c0_57 = arith.constant 0 : index
    %c1024 = arith.constant 1024 : index
    %86 = vector.load %arg22[%c0_57, %c1024] : memref<4x1600xf32, #tpu.memory_space<vmem>>, vector<4x64xf32>
    tpu.vector_store %arg22[%c0_57, %c1024], %85 {strides = array<i32>} : memref<4x1600xf32, #tpu.memory_space<vmem>>, vector<4x64xf32>,
    %87 = vector.extract_strided_slice %52 {offsets = [68, 0], sizes = [4, 64], strides = [1, 1]} : vector<100x64xf32> to vector<4x64xf32>
    %c0_58 = arith.constant 0 : index
    %c1088 = arith.constant 1088 : index
    %88 = vector.load %arg22[%c0_58, %c1088] : memref<4x1600xf32, #tpu.memory_space<vmem>>, vector<4x64xf32>
    tpu.vector_store %arg22[%c0_58, %c1088], %87 {strides = array<i32>} : memref<4x1600xf32, #tpu.memory_space<vmem>>, vector<4x64xf32>,
    %89 = vector.extract_strided_slice %52 {offsets = [72, 0], sizes = [4, 64], strides = [1, 1]} : vector<100x64xf32> to vector<4x64xf32>
    %c0_59 = arith.constant 0 : index
    %c1152 = arith.constant 1152 : index
    %90 = vector.load %arg22[%c0_59, %c1152] : memref<4x1600xf32, #tpu.memory_space<vmem>>, vector<4x64xf32>
    tpu.vector_store %arg22[%c0_59, %c1152], %89 {strides = array<i32>} : memref<4x1600xf32, #tpu.memory_space<vmem>>, vector<4x64xf32>,
    %91 = vector.extract_strided_slice %52 {offsets = [76, 0], sizes = [4, 64], strides = [1, 1]} : vector<100x64xf32> to vector<4x64xf32>
    %c0_60 = arith.constant 0 : index
    %c1216 = arith.constant 1216 : index
    %92 = vector.load %arg22[%c0_60, %c1216] : memref<4x1600xf32, #tpu.memory_space<vmem>>, vector<4x64xf32>
    tpu.vector_store %arg22[%c0_60, %c1216], %91 {strides = array<i32>} : memref<4x1600xf32, #tpu.memory_space<vmem>>, vector<4x64xf32>,
    %93 = vector.extract_strided_slice %52 {offsets = [80, 0], sizes = [4, 64], strides = [1, 1]} : vector<100x64xf32> to vector<4x64xf32>
    %c0_61 = arith.constant 0 : index
    %c1280 = arith.constant 1280 : index
    %94 = vector.load %arg22[%c0_61, %c1280] : memref<4x1600xf32, #tpu.memory_space<vmem>>, vector<4x64xf32>
    tpu.vector_store %arg22[%c0_61, %c1280], %93 {strides = array<i32>} : memref<4x1600xf32, #tpu.memory_space<vmem>>, vector<4x64xf32>,
    %95 = vector.extract_strided_slice %52 {offsets = [84, 0], sizes = [4, 64], strides = [1, 1]} : vector<100x64xf32> to vector<4x64xf32>
    %c0_62 = arith.constant 0 : index
    %c1344 = arith.constant 1344 : index
    %96 = vector.load %arg22[%c0_62, %c1344] : memref<4x1600xf32, #tpu.memory_space<vmem>>, vector<4x64xf32>
    tpu.vector_store %arg22[%c0_62, %c1344], %95 {strides = array<i32>} : memref<4x1600xf32, #tpu.memory_space<vmem>>, vector<4x64xf32>,
    %97 = vector.extract_strided_slice %52 {offsets = [88, 0], sizes = [4, 64], strides = [1, 1]} : vector<100x64xf32> to vector<4x64xf32>
    %c0_63 = arith.constant 0 : index
    %c1408 = arith.constant 1408 : index
    %98 = vector.load %arg22[%c0_63, %c1408] : memref<4x1600xf32, #tpu.memory_space<vmem>>, vector<4x64xf32>
    tpu.vector_store %arg22[%c0_63, %c1408], %97 {strides = array<i32>} : memref<4x1600xf32, #tpu.memory_space<vmem>>, vector<4x64xf32>,
    %99 = vector.extract_strided_slice %52 {offsets = [92, 0], sizes = [4, 64], strides = [1, 1]} : vector<100x64xf32> to vector<4x64xf32>
    %c0_64 = arith.constant 0 : index
    %c1472 = arith.constant 1472 : index
    %100 = vector.load %arg22[%c0_64, %c1472] : memref<4x1600xf32, #tpu.memory_space<vmem>>, vector<4x64xf32>
    tpu.vector_store %arg22[%c0_64, %c1472], %99 {strides = array<i32>} : memref<4x1600xf32, #tpu.memory_space<vmem>>, vector<4x64xf32>,
    %101 = vector.extract_strided_slice %52 {offsets = [96, 0], sizes = [4, 64], strides = [1, 1]} : vector<100x64xf32> to vector<4x64xf32>
    %c0_65 = arith.constant 0 : index
    %c1536 = arith.constant 1536 : index
    %102 = vector.load %arg22[%c0_65, %c1536] : memref<4x1600xf32, #tpu.memory_space<vmem>>, vector<4x64xf32>
    tpu.vector_store %arg22[%c0_65, %c1536], %101 {strides = array<i32>} : memref<4x1600xf32, #tpu.memory_space<vmem>>, vector<4x64xf32>,
    %c0_66 = arith.constant 0 : index
    %c0_67 = arith.constant 0 : index
    %103 = vector.load %arg22[%c0_66, %c0_67] : memref<4x1600xf32, #tpu.memory_space<vmem>>, vector<4x1600xf32>
    %104 = arith.truncf %103 : vector<4x1600xf32> to vector<4x1600xbf16>
    %c0_68 = arith.constant 0 : index
    %c0_69 = arith.constant 0 : index
    %105 = vector.load %arg7[%c0_68, %c0_69] : memref<1600x512xbf16, #tpu.memory_space<vmem>>, vector<1600x512xbf16>
    %cst_70 = arith.constant dense<0.000000e+00> : vector<4x512xf32>
    %106 = tpu.matmul %104, %105, %cst_70 {dimension_numbers = #tpu.dot_dimension_numbers<[1], [0], [0], [1], [0, 0, 1, 1], [], []>} : vector<4x1600xbf16>, vector<1600x512xbf16>, vector<4x512xf32> -> vector<4x512xf32>
    %c0_71 = arith.constant 0 : index
    %c0_72 = arith.constant 0 : index
    %107 = vector.load %arg8[%c0_71, %c0_72] : memref<1x512xf32, #tpu.memory_space<vmem>>, vector<1x512xf32>
    %108 = vector.broadcast %107 : vector<1x512xf32> to vector<4x512xf32>
    %109 = arith.addf %106, %108 : vector<4x512xf32>
    %cst_73 = arith.constant 0.000000e+00 : f32
    %110 = vector.broadcast %cst_73 : f32 to vector<4x512xf32>
    %111 = arith.maximumf %109, %110 : vector<4x512xf32>
    %112 = arith.truncf %111 : vector<4x512xf32> to vector<4x512xbf16>
    %c0_74 = arith.constant 0 : index
    %c0_75 = arith.constant 0 : index
    %113 = vector.load %arg9[%c0_74, %c0_75] : memref<512x32xbf16, #tpu.memory_space<vmem>>, vector<512x32xbf16>
    %cst_76 = arith.constant dense<0.000000e+00> : vector<4x32xf32>
    %114 = tpu.matmul %112, %113, %cst_76 {dimension_numbers = #tpu.dot_dimension_numbers<[1], [0], [0], [1], [0, 0, 1, 1], [], []>} : vector<4x512xbf16>, vector<512x32xbf16>, vector<4x32xf32> -> vector<4x32xf32>
    %c0_77 = arith.constant 0 : index
    %c0_78 = arith.constant 0 : index
    %115 = vector.load %arg10[%c0_77, %c0_78] : memref<1x32xf32, #tpu.memory_space<vmem>>, vector<1x32xf32>
    %116 = vector.broadcast %115 : vector<1x32xf32> to vector<4x32xf32>
    %117 = arith.addf %114, %116 : vector<4x32xf32>
    %118 = vector.extract_strided_slice %117 {offsets = [0, 0], sizes = [2, 32], strides = [1, 1]} : vector<4x32xf32> to vector<2x32xf32>
    %119 = vector.extract_strided_slice %117 {offsets = [2, 0], sizes = [2, 32], strides = [1, 1]} : vector<4x32xf32> to vector<2x32xf32>
    %c0_79 = arith.constant 0 : index
    %c0_80 = arith.constant 0 : index
    %120 = vector.load %arg2[%c0_79, %c0_80] : memref<2x7xf32, #tpu.memory_space<vmem>>, vector<2x7xf32>
    %121 = arith.truncf %118 : vector<2x32xf32> to vector<2x32xbf16>
    %c0_81 = arith.constant 0 : index
    %c0_82 = arith.constant 0 : index
    %122 = vector.load %arg11[%c0_81, %c0_82] : memref<32x512xbf16, #tpu.memory_space<vmem>>, vector<32x512xbf16>
    %cst_83 = arith.constant dense<0.000000e+00> : vector<2x512xf32>
    %123 = tpu.matmul %121, %122, %cst_83 {dimension_numbers = #tpu.dot_dimension_numbers<[1], [0], [0], [1], [0, 0, 1, 1], [], []>} : vector<2x32xbf16>, vector<32x512xbf16>, vector<2x512xf32> -> vector<2x512xf32>
    %124 = arith.truncf %120 : vector<2x7xf32> to vector<2x7xbf16>
    %c0_84 = arith.constant 0 : index
    %c0_85 = arith.constant 0 : index
    %125 = vector.load %arg12[%c0_84, %c0_85] : memref<7x512xbf16, #tpu.memory_space<vmem>>, vector<7x512xbf16>
    %cst_86 = arith.constant dense<0.000000e+00> : vector<2x512xf32>
    %126 = tpu.matmul %124, %125, %cst_86 {dimension_numbers = #tpu.dot_dimension_numbers<[1], [0], [0], [1], [0, 0, 1, 1], [], []>} : vector<2x7xbf16>, vector<7x512xbf16>, vector<2x512xf32> -> vector<2x512xf32>
    %127 = arith.addf %123, %126 : vector<2x512xf32>
    %c0_87 = arith.constant 0 : index
    %c0_88 = arith.constant 0 : index
    %128 = vector.load %arg13[%c0_87, %c0_88] : memref<1x512xf32, #tpu.memory_space<vmem>>, vector<1x512xf32>
    %129 = vector.broadcast %128 : vector<1x512xf32> to vector<2x512xf32>
    %130 = arith.addf %127, %129 : vector<2x512xf32>
    %cst_89 = arith.constant 0.000000e+00 : f32
    %131 = vector.broadcast %cst_89 : f32 to vector<2x512xf32>
    %132 = arith.maximumf %130, %131 : vector<2x512xf32>
    %133 = arith.truncf %132 : vector<2x512xf32> to vector<2x512xbf16>
    %c0_90 = arith.constant 0 : index
    %c0_91 = arith.constant 0 : index
    %134 = vector.load %arg14[%c0_90, %c0_91] : memref<512x32xbf16, #tpu.memory_space<vmem>>, vector<512x32xbf16>
    %cst_92 = arith.constant dense<0.000000e+00> : vector<2x32xf32>
    %135 = tpu.matmul %133, %134, %cst_92 {dimension_numbers = #tpu.dot_dimension_numbers<[1], [0], [0], [1], [0, 0, 1, 1], [], []>} : vector<2x512xbf16>, vector<512x32xbf16>, vector<2x32xf32> -> vector<2x32xf32>
    %c0_93 = arith.constant 0 : index
    %c0_94 = arith.constant 0 : index
    %136 = vector.load %arg15[%c0_93, %c0_94] : memref<1x32xf32, #tpu.memory_space<vmem>>, vector<1x32xf32>
    %137 = vector.broadcast %136 : vector<1x32xf32> to vector<2x32xf32>
    %138 = arith.addf %135, %137 : vector<2x32xf32>
    %cst_95 = arith.constant 0.000000e+00 : f32
    %139 = vector.broadcast %cst_95 : f32 to vector<2x32xf32>
    %140 = arith.maximumf %138, %139 : vector<2x32xf32>
    %141 = arith.truncf %118 : vector<2x32xf32> to vector<2x32xbf16>
    %c0_96 = arith.constant 0 : index
    %c0_97 = arith.constant 0 : index
    %142 = vector.load %arg16[%c0_96, %c0_97] : memref<32x512xbf16, #tpu.memory_space<vmem>>, vector<32x512xbf16>
    %cst_98 = arith.constant dense<0.000000e+00> : vector<2x512xf32>
    %143 = tpu.matmul %141, %142, %cst_98 {dimension_numbers = #tpu.dot_dimension_numbers<[1], [0], [0], [1], [0, 0, 1, 1], [], []>} : vector<2x32xbf16>, vector<32x512xbf16>, vector<2x512xf32> -> vector<2x512xf32>
    %144 = arith.truncf %119 : vector<2x32xf32> to vector<2x32xbf16>
    %c0_99 = arith.constant 0 : index
    %c0_100 = arith.constant 0 : index
    %145 = vector.load %arg17[%c0_99, %c0_100] : memref<32x512xbf16, #tpu.memory_space<vmem>>, vector<32x512xbf16>
    %cst_101 = arith.constant dense<0.000000e+00> : vector<2x512xf32>
    %146 = tpu.matmul %144, %145, %cst_101 {dimension_numbers = #tpu.dot_dimension_numbers<[1], [0], [0], [1], [0, 0, 1, 1], [], []>} : vector<2x32xbf16>, vector<32x512xbf16>, vector<2x512xf32> -> vector<2x512xf32>
    %147 = arith.addf %143, %146 : vector<2x512xf32>
    %c0_102 = arith.constant 0 : index
    %c0_103 = arith.constant 0 : index
    %148 = vector.load %arg18[%c0_102, %c0_103] : memref<1x512xf32, #tpu.memory_space<vmem>>, vector<1x512xf32>
    %149 = vector.broadcast %148 : vector<1x512xf32> to vector<2x512xf32>
    %150 = arith.addf %147, %149 : vector<2x512xf32>
    %cst_104 = arith.constant 0.000000e+00 : f32
    %151 = vector.broadcast %cst_104 : f32 to vector<2x512xf32>
    %152 = arith.maximumf %150, %151 : vector<2x512xf32>
    %153 = arith.truncf %152 : vector<2x512xf32> to vector<2x512xbf16>
    %c0_105 = arith.constant 0 : index
    %c0_106 = arith.constant 0 : index
    %154 = vector.load %arg19[%c0_105, %c0_106] : memref<512x7xbf16, #tpu.memory_space<vmem>>, vector<512x7xbf16>
    %cst_107 = arith.constant dense<0.000000e+00> : vector<2x7xf32>
    %155 = tpu.matmul %153, %154, %cst_107 {dimension_numbers = #tpu.dot_dimension_numbers<[1], [0], [0], [1], [0, 0, 1, 1], [], []>} : vector<2x512xbf16>, vector<512x7xbf16>, vector<2x7xf32> -> vector<2x7xf32>
    %c0_108 = arith.constant 0 : index
    %c0_109 = arith.constant 0 : index
    %156 = vector.load %arg20[%c0_108, %c0_109] : memref<1x7xf32, #tpu.memory_space<vmem>>, vector<1x7xf32>
    %157 = vector.broadcast %156 : vector<1x7xf32> to vector<2x7xf32>
    %158 = arith.addf %155, %157 : vector<2x7xf32>
    %cst_110 = arith.constant 0.000000e+00 : f32
    %159 = vector.broadcast %cst_110 : f32 to vector<2x7xf32>
    %160 = arith.maximumf %158, %159 : vector<2x7xf32>
    %161 = arith.subf %140, %119 : vector<2x32xf32>
    %162 = arith.mulf %161, %161 : vector<2x32xf32>
    %cst_111 = arith.constant dense<0.000000e+00> : vector<2xf32>
    %163 = vector.multi_reduction <add>, %162, %cst_111 [1] : vector<2x32xf32> to vector<2xf32>
    %164 = vector.shape_cast %163 : vector<2xf32> to vector<2x1xf32>
    %cst_112 = arith.constant 3.125000e-02 : f32
    %165 = vector.broadcast %cst_112 : f32 to vector<2x1xf32>
    %166 = arith.mulf %164, %165 : vector<2x1xf32>
    %cst_113 = arith.constant 5.000000e-01 : f32
    %167 = vector.broadcast %cst_113 : f32 to vector<2x1xf32>
    %168 = arith.mulf %167, %166 : vector<2x1xf32>
    %cst_114 = arith.constant dense<0.000000e+00> : vector<1xf32>
    %169 = vector.multi_reduction <add>, %166, %cst_114 [0] : vector<2x1xf32> to vector<1xf32>
    %170 = vector.shape_cast %169 : vector<1xf32> to vector<1x1xf32>
    %cst_115 = arith.constant 5.000000e-01 : f32
    %171 = vector.broadcast %cst_115 : f32 to vector<1x1xf32>
    %172 = arith.mulf %170, %171 : vector<1x1xf32>
    %cst_116 = arith.constant dense<0xFF800000> : vector<2xf32>
    %173 = vector.multi_reduction <maximumf>, %160, %cst_116 [1] : vector<2x7xf32> to vector<2xf32>
    %174 = vector.shape_cast %173 : vector<2xf32> to vector<2x1xf32>
    %175 = vector.broadcast %174 : vector<2x1xf32> to vector<2x7xf32>
    %176 = arith.subf %160, %175 : vector<2x7xf32>
    %177 = math.exp %176 : vector<2x7xf32>
    %cst_117 = arith.constant dense<0.000000e+00> : vector<2xf32>
    %178 = vector.multi_reduction <add>, %177, %cst_117 [1] : vector<2x7xf32> to vector<2xf32>
    %179 = vector.shape_cast %178 : vector<2xf32> to vector<2x1xf32>
    %180 = math.log %179 : vector<2x1xf32>
    %181 = vector.broadcast %180 : vector<2x1xf32> to vector<2x7xf32>
    %182 = arith.subf %176, %181 : vector<2x7xf32>
    %183 = arith.mulf %120, %182 : vector<2x7xf32>
    %cst_118 = arith.constant dense<0.000000e+00> : vector<2xf32>
    %184 = vector.multi_reduction <add>, %183, %cst_118 [1] : vector<2x7xf32> to vector<2xf32>
    %185 = vector.shape_cast %184 : vector<2xf32> to vector<2x1xf32>
    %cst_119 = arith.constant 0.000000e+00 : f32
    %186 = vector.broadcast %cst_119 : f32 to vector<2x1xf32>
    %187 = arith.subf %186, %185 : vector<2x1xf32>
    %cst_120 = arith.constant dense<0.000000e+00> : vector<1xf32>
    %188 = vector.multi_reduction <add>, %187, %cst_120 [0] : vector<2x1xf32> to vector<1xf32>
    %189 = vector.shape_cast %188 : vector<1xf32> to vector<1x1xf32>
    %cst_121 = arith.constant 5.000000e-01 : f32
    %190 = vector.broadcast %cst_121 : f32 to vector<1x1xf32>
    %191 = arith.mulf %189, %190 : vector<1x1xf32>
    %cst_122 = arith.constant 0.000000e+00 : f32
    %192 = vector.broadcast %cst_122 : f32 to vector<8x128xf32>
    %c0_123 = arith.constant 0 : index
    %c0_124 = arith.constant 0 : index
    %193 = vector.load %arg21[%c0_123, %c0_124] : memref<8x128xf32, #tpu.memory_space<vmem>>, vector<8x128xf32>
    tpu.vector_store %arg21[%c0_123, %c0_124], %192 {strides = array<i32>} : memref<8x128xf32, #tpu.memory_space<vmem>>, vector<8x128xf32>,
    %194 = vector.shape_cast %172 : vector<1x1xf32> to vector<1x1xf32>
    %195 = vector.broadcast %194 : vector<1x1xf32> to vector<1x128xf32>
    %c0_125 = arith.constant 0 : index
    %c0_126 = arith.constant 0 : index
    %196 = vector.load %arg21[%c0_125, %c0_126] : memref<8x128xf32, #tpu.memory_space<vmem>>, vector<1x128xf32>
    tpu.vector_store %arg21[%c0_125, %c0_126], %195 {strides = array<i32>} : memref<8x128xf32, #tpu.memory_space<vmem>>, vector<1x128xf32>,
    %197 = vector.shape_cast %191 : vector<1x1xf32> to vector<1x1xf32>
    %198 = vector.broadcast %197 : vector<1x1xf32> to vector<1x128xf32>
    %c1_127 = arith.constant 1 : index
    %c0_128 = arith.constant 0 : index
    %199 = vector.load %arg21[%c1_127, %c0_128] : memref<8x128xf32, #tpu.memory_space<vmem>>, vector<1x128xf32>
    tpu.vector_store %arg21[%c1_127, %c0_128], %198 {strides = array<i32>} : memref<8x128xf32, #tpu.memory_space<vmem>>, vector<1x128xf32>,
    %200 = vector.shape_cast %168 : vector<2x1xf32> to vector<2x1xf32>
    %201 = vector.broadcast %200 : vector<2x1xf32> to vector<2x128xf32>
    %c2_129 = arith.constant 2 : index
    %c0_130 = arith.constant 0 : index
    %202 = vector.load %arg21[%c2_129, %c0_130] : memref<8x128xf32, #tpu.memory_space<vmem>>, vector<2x128xf32>
    tpu.vector_store %arg21[%c2_129, %c0_130], %201 {strides = array<i32>} : memref<8x128xf32, #tpu.memory_space<vmem>>, vector<2x128xf32>,
    return
  }
}

</mosaic_0001>

<bundles_post_ra>
// kernel: icm_forward.2
= control target key start
LH: loop header
LB: loop body
LE: loop exit
PB: predicated region body
PF: predicated region fallthrough
CT: control target
= control target key end

     0   :  { %v4356_v0 = vmov 0   ;;  %vm3183_vm0 = vcmask 257024   ;;  %s6072_s1 = inlined_call_operand.vmem [shape: bf16[256,32], index: 1, kind: input, shape index: {}]   ;;  %s6073_s0 = inlined_call_operand.vmem [shape: bf16[1600,256], index: 0, kind: input, shape index: {}]   ;;  %s6074_s2 = inlined_call_operand.vmem [shape: f32[1,32], index: 2, kind: input, shape index: {}]   ;;  %s6075_s3 = inlined_call_operand.vmem [shape: bf16[1600,32], index: 3, kind: output, shape index: {}]  }
   0x1   :  { %1350 = vmatprep.subr.bf16.mxu0 %v4356_v0  ;;  %4005 = vmatprep.subr.bf16.mxu1 %v4356_v0  ;;  %v4038_v1 = vld [vmem:[%s6072_s1] sm:$0xff]   ;;  %v4039_v2 = vld [vmem:[%s6072_s1 + $0x8] sm:$0xff]   ;;  %v4040_v3 = vld [vmem:[%s6072_s1 + $0x10] sm:$0xff]  }
   0x2   :  { %1351 = vmatpush1.bf16.msra.mxu0 %v4038_v1  ;;  %4021 = vmatpush1.bf16.msra.mxu1 %v4038_v1  ;;  %v4041_v4 = vld [vmem:[%s6072_s1 + $0x18] sm:$0xff]   ;;  %v4042_v5 = vld [vmem:[%s6072_s1 + $0x20] sm:$0xff]   ;;  %v4043_v7 = vld [vmem:[%s6072_s1 + $0x28] sm:$0xff]  }
   0x3   :  { %1352 = vmatprep.subr.bf16.mxu0 %v4356_v0  ;;  %4006 = vmatprep.subr.bf16.mxu1 %v4356_v0  ;;  %v4056_v6 = vld [vmem:[%s6073_s0 + $0x4] ss:$8 sps:$4 sm:$0xff]   ;;  %v4044_v9 = vld [vmem:[%s6072_s1 + $0x30] sm:$0xff]   ;;  %v4045_v10 = vld [vmem:[%s6072_s1 + $0x38] sm:$0xff]  }
   0x4   :  { %v4059_v8 = vld [vmem:[%s6073_s0 + $0x324] ss:$8 sps:$4 sm:$0xff]   ;;  %1382 = vmatprep.mubr.bf16.mxu0 %v4056_v6  ;;  %v4048_v13 = vld [vmem:[%s6072_s1 + $0x50] sm:$0xff]   ;;  %v4049_v14 = vld [vmem:[%s6072_s1 + $0x58] sm:$0xff]  }
   0x5   :  { %1782 = vmatprep.mubr.bf16.mxu1 %v4059_v8  ;;  %v4046_v11 = vld [vmem:[%s6072_s1 + $0x40] sm:$0xff]   ;;  %v4047_v12 = vld [vmem:[%s6072_s1 + $0x48] sm:$0xff]   ;;  %v4052_v17 = vld [vmem:[%s6072_s1 + $0x70] sm:$0xff]  }
   0x6   :  { %1353 = vmatpush1.bf16.msra.mxu0 %v4039_v2  ;;  %4022 = vmatpush1.bf16.msra.mxu1 %v4039_v2  ;;  %v4050_v15 = vld [vmem:[%s6072_s1 + $0x60] sm:$0xff]   ;;  %v4051_v16 = vld [vmem:[%s6072_s1 + $0x68] sm:$0xff]   ;;  %v4053_v18 = vld [vmem:[%s6072_s1 + $0x78] sm:$0xff]  }
   0x7   :  { %1354 = vmatprep.subr.bf16.mxu0 %v4356_v0  ;;  %4007 = vmatprep.subr.bf16.mxu1 %v4356_v0  ;;  %v4054_v19 = vld [vmem:[%s6073_s0] ss:$8 sps:$4 sm:$0xff]   ;;  %v4060_v21 = vld [vmem:[%s6073_s0 + $0x14] ss:$8 sps:$4 sm:$0xff]   ;;  %v4064_v23 = vld [vmem:[%s6073_s0 + $0x10] ss:$8 sps:$4 sm:$0xff]  }
   0x8   :  { %v4057_v20 = vld [vmem:[%s6073_s0 + $0x320] ss:$8 sps:$4 sm:$0xff]   ;;  %v4062_v22 = vld [vmem:[%s6073_s0 + $0x334] ss:$8 sps:$4 sm:$0xff]   ;;  %v4065_v24 = vld [vmem:[%s6073_s0 + $0x330] ss:$8 sps:$4 sm:$0xff]  }
   0x9   :  { %v4066_v25 = vld [vmem:[%s6073_s0 + $0x24] ss:$8 sps:$4 sm:$0xff]   ;;  %v4070_v27 = vld [vmem:[%s6073_s0 + $0x20] ss:$8 sps:$4 sm:$0xff]   ;;  %v4072_v29 = vld [vmem:[%s6073_s0 + $0x34] ss:$8 sps:$4 sm:$0xff]  }
   0xa   :  { %1355 = vmatpush1.bf16.msra.mxu0 %v4040_v3  ;;  %4023 = vmatpush1.bf16.msra.mxu1 %v4040_v3  ;;  %v4068_v26 = vld [vmem:[%s6073_s0 + $0x344] ss:$8 sps:$4 sm:$0xff]   ;;  %v4071_v28 = vld [vmem:[%s6073_s0 + $0x340] ss:$8 sps:$4 sm:$0xff]   ;;  %v4074_v30 = vld [vmem:[%s6073_s0 + $0x354] ss:$8 sps:$4 sm:$0xff]  }
   0xb   :  { %1356 = vmatprep.subr.bf16.mxu0 %v4356_v0  ;;  %4008 = vmatprep.subr.bf16.mxu1 %v4356_v0  ;;  %v4076_v31 = vld [vmem:[%s6073_s0 + $0x30] ss:$8 sps:$4 sm:$0xff]   ;;  %v4078_v33 = vld [vmem:[%s6073_s0 + $0x44] ss:$8 sps:$4 sm:$0xff]   ;;  %v4082_v35 = vld [vmem:[%s6073_s0 + $0x40] ss:$8 sps:$4 sm:$0xff]  }
   0xc   :  { %v4077_v32 = vld [vmem:[%s6073_s0 + $0x350] ss:$8 sps:$4 sm:$0xff]   ;;  %v4080_v34 = vld [vmem:[%s6073_s0 + $0x364] ss:$8 sps:$4 sm:$0xff]   ;;  %v4083_v36 = vld [vmem:[%s6073_s0 + $0x360] ss:$8 sps:$4 sm:$0xff]  }
   0xd   :  { %v4084_v37 = vld [vmem:[%s6073_s0 + $0x54] ss:$8 sps:$4 sm:$0xff]   ;;  %v4088_v39 = vld [vmem:[%s6073_s0 + $0x50] ss:$8 sps:$4 sm:$0xff]   ;;  %v4090_v41 = vld [vmem:[%s6073_s0 + $0x64] ss:$8 sps:$4 sm:$0xff]  }
   0xe   :  { %1357 = vmatpush1.bf16.msra.mxu0 %v4041_v4  ;;  %4024 = vmatpush1.bf16.msra.mxu1 %v4041_v4  ;;  %v4086_v38 = vld [vmem:[%s6073_s0 + $0x374] ss:$8 sps:$4 sm:$0xff]   ;;  %v4089_v40 = vld [vmem:[%s6073_s0 + $0x370] ss:$8 sps:$4 sm:$0xff]   ;;  %v4092_v42 = vld [vmem:[%s6073_s0 + $0x384] ss:$8 sps:$4 sm:$0xff]  }
   0xf   :  { %1358 = vmatprep.subr.bf16.mxu0 %v4356_v0  ;;  %4009 = vmatprep.subr.bf16.mxu1 %v4356_v0  ;;  %v4094_v43 = vld [vmem:[%s6073_s0 + $0x60] ss:$8 sps:$4 sm:$0xff]   ;;  %v4096_v45 = vld [vmem:[%s6073_s0 + $0x74] ss:$8 sps:$4 sm:$0xff]   ;;  %v4100_v47 = vld [vmem:[%s6073_s0 + $0x70] ss:$8 sps:$4 sm:$0xff]  }
  0x10   :  { %v4095_v44 = vld [vmem:[%s6073_s0 + $0x380] ss:$8 sps:$4 sm:$0xff]   ;;  %v4098_v46 = vld [vmem:[%s6073_s0 + $0x394] ss:$8 sps:$4 sm:$0xff]   ;;  %v4101_v48 = vld [vmem:[%s6073_s0 + $0x390] ss:$8 sps:$4 sm:$0xff]  }
  0x11   :  { %v4102_v49 = vld [vmem:[%s6073_s0 + $0x84] ss:$8 sps:$4 sm:$0xff]   ;;  %v4106_v51 = vld [vmem:[%s6073_s0 + $0x80] ss:$8 sps:$4 sm:$0xff]   ;;  %v4108_v53 = vld [vmem:[%s6073_s0 + $0x94] ss:$8 sps:$4 sm:$0xff]  }
  0x12   :  { %1359 = vmatpush1.bf16.msra.mxu0 %v4042_v5  ;;  %4025 = vmatpush1.bf16.msra.mxu1 %v4042_v5  ;;  %v4104_v50 = vld [vmem:[%s6073_s0 + $0x3a4] ss:$8 sps:$4 sm:$0xff]   ;;  %v4107_v52 = vld [vmem:[%s6073_s0 + $0x3a0] ss:$8 sps:$4 sm:$0xff]   ;;  %v4110_v54 = vld [vmem:[%s6073_s0 + $0x3b4] ss:$8 sps:$4 sm:$0xff]  }
  0x13   :  { %1360 = vmatprep.subr.bf16.mxu0 %v4356_v0  ;;  %4010 = vmatprep.subr.bf16.mxu1 %v4356_v0  ;;  %v4112_v55 = vld [vmem:[%s6073_s0 + $0x90] ss:$8 sps:$4 sm:$0xff]   ;;  %v4114_v57 = vld [vmem:[%s6073_s0 + $0xa4] ss:$8 sps:$4 sm:$0xff]   ;;  %v4118_v59 = vld [vmem:[%s6073_s0 + $0xa0] ss:$8 sps:$4 sm:$0xff]  }
  0x14   :  { %v4113_v56 = vld [vmem:[%s6073_s0 + $0x3b0] ss:$8 sps:$4 sm:$0xff]   ;;  %v4116_v58 = vld [vmem:[%s6073_s0 + $0x3c4] ss:$8 sps:$4 sm:$0xff]   ;;  %v4119_v60 = vld [vmem:[%s6073_s0 + $0x3c0] ss:$8 sps:$4 sm:$0xff]  }
  0x15   :  { %v4120_v61 = vld [vmem:[%s6073_s0 + $0xb4] ss:$8 sps:$4 sm:$0xff]   ;;  %v4124_v63 = vld [vmem:[%s6073_s0 + $0xb0] ss:$8 sps:$4 sm:$0xff]   ;;  %v4126_v1 = vld [vmem:[%s6073_s0 + $0xc4] ss:$8 sps:$4 sm:$0xff]  }
  0x16   :  { %1361 = vmatpush1.bf16.msra.mxu0 %v4043_v7  ;;  %4026 = vmatpush1.bf16.msra.mxu1 %v4043_v7  ;;  %v4122_v62 = vld [vmem:[%s6073_s0 + $0x3d4] ss:$8 sps:$4 sm:$0xff]   ;;  %v4128_v2 = vld [vmem:[%s6073_s0 + $0x3e4] ss:$8 sps:$4 sm:$0xff]   ;;  %v4130_v3 = vld [vmem:[%s6073_s0 + $0xc0] ss:$8 sps:$4 sm:$0xff]  }
  0x17   :  { %1362 = vmatprep.subr.bf16.mxu0 %v4356_v0  ;;  %4011 = vmatprep.subr.bf16.mxu1 %v4356_v0  ;;  %v4131_v4 = vld [vmem:[%s6073_s0 + $0x3e0] ss:$8 sps:$4 sm:$0xff]   ;;  %v4132_v5 = vld [vmem:[%s6073_s0 + $0xd4] ss:$8 sps:$4 sm:$0xff]   ;;  %v4136_v7 = vld [vmem:[%s6073_s0 + $0xd0] ss:$8 sps:$4 sm:$0xff]  }
  0x18   :  { %v4134_v6 = vld [vmem:[%s6073_s0 + $0x3f4] ss:$8 sps:$4 sm:$0xff]   ;;  %v4137_v8 = vld [vmem:[%s6073_s0 + $0x3f0] ss:$8 sps:$4 sm:$0xff]  }
  0x1a   :  { %1363 = vmatpush1.bf16.msra.mxu0 %v4044_v9  ;;  %4027 = vmatpush1.bf16.msra.mxu1 %v4044_v9  ;;  %v4138_v9 = vld [vmem:[%s6073_s0 + $0xe4] ss:$8 sps:$4 sm:$0xff]  }
  0x1b   :  { %1364 = vmatprep.subr.bf16.mxu0 %v4356_v0  ;;  %4012 = vmatprep.subr.bf16.mxu1 %v4356_v0 }
  0x1e   :  { %1365 = vmatpush1.bf16.msra.mxu0 %v4045_v10  ;;  %4028 = vmatpush1.bf16.msra.mxu1 %v4045_v10  ;;  %v4140_v10 = vld [vmem:[%s6073_s0 + $0x404] ss:$8 sps:$4 sm:$0xff]  }
  0x1f   :  { %1366 = vmatprep.subr.bf16.mxu0 %v4356_v0  ;;  %4013 = vmatprep.subr.bf16.mxu1 %v4356_v0 }
  0x22   :  { %1367 = vmatpush1.bf16.msra.mxu0 %v4046_v11  ;;  %4029 = vmatpush1.bf16.msra.mxu1 %v4046_v11  ;;  %v4142_v11 = vld [vmem:[%s6073_s0 + $0xe0] ss:$8 sps:$4 sm:$0xff]  }
  0x23   :  { %1368 = vmatprep.subr.bf16.mxu0 %v4356_v0  ;;  %4014 = vmatprep.subr.bf16.mxu1 %v4356_v0 }
  0x26   :  { %1369 = vmatpush1.bf16.msra.mxu0 %v4047_v12  ;;  %4030 = vmatpush1.bf16.msra.mxu1 %v4047_v12  ;;  %v4143_v12 = vld [vmem:[%s6073_s0 + $0x400] ss:$8 sps:$4 sm:$0xff]  }
  0x27   :  { %1370 = vmatprep.subr.bf16.mxu0 %v4356_v0  ;;  %4015 = vmatprep.subr.bf16.mxu1 %v4356_v0 }
  0x2a   :  { %1371 = vmatpush1.bf16.msra.mxu0 %v4048_v13  ;;  %4031 = vmatpush1.bf16.msra.mxu1 %v4048_v13  ;;  %v4144_v13 = vld [vmem:[%s6073_s0 + $0xf4] ss:$8 sps:$4 sm:$0xff]  }
  0x2b   :  { %1372 = vmatprep.subr.bf16.mxu0 %v4356_v0  ;;  %4016 = vmatprep.subr.bf16.mxu1 %v4356_v0 }
  0x2e   :  { %1373 = vmatpush1.bf16.msra.mxu0 %v4049_v14  ;;  %4032 = vmatpush1.bf16.msra.mxu1 %v4049_v14  ;;  %v4146_v14 = vld [vmem:[%s6073_s0 + $0x414] ss:$8 sps:$4 sm:$0xff]  }
  0x2f   :  { %1374 = vmatprep.subr.bf16.mxu0 %v4356_v0  ;;  %4017 = vmatprep.subr.bf16.mxu1 %v4356_v0 }
  0x32   :  { %1375 = vmatpush1.bf16.msra.mxu0 %v4050_v15  ;;  %4033 = vmatpush1.bf16.msra.mxu1 %v4050_v15  ;;  %v4148_v15 = vld [vmem:[%s6073_s0 + $0xf0] ss:$8 sps:$4 sm:$0xff]  }
  0x33   :  { %1376 = vmatprep.subr.bf16.mxu0 %v4356_v0  ;;  %4018 = vmatprep.subr.bf16.mxu1 %v4356_v0 }
  0x36   :  { %1377 = vmatpush1.bf16.msra.mxu0 %v4051_v16  ;;  %4034 = vmatpush1.bf16.msra.mxu1 %v4051_v16  ;;  %v4149_v16 = vld [vmem:[%s6073_s0 + $0x410] ss:$8 sps:$4 sm:$0xff]  }
  0x37   :  { %1378 = vmatprep.subr.bf16.mxu0 %v4356_v0  ;;  %4019 = vmatprep.subr.bf16.mxu1 %v4356_v0 }
  0x3a   :  { %1379 = vmatpush1.bf16.msra.mxu0 %v4052_v17  ;;  %4035 = vmatpush1.bf16.msra.mxu1 %v4052_v17  ;;  %v4150_v17 = vld [vmem:[%s6073_s0 + $0x104] ss:$8 sps:$4 sm:$0xff]  }
  0x3b   :  { %1380 = vmatprep.subr.bf16.mxu0 %v4356_v0  ;;  %4020 = vmatprep.subr.bf16.mxu1 %v4356_v0  ;;  %v4125_v0 = vld [vmem:[%s6073_s0 + $0x3d0] ss:$8 sps:$4 sm:$0xff]  }
  0x3e   :  { %1381 = vmatpush1.bf16.msra.mxu0 %v4053_v18  ;;  %4036 = vmatpush1.bf16.msra.mxu1 %v4053_v18  ;;  %v4152_v18 = vld [vmem:[%s6073_s0 + $0x424] ss:$8 sps:$4 sm:$0xff]  }
  0x41   :  { %1383 = vmatmul.mubr.bf16.vlgmr.msra.gmra.mrb[0].mxu0 %v4054_v19  ;;  %1783 = vmatmul.mubr.bf16.vlgmr.msra.gmra.mrb[0].mxu1 %v4057_v20  ;;  %v4154_v19 = vld [vmem:[%s6073_s0 + $0x100] ss:$8 sps:$4 sm:$0xff]  }
  0x42   :  { %1390 = vmatprep.mubr.bf16.mxu0 %v4060_v21  ;;  %1790 = vmatprep.mubr.bf16.mxu1 %v4062_v22  ;;  %v4155_v20 = vld [vmem:[%s6073_s0 + $0x420] ss:$8 sps:$4 sm:$0xff]   ;;  %v4156_v21 = vld [vmem:[%s6073_s0 + $0x114] ss:$8 sps:$4 sm:$0xff]  }
  0x43   :  { %v4158_v22 = vld [vmem:[%s6073_s0 + $0x434] ss:$8 sps:$4 sm:$0xff]  }
  0x49   :  { %1391 = vmatmul.mubr.bf16.gmra.mrb[4].mxu0 %v4064_v23  ;;  %1791 = vmatmul.mubr.bf16.gmra.mrb[4].mxu1 %v4065_v24  ;;  %v4160_v23 = vld [vmem:[%s6073_s0 + $0x110] ss:$8 sps:$4 sm:$0xff]  }
  0x4a   :  { %1398 = vmatprep.mubr.bf16.mxu0 %v4066_v25  ;;  %1798 = vmatprep.mubr.bf16.mxu1 %v4068_v26  ;;  %v4161_v24 = vld [vmem:[%s6073_s0 + $0x430] ss:$8 sps:$4 sm:$0xff]   ;;  %v4162_v25 = vld [vmem:[%s6073_s0 + $0x124] ss:$8 sps:$4 sm:$0xff]  }
  0x4b   :  { %v4164_v26 = vld [vmem:[%s6073_s0 + $0x444] ss:$8 sps:$4 sm:$0xff]  }
  0x51   :  { %1399 = vmatmul.mubr.bf16.gmra.mrb[8].mxu0 %v4070_v27  ;;  %1799 = vmatmul.mubr.bf16.gmra.mrb[8].mxu1 %v4071_v28  ;;  %v4166_v27 = vld [vmem:[%s6073_s0 + $0x120] ss:$8 sps:$4 sm:$0xff]  }
  0x52   :  { %1406 = vmatprep.mubr.bf16.mxu0 %v4072_v29  ;;  %1806 = vmatprep.mubr.bf16.mxu1 %v4074_v30  ;;  %v4167_v28 = vld [vmem:[%s6073_s0 + $0x440] ss:$8 sps:$4 sm:$0xff]   ;;  %v4168_v29 = vld [vmem:[%s6073_s0 + $0x134] ss:$8 sps:$4 sm:$0xff]  }
  0x53   :  { %v4170_v30 = vld [vmem:[%s6073_s0 + $0x454] ss:$8 sps:$4 sm:$0xff]  }
  0x59   :  { %1407 = vmatmul.mubr.bf16.gmra.mrb[12].mxu0 %v4076_v31  ;;  %1807 = vmatmul.mubr.bf16.gmra.mrb[12].mxu1 %v4077_v32  ;;  %v4172_v31 = vld [vmem:[%s6073_s0 + $0x130] ss:$8 sps:$4 sm:$0xff]  }
  0x5a   :  { %1414 = vmatprep.mubr.bf16.mxu0 %v4078_v33  ;;  %1814 = vmatprep.mubr.bf16.mxu1 %v4080_v34  ;;  %v4173_v32 = vld [vmem:[%s6073_s0 + $0x450] ss:$8 sps:$4 sm:$0xff]   ;;  %v4174_v33 = vld [vmem:[%s6073_s0 + $0x144] ss:$8 sps:$4 sm:$0xff]  }
  0x5b   :  { %v4176_v34 = vld [vmem:[%s6073_s0 + $0x464] ss:$8 sps:$4 sm:$0xff]  }
  0x61   :  { %1415 = vmatmul.mubr.bf16.gmra.mrb[16].mxu0 %v4082_v35  ;;  %1815 = vmatmul.mubr.bf16.gmra.mrb[16].mxu1 %v4083_v36  ;;  %v4178_v35 = vld [vmem:[%s6073_s0 + $0x140] ss:$8 sps:$4 sm:$0xff]  }
  0x62   :  { %1422 = vmatprep.mubr.bf16.mxu0 %v4084_v37  ;;  %1822 = vmatprep.mubr.bf16.mxu1 %v4086_v38  ;;  %v4179_v36 = vld [vmem:[%s6073_s0 + $0x460] ss:$8 sps:$4 sm:$0xff]   ;;  %v4180_v37 = vld [vmem:[%s6073_s0 + $0x154] ss:$8 sps:$4 sm:$0xff]  }
  0x63   :  { %v4182_v38 = vld [vmem:[%s6073_s0 + $0x474] ss:$8 sps:$4 sm:$0xff]  }
  0x69   :  { %1423 = vmatmul.mubr.bf16.gmra.mrb[20].mxu0 %v4088_v39  ;;  %1823 = vmatmul.mubr.bf16.gmra.mrb[20].mxu1 %v4089_v40  ;;  %v4184_v39 = vld [vmem:[%s6073_s0 + $0x150] ss:$8 sps:$4 sm:$0xff]  }
  0x6a   :  { %1430 = vmatprep.mubr.bf16.mxu0 %v4090_v41  ;;  %1830 = vmatprep.mubr.bf16.mxu1 %v4092_v42  ;;  %v4185_v40 = vld [vmem:[%s6073_s0 + $0x470] ss:$8 sps:$4 sm:$0xff]   ;;  %v4186_v41 = vld [vmem:[%s6073_s0 + $0x164] ss:$8 sps:$4 sm:$0xff]  }
  0x6b   :  { %v4188_v42 = vld [vmem:[%s6073_s0 + $0x484] ss:$8 sps:$4 sm:$0xff]  }
  0x71   :  { %1431 = vmatmul.mubr.bf16.gmra.mrb[24].mxu0 %v4094_v43  ;;  %1831 = vmatmul.mubr.bf16.gmra.mrb[24].mxu1 %v4095_v44  ;;  %v4190_v43 = vld [vmem:[%s6073_s0 + $0x160] ss:$8 sps:$4 sm:$0xff]  }
  0x72   :  { %1438 = vmatprep.mubr.bf16.mxu0 %v4096_v45  ;;  %1838 = vmatprep.mubr.bf16.mxu1 %v4098_v46  ;;  %v4191_v44 = vld [vmem:[%s6073_s0 + $0x480] ss:$8 sps:$4 sm:$0xff]   ;;  %v4192_v45 = vld [vmem:[%s6073_s0 + $0x174] ss:$8 sps:$4 sm:$0xff]  }
  0x73   :  { %v4194_v46 = vld [vmem:[%s6073_s0 + $0x494] ss:$8 sps:$4 sm:$0xff]  }
  0x79   :  { %1439 = vmatmul.mubr.bf16.gmra.mrb[28].mxu0 %v4100_v47  ;;  %1839 = vmatmul.mubr.bf16.gmra.mrb[28].mxu1 %v4101_v48  ;;  %v4196_v47 = vld [vmem:[%s6073_s0 + $0x170] ss:$8 sps:$4 sm:$0xff]  }
  0x7a   :  { %1446 = vmatprep.mubr.bf16.mxu0 %v4102_v49  ;;  %1846 = vmatprep.mubr.bf16.mxu1 %v4104_v50  ;;  %v4197_v48 = vld [vmem:[%s6073_s0 + $0x490] ss:$8 sps:$4 sm:$0xff]   ;;  %v4198_v49 = vld [vmem:[%s6073_s0 + $0x184] ss:$8 sps:$4 sm:$0xff]  }
  0x7b   :  { %v4200_v50 = vld [vmem:[%s6073_s0 + $0x4a4] ss:$8 sps:$4 sm:$0xff]  }
  0x81   :  { %1447 = vmatmul.mubr.bf16.gmra.mrb[32].mxu0 %v4106_v51  ;;  %1847 = vmatmul.mubr.bf16.gmra.mrb[32].mxu1 %v4107_v52  ;;  %v4202_v51 = vld [vmem:[%s6073_s0 + $0x180] ss:$8 sps:$4 sm:$0xff]  }
  0x82   :  { %1454 = vmatprep.mubr.bf16.mxu0 %v4108_v53  ;;  %1854 = vmatprep.mubr.bf16.mxu1 %v4110_v54  ;;  %v4203_v52 = vld [vmem:[%s6073_s0 + $0x4a0] ss:$8 sps:$4 sm:$0xff]   ;;  %v4204_v53 = vld [vmem:[%s6073_s0 + $0x194] ss:$8 sps:$4 sm:$0xff]  }
  0x83   :  { %v4206_v54 = vld [vmem:[%s6073_s0 + $0x4b4] ss:$8 sps:$4 sm:$0xff]  }
  0x89   :  { %1455 = vmatmul.mubr.bf16.gmra.mrb[36].mxu0 %v4112_v55  ;;  %1855 = vmatmul.mubr.bf16.gmra.mrb[36].mxu1 %v4113_v56  ;;  %v4208_v55 = vld [vmem:[%s6073_s0 + $0x190] ss:$8 sps:$4 sm:$0xff]  }
  0x8a   :  { %1462 = vmatprep.mubr.bf16.mxu0 %v4114_v57  ;;  %1862 = vmatprep.mubr.bf16.mxu1 %v4116_v58  ;;  %v4209_v56 = vld [vmem:[%s6073_s0 + $0x4b0] ss:$8 sps:$4 sm:$0xff]   ;;  %v4210_v57 = vld [vmem:[%s6073_s0 + $0x1a4] ss:$8 sps:$4 sm:$0xff]  }
  0x8b   :  { %v4212_v58 = vld [vmem:[%s6073_s0 + $0x4c4] ss:$8 sps:$4 sm:$0xff]  }
  0x91   :  { %1463 = vmatmul.mubr.bf16.gmra.mrb[40].mxu0 %v4118_v59  ;;  %1863 = vmatmul.mubr.bf16.gmra.mrb[40].mxu1 %v4119_v60  ;;  %v4214_v59 = vld [vmem:[%s6073_s0 + $0x1a0] ss:$8 sps:$4 sm:$0xff]  }
  0x92   :  { %1470 = vmatprep.mubr.bf16.mxu0 %v4120_v61  ;;  %1870 = vmatprep.mubr.bf16.mxu1 %v4122_v62  ;;  %v4215_v60 = vld [vmem:[%s6073_s0 + $0x4c0] ss:$8 sps:$4 sm:$0xff]   ;;  %v4216_v61 = vld [vmem:[%s6073_s0 + $0x1b4] ss:$8 sps:$4 sm:$0xff]  }
  0x93   :  { %v4218_v62 = vld [vmem:[%s6073_s0 + $0x4d4] ss:$8 sps:$4 sm:$0xff]  }
  0x99   :  { %1471 = vmatmul.mubr.bf16.gmra.mrb[44].mxu0 %v4124_v63  ;;  %1871 = vmatmul.mubr.bf16.gmra.mrb[44].mxu1 %v4125_v0  ;;  %v4790_v63 = vld [vmem:[%s6074_s2] ss:$0 sm:$0xff] }
  0x9a   :  { %1478 = vmatprep.mubr.bf16.mxu0 %v4126_v1  ;;  %1878 = vmatprep.mubr.bf16.mxu1 %v4128_v2 }
  0xa1   :  { %1479 = vmatmul.mubr.bf16.gmra.mrb[48].mxu0 %v4130_v3  ;;  %1879 = vmatmul.mubr.bf16.gmra.mrb[48].mxu1 %v4131_v4 }
  0xa2   :  { %1486 = vmatprep.mubr.bf16.mxu0 %v4132_v5  ;;  %1886 = vmatprep.mubr.bf16.mxu1 %v4134_v6  ;;  %v4220_v6 = vld [vmem:[%s6073_s0 + $0x1b0] ss:$8 sps:$4 sm:$0xff]  }
  0xa9   :  { %1487 = vmatmul.mubr.bf16.gmra.mrb[52].mxu0 %v4136_v7  ;;  %1887 = vmatmul.mubr.bf16.gmra.mrb[52].mxu1 %v4137_v8  ;;  %v4221_v7 = vld [vmem:[%s6073_s0 + $0x4d0] ss:$8 sps:$4 sm:$0xff]  }
  0xaa   :  { %1494 = vmatprep.mubr.bf16.mxu0 %v4138_v9  ;;  %1894 = vmatprep.mubr.bf16.mxu1 %v4140_v10  ;;  %v4222_v10 = vld [vmem:[%s6073_s0 + $0x1c4] ss:$8 sps:$4 sm:$0xff]  }
  0xb1   :  { %1495 = vmatmul.mubr.bf16.gmra.mrb[56].mxu0 %v4142_v11  ;;  %1895 = vmatmul.mubr.bf16.gmra.mrb[56].mxu1 %v4143_v12  ;;  %v4224_v11 = vld [vmem:[%s6073_s0 + $0x4e4] ss:$8 sps:$4 sm:$0xff]  }
  0xb2   :  { %1502 = vmatprep.mubr.bf16.mxu0 %v4144_v13  ;;  %1902 = vmatprep.mubr.bf16.mxu1 %v4146_v14 }
  0xb9   :  { %1503 = vmatmul.mubr.bf16.gmra.mrb[60].mxu0 %v4148_v15  ;;  %1903 = vmatmul.mubr.bf16.gmra.mrb[60].mxu1 %v4149_v16 }
  0xba   :  { %1510 = vmatprep.mubr.bf16.mxu0 %v4150_v17  ;;  %1910 = vmatprep.mubr.bf16.mxu1 %v4152_v18 }
  0xc1   :  { %1511 = vmatmul.mubr.bf16.gmra.mrb[64].mxu0 %v4154_v19  ;;  %1911 = vmatmul.mubr.bf16.gmra.mrb[64].mxu1 %v4155_v20 }
  0xc2   :  { %1518 = vmatprep.mubr.bf16.mxu0 %v4156_v21  ;;  %1918 = vmatprep.mubr.bf16.mxu1 %v4158_v22 }
  0xc9   :  { %1519 = vmatmul.mubr.bf16.gmra.mrb[68].mxu0 %v4160_v23  ;;  %1919 = vmatmul.mubr.bf16.gmra.mrb[68].mxu1 %v4161_v24 }
  0xca   :  { %1526 = vmatprep.mubr.bf16.mxu0 %v4162_v25  ;;  %1926 = vmatprep.mubr.bf16.mxu1 %v4164_v26 }
  0xd1   :  { %1527 = vmatmul.mubr.bf16.gmra.mrb[72].mxu0 %v4166_v27  ;;  %1927 = vmatmul.mubr.bf16.gmra.mrb[72].mxu1 %v4167_v28 }
  0xd2   :  { %1534 = vmatprep.mubr.bf16.mxu0 %v4168_v29  ;;  %1934 = vmatprep.mubr.bf16.mxu1 %v4170_v30  ;;  %v4226_v30 = vld [vmem:[%s6073_s0 + $0x1c0] ss:$8 sps:$4 sm:$0xff]  }
  0xd9   :  { %1535 = vmatmul.mubr.bf16.gmra.mrb[76].mxu0 %v4172_v31  ;;  %1935 = vmatmul.mubr.bf16.gmra.mrb[76].mxu1 %v4173_v32  ;;  %v4227_v31 = vld [vmem:[%s6073_s0 + $0x4e0] ss:$8 sps:$4 sm:$0xff]  }
  0xda   :  { %1542 = vmatprep.mubr.bf16.mxu0 %v4174_v33  ;;  %1942 = vmatprep.mubr.bf16.mxu1 %v4176_v34  ;;  %v4228_v34 = vld [vmem:[%s6073_s0 + $0x1d4] ss:$8 sps:$4 sm:$0xff]  }
  0xe1   :  { %1543 = vmatmul.mubr.bf16.gmra.mrb[80].mxu0 %v4178_v35  ;;  %1943 = vmatmul.mubr.bf16.gmra.mrb[80].mxu1 %v4179_v36  ;;  %v4230_v35 = vld [vmem:[%s6073_s0 + $0x4f4] ss:$8 sps:$4 sm:$0xff]  }
  0xe2   :  { %1550 = vmatprep.mubr.bf16.mxu0 %v4180_v37  ;;  %1950 = vmatprep.mubr.bf16.mxu1 %v4182_v38 }
  0xe9   :  { %1551 = vmatmul.mubr.bf16.gmra.mrb[84].mxu0 %v4184_v39  ;;  %1951 = vmatmul.mubr.bf16.gmra.mrb[84].mxu1 %v4185_v40 }
  0xea   :  { %1558 = vmatprep.mubr.bf16.mxu0 %v4186_v41  ;;  %1958 = vmatprep.mubr.bf16.mxu1 %v4188_v42 }
  0xf1   :  { %1559 = vmatmul.mubr.bf16.gmra.mrb[88].mxu0 %v4190_v43  ;;  %1959 = vmatmul.mubr.bf16.gmra.mrb[88].mxu1 %v4191_v44 }
  0xf2   :  { %1566 = vmatprep.mubr.bf16.mxu0 %v4192_v45  ;;  %1966 = vmatprep.mubr.bf16.mxu1 %v4194_v46 }
  0xf9   :  { %1567 = vmatmul.mubr.bf16.gmra.mrb[92].mxu0 %v4196_v47  ;;  %1967 = vmatmul.mubr.bf16.gmra.mrb[92].mxu1 %v4197_v48 }
  0xfa   :  { %1574 = vmatprep.mubr.bf16.mxu0 %v4198_v49  ;;  %1974 = vmatprep.mubr.bf16.mxu1 %v4200_v50 }
 0x101   :  { %1575 = vmatmul.mubr.bf16.gmra.mrb[96].mxu0 %v4202_v51  ;;  %1975 = vmatmul.mubr.bf16.gmra.mrb[96].mxu1 %v4203_v52 }
 0x102   :  { %1582 = vmatprep.mubr.bf16.mxu0 %v4204_v53  ;;  %1982 = vmatprep.mubr.bf16.mxu1 %v4206_v54  ;;  %v4232_v54 = vld [vmem:[%s6073_s0 + $0x1d0] ss:$8 sps:$4 sm:$0xff]  }
 0x109   :  { %1583 = vmatmul.mubr.bf16.gmra.mrb[100].mxu0 %v4208_v55  ;;  %1983 = vmatmul.mubr.bf16.gmra.mrb[100].mxu1 %v4209_v56  ;;  %v4233_v55 = vld [vmem:[%s6073_s0 + $0x4f0] ss:$8 sps:$4 sm:$0xff]  }
 0x10a   :  { %1590 = vmatprep.mubr.bf16.mxu0 %v4210_v57  ;;  %1990 = vmatprep.mubr.bf16.mxu1 %v4212_v58  ;;  %v4234_v58 = vld [vmem:[%s6073_s0 + $0x1e4] ss:$8 sps:$4 sm:$0xff]  }
 0x111   :  { %1591 = vmatmul.mubr.bf16.gmra.mrb[104].mxu0 %v4214_v59  ;;  %1991 = vmatmul.mubr.bf16.gmra.mrb[104].mxu1 %v4215_v60  ;;  %v4236_v59 = vld [vmem:[%s6073_s0 + $0x504] ss:$8 sps:$4 sm:$0xff]  }
 0x112   :  { %1598 = vmatprep.mubr.bf16.mxu0 %v4216_v61  ;;  %1998 = vmatprep.mubr.bf16.mxu1 %v4218_v62 }
 0x114   :  { %v1384_v0 = vpop.f32.mrb[0].mxu0  ;;  %v1784_v1 = vpop.f32.mrb[0].mxu1 }
 0x115   :  { %v1385_v2 = vadd.f32 %v4790_v63, %v1384_v0  ;;  %v1785_v3 = vadd.f32 %v4790_v63, %v1784_v1  ;;  %v1386_v4 = vpop.f32.mrb[1].mxu0  ;;  %v1786_v5 = vpop.f32.mrb[1].mxu1 }
 0x116   :  { %v1387_v8 = vpop.f32.mrb[2].mxu0  ;;  %v1787_v9 = vpop.f32.mrb[2].mxu1 }
 0x117   :  { %v2183_v12 = vmax.f32 %v1385_v2, 0.0  ;;  %v2283_v13 = vmax.f32 %v1785_v3, 0.0  ;;  %v1388_v14 = vadd.f32 %v4790_v63, %v1387_v8  ;;  %v1788_v15 = vadd.f32 %v4790_v63, %v1787_v9  ;;  %v1389_v16 = vpop.f32.mrb[3].mxu0  ;;  %v1789_v17 = vpop.f32.mrb[3].mxu1 }
 0x118   :  { %v4239_v16 = vld [vmem:[%s6073_s0 + $0x500] ss:$8 sps:$4 sm:$0xff]  }
 0x119   :  { %v3805_v18 = vpack.c.bf16 %v2183_v12, %v2183_v12  ;;  %v3905_v19 = vpack.c.bf16 %v2283_v13, %v2283_v13  ;;  %v2184_v20 = vmax.f32 %v1388_v14, 0.0  ;;  %v2284_v21 = vmax.f32 %v1788_v15, 0.0  ;;  %1599 = vmatmul.mubr.bf16.gmra.mrb[108].mxu0 %v4220_v6  ;;  %1999 = vmatmul.mubr.bf16.gmra.mrb[108].mxu1 %v4221_v7  ;;  %v4238_v15 = vld [vmem:[%s6073_s0 + $0x1e0] ss:$8 sps:$4 sm:$0xff]  }
 0x11a   :  { %1606 = vmatprep.mubr.bf16.mxu0 %v4222_v10  ;;  %2006 = vmatprep.mubr.bf16.mxu1 %v4224_v11 }
 0x11b   :  { %3184 = vst.msk [vmem:[%s6075_s3] sm:$0xf] %vm3183_vm0, %v3805_v18  ;;  %3284 = vst.msk [vmem:[%s6075_s3 + $0x190] sm:$0xf] %vm3183_vm0, %v3905_v19  ;;  %v3806_v22 = vpack.c.bf16 %v2184_v20, %v2184_v20  ;;  %v3906_v23 = vpack.c.bf16 %v2284_v21, %v2284_v21  ;;  %v4240_v19 = vld [vmem:[%s6073_s0 + $0x1f4] ss:$8 sps:$4 sm:$0xff]  }
 0x11c   :  { %v1392_v24 = vpop.f32.mrb[4].mxu0  ;;  %v1792_v25 = vpop.f32.mrb[4].mxu1  ;;  %v4242_v20 = vld [vmem:[%s6073_s0 + $0x514] ss:$8 sps:$4 sm:$0xff]  }
 0x11d   :  { %3185 = vst.msk [vmem:[%s6075_s3 + $0x4] sm:$0xf] %vm3183_vm0, %v3806_v22  ;;  %3285 = vst.msk [vmem:[%s6075_s3 + $0x194] sm:$0xf] %vm3183_vm0, %v3906_v23  ;;  %v1393_v26 = vadd.f32 %v4790_v63, %v1392_v24  ;;  %v1793_v27 = vadd.f32 %v4790_v63, %v1792_v25  ;;  %v1394_v28 = vpop.f32.mrb[5].mxu0  ;;  %v1794_v29 = vpop.f32.mrb[5].mxu1 }
 0x11e   :  { %v1395_v32 = vpop.f32.mrb[6].mxu0  ;;  %v1795_v33 = vpop.f32.mrb[6].mxu1 }
 0x11f   :  { %v2185_v36 = vmax.f32 %v1393_v26, 0.0  ;;  %v2285_v37 = vmax.f32 %v1793_v27, 0.0  ;;  %v1396_v38 = vadd.f32 %v4790_v63, %v1395_v32  ;;  %v1796_v39 = vadd.f32 %v4790_v63, %v1795_v33  ;;  %v1397_v40 = vpop.f32.mrb[7].mxu0  ;;  %v1797_v41 = vpop.f32.mrb[7].mxu1 }
 0x120   :  { %v4245_v40 = vld [vmem:[%s6073_s0 + $0x510] ss:$8 sps:$4 sm:$0xff]  }
 0x121   :  { %v3807_v42 = vpack.c.bf16 %v2185_v36, %v2185_v36  ;;  %v3907_v43 = vpack.c.bf16 %v2285_v37, %v2285_v37  ;;  %v2186_v44 = vmax.f32 %v1396_v38, 0.0  ;;  %v2286_v45 = vmax.f32 %v1796_v39, 0.0  ;;  %1607 = vmatmul.mubr.bf16.gmra.mrb[112].mxu0 %v4226_v30  ;;  %2007 = vmatmul.mubr.bf16.gmra.mrb[112].mxu1 %v4227_v31  ;;  %v4244_v39 = vld [vmem:[%s6073_s0 + $0x1f0] ss:$8 sps:$4 sm:$0xff]  }
 0x122   :  { %1614 = vmatprep.mubr.bf16.mxu0 %v4228_v34  ;;  %2014 = vmatprep.mubr.bf16.mxu1 %v4230_v35 }
 0x123   :  { %3186 = vst.msk [vmem:[%s6075_s3 + $0x8] sm:$0xf] %vm3183_vm0, %v3807_v42  ;;  %3286 = vst.msk [vmem:[%s6075_s3 + $0x198] sm:$0xf] %vm3183_vm0, %v3907_v43  ;;  %v3808_v46 = vpack.c.bf16 %v2186_v44, %v2186_v44  ;;  %v3908_v47 = vpack.c.bf16 %v2286_v45, %v2286_v45  ;;  %v4246_v43 = vld [vmem:[%s6073_s0 + $0x204] ss:$8 sps:$4 sm:$0xff]  }
 0x124   :  { %v1400_v48 = vpop.f32.mrb[8].mxu0  ;;  %v1800_v49 = vpop.f32.mrb[8].mxu1  ;;  %v4248_v44 = vld [vmem:[%s6073_s0 + $0x524] ss:$8 sps:$4 sm:$0xff]  }
 0x125   :  { %3187 = vst.msk [vmem:[%s6075_s3 + $0xc] sm:$0xf] %vm3183_vm0, %v3808_v46  ;;  %3287 = vst.msk [vmem:[%s6075_s3 + $0x19c] sm:$0xf] %vm3183_vm0, %v3908_v47  ;;  %v1401_v50 = vadd.f32 %v4790_v63, %v1400_v48  ;;  %v1801_v51 = vadd.f32 %v4790_v63, %v1800_v49  ;;  %v1402_v52 = vpop.f32.mrb[9].mxu0  ;;  %v1802_v53 = vpop.f32.mrb[9].mxu1 }
 0x126   :  { %v1403_v56 = vpop.f32.mrb[10].mxu0  ;;  %v1803_v57 = vpop.f32.mrb[10].mxu1 }
 0x127   :  { %v2187_v60 = vmax.f32 %v1401_v50, 0.0  ;;  %v2287_v61 = vmax.f32 %v1801_v51, 0.0  ;;  %v1404_v62 = vadd.f32 %v4790_v63, %v1403_v56  ;;  %v1804_v0 = vadd.f32 %v4790_v63, %v1803_v57  ;;  %v1405_v1 = vpop.f32.mrb[11].mxu0  ;;  %v1805_v2 = vpop.f32.mrb[11].mxu1 }
 0x128   :  { %v4251_v1 = vld [vmem:[%s6073_s0 + $0x520] ss:$8 sps:$4 sm:$0xff]  }
 0x129   :  { %v3809_v3 = vpack.c.bf16 %v2187_v60, %v2187_v60  ;;  %v3909_v4 = vpack.c.bf16 %v2287_v61, %v2287_v61  ;;  %v2188_v5 = vmax.f32 %v1404_v62, 0.0  ;;  %v2288_v6 = vmax.f32 %v1804_v0, 0.0  ;;  %1615 = vmatmul.mubr.bf16.gmra.mrb[116].mxu0 %v4232_v54  ;;  %2015 = vmatmul.mubr.bf16.gmra.mrb[116].mxu1 %v4233_v55  ;;  %v4250_v0 = vld [vmem:[%s6073_s0 + $0x200] ss:$8 sps:$4 sm:$0xff]  }
 0x12a   :  { %1622 = vmatprep.mubr.bf16.mxu0 %v4234_v58  ;;  %2022 = vmatprep.mubr.bf16.mxu1 %v4236_v59 }
 0x12b   :  { %3188 = vst.msk [vmem:[%s6075_s3 + $0x10] sm:$0xf] %vm3183_vm0, %v3809_v3  ;;  %3288 = vst.msk [vmem:[%s6075_s3 + $0x1a0] sm:$0xf] %vm3183_vm0, %v3909_v4  ;;  %v3810_v7 = vpack.c.bf16 %v2188_v5, %v2188_v5  ;;  %v3910_v8 = vpack.c.bf16 %v2288_v6, %v2288_v6  ;;  %v4252_v4 = vld [vmem:[%s6073_s0 + $0x214] ss:$8 sps:$4 sm:$0xff]  }
 0x12c   :  { %v1408_v9 = vpop.f32.mrb[12].mxu0  ;;  %v1808_v10 = vpop.f32.mrb[12].mxu1  ;;  %v4254_v5 = vld [vmem:[%s6073_s0 + $0x534] ss:$8 sps:$4 sm:$0xff]  }
 0x12d   :  { %3189 = vst.msk [vmem:[%s6075_s3 + $0x14] sm:$0xf] %vm3183_vm0, %v3810_v7  ;;  %3289 = vst.msk [vmem:[%s6075_s3 + $0x1a4] sm:$0xf] %vm3183_vm0, %v3910_v8  ;;  %v1409_v11 = vadd.f32 %v4790_v63, %v1408_v9  ;;  %v1809_v12 = vadd.f32 %v4790_v63, %v1808_v10  ;;  %v1410_v13 = vpop.f32.mrb[13].mxu0  ;;  %v1810_v14 = vpop.f32.mrb[13].mxu1 }
 0x12e   :  { %v1411_v17 = vpop.f32.mrb[14].mxu0  ;;  %v1811_v18 = vpop.f32.mrb[14].mxu1 }
 0x12f   :  { %v2189_v21 = vmax.f32 %v1409_v11, 0.0  ;;  %v2289_v22 = vmax.f32 %v1809_v12, 0.0  ;;  %v1412_v23 = vadd.f32 %v4790_v63, %v1411_v17  ;;  %v1812_v24 = vadd.f32 %v4790_v63, %v1811_v18  ;;  %v1413_v25 = vpop.f32.mrb[15].mxu0  ;;  %v1813_v26 = vpop.f32.mrb[15].mxu1 }
 0x130   :  { %v4257_v25 = vld [vmem:[%s6073_s0 + $0x530] ss:$8 sps:$4 sm:$0xff]  }
 0x131   :  { %v3811_v27 = vpack.c.bf16 %v2189_v21, %v2189_v21  ;;  %v3911_v28 = vpack.c.bf16 %v2289_v22, %v2289_v22  ;;  %v2190_v29 = vmax.f32 %v1412_v23, 0.0  ;;  %v2290_v30 = vmax.f32 %v1812_v24, 0.0  ;;  %1623 = vmatmul.mubr.bf16.gmra.mrb[120].mxu0 %v4238_v15  ;;  %2023 = vmatmul.mubr.bf16.gmra.mrb[120].mxu1 %v4239_v16  ;;  %v4256_v24 = vld [vmem:[%s6073_s0 + $0x210] ss:$8 sps:$4 sm:$0xff]  }
 0x132   :  { %1630 = vmatprep.mubr.bf16.mxu0 %v4240_v19  ;;  %2030 = vmatprep.mubr.bf16.mxu1 %v4242_v20 }
 0x133   :  { %3190 = vst.msk [vmem:[%s6075_s3 + $0x18] sm:$0xf] %vm3183_vm0, %v3811_v27  ;;  %3290 = vst.msk [vmem:[%s6075_s3 + $0x1a8] sm:$0xf] %vm3183_vm0, %v3911_v28  ;;  %v3812_v31 = vpack.c.bf16 %v2190_v29, %v2190_v29  ;;  %v3912_v32 = vpack.c.bf16 %v2290_v30, %v2290_v30  ;;  %v4258_v28 = vld [vmem:[%s6073_s0 + $0x224] ss:$8 sps:$4 sm:$0xff]  }
 0x134   :  { %v1416_v33 = vpop.f32.mrb[16].mxu0  ;;  %v1816_v34 = vpop.f32.mrb[16].mxu1  ;;  %v4260_v29 = vld [vmem:[%s6073_s0 + $0x544] ss:$8 sps:$4 sm:$0xff]  }
 0x135   :  { %3191 = vst.msk [vmem:[%s6075_s3 + $0x1c] sm:$0xf] %vm3183_vm0, %v3812_v31  ;;  %3291 = vst.msk [vmem:[%s6075_s3 + $0x1ac] sm:$0xf] %vm3183_vm0, %v3912_v32  ;;  %v1417_v35 = vadd.f32 %v4790_v63, %v1416_v33  ;;  %v1817_v36 = vadd.f32 %v4790_v63, %v1816_v34  ;;  %v1418_v37 = vpop.f32.mrb[17].mxu0  ;;  %v1818_v38 = vpop.f32.mrb[17].mxu1 }
 0x136   :  { %v1419_v41 = vpop.f32.mrb[18].mxu0  ;;  %v1819_v42 = vpop.f32.mrb[18].mxu1 }
 0x137   :  { %v2191_v45 = vmax.f32 %v1417_v35, 0.0  ;;  %v2291_v46 = vmax.f32 %v1817_v36, 0.0  ;;  %v1420_v47 = vadd.f32 %v4790_v63, %v1419_v41  ;;  %v1820_v48 = vadd.f32 %v4790_v63, %v1819_v42  ;;  %v1421_v49 = vpop.f32.mrb[19].mxu0  ;;  %v1821_v50 = vpop.f32.mrb[19].mxu1 }
 0x138   :  { %v4263_v49 = vld [vmem:[%s6073_s0 + $0x540] ss:$8 sps:$4 sm:$0xff]  }
 0x139   :  { %v3813_v51 = vpack.c.bf16 %v2191_v45, %v2191_v45  ;;  %v3913_v52 = vpack.c.bf16 %v2291_v46, %v2291_v46  ;;  %v2192_v53 = vmax.f32 %v1420_v47, 0.0  ;;  %v2292_v54 = vmax.f32 %v1820_v48, 0.0  ;;  %1631 = vmatmul.mubr.bf16.gmra.mrb[124].mxu0 %v4244_v39  ;;  %2031 = vmatmul.mubr.bf16.gmra.mrb[124].mxu1 %v4245_v40  ;;  %v4262_v48 = vld [vmem:[%s6073_s0 + $0x220] ss:$8 sps:$4 sm:$0xff]  }
 0x13a   :  { %1638 = vmatprep.mubr.bf16.mxu0 %v4246_v43  ;;  %2038 = vmatprep.mubr.bf16.mxu1 %v4248_v44 }
 0x13b   :  { %3192 = vst.msk [vmem:[%s6075_s3 + $0x20] sm:$0xf] %vm3183_vm0, %v3813_v51  ;;  %3292 = vst.msk [vmem:[%s6075_s3 + $0x1b0] sm:$0xf] %vm3183_vm0, %v3913_v52  ;;  %v3814_v55 = vpack.c.bf16 %v2192_v53, %v2192_v53  ;;  %v3914_v56 = vpack.c.bf16 %v2292_v54, %v2292_v54  ;;  %v4264_v52 = vld [vmem:[%s6073_s0 + $0x234] ss:$8 sps:$4 sm:$0xff]  }
 0x13c   :  { %v1424_v57 = vpop.f32.mrb[20].mxu0  ;;  %v1824_v58 = vpop.f32.mrb[20].mxu1  ;;  %v4266_v53 = vld [vmem:[%s6073_s0 + $0x554] ss:$8 sps:$4 sm:$0xff]  }
 0x13d   :  { %3193 = vst.msk [vmem:[%s6075_s3 + $0x24] sm:$0xf] %vm3183_vm0, %v3814_v55  ;;  %3293 = vst.msk [vmem:[%s6075_s3 + $0x1b4] sm:$0xf] %vm3183_vm0, %v3914_v56  ;;  %v1425_v59 = vadd.f32 %v4790_v63, %v1424_v57  ;;  %v1825_v60 = vadd.f32 %v4790_v63, %v1824_v58  ;;  %v1426_v61 = vpop.f32.mrb[21].mxu0  ;;  %v1826_v62 = vpop.f32.mrb[21].mxu1 }
 0x13e   :  { %v1427_v2 = vpop.f32.mrb[22].mxu0  ;;  %v1827_v3 = vpop.f32.mrb[22].mxu1 }
 0x13f   :  { %v2193_v6 = vmax.f32 %v1425_v59, 0.0  ;;  %v2293_v7 = vmax.f32 %v1825_v60, 0.0  ;;  %v1428_v8 = vadd.f32 %v4790_v63, %v1427_v2  ;;  %v1828_v9 = vadd.f32 %v4790_v63, %v1827_v3  ;;  %v1429_v10 = vpop.f32.mrb[23].mxu0  ;;  %v1829_v11 = vpop.f32.mrb[23].mxu1 }
 0x140   :  { %v4269_v10 = vld [vmem:[%s6073_s0 + $0x550] ss:$8 sps:$4 sm:$0xff]  }
 0x141   :  { %v3815_v12 = vpack.c.bf16 %v2193_v6, %v2193_v6  ;;  %v3915_v13 = vpack.c.bf16 %v2293_v7, %v2293_v7  ;;  %v2194_v14 = vmax.f32 %v1428_v8, 0.0  ;;  %v2294_v15 = vmax.f32 %v1828_v9, 0.0  ;;  %1639 = vmatmul.mubr.bf16.gmra.mrb[128].mxu0 %v4250_v0  ;;  %2039 = vmatmul.mubr.bf16.gmra.mrb[128].mxu1 %v4251_v1  ;;  %v4268_v9 = vld [vmem:[%s6073_s0 + $0x230] ss:$8 sps:$4 sm:$0xff]  }
 0x142   :  { %1646 = vmatprep.mubr.bf16.mxu0 %v4252_v4  ;;  %2046 = vmatprep.mubr.bf16.mxu1 %v4254_v5 }
 0x143   :  { %3194 = vst.msk [vmem:[%s6075_s3 + $0x28] sm:$0xf] %vm3183_vm0, %v3815_v12  ;;  %3294 = vst.msk [vmem:[%s6075_s3 + $0x1b8] sm:$0xf] %vm3183_vm0, %v3915_v13  ;;  %v3816_v16 = vpack.c.bf16 %v2194_v14, %v2194_v14  ;;  %v3916_v17 = vpack.c.bf16 %v2294_v15, %v2294_v15  ;;  %v4270_v13 = vld [vmem:[%s6073_s0 + $0x244] ss:$8 sps:$4 sm:$0xff]  }
 0x144   :  { %v1432_v18 = vpop.f32.mrb[24].mxu0  ;;  %v1832_v19 = vpop.f32.mrb[24].mxu1  ;;  %v4272_v14 = vld [vmem:[%s6073_s0 + $0x564] ss:$8 sps:$4 sm:$0xff]  }
 0x145   :  { %3195 = vst.msk [vmem:[%s6075_s3 + $0x2c] sm:$0xf] %vm3183_vm0, %v3816_v16  ;;  %3295 = vst.msk [vmem:[%s6075_s3 + $0x1bc] sm:$0xf] %vm3183_vm0, %v3916_v17  ;;  %v1433_v20 = vadd.f32 %v4790_v63, %v1432_v18  ;;  %v1833_v21 = vadd.f32 %v4790_v63, %v1832_v19  ;;  %v1434_v22 = vpop.f32.mrb[25].mxu0  ;;  %v1834_v23 = vpop.f32.mrb[25].mxu1 }
 0x146   :  { %v1435_v26 = vpop.f32.mrb[26].mxu0  ;;  %v1835_v27 = vpop.f32.mrb[26].mxu1 }
 0x147   :  { %v2195_v30 = vmax.f32 %v1433_v20, 0.0  ;;  %v2295_v31 = vmax.f32 %v1833_v21, 0.0  ;;  %v1436_v32 = vadd.f32 %v4790_v63, %v1435_v26  ;;  %v1836_v33 = vadd.f32 %v4790_v63, %v1835_v27  ;;  %v1437_v34 = vpop.f32.mrb[27].mxu0  ;;  %v1837_v35 = vpop.f32.mrb[27].mxu1 }
 0x148   :  { %v4275_v34 = vld [vmem:[%s6073_s0 + $0x560] ss:$8 sps:$4 sm:$0xff]  }
 0x149   :  { %v3817_v36 = vpack.c.bf16 %v2195_v30, %v2195_v30  ;;  %v3917_v37 = vpack.c.bf16 %v2295_v31, %v2295_v31  ;;  %v2196_v38 = vmax.f32 %v1436_v32, 0.0  ;;  %v2296_v39 = vmax.f32 %v1836_v33, 0.0  ;;  %1647 = vmatmul.mubr.bf16.gmra.mrb[132].mxu0 %v4256_v24  ;;  %2047 = vmatmul.mubr.bf16.gmra.mrb[132].mxu1 %v4257_v25  ;;  %v4274_v33 = vld [vmem:[%s6073_s0 + $0x240] ss:$8 sps:$4 sm:$0xff]  }
 0x14a   :  { %1654 = vmatprep.mubr.bf16.mxu0 %v4258_v28  ;;  %2054 = vmatprep.mubr.bf16.mxu1 %v4260_v29 }
 0x14b   :  { %3196 = vst.msk [vmem:[%s6075_s3 + $0x30] sm:$0xf] %vm3183_vm0, %v3817_v36  ;;  %3296 = vst.msk [vmem:[%s6075_s3 + $0x1c0] sm:$0xf] %vm3183_vm0, %v3917_v37  ;;  %v3818_v40 = vpack.c.bf16 %v2196_v38, %v2196_v38  ;;  %v3918_v41 = vpack.c.bf16 %v2296_v39, %v2296_v39  ;;  %v4276_v37 = vld [vmem:[%s6073_s0 + $0x254] ss:$8 sps:$4 sm:$0xff]  }
 0x14c   :  { %v1440_v42 = vpop.f32.mrb[28].mxu0  ;;  %v1840_v43 = vpop.f32.mrb[28].mxu1  ;;  %v4278_v38 = vld [vmem:[%s6073_s0 + $0x574] ss:$8 sps:$4 sm:$0xff]  }
 0x14d   :  { %3197 = vst.msk [vmem:[%s6075_s3 + $0x34] sm:$0xf] %vm3183_vm0, %v3818_v40  ;;  %3297 = vst.msk [vmem:[%s6075_s3 + $0x1c4] sm:$0xf] %vm3183_vm0, %v3918_v41  ;;  %v1441_v44 = vadd.f32 %v4790_v63, %v1440_v42  ;;  %v1841_v45 = vadd.f32 %v4790_v63, %v1840_v43  ;;  %v1442_v46 = vpop.f32.mrb[29].mxu0  ;;  %v1842_v47 = vpop.f32.mrb[29].mxu1 }
 0x14e   :  { %v1443_v50 = vpop.f32.mrb[30].mxu0  ;;  %v1843_v51 = vpop.f32.mrb[30].mxu1 }
 0x14f   :  { %v2197_v54 = vmax.f32 %v1441_v44, 0.0  ;;  %v2297_v55 = vmax.f32 %v1841_v45, 0.0  ;;  %v1444_v56 = vadd.f32 %v4790_v63, %v1443_v50  ;;  %v1844_v57 = vadd.f32 %v4790_v63, %v1843_v51  ;;  %v1445_v58 = vpop.f32.mrb[31].mxu0  ;;  %v1845_v59 = vpop.f32.mrb[31].mxu1 }
 0x150   :  { %v4281_v58 = vld [vmem:[%s6073_s0 + $0x570] ss:$8 sps:$4 sm:$0xff]  }
 0x151   :  { %v3819_v60 = vpack.c.bf16 %v2197_v54, %v2197_v54  ;;  %v3919_v61 = vpack.c.bf16 %v2297_v55, %v2297_v55  ;;  %v2198_v62 = vmax.f32 %v1444_v56, 0.0  ;;  %v2298_v0 = vmax.f32 %v1844_v57, 0.0  ;;  %1655 = vmatmul.mubr.bf16.gmra.mrb[136].mxu0 %v4262_v48  ;;  %2055 = vmatmul.mubr.bf16.gmra.mrb[136].mxu1 %v4263_v49  ;;  %v4280_v57 = vld [vmem:[%s6073_s0 + $0x250] ss:$8 sps:$4 sm:$0xff]  }
 0x152   :  { %1662 = vmatprep.mubr.bf16.mxu0 %v4264_v52  ;;  %2062 = vmatprep.mubr.bf16.mxu1 %v4266_v53 }
 0x153   :  { %3198 = vst.msk [vmem:[%s6075_s3 + $0x38] sm:$0xf] %vm3183_vm0, %v3819_v60  ;;  %3298 = vst.msk [vmem:[%s6075_s3 + $0x1c8] sm:$0xf] %vm3183_vm0, %v3919_v61  ;;  %v3820_v1 = vpack.c.bf16 %v2198_v62, %v2198_v62  ;;  %v3920_v2 = vpack.c.bf16 %v2298_v0, %v2298_v0  ;;  %v4282_v61 = vld [vmem:[%s6073_s0 + $0x264] ss:$8 sps:$4 sm:$0xff]  }
 0x154   :  { %v1448_v3 = vpop.f32.mrb[32].mxu0  ;;  %v1848_v4 = vpop.f32.mrb[32].mxu1  ;;  %v4284_v62 = vld [vmem:[%s6073_s0 + $0x584] ss:$8 sps:$4 sm:$0xff]  }
 0x155   :  { %3199 = vst.msk [vmem:[%s6075_s3 + $0x3c] sm:$0xf] %vm3183_vm0, %v3820_v1  ;;  %3299 = vst.msk [vmem:[%s6075_s3 + $0x1cc] sm:$0xf] %vm3183_vm0, %v3920_v2  ;;  %v1449_v5 = vadd.f32 %v4790_v63, %v1448_v3  ;;  %v1849_v6 = vadd.f32 %v4790_v63, %v1848_v4  ;;  %v1450_v7 = vpop.f32.mrb[33].mxu0  ;;  %v1850_v8 = vpop.f32.mrb[33].mxu1 }
 0x156   :  { %v1451_v11 = vpop.f32.mrb[34].mxu0  ;;  %v1851_v12 = vpop.f32.mrb[34].mxu1 }
 0x157   :  { %v2199_v15 = vmax.f32 %v1449_v5, 0.0  ;;  %v2299_v16 = vmax.f32 %v1849_v6, 0.0  ;;  %v1452_v17 = vadd.f32 %v4790_v63, %v1451_v11  ;;  %v1852_v18 = vadd.f32 %v4790_v63, %v1851_v12  ;;  %v1453_v19 = vpop.f32.mrb[35].mxu0  ;;  %v1853_v20 = vpop.f32.mrb[35].mxu1 }
 0x158   :  { %v4287_v19 = vld [vmem:[%s6073_s0 + $0x580] ss:$8 sps:$4 sm:$0xff]  }
 0x159   :  { %v3821_v21 = vpack.c.bf16 %v2199_v15, %v2199_v15  ;;  %v3921_v22 = vpack.c.bf16 %v2299_v16, %v2299_v16  ;;  %v2200_v23 = vmax.f32 %v1452_v17, 0.0  ;;  %v2300_v24 = vmax.f32 %v1852_v18, 0.0  ;;  %1663 = vmatmul.mubr.bf16.gmra.mrb[140].mxu0 %v4268_v9  ;;  %2063 = vmatmul.mubr.bf16.gmra.mrb[140].mxu1 %v4269_v10  ;;  %v4286_v18 = vld [vmem:[%s6073_s0 + $0x260] ss:$8 sps:$4 sm:$0xff]  }
 0x15a   :  { %1670 = vmatprep.mubr.bf16.mxu0 %v4270_v13  ;;  %2070 = vmatprep.mubr.bf16.mxu1 %v4272_v14 }
 0x15b   :  { %3200 = vst.msk [vmem:[%s6075_s3 + $0x40] sm:$0xf] %vm3183_vm0, %v3821_v21  ;;  %3300 = vst.msk [vmem:[%s6075_s3 + $0x1d0] sm:$0xf] %vm3183_vm0, %v3921_v22  ;;  %v3822_v25 = vpack.c.bf16 %v2200_v23, %v2200_v23  ;;  %v3922_v26 = vpack.c.bf16 %v2300_v24, %v2300_v24  ;;  %v4288_v22 = vld [vmem:[%s6073_s0 + $0x274] ss:$8 sps:$4 sm:$0xff]  }
 0x15c   :  { %v1456_v27 = vpop.f32.mrb[36].mxu0  ;;  %v1856_v28 = vpop.f32.mrb[36].mxu1  ;;  %v4290_v23 = vld [vmem:[%s6073_s0 + $0x594] ss:$8 sps:$4 sm:$0xff]  }
 0x15d   :  { %3201 = vst.msk [vmem:[%s6075_s3 + $0x44] sm:$0xf] %vm3183_vm0, %v3822_v25  ;;  %3301 = vst.msk [vmem:[%s6075_s3 + $0x1d4] sm:$0xf] %vm3183_vm0, %v3922_v26  ;;  %v1457_v29 = vadd.f32 %v4790_v63, %v1456_v27  ;;  %v1857_v30 = vadd.f32 %v4790_v63, %v1856_v28  ;;  %v1458_v31 = vpop.f32.mrb[37].mxu0  ;;  %v1858_v32 = vpop.f32.mrb[37].mxu1 }
 0x15e   :  { %v1459_v35 = vpop.f32.mrb[38].mxu0  ;;  %v1859_v36 = vpop.f32.mrb[38].mxu1 }
 0x15f   :  { %v2201_v39 = vmax.f32 %v1457_v29, 0.0  ;;  %v2301_v40 = vmax.f32 %v1857_v30, 0.0  ;;  %v1460_v41 = vadd.f32 %v4790_v63, %v1459_v35  ;;  %v1860_v42 = vadd.f32 %v4790_v63, %v1859_v36  ;;  %v1461_v43 = vpop.f32.mrb[39].mxu0  ;;  %v1861_v44 = vpop.f32.mrb[39].mxu1 }
 0x160   :  { %v4293_v43 = vld [vmem:[%s6073_s0 + $0x590] ss:$8 sps:$4 sm:$0xff]  }
 0x161   :  { %v3823_v45 = vpack.c.bf16 %v2201_v39, %v2201_v39  ;;  %v3923_v46 = vpack.c.bf16 %v2301_v40, %v2301_v40  ;;  %v2202_v47 = vmax.f32 %v1460_v41, 0.0  ;;  %v2302_v48 = vmax.f32 %v1860_v42, 0.0  ;;  %1671 = vmatmul.mubr.bf16.gmra.mrb[144].mxu0 %v4274_v33  ;;  %2071 = vmatmul.mubr.bf16.gmra.mrb[144].mxu1 %v4275_v34  ;;  %v4292_v42 = vld [vmem:[%s6073_s0 + $0x270] ss:$8 sps:$4 sm:$0xff]  }
 0x162   :  { %1678 = vmatprep.mubr.bf16.mxu0 %v4276_v37  ;;  %2078 = vmatprep.mubr.bf16.mxu1 %v4278_v38 }
 0x163   :  { %3202 = vst.msk [vmem:[%s6075_s3 + $0x48] sm:$0xf] %vm3183_vm0, %v3823_v45  ;;  %3302 = vst.msk [vmem:[%s6075_s3 + $0x1d8] sm:$0xf] %vm3183_vm0, %v3923_v46  ;;  %v3824_v49 = vpack.c.bf16 %v2202_v47, %v2202_v47  ;;  %v3924_v50 = vpack.c.bf16 %v2302_v48, %v2302_v48  ;;  %v4294_v46 = vld [vmem:[%s6073_s0 + $0x284] ss:$8 sps:$4 sm:$0xff]  }
 0x164   :  { %v1464_v51 = vpop.f32.mrb[40].mxu0  ;;  %v1864_v52 = vpop.f32.mrb[40].mxu1  ;;  %v4296_v47 = vld [vmem:[%s6073_s0 + $0x5a4] ss:$8 sps:$4 sm:$0xff]  }
 0x165   :  { %3203 = vst.msk [vmem:[%s6075_s3 + $0x4c] sm:$0xf] %vm3183_vm0, %v3824_v49  ;;  %3303 = vst.msk [vmem:[%s6075_s3 + $0x1dc] sm:$0xf] %vm3183_vm0, %v3924_v50  ;;  %v1465_v53 = vadd.f32 %v4790_v63, %v1464_v51  ;;  %v1865_v54 = vadd.f32 %v4790_v63, %v1864_v52  ;;  %v1466_v55 = vpop.f32.mrb[41].mxu0  ;;  %v1866_v56 = vpop.f32.mrb[41].mxu1 }
 0x166   :  { %v1467_v59 = vpop.f32.mrb[42].mxu0  ;;  %v1867_v60 = vpop.f32.mrb[42].mxu1 }
 0x167   :  { %v2203_v0 = vmax.f32 %v1465_v53, 0.0  ;;  %v2303_v1 = vmax.f32 %v1865_v54, 0.0  ;;  %v1468_v2 = vadd.f32 %v4790_v63, %v1467_v59  ;;  %v1868_v3 = vadd.f32 %v4790_v63, %v1867_v60  ;;  %v1469_v4 = vpop.f32.mrb[43].mxu0  ;;  %v1869_v5 = vpop.f32.mrb[43].mxu1 }
 0x168   :  { %v4299_v4 = vld [vmem:[%s6073_s0 + $0x5a0] ss:$8 sps:$4 sm:$0xff]  }
 0x169   :  { %v3825_v6 = vpack.c.bf16 %v2203_v0, %v2203_v0  ;;  %v3925_v7 = vpack.c.bf16 %v2303_v1, %v2303_v1  ;;  %v2204_v8 = vmax.f32 %v1468_v2, 0.0  ;;  %v2304_v9 = vmax.f32 %v1868_v3, 0.0  ;;  %1679 = vmatmul.mubr.bf16.gmra.mrb[148].mxu0 %v4280_v57  ;;  %2079 = vmatmul.mubr.bf16.gmra.mrb[148].mxu1 %v4281_v58  ;;  %v4298_v3 = vld [vmem:[%s6073_s0 + $0x280] ss:$8 sps:$4 sm:$0xff]  }
 0x16a   :  { %1686 = vmatprep.mubr.bf16.mxu0 %v4282_v61  ;;  %2086 = vmatprep.mubr.bf16.mxu1 %v4284_v62 }
 0x16b   :  { %3204 = vst.msk [vmem:[%s6075_s3 + $0x50] sm:$0xf] %vm3183_vm0, %v3825_v6  ;;  %3304 = vst.msk [vmem:[%s6075_s3 + $0x1e0] sm:$0xf] %vm3183_vm0, %v3925_v7  ;;  %v3826_v10 = vpack.c.bf16 %v2204_v8, %v2204_v8  ;;  %v3926_v11 = vpack.c.bf16 %v2304_v9, %v2304_v9  ;;  %v4300_v7 = vld [vmem:[%s6073_s0 + $0x294] ss:$8 sps:$4 sm:$0xff]  }
 0x16c   :  { %v1472_v12 = vpop.f32.mrb[44].mxu0  ;;  %v1872_v13 = vpop.f32.mrb[44].mxu1  ;;  %v4302_v8 = vld [vmem:[%s6073_s0 + $0x5b4] ss:$8 sps:$4 sm:$0xff]  }
 0x16d   :  { %3205 = vst.msk [vmem:[%s6075_s3 + $0x54] sm:$0xf] %vm3183_vm0, %v3826_v10  ;;  %3305 = vst.msk [vmem:[%s6075_s3 + $0x1e4] sm:$0xf] %vm3183_vm0, %v3926_v11  ;;  %v1473_v14 = vadd.f32 %v4790_v63, %v1472_v12  ;;  %v1873_v15 = vadd.f32 %v4790_v63, %v1872_v13  ;;  %v1474_v16 = vpop.f32.mrb[45].mxu0  ;;  %v1874_v17 = vpop.f32.mrb[45].mxu1 }
 0x16e   :  { %v1475_v20 = vpop.f32.mrb[46].mxu0  ;;  %v1875_v21 = vpop.f32.mrb[46].mxu1 }
 0x16f   :  { %v2205_v24 = vmax.f32 %v1473_v14, 0.0  ;;  %v2305_v25 = vmax.f32 %v1873_v15, 0.0  ;;  %v1476_v26 = vadd.f32 %v4790_v63, %v1475_v20  ;;  %v1876_v27 = vadd.f32 %v4790_v63, %v1875_v21  ;;  %v1477_v28 = vpop.f32.mrb[47].mxu0  ;;  %v1877_v29 = vpop.f32.mrb[47].mxu1 }
 0x170   :  { %v4305_v28 = vld [vmem:[%s6073_s0 + $0x5b0] ss:$8 sps:$4 sm:$0xff]  }
 0x171   :  { %v3827_v30 = vpack.c.bf16 %v2205_v24, %v2205_v24  ;;  %v3927_v31 = vpack.c.bf16 %v2305_v25, %v2305_v25  ;;  %v2206_v32 = vmax.f32 %v1476_v26, 0.0  ;;  %v2306_v33 = vmax.f32 %v1876_v27, 0.0  ;;  %1687 = vmatmul.mubr.bf16.gmra.mrb[152].mxu0 %v4286_v18  ;;  %2087 = vmatmul.mubr.bf16.gmra.mrb[152].mxu1 %v4287_v19  ;;  %v4304_v27 = vld [vmem:[%s6073_s0 + $0x290] ss:$8 sps:$4 sm:$0xff]  }
 0x172   :  { %1694 = vmatprep.mubr.bf16.mxu0 %v4288_v22  ;;  %2094 = vmatprep.mubr.bf16.mxu1 %v4290_v23 }
 0x173   :  { %3206 = vst.msk [vmem:[%s6075_s3 + $0x58] sm:$0xf] %vm3183_vm0, %v3827_v30  ;;  %3306 = vst.msk [vmem:[%s6075_s3 + $0x1e8] sm:$0xf] %vm3183_vm0, %v3927_v31  ;;  %v3828_v34 = vpack.c.bf16 %v2206_v32, %v2206_v32  ;;  %v3928_v35 = vpack.c.bf16 %v2306_v33, %v2306_v33  ;;  %v4306_v31 = vld [vmem:[%s6073_s0 + $0x2a4] ss:$8 sps:$4 sm:$0xff]  }
 0x174   :  { %v1480_v36 = vpop.f32.mrb[48].mxu0  ;;  %v1880_v37 = vpop.f32.mrb[48].mxu1  ;;  %v4308_v32 = vld [vmem:[%s6073_s0 + $0x5c4] ss:$8 sps:$4 sm:$0xff]  }
 0x175   :  { %3207 = vst.msk [vmem:[%s6075_s3 + $0x5c] sm:$0xf] %vm3183_vm0, %v3828_v34  ;;  %3307 = vst.msk [vmem:[%s6075_s3 + $0x1ec] sm:$0xf] %vm3183_vm0, %v3928_v35  ;;  %v1481_v38 = vadd.f32 %v4790_v63, %v1480_v36  ;;  %v1881_v39 = vadd.f32 %v4790_v63, %v1880_v37  ;;  %v1482_v40 = vpop.f32.mrb[49].mxu0  ;;  %v1882_v41 = vpop.f32.mrb[49].mxu1 }
 0x176   :  { %v1483_v44 = vpop.f32.mrb[50].mxu0  ;;  %v1883_v45 = vpop.f32.mrb[50].mxu1 }
 0x177   :  { %v2207_v48 = vmax.f32 %v1481_v38, 0.0  ;;  %v2307_v49 = vmax.f32 %v1881_v39, 0.0  ;;  %v1484_v50 = vadd.f32 %v4790_v63, %v1483_v44  ;;  %v1884_v51 = vadd.f32 %v4790_v63, %v1883_v45  ;;  %v1485_v52 = vpop.f32.mrb[51].mxu0  ;;  %v1885_v53 = vpop.f32.mrb[51].mxu1 }
 0x178   :  { %v4311_v52 = vld [vmem:[%s6073_s0 + $0x5c0] ss:$8 sps:$4 sm:$0xff]  }
 0x179   :  { %v3829_v54 = vpack.c.bf16 %v2207_v48, %v2207_v48  ;;  %v3929_v55 = vpack.c.bf16 %v2307_v49, %v2307_v49  ;;  %v2208_v56 = vmax.f32 %v1484_v50, 0.0  ;;  %v2308_v57 = vmax.f32 %v1884_v51, 0.0  ;;  %1695 = vmatmul.mubr.bf16.gmra.mrb[156].mxu0 %v4292_v42  ;;  %2095 = vmatmul.mubr.bf16.gmra.mrb[156].mxu1 %v4293_v43  ;;  %v4310_v51 = vld [vmem:[%s6073_s0 + $0x2a0] ss:$8 sps:$4 sm:$0xff]  }
 0x17a   :  { %1702 = vmatprep.mubr.bf16.mxu0 %v4294_v46  ;;  %2102 = vmatprep.mubr.bf16.mxu1 %v4296_v47 }
 0x17b   :  { %3208 = vst.msk [vmem:[%s6075_s3 + $0x60] sm:$0xf] %vm3183_vm0, %v3829_v54  ;;  %3308 = vst.msk [vmem:[%s6075_s3 + $0x1f0] sm:$0xf] %vm3183_vm0, %v3929_v55  ;;  %v3830_v58 = vpack.c.bf16 %v2208_v56, %v2208_v56  ;;  %v3930_v59 = vpack.c.bf16 %v2308_v57, %v2308_v57  ;;  %v4312_v55 = vld [vmem:[%s6073_s0 + $0x2b4] ss:$8 sps:$4 sm:$0xff]  }
 0x17c   :  { %v1488_v60 = vpop.f32.mrb[52].mxu0  ;;  %v1888_v61 = vpop.f32.mrb[52].mxu1  ;;  %v4314_v56 = vld [vmem:[%s6073_s0 + $0x5d4] ss:$8 sps:$4 sm:$0xff]  }
 0x17d   :  { %3209 = vst.msk [vmem:[%s6075_s3 + $0x64] sm:$0xf] %vm3183_vm0, %v3830_v58  ;;  %3309 = vst.msk [vmem:[%s6075_s3 + $0x1f4] sm:$0xf] %vm3183_vm0, %v3930_v59  ;;  %v1489_v62 = vadd.f32 %v4790_v63, %v1488_v60  ;;  %v1889_v0 = vadd.f32 %v4790_v63, %v1888_v61  ;;  %v1490_v1 = vpop.f32.mrb[53].mxu0  ;;  %v1890_v2 = vpop.f32.mrb[53].mxu1 }
 0x17e   :  { %v1491_v5 = vpop.f32.mrb[54].mxu0  ;;  %v1891_v6 = vpop.f32.mrb[54].mxu1 }
 0x17f   :  { %v2209_v9 = vmax.f32 %v1489_v62, 0.0  ;;  %v2309_v10 = vmax.f32 %v1889_v0, 0.0  ;;  %v1492_v11 = vadd.f32 %v4790_v63, %v1491_v5  ;;  %v1892_v12 = vadd.f32 %v4790_v63, %v1891_v6  ;;  %v1493_v13 = vpop.f32.mrb[55].mxu0  ;;  %v1893_v14 = vpop.f32.mrb[55].mxu1 }
 0x180   :  { %v4317_v13 = vld [vmem:[%s6073_s0 + $0x5d0] ss:$8 sps:$4 sm:$0xff]  }
 0x181   :  { %v3831_v15 = vpack.c.bf16 %v2209_v9, %v2209_v9  ;;  %v3931_v16 = vpack.c.bf16 %v2309_v10, %v2309_v10  ;;  %v2210_v17 = vmax.f32 %v1492_v11, 0.0  ;;  %v2310_v18 = vmax.f32 %v1892_v12, 0.0  ;;  %1703 = vmatmul.mubr.bf16.gmra.mrb[160].mxu0 %v4298_v3  ;;  %2103 = vmatmul.mubr.bf16.gmra.mrb[160].mxu1 %v4299_v4  ;;  %v4316_v12 = vld [vmem:[%s6073_s0 + $0x2b0] ss:$8 sps:$4 sm:$0xff]  }
 0x182   :  { %1710 = vmatprep.mubr.bf16.mxu0 %v4300_v7  ;;  %2110 = vmatprep.mubr.bf16.mxu1 %v4302_v8  ;;  %v5307_v7 = vld [vmem:[%s6074_s2] ss:$0 sm:$0xff] }
 0x183   :  { %3210 = vst.msk [vmem:[%s6075_s3 + $0x68] sm:$0xf] %vm3183_vm0, %v3831_v15  ;;  %3310 = vst.msk [vmem:[%s6075_s3 + $0x1f8] sm:$0xf] %vm3183_vm0, %v3931_v16  ;;  %v3832_v19 = vpack.c.bf16 %v2210_v17, %v2210_v17  ;;  %v3932_v20 = vpack.c.bf16 %v2310_v18, %v2310_v18  ;;  %v4318_v16 = vld [vmem:[%s6073_s0 + $0x2c4] ss:$8 sps:$4 sm:$0xff]  }
 0x184   :  { %v1496_v21 = vpop.f32.mrb[56].mxu0  ;;  %v1896_v22 = vpop.f32.mrb[56].mxu1  ;;  %v4320_v17 = vld [vmem:[%s6073_s0 + $0x5e4] ss:$8 sps:$4 sm:$0xff]  }
 0x185   :  { %3211 = vst.msk [vmem:[%s6075_s3 + $0x6c] sm:$0xf] %vm3183_vm0, %v3832_v19  ;;  %3311 = vst.msk [vmem:[%s6075_s3 + $0x1fc] sm:$0xf] %vm3183_vm0, %v3932_v20  ;;  %v1497_v23 = vadd.f32 %v4790_v63, %v1496_v21  ;;  %v1897_v24 = vadd.f32 %v4790_v63, %v1896_v22  ;;  %v1498_v25 = vpop.f32.mrb[57].mxu0  ;;  %v1898_v26 = vpop.f32.mrb[57].mxu1 }
 0x186   :  { %v1499_v29 = vpop.f32.mrb[58].mxu0  ;;  %v1899_v30 = vpop.f32.mrb[58].mxu1 }
 0x187   :  { %v2211_v33 = vmax.f32 %v1497_v23, 0.0  ;;  %v2311_v34 = vmax.f32 %v1897_v24, 0.0  ;;  %v1500_v35 = vadd.f32 %v4790_v63, %v1499_v29  ;;  %v1900_v36 = vadd.f32 %v4790_v63, %v1899_v30  ;;  %v1501_v37 = vpop.f32.mrb[59].mxu0  ;;  %v1901_v38 = vpop.f32.mrb[59].mxu1 }
 0x188   :  { %v4323_v37 = vld [vmem:[%s6073_s0 + $0x5e0] ss:$8 sps:$4 sm:$0xff]  }
 0x189   :  { %v3833_v39 = vpack.c.bf16 %v2211_v33, %v2211_v33  ;;  %v3933_v40 = vpack.c.bf16 %v2311_v34, %v2311_v34  ;;  %v2212_v41 = vmax.f32 %v1500_v35, 0.0  ;;  %v2312_v42 = vmax.f32 %v1900_v36, 0.0  ;;  %1711 = vmatmul.mubr.bf16.gmra.mrb[164].mxu0 %v4304_v27  ;;  %2111 = vmatmul.mubr.bf16.gmra.mrb[164].mxu1 %v4305_v28  ;;  %v4322_v36 = vld [vmem:[%s6073_s0 + $0x2c0] ss:$8 sps:$4 sm:$0xff]  }
 0x18a   :  { %1718 = vmatprep.mubr.bf16.mxu0 %v4306_v31  ;;  %2118 = vmatprep.mubr.bf16.mxu1 %v4308_v32 }
 0x18b   :  { %3212 = vst.msk [vmem:[%s6075_s3 + $0x70] sm:$0xf] %vm3183_vm0, %v3833_v39  ;;  %3312 = vst.msk [vmem:[%s6075_s3 + $0x200] sm:$0xf] %vm3183_vm0, %v3933_v40  ;;  %v3834_v43 = vpack.c.bf16 %v2212_v41, %v2212_v41  ;;  %v3934_v44 = vpack.c.bf16 %v2312_v42, %v2312_v42  ;;  %v4324_v40 = vld [vmem:[%s6073_s0 + $0x2d4] ss:$8 sps:$4 sm:$0xff]  }
 0x18c   :  { %v1504_v45 = vpop.f32.mrb[60].mxu0  ;;  %v1904_v46 = vpop.f32.mrb[60].mxu1  ;;  %v4326_v41 = vld [vmem:[%s6073_s0 + $0x5f4] ss:$8 sps:$4 sm:$0xff]  }
 0x18d   :  { %3213 = vst.msk [vmem:[%s6075_s3 + $0x74] sm:$0xf] %vm3183_vm0, %v3834_v43  ;;  %3313 = vst.msk [vmem:[%s6075_s3 + $0x204] sm:$0xf] %vm3183_vm0, %v3934_v44  ;;  %v1505_v47 = vadd.f32 %v4790_v63, %v1504_v45  ;;  %v1905_v48 = vadd.f32 %v4790_v63, %v1904_v46  ;;  %v1506_v49 = vpop.f32.mrb[61].mxu0  ;;  %v1906_v50 = vpop.f32.mrb[61].mxu1 }
 0x18e   :  { %v1507_v53 = vpop.f32.mrb[62].mxu0  ;;  %v1907_v54 = vpop.f32.mrb[62].mxu1 }
 0x18f   :  { %v2213_v57 = vmax.f32 %v1505_v47, 0.0  ;;  %v2313_v58 = vmax.f32 %v1905_v48, 0.0  ;;  %v1508_v59 = vadd.f32 %v4790_v63, %v1507_v53  ;;  %v1908_v60 = vadd.f32 %v4790_v63, %v1907_v54  ;;  %v1509_v61 = vpop.f32.mrb[63].mxu0  ;;  %v1909_v62 = vpop.f32.mrb[63].mxu1 }
 0x190   :  { %v4329_v61 = vld [vmem:[%s6073_s0 + $0x5f0] ss:$8 sps:$4 sm:$0xff]  }
 0x191   :  { %v3835_v0 = vpack.c.bf16 %v2213_v57, %v2213_v57  ;;  %v3935_v1 = vpack.c.bf16 %v2313_v58, %v2313_v58  ;;  %v2214_v2 = vmax.f32 %v1508_v59, 0.0  ;;  %v2314_v3 = vmax.f32 %v1908_v60, 0.0  ;;  %1719 = vmatmul.mubr.bf16.gmra.mrb[168].mxu0 %v4310_v51  ;;  %2119 = vmatmul.mubr.bf16.gmra.mrb[168].mxu1 %v4311_v52  ;;  %v4328_v60 = vld [vmem:[%s6073_s0 + $0x2d0] ss:$8 sps:$4 sm:$0xff]  }
 0x192   :  { %1726 = vmatprep.mubr.bf16.mxu0 %v4312_v55  ;;  %2126 = vmatprep.mubr.bf16.mxu1 %v4314_v56 }
 0x193   :  { %3214 = vst.msk [vmem:[%s6075_s3 + $0x78] sm:$0xf] %vm3183_vm0, %v3835_v0  ;;  %3314 = vst.msk [vmem:[%s6075_s3 + $0x208] sm:$0xf] %vm3183_vm0, %v3935_v1  ;;  %v3836_v63 = vpack.c.bf16 %v2214_v2, %v2214_v2  ;;  %v3936_v4 = vpack.c.bf16 %v2314_v3, %v2314_v3  ;;  %v4330_v1 = vld [vmem:[%s6073_s0 + $0x2e4] ss:$8 sps:$4 sm:$0xff]  }
 0x194   :  { %v1512_v5 = vpop.f32.mrb[64].mxu0  ;;  %v1912_v6 = vpop.f32.mrb[64].mxu1  ;;  %v4332_v2 = vld [vmem:[%s6073_s0 + $0x604] ss:$8 sps:$4 sm:$0xff]  }
 0x195   :  { %3215 = vst.msk [vmem:[%s6075_s3 + $0x7c] sm:$0xf] %vm3183_vm0, %v3836_v63  ;;  %3315 = vst.msk [vmem:[%s6075_s3 + $0x20c] sm:$0xf] %vm3183_vm0, %v3936_v4  ;;  %v1513_v8 = vadd.f32 %v5307_v7, %v1512_v5  ;;  %v1913_v9 = vadd.f32 %v5307_v7, %v1912_v6  ;;  %v1514_v10 = vpop.f32.mrb[65].mxu0  ;;  %v1914_v11 = vpop.f32.mrb[65].mxu1 }
 0x196   :  { %v1515_v14 = vpop.f32.mrb[66].mxu0  ;;  %v1915_v15 = vpop.f32.mrb[66].mxu1 }
 0x197   :  { %v2215_v18 = vmax.f32 %v1513_v8, 0.0  ;;  %v2315_v19 = vmax.f32 %v1913_v9, 0.0  ;;  %v1516_v20 = vadd.f32 %v5307_v7, %v1515_v14  ;;  %v1916_v21 = vadd.f32 %v5307_v7, %v1915_v15  ;;  %v1517_v22 = vpop.f32.mrb[67].mxu0  ;;  %v1917_v23 = vpop.f32.mrb[67].mxu1 }
 0x198   :  { %v4335_v22 = vld [vmem:[%s6073_s0 + $0x600] ss:$8 sps:$4 sm:$0xff]  }
 0x199   :  { %v3837_v24 = vpack.c.bf16 %v2215_v18, %v2215_v18  ;;  %v3937_v25 = vpack.c.bf16 %v2315_v19, %v2315_v19  ;;  %v2216_v26 = vmax.f32 %v1516_v20, 0.0  ;;  %v2316_v27 = vmax.f32 %v1916_v21, 0.0  ;;  %1727 = vmatmul.mubr.bf16.gmra.mrb[172].mxu0 %v4316_v12  ;;  %2127 = vmatmul.mubr.bf16.gmra.mrb[172].mxu1 %v4317_v13  ;;  %v4334_v21 = vld [vmem:[%s6073_s0 + $0x2e0] ss:$8 sps:$4 sm:$0xff]  }
 0x19a   :  { %1734 = vmatprep.mubr.bf16.mxu0 %v4318_v16  ;;  %2134 = vmatprep.mubr.bf16.mxu1 %v4320_v17 }
 0x19b   :  { %3216 = vst.msk [vmem:[%s6075_s3 + $0x80] sm:$0xf] %vm3183_vm0, %v3837_v24  ;;  %3316 = vst.msk [vmem:[%s6075_s3 + $0x210] sm:$0xf] %vm3183_vm0, %v3937_v25  ;;  %v3838_v28 = vpack.c.bf16 %v2216_v26, %v2216_v26  ;;  %v3938_v29 = vpack.c.bf16 %v2316_v27, %v2316_v27  ;;  %v4336_v25 = vld [vmem:[%s6073_s0 + $0x2f4] ss:$8 sps:$4 sm:$0xff]  }
 0x19c   :  { %v1520_v30 = vpop.f32.mrb[68].mxu0  ;;  %v1920_v31 = vpop.f32.mrb[68].mxu1  ;;  %v4338_v26 = vld [vmem:[%s6073_s0 + $0x614] ss:$8 sps:$4 sm:$0xff]  }
 0x19d   :  { %3217 = vst.msk [vmem:[%s6075_s3 + $0x84] sm:$0xf] %vm3183_vm0, %v3838_v28  ;;  %3317 = vst.msk [vmem:[%s6075_s3 + $0x214] sm:$0xf] %vm3183_vm0, %v3938_v29  ;;  %v1521_v32 = vadd.f32 %v5307_v7, %v1520_v30  ;;  %v1921_v33 = vadd.f32 %v5307_v7, %v1920_v31  ;;  %v1522_v34 = vpop.f32.mrb[69].mxu0  ;;  %v1922_v35 = vpop.f32.mrb[69].mxu1 }
 0x19e   :  { %v1523_v38 = vpop.f32.mrb[70].mxu0  ;;  %v1923_v39 = vpop.f32.mrb[70].mxu1 }
 0x19f   :  { %v2217_v42 = vmax.f32 %v1521_v32, 0.0  ;;  %v2317_v43 = vmax.f32 %v1921_v33, 0.0  ;;  %v1524_v44 = vadd.f32 %v5307_v7, %v1523_v38  ;;  %v1924_v45 = vadd.f32 %v5307_v7, %v1923_v39  ;;  %v1525_v46 = vpop.f32.mrb[71].mxu0  ;;  %v1925_v47 = vpop.f32.mrb[71].mxu1 }
 0x1a0   :  { %v4341_v46 = vld [vmem:[%s6073_s0 + $0x610] ss:$8 sps:$4 sm:$0xff]  }
 0x1a1   :  { %v3839_v48 = vpack.c.bf16 %v2217_v42, %v2217_v42  ;;  %v3939_v49 = vpack.c.bf16 %v2317_v43, %v2317_v43  ;;  %v2218_v50 = vmax.f32 %v1524_v44, 0.0  ;;  %v2318_v51 = vmax.f32 %v1924_v45, 0.0  ;;  %1735 = vmatmul.mubr.bf16.gmra.mrb[176].mxu0 %v4322_v36  ;;  %2135 = vmatmul.mubr.bf16.gmra.mrb[176].mxu1 %v4323_v37  ;;  %v4340_v45 = vld [vmem:[%s6073_s0 + $0x2f0] ss:$8 sps:$4 sm:$0xff]  }
 0x1a2   :  { %1742 = vmatprep.mubr.bf16.mxu0 %v4324_v40  ;;  %2142 = vmatprep.mubr.bf16.mxu1 %v4326_v41 }
 0x1a3   :  { %3218 = vst.msk [vmem:[%s6075_s3 + $0x88] sm:$0xf] %vm3183_vm0, %v3839_v48  ;;  %3318 = vst.msk [vmem:[%s6075_s3 + $0x218] sm:$0xf] %vm3183_vm0, %v3939_v49  ;;  %v3840_v52 = vpack.c.bf16 %v2218_v50, %v2218_v50  ;;  %v3940_v53 = vpack.c.bf16 %v2318_v51, %v2318_v51  ;;  %v4342_v49 = vld [vmem:[%s6073_s0 + $0x304] ss:$8 sps:$4 sm:$0xff]  }
 0x1a4   :  { %v1528_v54 = vpop.f32.mrb[72].mxu0  ;;  %v1928_v55 = vpop.f32.mrb[72].mxu1  ;;  %v4344_v50 = vld [vmem:[%s6073_s0 + $0x624] ss:$8 sps:$4 sm:$0xff]  }
 0x1a5   :  { %3219 = vst.msk [vmem:[%s6075_s3 + $0x8c] sm:$0xf] %vm3183_vm0, %v3840_v52  ;;  %3319 = vst.msk [vmem:[%s6075_s3 + $0x21c] sm:$0xf] %vm3183_vm0, %v3940_v53  ;;  %v1529_v56 = vadd.f32 %v5307_v7, %v1528_v54  ;;  %v1929_v57 = vadd.f32 %v5307_v7, %v1928_v55  ;;  %v1530_v58 = vpop.f32.mrb[73].mxu0  ;;  %v1930_v59 = vpop.f32.mrb[73].mxu1 }
 0x1a6   :  { %v1531_v62 = vpop.f32.mrb[74].mxu0  ;;  %v1931_v0 = vpop.f32.mrb[74].mxu1 }
 0x1a7   :  { %v2219_v3 = vmax.f32 %v1529_v56, 0.0  ;;  %v2319_v63 = vmax.f32 %v1929_v57, 0.0  ;;  %v1532_v4 = vadd.f32 %v5307_v7, %v1531_v62  ;;  %v1932_v5 = vadd.f32 %v5307_v7, %v1931_v0  ;;  %v1533_v6 = vpop.f32.mrb[75].mxu0  ;;  %v1933_v8 = vpop.f32.mrb[75].mxu1 }
 0x1a8   :  { %v4347_v6 = vld [vmem:[%s6073_s0 + $0x620] ss:$8 sps:$4 sm:$0xff]  }
 0x1a9   :  { %v3841_v9 = vpack.c.bf16 %v2219_v3, %v2219_v3  ;;  %v3941_v10 = vpack.c.bf16 %v2319_v63, %v2319_v63  ;;  %v2220_v11 = vmax.f32 %v1532_v4, 0.0  ;;  %v2320_v12 = vmax.f32 %v1932_v5, 0.0  ;;  %1743 = vmatmul.mubr.bf16.gmra.mrb[180].mxu0 %v4328_v60  ;;  %2143 = vmatmul.mubr.bf16.gmra.mrb[180].mxu1 %v4329_v61  ;;  %v4346_v5 = vld [vmem:[%s6073_s0 + $0x300] ss:$8 sps:$4 sm:$0xff]  }
 0x1aa   :  { %1750 = vmatprep.mubr.bf16.mxu0 %v4330_v1  ;;  %2150 = vmatprep.mubr.bf16.mxu1 %v4332_v2 }
 0x1ab   :  { %3220 = vst.msk [vmem:[%s6075_s3 + $0x90] sm:$0xf] %vm3183_vm0, %v3841_v9  ;;  %3320 = vst.msk [vmem:[%s6075_s3 + $0x220] sm:$0xf] %vm3183_vm0, %v3941_v10  ;;  %v3842_v13 = vpack.c.bf16 %v2220_v11, %v2220_v11  ;;  %v3942_v14 = vpack.c.bf16 %v2320_v12, %v2320_v12  ;;  %v4348_v10 = vld [vmem:[%s6073_s0 + $0x314] ss:$8 sps:$4 sm:$0xff]  }
 0x1ac   :  { %v1536_v15 = vpop.f32.mrb[76].mxu0  ;;  %v1936_v16 = vpop.f32.mrb[76].mxu1  ;;  %v4350_v11 = vld [vmem:[%s6073_s0 + $0x634] ss:$8 sps:$4 sm:$0xff]  }
 0x1ad   :  { %3221 = vst.msk [vmem:[%s6075_s3 + $0x94] sm:$0xf] %vm3183_vm0, %v3842_v13  ;;  %3321 = vst.msk [vmem:[%s6075_s3 + $0x224] sm:$0xf] %vm3183_vm0, %v3942_v14  ;;  %v1537_v17 = vadd.f32 %v5307_v7, %v1536_v15  ;;  %v1937_v18 = vadd.f32 %v5307_v7, %v1936_v16  ;;  %v1538_v19 = vpop.f32.mrb[77].mxu0  ;;  %v1938_v20 = vpop.f32.mrb[77].mxu1 }
 0x1ae   :  { %v1539_v23 = vpop.f32.mrb[78].mxu0  ;;  %v1939_v24 = vpop.f32.mrb[78].mxu1 }
 0x1af   :  { %v2221_v27 = vmax.f32 %v1537_v17, 0.0  ;;  %v2321_v28 = vmax.f32 %v1937_v18, 0.0  ;;  %v1540_v29 = vadd.f32 %v5307_v7, %v1539_v23  ;;  %v1940_v30 = vadd.f32 %v5307_v7, %v1939_v24  ;;  %v1541_v31 = vpop.f32.mrb[79].mxu0  ;;  %v1941_v32 = vpop.f32.mrb[79].mxu1 }
 0x1b0   :  { %v4353_v31 = vld [vmem:[%s6073_s0 + $0x630] ss:$8 sps:$4 sm:$0xff]  }
 0x1b1   :  { %v3843_v33 = vpack.c.bf16 %v2221_v27, %v2221_v27  ;;  %v3943_v34 = vpack.c.bf16 %v2321_v28, %v2321_v28  ;;  %v2222_v35 = vmax.f32 %v1540_v29, 0.0  ;;  %v2322_v36 = vmax.f32 %v1940_v30, 0.0  ;;  %1751 = vmatmul.mubr.bf16.gmra.mrb[184].mxu0 %v4334_v21  ;;  %2151 = vmatmul.mubr.bf16.gmra.mrb[184].mxu1 %v4335_v22  ;;  %v4352_v30 = vld [vmem:[%s6073_s0 + $0x310] ss:$8 sps:$4 sm:$0xff]  }
 0x1b2   :  { %1758 = vmatprep.mubr.bf16.mxu0 %v4336_v25  ;;  %2158 = vmatprep.mubr.bf16.mxu1 %v4338_v26 }
 0x1b3   :  { %3222 = vst.msk [vmem:[%s6075_s3 + $0x98] sm:$0xf] %vm3183_vm0, %v3843_v33  ;;  %3322 = vst.msk [vmem:[%s6075_s3 + $0x228] sm:$0xf] %vm3183_vm0, %v3943_v34  ;;  %v3844_v37 = vpack.c.bf16 %v2222_v35, %v2222_v35  ;;  %v3944_v38 = vpack.c.bf16 %v2322_v36, %v2322_v36 }
 0x1b4   :  { %v1544_v39 = vpop.f32.mrb[80].mxu0  ;;  %v1944_v40 = vpop.f32.mrb[80].mxu1 }
 0x1b5   :  { %3223 = vst.msk [vmem:[%s6075_s3 + $0x9c] sm:$0xf] %vm3183_vm0, %v3844_v37  ;;  %3323 = vst.msk [vmem:[%s6075_s3 + $0x22c] sm:$0xf] %vm3183_vm0, %v3944_v38  ;;  %v1545_v41 = vadd.f32 %v5307_v7, %v1544_v39  ;;  %v1945_v42 = vadd.f32 %v5307_v7, %v1944_v40  ;;  %v1546_v43 = vpop.f32.mrb[81].mxu0  ;;  %v1946_v44 = vpop.f32.mrb[81].mxu1 }
 0x1b6   :  { %v1547_v47 = vpop.f32.mrb[82].mxu0  ;;  %v1947_v48 = vpop.f32.mrb[82].mxu1 }
 0x1b7   :  { %v2223_v51 = vmax.f32 %v1545_v41, 0.0  ;;  %v2323_v52 = vmax.f32 %v1945_v42, 0.0  ;;  %v1548_v53 = vadd.f32 %v5307_v7, %v1547_v47  ;;  %v1948_v54 = vadd.f32 %v5307_v7, %v1947_v48  ;;  %v1549_v55 = vpop.f32.mrb[83].mxu0  ;;  %v1949_v56 = vpop.f32.mrb[83].mxu1 }
 0x1b9   :  { %v3845_v57 = vpack.c.bf16 %v2223_v51, %v2223_v51  ;;  %v3945_v58 = vpack.c.bf16 %v2323_v52, %v2323_v52  ;;  %v2224_v59 = vmax.f32 %v1548_v53, 0.0  ;;  %v2324_v60 = vmax.f32 %v1948_v54, 0.0  ;;  %1759 = vmatmul.mubr.bf16.gmra.mrb[188].mxu0 %v4340_v45  ;;  %2159 = vmatmul.mubr.bf16.gmra.mrb[188].mxu1 %v4341_v46 }
 0x1ba   :  { %1766 = vmatprep.mubr.bf16.mxu0 %v4342_v49  ;;  %2166 = vmatprep.mubr.bf16.mxu1 %v4344_v50 }
 0x1bb   :  { %3224 = vst.msk [vmem:[%s6075_s3 + $0xa0] sm:$0xf] %vm3183_vm0, %v3845_v57  ;;  %3324 = vst.msk [vmem:[%s6075_s3 + $0x230] sm:$0xf] %vm3183_vm0, %v3945_v58  ;;  %v3846_v61 = vpack.c.bf16 %v2224_v59, %v2224_v59  ;;  %v3946_v62 = vpack.c.bf16 %v2324_v60, %v2324_v60 }
 0x1bc   :  { %v1552_v0 = vpop.f32.mrb[84].mxu0  ;;  %v1952_v1 = vpop.f32.mrb[84].mxu1 }
 0x1bd   :  { %3225 = vst.msk [vmem:[%s6075_s3 + $0xa4] sm:$0xf] %vm3183_vm0, %v3846_v61  ;;  %3325 = vst.msk [vmem:[%s6075_s3 + $0x234] sm:$0xf] %vm3183_vm0, %v3946_v62  ;;  %v1553_v2 = vadd.f32 %v5307_v7, %v1552_v0  ;;  %v1953_v3 = vadd.f32 %v5307_v7, %v1952_v1  ;;  %v1554_v63 = vpop.f32.mrb[85].mxu0  ;;  %v1954_v4 = vpop.f32.mrb[85].mxu1 }
 0x1be   :  { %v1555_v8 = vpop.f32.mrb[86].mxu0  ;;  %v1955_v9 = vpop.f32.mrb[86].mxu1 }
 0x1bf   :  { %v2225_v12 = vmax.f32 %v1553_v2, 0.0  ;;  %v2325_v13 = vmax.f32 %v1953_v3, 0.0  ;;  %v1556_v14 = vadd.f32 %v5307_v7, %v1555_v8  ;;  %v1956_v15 = vadd.f32 %v5307_v7, %v1955_v9  ;;  %v1557_v16 = vpop.f32.mrb[87].mxu0  ;;  %v1957_v17 = vpop.f32.mrb[87].mxu1 }
 0x1c1   :  { %v3847_v18 = vpack.c.bf16 %v2225_v12, %v2225_v12  ;;  %v3947_v19 = vpack.c.bf16 %v2325_v13, %v2325_v13  ;;  %v2226_v20 = vmax.f32 %v1556_v14, 0.0  ;;  %v2326_v21 = vmax.f32 %v1956_v15, 0.0  ;;  %1767 = vmatmul.mubr.bf16.gmra.mrb[192].mxu0 %v4346_v5  ;;  %2167 = vmatmul.mubr.bf16.gmra.mrb[192].mxu1 %v4347_v6 }
 0x1c2   :  { %1774 = vmatprep.mubr.bf16.mxu0 %v4348_v10  ;;  %2174 = vmatprep.mubr.bf16.mxu1 %v4350_v11 }
 0x1c3   :  { %3226 = vst.msk [vmem:[%s6075_s3 + $0xa8] sm:$0xf] %vm3183_vm0, %v3847_v18  ;;  %3326 = vst.msk [vmem:[%s6075_s3 + $0x238] sm:$0xf] %vm3183_vm0, %v3947_v19  ;;  %v3848_v22 = vpack.c.bf16 %v2226_v20, %v2226_v20  ;;  %v3948_v23 = vpack.c.bf16 %v2326_v21, %v2326_v21 }
 0x1c4   :  { %v1560_v24 = vpop.f32.mrb[88].mxu0  ;;  %v1960_v25 = vpop.f32.mrb[88].mxu1 }
 0x1c5   :  { %3227 = vst.msk [vmem:[%s6075_s3 + $0xac] sm:$0xf] %vm3183_vm0, %v3848_v22  ;;  %3327 = vst.msk [vmem:[%s6075_s3 + $0x23c] sm:$0xf] %vm3183_vm0, %v3948_v23  ;;  %v1561_v26 = vadd.f32 %v5307_v7, %v1560_v24  ;;  %v1961_v27 = vadd.f32 %v5307_v7, %v1960_v25  ;;  %v1562_v28 = vpop.f32.mrb[89].mxu0  ;;  %v1962_v29 = vpop.f32.mrb[89].mxu1 }
 0x1c6   :  { %v1563_v32 = vpop.f32.mrb[90].mxu0  ;;  %v1963_v33 = vpop.f32.mrb[90].mxu1 }
 0x1c7   :  { %v2227_v34 = vmax.f32 %v1561_v26, 0.0  ;;  %v2327_v35 = vmax.f32 %v1961_v27, 0.0  ;;  %v1564_v36 = vadd.f32 %v5307_v7, %v1563_v32  ;;  %v1964_v37 = vadd.f32 %v5307_v7, %v1963_v33  ;;  %v1565_v38 = vpop.f32.mrb[91].mxu0  ;;  %v1965_v39 = vpop.f32.mrb[91].mxu1 }
 0x1c9   :  { %v3849_v40 = vpack.c.bf16 %v2227_v34, %v2227_v34  ;;  %v3949_v41 = vpack.c.bf16 %v2327_v35, %v2327_v35  ;;  %v2228_v42 = vmax.f32 %v1564_v36, 0.0  ;;  %v2328_v43 = vmax.f32 %v1964_v37, 0.0  ;;  %1775 = vmatmul.mubr.bf16.gmra.mrb[196].mxu0 %v4352_v30  ;;  %2175 = vmatmul.mubr.bf16.gmra.mrb[196].mxu1 %v4353_v31 }
 0x1cb   :  { %3228 = vst.msk [vmem:[%s6075_s3 + $0xb0] sm:$0xf] %vm3183_vm0, %v3849_v40  ;;  %3328 = vst.msk [vmem:[%s6075_s3 + $0x240] sm:$0xf] %vm3183_vm0, %v3949_v41  ;;  %v3850_v44 = vpack.c.bf16 %v2228_v42, %v2228_v42  ;;  %v3950_v45 = vpack.c.bf16 %v2328_v43, %v2328_v43 }
 0x1cc   :  { %v1568_v46 = vpop.f32.mrb[92].mxu0  ;;  %v1968_v47 = vpop.f32.mrb[92].mxu1 }
 0x1cd   :  { %3229 = vst.msk [vmem:[%s6075_s3 + $0xb4] sm:$0xf] %vm3183_vm0, %v3850_v44  ;;  %3329 = vst.msk [vmem:[%s6075_s3 + $0x244] sm:$0xf] %vm3183_vm0, %v3950_v45  ;;  %v1569_v48 = vadd.f32 %v5307_v7, %v1568_v46  ;;  %v1969_v49 = vadd.f32 %v5307_v7, %v1968_v47  ;;  %v1570_v50 = vpop.f32.mrb[93].mxu0  ;;  %v1970_v51 = vpop.f32.mrb[93].mxu1 }
 0x1ce   :  { %v1571_v52 = vpop.f32.mrb[94].mxu0  ;;  %v1971_v53 = vpop.f32.mrb[94].mxu1 }
 0x1cf   :  { %v2229_v54 = vmax.f32 %v1569_v48, 0.0  ;;  %v2329_v55 = vmax.f32 %v1969_v49, 0.0  ;;  %v1572_v56 = vadd.f32 %v5307_v7, %v1571_v52  ;;  %v1972_v57 = vadd.f32 %v5307_v7, %v1971_v53  ;;  %v1573_v58 = vpop.f32.mrb[95].mxu0  ;;  %v1973_v59 = vpop.f32.mrb[95].mxu1 }
 0x1d1   :  { %v3851_v60 = vpack.c.bf16 %v2229_v54, %v2229_v54  ;;  %v3951_v61 = vpack.c.bf16 %v2329_v55, %v2329_v55  ;;  %v2230_v62 = vmax.f32 %v1572_v56, 0.0  ;;  %v2330_v0 = vmax.f32 %v1972_v57, 0.0 }
 0x1d3   :  { %3230 = vst.msk [vmem:[%s6075_s3 + $0xb8] sm:$0xf] %vm3183_vm0, %v3851_v60  ;;  %3330 = vst.msk [vmem:[%s6075_s3 + $0x248] sm:$0xf] %vm3183_vm0, %v3951_v61  ;;  %v3852_v1 = vpack.c.bf16 %v2230_v62, %v2230_v62  ;;  %v3952_v2 = vpack.c.bf16 %v2330_v0, %v2330_v0 }
 0x1d4   :  { %v1576_v3 = vpop.f32.mrb[96].mxu0  ;;  %v1976_v63 = vpop.f32.mrb[96].mxu1 }
 0x1d5   :  { %3231 = vst.msk [vmem:[%s6075_s3 + $0xbc] sm:$0xf] %vm3183_vm0, %v3852_v1  ;;  %3331 = vst.msk [vmem:[%s6075_s3 + $0x24c] sm:$0xf] %vm3183_vm0, %v3952_v2  ;;  %v1577_v4 = vadd.f32 %v5307_v7, %v1576_v3  ;;  %v1977_v5 = vadd.f32 %v5307_v7, %v1976_v63  ;;  %v1578_v6 = vpop.f32.mrb[97].mxu0  ;;  %v1978_v8 = vpop.f32.mrb[97].mxu1 }
 0x1d6   :  { %v1579_v9 = vpop.f32.mrb[98].mxu0  ;;  %v1979_v10 = vpop.f32.mrb[98].mxu1 }
 0x1d7   :  { %v2231_v11 = vmax.f32 %v1577_v4, 0.0  ;;  %v2331_v12 = vmax.f32 %v1977_v5, 0.0  ;;  %v1580_v13 = vadd.f32 %v5307_v7, %v1579_v9  ;;  %v1980_v14 = vadd.f32 %v5307_v7, %v1979_v10  ;;  %v1581_v15 = vpop.f32.mrb[99].mxu0  ;;  %v1981_v16 = vpop.f32.mrb[99].mxu1 }
 0x1d9   :  { %v3853_v17 = vpack.c.bf16 %v2231_v11, %v2231_v11  ;;  %v3953_v18 = vpack.c.bf16 %v2331_v12, %v2331_v12  ;;  %v2232_v19 = vmax.f32 %v1580_v13, 0.0  ;;  %v2332_v20 = vmax.f32 %v1980_v14, 0.0 }
 0x1db   :  { %3232 = vst.msk [vmem:[%s6075_s3 + $0xc0] sm:$0xf] %vm3183_vm0, %v3853_v17  ;;  %3332 = vst.msk [vmem:[%s6075_s3 + $0x250] sm:$0xf] %vm3183_vm0, %v3953_v18  ;;  %v3854_v21 = vpack.c.bf16 %v2232_v19, %v2232_v19  ;;  %v3954_v22 = vpack.c.bf16 %v2332_v20, %v2332_v20 }
 0x1dc   :  { %v1584_v23 = vpop.f32.mrb[100].mxu0  ;;  %v1984_v24 = vpop.f32.mrb[100].mxu1 }
 0x1dd   :  { %3233 = vst.msk [vmem:[%s6075_s3 + $0xc4] sm:$0xf] %vm3183_vm0, %v3854_v21  ;;  %3333 = vst.msk [vmem:[%s6075_s3 + $0x254] sm:$0xf] %vm3183_vm0, %v3954_v22  ;;  %v1585_v25 = vadd.f32 %v5307_v7, %v1584_v23  ;;  %v1985_v26 = vadd.f32 %v5307_v7, %v1984_v24  ;;  %v1586_v27 = vpop.f32.mrb[101].mxu0  ;;  %v1986_v28 = vpop.f32.mrb[101].mxu1 }
 0x1de   :  { %v1587_v29 = vpop.f32.mrb[102].mxu0  ;;  %v1987_v30 = vpop.f32.mrb[102].mxu1 }
 0x1df   :  { %v2233_v31 = vmax.f32 %v1585_v25, 0.0  ;;  %v2333_v32 = vmax.f32 %v1985_v26, 0.0  ;;  %v1588_v33 = vadd.f32 %v5307_v7, %v1587_v29  ;;  %v1988_v34 = vadd.f32 %v5307_v7, %v1987_v30  ;;  %v1589_v35 = vpop.f32.mrb[103].mxu0  ;;  %v1989_v36 = vpop.f32.mrb[103].mxu1 }
 0x1e1   :  { %v3855_v37 = vpack.c.bf16 %v2233_v31, %v2233_v31  ;;  %v3955_v38 = vpack.c.bf16 %v2333_v32, %v2333_v32  ;;  %v2234_v39 = vmax.f32 %v1588_v33, 0.0  ;;  %v2334_v40 = vmax.f32 %v1988_v34, 0.0 }
 0x1e3   :  { %3234 = vst.msk [vmem:[%s6075_s3 + $0xc8] sm:$0xf] %vm3183_vm0, %v3855_v37  ;;  %3334 = vst.msk [vmem:[%s6075_s3 + $0x258] sm:$0xf] %vm3183_vm0, %v3955_v38  ;;  %v3856_v41 = vpack.c.bf16 %v2234_v39, %v2234_v39  ;;  %v3956_v42 = vpack.c.bf16 %v2334_v40, %v2334_v40 }
 0x1e4   :  { %v1592_v43 = vpop.f32.mrb[104].mxu0  ;;  %v1992_v44 = vpop.f32.mrb[104].mxu1 }
 0x1e5   :  { %3235 = vst.msk [vmem:[%s6075_s3 + $0xcc] sm:$0xf] %vm3183_vm0, %v3856_v41  ;;  %3335 = vst.msk [vmem:[%s6075_s3 + $0x25c] sm:$0xf] %vm3183_vm0, %v3956_v42  ;;  %v1593_v45 = vadd.f32 %v5307_v7, %v1592_v43  ;;  %v1993_v46 = vadd.f32 %v5307_v7, %v1992_v44  ;;  %v1594_v47 = vpop.f32.mrb[105].mxu0  ;;  %v1994_v48 = vpop.f32.mrb[105].mxu1 }
 0x1e6   :  { %v1595_v49 = vpop.f32.mrb[106].mxu0  ;;  %v1995_v50 = vpop.f32.mrb[106].mxu1 }
 0x1e7   :  { %v2235_v51 = vmax.f32 %v1593_v45, 0.0  ;;  %v2335_v52 = vmax.f32 %v1993_v46, 0.0  ;;  %v1596_v53 = vadd.f32 %v5307_v7, %v1595_v49  ;;  %v1996_v54 = vadd.f32 %v5307_v7, %v1995_v50  ;;  %v1597_v55 = vpop.f32.mrb[107].mxu0  ;;  %v1997_v56 = vpop.f32.mrb[107].mxu1 }
 0x1e9   :  { %v3857_v57 = vpack.c.bf16 %v2235_v51, %v2235_v51  ;;  %v3957_v58 = vpack.c.bf16 %v2335_v52, %v2335_v52  ;;  %v2236_v59 = vmax.f32 %v1596_v53, 0.0  ;;  %v2336_v60 = vmax.f32 %v1996_v54, 0.0 }
 0x1eb   :  { %3236 = vst.msk [vmem:[%s6075_s3 + $0xd0] sm:$0xf] %vm3183_vm0, %v3857_v57  ;;  %3336 = vst.msk [vmem:[%s6075_s3 + $0x260] sm:$0xf] %vm3183_vm0, %v3957_v58  ;;  %v3858_v61 = vpack.c.bf16 %v2236_v59, %v2236_v59  ;;  %v3958_v62 = vpack.c.bf16 %v2336_v60, %v2336_v60 }
 0x1ec   :  { %v1600_v0 = vpop.f32.mrb[108].mxu0  ;;  %v2000_v1 = vpop.f32.mrb[108].mxu1 }
 0x1ed   :  { %3237 = vst.msk [vmem:[%s6075_s3 + $0xd4] sm:$0xf] %vm3183_vm0, %v3858_v61  ;;  %3337 = vst.msk [vmem:[%s6075_s3 + $0x264] sm:$0xf] %vm3183_vm0, %v3958_v62  ;;  %v1601_v2 = vadd.f32 %v5307_v7, %v1600_v0  ;;  %v2001_v3 = vadd.f32 %v5307_v7, %v2000_v1  ;;  %v1602_v63 = vpop.f32.mrb[109].mxu0  ;;  %v2002_v4 = vpop.f32.mrb[109].mxu1 }
 0x1ee   :  { %v1603_v5 = vpop.f32.mrb[110].mxu0  ;;  %v2003_v6 = vpop.f32.mrb[110].mxu1 }
 0x1ef   :  { %v2237_v8 = vmax.f32 %v1601_v2, 0.0  ;;  %v2337_v9 = vmax.f32 %v2001_v3, 0.0  ;;  %v1604_v10 = vadd.f32 %v5307_v7, %v1603_v5  ;;  %v2004_v11 = vadd.f32 %v5307_v7, %v2003_v6  ;;  %v1605_v12 = vpop.f32.mrb[111].mxu0  ;;  %v2005_v13 = vpop.f32.mrb[111].mxu1 }
 0x1f1   :  { %v3859_v14 = vpack.c.bf16 %v2237_v8, %v2237_v8  ;;  %v3959_v15 = vpack.c.bf16 %v2337_v9, %v2337_v9  ;;  %v2238_v16 = vmax.f32 %v1604_v10, 0.0  ;;  %v2338_v17 = vmax.f32 %v2004_v11, 0.0 }
 0x1f3   :  { %3238 = vst.msk [vmem:[%s6075_s3 + $0xd8] sm:$0xf] %vm3183_vm0, %v3859_v14  ;;  %3338 = vst.msk [vmem:[%s6075_s3 + $0x268] sm:$0xf] %vm3183_vm0, %v3959_v15  ;;  %v3860_v18 = vpack.c.bf16 %v2238_v16, %v2238_v16  ;;  %v3960_v19 = vpack.c.bf16 %v2338_v17, %v2338_v17 }
 0x1f4   :  { %v1608_v20 = vpop.f32.mrb[112].mxu0  ;;  %v2008_v21 = vpop.f32.mrb[112].mxu1 }
 0x1f5   :  { %3239 = vst.msk [vmem:[%s6075_s3 + $0xdc] sm:$0xf] %vm3183_vm0, %v3860_v18  ;;  %3339 = vst.msk [vmem:[%s6075_s3 + $0x26c] sm:$0xf] %vm3183_vm0, %v3960_v19  ;;  %v1609_v22 = vadd.f32 %v5307_v7, %v1608_v20  ;;  %v2009_v23 = vadd.f32 %v5307_v7, %v2008_v21  ;;  %v1610_v24 = vpop.f32.mrb[113].mxu0  ;;  %v2010_v25 = vpop.f32.mrb[113].mxu1 }
 0x1f6   :  { %v1611_v26 = vpop.f32.mrb[114].mxu0  ;;  %v2011_v27 = vpop.f32.mrb[114].mxu1 }
 0x1f7   :  { %v2239_v28 = vmax.f32 %v1609_v22, 0.0  ;;  %v2339_v29 = vmax.f32 %v2009_v23, 0.0  ;;  %v1612_v30 = vadd.f32 %v5307_v7, %v1611_v26  ;;  %v2012_v31 = vadd.f32 %v5307_v7, %v2011_v27  ;;  %v1613_v32 = vpop.f32.mrb[115].mxu0  ;;  %v2013_v33 = vpop.f32.mrb[115].mxu1 }
 0x1f9   :  { %v3861_v34 = vpack.c.bf16 %v2239_v28, %v2239_v28  ;;  %v3961_v35 = vpack.c.bf16 %v2339_v29, %v2339_v29  ;;  %v2240_v36 = vmax.f32 %v1612_v30, 0.0  ;;  %v2340_v37 = vmax.f32 %v2012_v31, 0.0 }
 0x1fb   :  { %3240 = vst.msk [vmem:[%s6075_s3 + $0xe0] sm:$0xf] %vm3183_vm0, %v3861_v34  ;;  %3340 = vst.msk [vmem:[%s6075_s3 + $0x270] sm:$0xf] %vm3183_vm0, %v3961_v35  ;;  %v3862_v38 = vpack.c.bf16 %v2240_v36, %v2240_v36  ;;  %v3962_v39 = vpack.c.bf16 %v2340_v37, %v2340_v37 }
 0x1fc   :  { %v1616_v40 = vpop.f32.mrb[116].mxu0  ;;  %v2016_v41 = vpop.f32.mrb[116].mxu1 }
 0x1fd   :  { %3241 = vst.msk [vmem:[%s6075_s3 + $0xe4] sm:$0xf] %vm3183_vm0, %v3862_v38  ;;  %3341 = vst.msk [vmem:[%s6075_s3 + $0x274] sm:$0xf] %vm3183_vm0, %v3962_v39  ;;  %v1617_v42 = vadd.f32 %v5307_v7, %v1616_v40  ;;  %v2017_v43 = vadd.f32 %v5307_v7, %v2016_v41  ;;  %v1618_v44 = vpop.f32.mrb[117].mxu0  ;;  %v2018_v45 = vpop.f32.mrb[117].mxu1 }
 0x1fe   :  { %v1619_v46 = vpop.f32.mrb[118].mxu0  ;;  %v2019_v47 = vpop.f32.mrb[118].mxu1 }
 0x1ff   :  { %v2241_v48 = vmax.f32 %v1617_v42, 0.0  ;;  %v2341_v49 = vmax.f32 %v2017_v43, 0.0  ;;  %v1620_v50 = vadd.f32 %v5307_v7, %v1619_v46  ;;  %v2020_v51 = vadd.f32 %v5307_v7, %v2019_v47  ;;  %v1621_v52 = vpop.f32.mrb[119].mxu0  ;;  %v2021_v53 = vpop.f32.mrb[119].mxu1 }
 0x201   :  { %v3863_v54 = vpack.c.bf16 %v2241_v48, %v2241_v48  ;;  %v3963_v55 = vpack.c.bf16 %v2341_v49, %v2341_v49  ;;  %v2242_v56 = vmax.f32 %v1620_v50, 0.0  ;;  %v2342_v57 = vmax.f32 %v2020_v51, 0.0 }
 0x203   :  { %3242 = vst.msk [vmem:[%s6075_s3 + $0xe8] sm:$0xf] %vm3183_vm0, %v3863_v54  ;;  %3342 = vst.msk [vmem:[%s6075_s3 + $0x278] sm:$0xf] %vm3183_vm0, %v3963_v55  ;;  %v3864_v58 = vpack.c.bf16 %v2242_v56, %v2242_v56  ;;  %v3964_v59 = vpack.c.bf16 %v2342_v57, %v2342_v57 }
 0x204   :  { %v1624_v60 = vpop.f32.mrb[120].mxu0  ;;  %v2024_v61 = vpop.f32.mrb[120].mxu1 }
 0x205   :  { %3243 = vst.msk [vmem:[%s6075_s3 + $0xec] sm:$0xf] %vm3183_vm0, %v3864_v58  ;;  %3343 = vst.msk [vmem:[%s6075_s3 + $0x27c] sm:$0xf] %vm3183_vm0, %v3964_v59  ;;  %v1625_v62 = vadd.f32 %v5307_v7, %v1624_v60  ;;  %v2025_v0 = vadd.f32 %v5307_v7, %v2024_v61  ;;  %v1626_v1 = vpop.f32.mrb[121].mxu0  ;;  %v2026_v2 = vpop.f32.mrb[121].mxu1 }
 0x206   :  { %v1627_v3 = vpop.f32.mrb[122].mxu0  ;;  %v2027_v63 = vpop.f32.mrb[122].mxu1 }
 0x207   :  { %v2243_v4 = vmax.f32 %v1625_v62, 0.0  ;;  %v2343_v5 = vmax.f32 %v2025_v0, 0.0  ;;  %v1628_v6 = vadd.f32 %v5307_v7, %v1627_v3  ;;  %v2028_v8 = vadd.f32 %v5307_v7, %v2027_v63  ;;  %v1629_v9 = vpop.f32.mrb[123].mxu0  ;;  %v2029_v10 = vpop.f32.mrb[123].mxu1 }
 0x209   :  { %v3865_v11 = vpack.c.bf16 %v2243_v4, %v2243_v4  ;;  %v3965_v12 = vpack.c.bf16 %v2343_v5, %v2343_v5  ;;  %v2244_v13 = vmax.f32 %v1628_v6, 0.0  ;;  %v2344_v14 = vmax.f32 %v2028_v8, 0.0 }
 0x20b   :  { %3244 = vst.msk [vmem:[%s6075_s3 + $0xf0] sm:$0xf] %vm3183_vm0, %v3865_v11  ;;  %3344 = vst.msk [vmem:[%s6075_s3 + $0x280] sm:$0xf] %vm3183_vm0, %v3965_v12  ;;  %v3866_v15 = vpack.c.bf16 %v2244_v13, %v2244_v13  ;;  %v3966_v16 = vpack.c.bf16 %v2344_v14, %v2344_v14 }
 0x20c   :  { %v1632_v17 = vpop.f32.mrb[124].mxu0  ;;  %v2032_v18 = vpop.f32.mrb[124].mxu1 }
 0x20d   :  { %3245 = vst.msk [vmem:[%s6075_s3 + $0xf4] sm:$0xf] %vm3183_vm0, %v3866_v15  ;;  %3345 = vst.msk [vmem:[%s6075_s3 + $0x284] sm:$0xf] %vm3183_vm0, %v3966_v16  ;;  %v1633_v19 = vadd.f32 %v5307_v7, %v1632_v17  ;;  %v2033_v20 = vadd.f32 %v5307_v7, %v2032_v18  ;;  %v1634_v21 = vpop.f32.mrb[125].mxu0  ;;  %v2034_v22 = vpop.f32.mrb[125].mxu1 }
 0x20e   :  { %v1635_v23 = vpop.f32.mrb[126].mxu0  ;;  %v2035_v24 = vpop.f32.mrb[126].mxu1 }
 0x20f   :  { %v2245_v25 = vmax.f32 %v1633_v19, 0.0  ;;  %v2345_v26 = vmax.f32 %v2033_v20, 0.0  ;;  %v1636_v27 = vadd.f32 %v5307_v7, %v1635_v23  ;;  %v2036_v28 = vadd.f32 %v5307_v7, %v2035_v24  ;;  %v1637_v29 = vpop.f32.mrb[127].mxu0  ;;  %v2037_v30 = vpop.f32.mrb[127].mxu1 }
 0x211   :  { %v3867_v31 = vpack.c.bf16 %v2245_v25, %v2245_v25  ;;  %v3967_v32 = vpack.c.bf16 %v2345_v26, %v2345_v26  ;;  %v2246_v33 = vmax.f32 %v1636_v27, 0.0  ;;  %v2346_v34 = vmax.f32 %v2036_v28, 0.0 }
 0x213   :  { %3246 = vst.msk [vmem:[%s6075_s3 + $0xf8] sm:$0xf] %vm3183_vm0, %v3867_v31  ;;  %3346 = vst.msk [vmem:[%s6075_s3 + $0x288] sm:$0xf] %vm3183_vm0, %v3967_v32  ;;  %v3868_v35 = vpack.c.bf16 %v2246_v33, %v2246_v33  ;;  %v3968_v36 = vpack.c.bf16 %v2346_v34, %v2346_v34 }
 0x214   :  { %v1640_v37 = vpop.f32.mrb[128].mxu0  ;;  %v2040_v38 = vpop.f32.mrb[128].mxu1 }
 0x215   :  { %3247 = vst.msk [vmem:[%s6075_s3 + $0xfc] sm:$0xf] %vm3183_vm0, %v3868_v35  ;;  %3347 = vst.msk [vmem:[%s6075_s3 + $0x28c] sm:$0xf] %vm3183_vm0, %v3968_v36  ;;  %v1641_v39 = vadd.f32 %v5307_v7, %v1640_v37  ;;  %v2041_v40 = vadd.f32 %v5307_v7, %v2040_v38  ;;  %v1642_v41 = vpop.f32.mrb[129].mxu0  ;;  %v2042_v42 = vpop.f32.mrb[129].mxu1 }
 0x216   :  { %v1643_v43 = vpop.f32.mrb[130].mxu0  ;;  %v2043_v44 = vpop.f32.mrb[130].mxu1 }
 0x217   :  { %v2247_v45 = vmax.f32 %v1641_v39, 0.0  ;;  %v2347_v46 = vmax.f32 %v2041_v40, 0.0  ;;  %v1644_v47 = vadd.f32 %v5307_v7, %v1643_v43  ;;  %v2044_v48 = vadd.f32 %v5307_v7, %v2043_v44  ;;  %v1645_v49 = vpop.f32.mrb[131].mxu0  ;;  %v2045_v50 = vpop.f32.mrb[131].mxu1  ;;  %v5772_v44 = vld [vmem:[%s6074_s2] ss:$0 sm:$0xff] }
 0x219   :  { %v3869_v51 = vpack.c.bf16 %v2247_v45, %v2247_v45  ;;  %v3969_v52 = vpack.c.bf16 %v2347_v46, %v2347_v46  ;;  %v2248_v53 = vmax.f32 %v1644_v47, 0.0  ;;  %v2348_v54 = vmax.f32 %v2044_v48, 0.0 }
 0x21b   :  { %3248 = vst.msk [vmem:[%s6075_s3 + $0x100] sm:$0xf] %vm3183_vm0, %v3869_v51  ;;  %3348 = vst.msk [vmem:[%s6075_s3 + $0x290] sm:$0xf] %vm3183_vm0, %v3969_v52  ;;  %v3870_v55 = vpack.c.bf16 %v2248_v53, %v2248_v53  ;;  %v3970_v56 = vpack.c.bf16 %v2348_v54, %v2348_v54 }
 0x21c   :  { %v1648_v57 = vpop.f32.mrb[132].mxu0  ;;  %v2048_v58 = vpop.f32.mrb[132].mxu1 }
 0x21d   :  { %3249 = vst.msk [vmem:[%s6075_s3 + $0x104] sm:$0xf] %vm3183_vm0, %v3870_v55  ;;  %3349 = vst.msk [vmem:[%s6075_s3 + $0x294] sm:$0xf] %vm3183_vm0, %v3970_v56  ;;  %v1649_v59 = vadd.f32 %v5307_v7, %v1648_v57  ;;  %v2049_v60 = vadd.f32 %v5307_v7, %v2048_v58  ;;  %v1650_v61 = vpop.f32.mrb[133].mxu0  ;;  %v2050_v62 = vpop.f32.mrb[133].mxu1 }
 0x21e   :  { %v1651_v0 = vpop.f32.mrb[134].mxu0  ;;  %v2051_v1 = vpop.f32.mrb[134].mxu1 }
 0x21f   :  { %v2249_v2 = vmax.f32 %v1649_v59, 0.0  ;;  %v2349_v3 = vmax.f32 %v2049_v60, 0.0  ;;  %v1652_v63 = vadd.f32 %v5307_v7, %v1651_v0  ;;  %v2052_v4 = vadd.f32 %v5307_v7, %v2051_v1  ;;  %v1653_v5 = vpop.f32.mrb[135].mxu0  ;;  %v2053_v6 = vpop.f32.mrb[135].mxu1 }
 0x221   :  { %v3871_v8 = vpack.c.bf16 %v2249_v2, %v2249_v2  ;;  %v3971_v9 = vpack.c.bf16 %v2349_v3, %v2349_v3  ;;  %v2250_v10 = vmax.f32 %v1652_v63, 0.0  ;;  %v2350_v11 = vmax.f32 %v2052_v4, 0.0 }
 0x223   :  { %3250 = vst.msk [vmem:[%s6075_s3 + $0x108] sm:$0xf] %vm3183_vm0, %v3871_v8  ;;  %3350 = vst.msk [vmem:[%s6075_s3 + $0x298] sm:$0xf] %vm3183_vm0, %v3971_v9  ;;  %v3872_v12 = vpack.c.bf16 %v2250_v10, %v2250_v10  ;;  %v3972_v13 = vpack.c.bf16 %v2350_v11, %v2350_v11 }
 0x224   :  { %v1656_v14 = vpop.f32.mrb[136].mxu0  ;;  %v2056_v15 = vpop.f32.mrb[136].mxu1 }
 0x225   :  { %3251 = vst.msk [vmem:[%s6075_s3 + $0x10c] sm:$0xf] %vm3183_vm0, %v3872_v12  ;;  %3351 = vst.msk [vmem:[%s6075_s3 + $0x29c] sm:$0xf] %vm3183_vm0, %v3972_v13  ;;  %v1657_v16 = vadd.f32 %v5307_v7, %v1656_v14  ;;  %v2057_v17 = vadd.f32 %v5307_v7, %v2056_v15  ;;  %v1658_v18 = vpop.f32.mrb[137].mxu0  ;;  %v2058_v19 = vpop.f32.mrb[137].mxu1 }
 0x226   :  { %v1659_v20 = vpop.f32.mrb[138].mxu0  ;;  %v2059_v21 = vpop.f32.mrb[138].mxu1 }
 0x227   :  { %v2251_v22 = vmax.f32 %v1657_v16, 0.0  ;;  %v2351_v23 = vmax.f32 %v2057_v17, 0.0  ;;  %v1660_v24 = vadd.f32 %v5307_v7, %v1659_v20  ;;  %v2060_v25 = vadd.f32 %v5307_v7, %v2059_v21  ;;  %v1661_v26 = vpop.f32.mrb[139].mxu0  ;;  %v2061_v27 = vpop.f32.mrb[139].mxu1 }
 0x229   :  { %v3873_v28 = vpack.c.bf16 %v2251_v22, %v2251_v22  ;;  %v3973_v29 = vpack.c.bf16 %v2351_v23, %v2351_v23  ;;  %v2252_v30 = vmax.f32 %v1660_v24, 0.0  ;;  %v2352_v31 = vmax.f32 %v2060_v25, 0.0 }
 0x22b   :  { %3252 = vst.msk [vmem:[%s6075_s3 + $0x110] sm:$0xf] %vm3183_vm0, %v3873_v28  ;;  %3352 = vst.msk [vmem:[%s6075_s3 + $0x2a0] sm:$0xf] %vm3183_vm0, %v3973_v29  ;;  %v3874_v32 = vpack.c.bf16 %v2252_v30, %v2252_v30  ;;  %v3974_v33 = vpack.c.bf16 %v2352_v31, %v2352_v31 }
 0x22c   :  { %v1664_v34 = vpop.f32.mrb[140].mxu0  ;;  %v2064_v35 = vpop.f32.mrb[140].mxu1 }
 0x22d   :  { %3253 = vst.msk [vmem:[%s6075_s3 + $0x114] sm:$0xf] %vm3183_vm0, %v3874_v32  ;;  %3353 = vst.msk [vmem:[%s6075_s3 + $0x2a4] sm:$0xf] %vm3183_vm0, %v3974_v33  ;;  %v1665_v36 = vadd.f32 %v5307_v7, %v1664_v34  ;;  %v2065_v37 = vadd.f32 %v5307_v7, %v2064_v35  ;;  %v1666_v38 = vpop.f32.mrb[141].mxu0  ;;  %v2066_v39 = vpop.f32.mrb[141].mxu1 }
 0x22e   :  { %v1667_v40 = vpop.f32.mrb[142].mxu0  ;;  %v2067_v41 = vpop.f32.mrb[142].mxu1 }
 0x22f   :  { %v2253_v42 = vmax.f32 %v1665_v36, 0.0  ;;  %v2353_v43 = vmax.f32 %v2065_v37, 0.0  ;;  %v1668_v45 = vadd.f32 %v5772_v44, %v1667_v40  ;;  %v2068_v46 = vadd.f32 %v5772_v44, %v2067_v41  ;;  %v1669_v47 = vpop.f32.mrb[143].mxu0  ;;  %v2069_v48 = vpop.f32.mrb[143].mxu1 }
 0x231   :  { %v3875_v49 = vpack.c.bf16 %v2253_v42, %v2253_v42  ;;  %v3975_v50 = vpack.c.bf16 %v2353_v43, %v2353_v43  ;;  %v2254_v7 = vmax.f32 %v1668_v45, 0.0  ;;  %v2354_v51 = vmax.f32 %v2068_v46, 0.0 }
 0x233   :  { %3254 = vst.msk [vmem:[%s6075_s3 + $0x118] sm:$0xf] %vm3183_vm0, %v3875_v49  ;;  %3354 = vst.msk [vmem:[%s6075_s3 + $0x2a8] sm:$0xf] %vm3183_vm0, %v3975_v50  ;;  %v3876_v52 = vpack.c.bf16 %v2254_v7, %v2254_v7  ;;  %v3976_v53 = vpack.c.bf16 %v2354_v51, %v2354_v51 }
 0x234   :  { %v1672_v54 = vpop.f32.mrb[144].mxu0  ;;  %v2072_v55 = vpop.f32.mrb[144].mxu1 }
 0x235   :  { %3255 = vst.msk [vmem:[%s6075_s3 + $0x11c] sm:$0xf] %vm3183_vm0, %v3876_v52  ;;  %3355 = vst.msk [vmem:[%s6075_s3 + $0x2ac] sm:$0xf] %vm3183_vm0, %v3976_v53  ;;  %v1673_v56 = vadd.f32 %v5772_v44, %v1672_v54  ;;  %v2073_v57 = vadd.f32 %v5772_v44, %v2072_v55  ;;  %v1674_v58 = vpop.f32.mrb[145].mxu0  ;;  %v2074_v59 = vpop.f32.mrb[145].mxu1 }
 0x236   :  { %v1675_v60 = vpop.f32.mrb[146].mxu0  ;;  %v2075_v61 = vpop.f32.mrb[146].mxu1 }
 0x237   :  { %v2255_v62 = vmax.f32 %v1673_v56, 0.0  ;;  %v2355_v0 = vmax.f32 %v2073_v57, 0.0  ;;  %v1676_v1 = vadd.f32 %v5772_v44, %v1675_v60  ;;  %v2076_v2 = vadd.f32 %v5772_v44, %v2075_v61  ;;  %v1677_v3 = vpop.f32.mrb[147].mxu0  ;;  %v2077_v63 = vpop.f32.mrb[147].mxu1 }
 0x239   :  { %v3877_v4 = vpack.c.bf16 %v2255_v62, %v2255_v62  ;;  %v3977_v5 = vpack.c.bf16 %v2355_v0, %v2355_v0  ;;  %v2256_v6 = vmax.f32 %v1676_v1, 0.0  ;;  %v2356_v8 = vmax.f32 %v2076_v2, 0.0 }
 0x23b   :  { %3256 = vst.msk [vmem:[%s6075_s3 + $0x120] sm:$0xf] %vm3183_vm0, %v3877_v4  ;;  %3356 = vst.msk [vmem:[%s6075_s3 + $0x2b0] sm:$0xf] %vm3183_vm0, %v3977_v5  ;;  %v3878_v9 = vpack.c.bf16 %v2256_v6, %v2256_v6  ;;  %v3978_v10 = vpack.c.bf16 %v2356_v8, %v2356_v8 }
 0x23c   :  { %v1680_v11 = vpop.f32.mrb[148].mxu0  ;;  %v2080_v12 = vpop.f32.mrb[148].mxu1 }
 0x23d   :  { %3257 = vst.msk [vmem:[%s6075_s3 + $0x124] sm:$0xf] %vm3183_vm0, %v3878_v9  ;;  %3357 = vst.msk [vmem:[%s6075_s3 + $0x2b4] sm:$0xf] %vm3183_vm0, %v3978_v10  ;;  %v1681_v13 = vadd.f32 %v5772_v44, %v1680_v11  ;;  %v2081_v14 = vadd.f32 %v5772_v44, %v2080_v12  ;;  %v1682_v15 = vpop.f32.mrb[149].mxu0  ;;  %v2082_v16 = vpop.f32.mrb[149].mxu1 }
 0x23e   :  { %v1683_v17 = vpop.f32.mrb[150].mxu0  ;;  %v2083_v18 = vpop.f32.mrb[150].mxu1 }
 0x23f   :  { %v2257_v19 = vmax.f32 %v1681_v13, 0.0  ;;  %v2357_v20 = vmax.f32 %v2081_v14, 0.0  ;;  %v1684_v21 = vadd.f32 %v5772_v44, %v1683_v17  ;;  %v2084_v22 = vadd.f32 %v5772_v44, %v2083_v18  ;;  %v1685_v23 = vpop.f32.mrb[151].mxu0  ;;  %v2085_v24 = vpop.f32.mrb[151].mxu1 }
 0x241   :  { %v3879_v25 = vpack.c.bf16 %v2257_v19, %v2257_v19  ;;  %v3979_v26 = vpack.c.bf16 %v2357_v20, %v2357_v20  ;;  %v2258_v27 = vmax.f32 %v1684_v21, 0.0  ;;  %v2358_v28 = vmax.f32 %v2084_v22, 0.0 }
 0x243   :  { %3258 = vst.msk [vmem:[%s6075_s3 + $0x128] sm:$0xf] %vm3183_vm0, %v3879_v25  ;;  %3358 = vst.msk [vmem:[%s6075_s3 + $0x2b8] sm:$0xf] %vm3183_vm0, %v3979_v26  ;;  %v3880_v29 = vpack.c.bf16 %v2258_v27, %v2258_v27  ;;  %v3980_v30 = vpack.c.bf16 %v2358_v28, %v2358_v28 }
 0x244   :  { %v1688_v31 = vpop.f32.mrb[152].mxu0  ;;  %v2088_v32 = vpop.f32.mrb[152].mxu1 }
 0x245   :  { %3259 = vst.msk [vmem:[%s6075_s3 + $0x12c] sm:$0xf] %vm3183_vm0, %v3880_v29  ;;  %3359 = vst.msk [vmem:[%s6075_s3 + $0x2bc] sm:$0xf] %vm3183_vm0, %v3980_v30  ;;  %v1689_v33 = vadd.f32 %v5772_v44, %v1688_v31  ;;  %v2089_v34 = vadd.f32 %v5772_v44, %v2088_v32  ;;  %v1690_v35 = vpop.f32.mrb[153].mxu0  ;;  %v2090_v36 = vpop.f32.mrb[153].mxu1 }
 0x246   :  { %v1691_v37 = vpop.f32.mrb[154].mxu0  ;;  %v2091_v38 = vpop.f32.mrb[154].mxu1 }
 0x247   :  { %v2259_v39 = vmax.f32 %v1689_v33, 0.0  ;;  %v2359_v40 = vmax.f32 %v2089_v34, 0.0  ;;  %v1692_v41 = vadd.f32 %v5772_v44, %v1691_v37  ;;  %v2092_v42 = vadd.f32 %v5772_v44, %v2091_v38  ;;  %v1693_v43 = vpop.f32.mrb[155].mxu0  ;;  %v2093_v45 = vpop.f32.mrb[155].mxu1 }
 0x249   :  { %v3881_v46 = vpack.c.bf16 %v2259_v39, %v2259_v39  ;;  %v3981_v47 = vpack.c.bf16 %v2359_v40, %v2359_v40  ;;  %v2260_v48 = vmax.f32 %v1692_v41, 0.0  ;;  %v2360_v49 = vmax.f32 %v2092_v42, 0.0 }
 0x24b   :  { %3260 = vst.msk [vmem:[%s6075_s3 + $0x130] sm:$0xf] %vm3183_vm0, %v3881_v46  ;;  %3360 = vst.msk [vmem:[%s6075_s3 + $0x2c0] sm:$0xf] %vm3183_vm0, %v3981_v47  ;;  %v3882_v50 = vpack.c.bf16 %v2260_v48, %v2260_v48  ;;  %v3982_v7 = vpack.c.bf16 %v2360_v49, %v2360_v49 }
 0x24c   :  { %v1696_v51 = vpop.f32.mrb[156].mxu0  ;;  %v2096_v52 = vpop.f32.mrb[156].mxu1 }
 0x24d   :  { %3261 = vst.msk [vmem:[%s6075_s3 + $0x134] sm:$0xf] %vm3183_vm0, %v3882_v50  ;;  %3361 = vst.msk [vmem:[%s6075_s3 + $0x2c4] sm:$0xf] %vm3183_vm0, %v3982_v7  ;;  %v1697_v53 = vadd.f32 %v5772_v44, %v1696_v51  ;;  %v2097_v54 = vadd.f32 %v5772_v44, %v2096_v52  ;;  %v1698_v55 = vpop.f32.mrb[157].mxu0  ;;  %v2098_v56 = vpop.f32.mrb[157].mxu1 }
 0x24e   :  { %v1699_v57 = vpop.f32.mrb[158].mxu0  ;;  %v2099_v58 = vpop.f32.mrb[158].mxu1 }
 0x24f   :  { %v2261_v59 = vmax.f32 %v1697_v53, 0.0  ;;  %v2361_v60 = vmax.f32 %v2097_v54, 0.0  ;;  %v1700_v61 = vadd.f32 %v5772_v44, %v1699_v57  ;;  %v2100_v62 = vadd.f32 %v5772_v44, %v2099_v58  ;;  %v1701_v0 = vpop.f32.mrb[159].mxu0  ;;  %v2101_v1 = vpop.f32.mrb[159].mxu1 }
 0x251   :  { %v3883_v2 = vpack.c.bf16 %v2261_v59, %v2261_v59  ;;  %v3983_v3 = vpack.c.bf16 %v2361_v60, %v2361_v60  ;;  %v2262_v63 = vmax.f32 %v1700_v61, 0.0  ;;  %v2362_v4 = vmax.f32 %v2100_v62, 0.0 }
 0x253   :  { %3262 = vst.msk [vmem:[%s6075_s3 + $0x138] sm:$0xf] %vm3183_vm0, %v3883_v2  ;;  %3362 = vst.msk [vmem:[%s6075_s3 + $0x2c8] sm:$0xf] %vm3183_vm0, %v3983_v3  ;;  %v3884_v5 = vpack.c.bf16 %v2262_v63, %v2262_v63  ;;  %v3984_v6 = vpack.c.bf16 %v2362_v4, %v2362_v4 }
 0x254   :  { %v1704_v8 = vpop.f32.mrb[160].mxu0  ;;  %v2104_v9 = vpop.f32.mrb[160].mxu1 }
 0x255   :  { %3263 = vst.msk [vmem:[%s6075_s3 + $0x13c] sm:$0xf] %vm3183_vm0, %v3884_v5  ;;  %3363 = vst.msk [vmem:[%s6075_s3 + $0x2cc] sm:$0xf] %vm3183_vm0, %v3984_v6  ;;  %v1705_v10 = vadd.f32 %v5772_v44, %v1704_v8  ;;  %v2105_v11 = vadd.f32 %v5772_v44, %v2104_v9  ;;  %v1706_v12 = vpop.f32.mrb[161].mxu0  ;;  %v2106_v13 = vpop.f32.mrb[161].mxu1 }
 0x256   :  { %v1707_v14 = vpop.f32.mrb[162].mxu0  ;;  %v2107_v15 = vpop.f32.mrb[162].mxu1 }
 0x257   :  { %v2263_v16 = vmax.f32 %v1705_v10, 0.0  ;;  %v2363_v17 = vmax.f32 %v2105_v11, 0.0  ;;  %v1708_v18 = vadd.f32 %v5772_v44, %v1707_v14  ;;  %v2108_v19 = vadd.f32 %v5772_v44, %v2107_v15  ;;  %v1709_v20 = vpop.f32.mrb[163].mxu0  ;;  %v2109_v21 = vpop.f32.mrb[163].mxu1 }
 0x259   :  { %v3885_v22 = vpack.c.bf16 %v2263_v16, %v2263_v16  ;;  %v3985_v23 = vpack.c.bf16 %v2363_v17, %v2363_v17  ;;  %v2264_v24 = vmax.f32 %v1708_v18, 0.0  ;;  %v2364_v25 = vmax.f32 %v2108_v19, 0.0 }
 0x25b   :  { %3264 = vst.msk [vmem:[%s6075_s3 + $0x140] sm:$0xf] %vm3183_vm0, %v3885_v22  ;;  %3364 = vst.msk [vmem:[%s6075_s3 + $0x2d0] sm:$0xf] %vm3183_vm0, %v3985_v23  ;;  %v3886_v26 = vpack.c.bf16 %v2264_v24, %v2264_v24  ;;  %v3986_v27 = vpack.c.bf16 %v2364_v25, %v2364_v25 }
 0x25c   :  { %v1712_v28 = vpop.f32.mrb[164].mxu0  ;;  %v2112_v29 = vpop.f32.mrb[164].mxu1 }
 0x25d   :  { %3265 = vst.msk [vmem:[%s6075_s3 + $0x144] sm:$0xf] %vm3183_vm0, %v3886_v26  ;;  %3365 = vst.msk [vmem:[%s6075_s3 + $0x2d4] sm:$0xf] %vm3183_vm0, %v3986_v27  ;;  %v1713_v30 = vadd.f32 %v5772_v44, %v1712_v28  ;;  %v2113_v31 = vadd.f32 %v5772_v44, %v2112_v29  ;;  %v1714_v32 = vpop.f32.mrb[165].mxu0  ;;  %v2114_v33 = vpop.f32.mrb[165].mxu1 }
 0x25e   :  { %v1715_v34 = vpop.f32.mrb[166].mxu0  ;;  %v2115_v35 = vpop.f32.mrb[166].mxu1 }
 0x25f   :  { %v2265_v36 = vmax.f32 %v1713_v30, 0.0  ;;  %v2365_v37 = vmax.f32 %v2113_v31, 0.0  ;;  %v1716_v38 = vadd.f32 %v5772_v44, %v1715_v34  ;;  %v2116_v39 = vadd.f32 %v5772_v44, %v2115_v35  ;;  %v1717_v40 = vpop.f32.mrb[167].mxu0  ;;  %v2117_v41 = vpop.f32.mrb[167].mxu1 }
 0x261   :  { %v3887_v42 = vpack.c.bf16 %v2265_v36, %v2265_v36  ;;  %v3987_v43 = vpack.c.bf16 %v2365_v37, %v2365_v37  ;;  %v2266_v45 = vmax.f32 %v1716_v38, 0.0  ;;  %v2366_v46 = vmax.f32 %v2116_v39, 0.0 }
 0x263   :  { %3266 = vst.msk [vmem:[%s6075_s3 + $0x148] sm:$0xf] %vm3183_vm0, %v3887_v42  ;;  %3366 = vst.msk [vmem:[%s6075_s3 + $0x2d8] sm:$0xf] %vm3183_vm0, %v3987_v43  ;;  %v3888_v47 = vpack.c.bf16 %v2266_v45, %v2266_v45  ;;  %v3988_v48 = vpack.c.bf16 %v2366_v46, %v2366_v46 }
 0x264   :  { %v1720_v49 = vpop.f32.mrb[168].mxu0  ;;  %v2120_v50 = vpop.f32.mrb[168].mxu1 }
 0x265   :  { %3267 = vst.msk [vmem:[%s6075_s3 + $0x14c] sm:$0xf] %vm3183_vm0, %v3888_v47  ;;  %3367 = vst.msk [vmem:[%s6075_s3 + $0x2dc] sm:$0xf] %vm3183_vm0, %v3988_v48  ;;  %v1721_v7 = vadd.f32 %v5772_v44, %v1720_v49  ;;  %v2121_v51 = vadd.f32 %v5772_v44, %v2120_v50  ;;  %v1722_v52 = vpop.f32.mrb[169].mxu0  ;;  %v2122_v53 = vpop.f32.mrb[169].mxu1 }
 0x266   :  { %v1723_v54 = vpop.f32.mrb[170].mxu0  ;;  %v2123_v55 = vpop.f32.mrb[170].mxu1 }
 0x267   :  { %v2267_v56 = vmax.f32 %v1721_v7, 0.0  ;;  %v2367_v57 = vmax.f32 %v2121_v51, 0.0  ;;  %v1724_v58 = vadd.f32 %v5772_v44, %v1723_v54  ;;  %v2124_v59 = vadd.f32 %v5772_v44, %v2123_v55  ;;  %v1725_v60 = vpop.f32.mrb[171].mxu0  ;;  %v2125_v61 = vpop.f32.mrb[171].mxu1 }
 0x269   :  { %v3889_v62 = vpack.c.bf16 %v2267_v56, %v2267_v56  ;;  %v3989_v0 = vpack.c.bf16 %v2367_v57, %v2367_v57  ;;  %v2268_v1 = vmax.f32 %v1724_v58, 0.0  ;;  %v2368_v2 = vmax.f32 %v2124_v59, 0.0 }
 0x26b   :  { %3268 = vst.msk [vmem:[%s6075_s3 + $0x150] sm:$0xf] %vm3183_vm0, %v3889_v62  ;;  %3368 = vst.msk [vmem:[%s6075_s3 + $0x2e0] sm:$0xf] %vm3183_vm0, %v3989_v0  ;;  %v3890_v3 = vpack.c.bf16 %v2268_v1, %v2268_v1  ;;  %v3990_v63 = vpack.c.bf16 %v2368_v2, %v2368_v2 }
 0x26c   :  { %v1728_v4 = vpop.f32.mrb[172].mxu0  ;;  %v2128_v5 = vpop.f32.mrb[172].mxu1 }
 0x26d   :  { %3269 = vst.msk [vmem:[%s6075_s3 + $0x154] sm:$0xf] %vm3183_vm0, %v3890_v3  ;;  %3369 = vst.msk [vmem:[%s6075_s3 + $0x2e4] sm:$0xf] %vm3183_vm0, %v3990_v63  ;;  %v1729_v6 = vadd.f32 %v5772_v44, %v1728_v4  ;;  %v2129_v8 = vadd.f32 %v5772_v44, %v2128_v5  ;;  %v1730_v9 = vpop.f32.mrb[173].mxu0  ;;  %v2130_v10 = vpop.f32.mrb[173].mxu1 }
 0x26e   :  { %v1731_v11 = vpop.f32.mrb[174].mxu0  ;;  %v2131_v12 = vpop.f32.mrb[174].mxu1 }
 0x26f   :  { %v2269_v13 = vmax.f32 %v1729_v6, 0.0  ;;  %v2369_v14 = vmax.f32 %v2129_v8, 0.0  ;;  %v1732_v15 = vadd.f32 %v5772_v44, %v1731_v11  ;;  %v2132_v16 = vadd.f32 %v5772_v44, %v2131_v12  ;;  %v1733_v17 = vpop.f32.mrb[175].mxu0  ;;  %v2133_v18 = vpop.f32.mrb[175].mxu1 }
 0x271   :  { %v3891_v19 = vpack.c.bf16 %v2269_v13, %v2269_v13  ;;  %v3991_v20 = vpack.c.bf16 %v2369_v14, %v2369_v14  ;;  %v2270_v21 = vmax.f32 %v1732_v15, 0.0  ;;  %v2370_v22 = vmax.f32 %v2132_v16, 0.0 }
 0x273   :  { %3270 = vst.msk [vmem:[%s6075_s3 + $0x158] sm:$0xf] %vm3183_vm0, %v3891_v19  ;;  %3370 = vst.msk [vmem:[%s6075_s3 + $0x2e8] sm:$0xf] %vm3183_vm0, %v3991_v20  ;;  %v3892_v23 = vpack.c.bf16 %v2270_v21, %v2270_v21  ;;  %v3992_v24 = vpack.c.bf16 %v2370_v22, %v2370_v22 }
 0x274   :  { %v1736_v25 = vpop.f32.mrb[176].mxu0  ;;  %v2136_v26 = vpop.f32.mrb[176].mxu1 }
 0x275   :  { %3271 = vst.msk [vmem:[%s6075_s3 + $0x15c] sm:$0xf] %vm3183_vm0, %v3892_v23  ;;  %3371 = vst.msk [vmem:[%s6075_s3 + $0x2ec] sm:$0xf] %vm3183_vm0, %v3992_v24  ;;  %v1737_v27 = vadd.f32 %v5772_v44, %v1736_v25  ;;  %v2137_v28 = vadd.f32 %v5772_v44, %v2136_v26  ;;  %v1738_v29 = vpop.f32.mrb[177].mxu0  ;;  %v2138_v30 = vpop.f32.mrb[177].mxu1 }
 0x276   :  { %v1739_v31 = vpop.f32.mrb[178].mxu0  ;;  %v2139_v32 = vpop.f32.mrb[178].mxu1 }
 0x277   :  { %v2271_v33 = vmax.f32 %v1737_v27, 0.0  ;;  %v2371_v34 = vmax.f32 %v2137_v28, 0.0  ;;  %v1740_v35 = vadd.f32 %v5772_v44, %v1739_v31  ;;  %v2140_v36 = vadd.f32 %v5772_v44, %v2139_v32  ;;  %v1741_v37 = vpop.f32.mrb[179].mxu0  ;;  %v2141_v38 = vpop.f32.mrb[179].mxu1 }
 0x279   :  { %v3893_v39 = vpack.c.bf16 %v2271_v33, %v2271_v33  ;;  %v3993_v40 = vpack.c.bf16 %v2371_v34, %v2371_v34  ;;  %v2272_v41 = vmax.f32 %v1740_v35, 0.0  ;;  %v2372_v42 = vmax.f32 %v2140_v36, 0.0 }
 0x27b   :  { %3272 = vst.msk [vmem:[%s6075_s3 + $0x160] sm:$0xf] %vm3183_vm0, %v3893_v39  ;;  %3372 = vst.msk [vmem:[%s6075_s3 + $0x2f0] sm:$0xf] %vm3183_vm0, %v3993_v40  ;;  %v3894_v43 = vpack.c.bf16 %v2272_v41, %v2272_v41  ;;  %v3994_v45 = vpack.c.bf16 %v2372_v42, %v2372_v42 }
 0x27c   :  { %v1744_v46 = vpop.f32.mrb[180].mxu0  ;;  %v2144_v47 = vpop.f32.mrb[180].mxu1 }
 0x27d   :  { %3273 = vst.msk [vmem:[%s6075_s3 + $0x164] sm:$0xf] %vm3183_vm0, %v3894_v43  ;;  %3373 = vst.msk [vmem:[%s6075_s3 + $0x2f4] sm:$0xf] %vm3183_vm0, %v3994_v45  ;;  %v1745_v48 = vadd.f32 %v5772_v44, %v1744_v46  ;;  %v2145_v49 = vadd.f32 %v5772_v44, %v2144_v47  ;;  %v1746_v50 = vpop.f32.mrb[181].mxu0  ;;  %v2146_v7 = vpop.f32.mrb[181].mxu1 }
 0x27e   :  { %v1747_v51 = vpop.f32.mrb[182].mxu0  ;;  %v2147_v52 = vpop.f32.mrb[182].mxu1 }
 0x27f   :  { %v2273_v53 = vmax.f32 %v1745_v48, 0.0  ;;  %v2373_v54 = vmax.f32 %v2145_v49, 0.0  ;;  %v1748_v55 = vadd.f32 %v5772_v44, %v1747_v51  ;;  %v2148_v56 = vadd.f32 %v5772_v44, %v2147_v52  ;;  %v1749_v57 = vpop.f32.mrb[183].mxu0  ;;  %v2149_v58 = vpop.f32.mrb[183].mxu1 }
 0x281   :  { %v3895_v59 = vpack.c.bf16 %v2273_v53, %v2273_v53  ;;  %v3995_v60 = vpack.c.bf16 %v2373_v54, %v2373_v54  ;;  %v2274_v61 = vmax.f32 %v1748_v55, 0.0  ;;  %v2374_v62 = vmax.f32 %v2148_v56, 0.0 }
 0x283   :  { %3274 = vst.msk [vmem:[%s6075_s3 + $0x168] sm:$0xf] %vm3183_vm0, %v3895_v59  ;;  %3374 = vst.msk [vmem:[%s6075_s3 + $0x2f8] sm:$0xf] %vm3183_vm0, %v3995_v60  ;;  %v3896_v0 = vpack.c.bf16 %v2274_v61, %v2274_v61  ;;  %v3996_v1 = vpack.c.bf16 %v2374_v62, %v2374_v62 }
 0x284   :  { %v1752_v2 = vpop.f32.mrb[184].mxu0  ;;  %v2152_v3 = vpop.f32.mrb[184].mxu1 }
 0x285   :  { %3275 = vst.msk [vmem:[%s6075_s3 + $0x16c] sm:$0xf] %vm3183_vm0, %v3896_v0  ;;  %3375 = vst.msk [vmem:[%s6075_s3 + $0x2fc] sm:$0xf] %vm3183_vm0, %v3996_v1  ;;  %v1753_v63 = vadd.f32 %v5772_v44, %v1752_v2  ;;  %v2153_v4 = vadd.f32 %v5772_v44, %v2152_v3  ;;  %v1754_v5 = vpop.f32.mrb[185].mxu0  ;;  %v2154_v6 = vpop.f32.mrb[185].mxu1 }
 0x286   :  { %v1755_v8 = vpop.f32.mrb[186].mxu0  ;;  %v2155_v9 = vpop.f32.mrb[186].mxu1 }
 0x287   :  { %v2275_v10 = vmax.f32 %v1753_v63, 0.0  ;;  %v2375_v11 = vmax.f32 %v2153_v4, 0.0  ;;  %v1756_v12 = vadd.f32 %v5772_v44, %v1755_v8  ;;  %v2156_v13 = vadd.f32 %v5772_v44, %v2155_v9  ;;  %v1757_v14 = vpop.f32.mrb[187].mxu0  ;;  %v2157_v15 = vpop.f32.mrb[187].mxu1 }
 0x289   :  { %v3897_v16 = vpack.c.bf16 %v2275_v10, %v2275_v10  ;;  %v3997_v17 = vpack.c.bf16 %v2375_v11, %v2375_v11  ;;  %v2276_v18 = vmax.f32 %v1756_v12, 0.0  ;;  %v2376_v19 = vmax.f32 %v2156_v13, 0.0 }
 0x28b   :  { %3276 = vst.msk [vmem:[%s6075_s3 + $0x170] sm:$0xf] %vm3183_vm0, %v3897_v16  ;;  %3376 = vst.msk [vmem:[%s6075_s3 + $0x300] sm:$0xf] %vm3183_vm0, %v3997_v17  ;;  %v3898_v20 = vpack.c.bf16 %v2276_v18, %v2276_v18  ;;  %v3998_v21 = vpack.c.bf16 %v2376_v19, %v2376_v19 }
 0x28c   :  { %v1760_v22 = vpop.f32.mrb[188].mxu0  ;;  %v2160_v23 = vpop.f32.mrb[188].mxu1 }
 0x28d   :  { %3277 = vst.msk [vmem:[%s6075_s3 + $0x174] sm:$0xf] %vm3183_vm0, %v3898_v20  ;;  %3377 = vst.msk [vmem:[%s6075_s3 + $0x304] sm:$0xf] %vm3183_vm0, %v3998_v21  ;;  %v1761_v24 = vadd.f32 %v5772_v44, %v1760_v22  ;;  %v2161_v25 = vadd.f32 %v5772_v44, %v2160_v23  ;;  %v1762_v26 = vpop.f32.mrb[189].mxu0  ;;  %v2162_v27 = vpop.f32.mrb[189].mxu1 }
 0x28e   :  { %v1763_v28 = vpop.f32.mrb[190].mxu0  ;;  %v2163_v29 = vpop.f32.mrb[190].mxu1 }
 0x28f   :  { %v2277_v30 = vmax.f32 %v1761_v24, 0.0  ;;  %v2377_v31 = vmax.f32 %v2161_v25, 0.0  ;;  %v1764_v32 = vadd.f32 %v5772_v44, %v1763_v28  ;;  %v2164_v33 = vadd.f32 %v5772_v44, %v2163_v29  ;;  %v1765_v34 = vpop.f32.mrb[191].mxu0  ;;  %v2165_v35 = vpop.f32.mrb[191].mxu1 }
 0x291   :  { %v3899_v36 = vpack.c.bf16 %v2277_v30, %v2277_v30  ;;  %v3999_v37 = vpack.c.bf16 %v2377_v31, %v2377_v31  ;;  %v2278_v38 = vmax.f32 %v1764_v32, 0.0  ;;  %v2378_v39 = vmax.f32 %v2164_v33, 0.0 }
 0x293   :  { %3278 = vst.msk [vmem:[%s6075_s3 + $0x178] sm:$0xf] %vm3183_vm0, %v3899_v36  ;;  %3378 = vst.msk [vmem:[%s6075_s3 + $0x308] sm:$0xf] %vm3183_vm0, %v3999_v37  ;;  %v3900_v40 = vpack.c.bf16 %v2278_v38, %v2278_v38  ;;  %v4000_v41 = vpack.c.bf16 %v2378_v39, %v2378_v39 }
 0x294   :  { %v1768_v42 = vpop.f32.mrb[192].mxu0  ;;  %v2168_v43 = vpop.f32.mrb[192].mxu1 }
 0x295   :  { %3279 = vst.msk [vmem:[%s6075_s3 + $0x17c] sm:$0xf] %vm3183_vm0, %v3900_v40  ;;  %3379 = vst.msk [vmem:[%s6075_s3 + $0x30c] sm:$0xf] %vm3183_vm0, %v4000_v41  ;;  %v1769_v45 = vadd.f32 %v5772_v44, %v1768_v42  ;;  %v2169_v46 = vadd.f32 %v5772_v44, %v2168_v43  ;;  %v1770_v47 = vpop.f32.mrb[193].mxu0  ;;  %v2170_v48 = vpop.f32.mrb[193].mxu1 }
 0x296   :  { %v1771_v49 = vpop.f32.mrb[194].mxu0  ;;  %v2171_v50 = vpop.f32.mrb[194].mxu1 }
 0x297   :  { %v2279_v7 = vmax.f32 %v1769_v45, 0.0  ;;  %v2379_v51 = vmax.f32 %v2169_v46, 0.0  ;;  %v1772_v52 = vadd.f32 %v5772_v44, %v1771_v49  ;;  %v2172_v53 = vadd.f32 %v5772_v44, %v2171_v50  ;;  %v1773_v54 = vpop.f32.mrb[195].mxu0  ;;  %v2173_v55 = vpop.f32.mrb[195].mxu1 }
 0x299   :  { %v3901_v56 = vpack.c.bf16 %v2279_v7, %v2279_v7  ;;  %v4001_v57 = vpack.c.bf16 %v2379_v51, %v2379_v51  ;;  %v2280_v58 = vmax.f32 %v1772_v52, 0.0  ;;  %v2380_v59 = vmax.f32 %v2172_v53, 0.0 }
 0x29b   :  { %3280 = vst.msk [vmem:[%s6075_s3 + $0x180] sm:$0xf] %vm3183_vm0, %v3901_v56  ;;  %3380 = vst.msk [vmem:[%s6075_s3 + $0x310] sm:$0xf] %vm3183_vm0, %v4001_v57  ;;  %v3902_v60 = vpack.c.bf16 %v2280_v58, %v2280_v58  ;;  %v4002_v61 = vpack.c.bf16 %v2380_v59, %v2380_v59 }
 0x29c   :  { %v1776_v62 = vpop.f32.mrb[196].mxu0  ;;  %v2176_v0 = vpop.f32.mrb[196].mxu1 }
 0x29d   :  { %3281 = vst.msk [vmem:[%s6075_s3 + $0x184] sm:$0xf] %vm3183_vm0, %v3902_v60  ;;  %3381 = vst.msk [vmem:[%s6075_s3 + $0x314] sm:$0xf] %vm3183_vm0, %v4002_v61  ;;  %v1777_v1 = vadd.f32 %v5772_v44, %v1776_v62  ;;  %v2177_v2 = vadd.f32 %v5772_v44, %v2176_v0  ;;  %v1778_v3 = vpop.f32.mrb[197].mxu0  ;;  %v2178_v63 = vpop.f32.mrb[197].mxu1 }
 0x29e   :  { %v1779_v4 = vpop.f32.mrb[198].mxu0  ;;  %v2179_v5 = vpop.f32.mrb[198].mxu1 }
 0x29f   :  { %v2281_v6 = vmax.f32 %v1777_v1, 0.0  ;;  %v2381_v8 = vmax.f32 %v2177_v2, 0.0  ;;  %v1780_v9 = vadd.f32 %v5772_v44, %v1779_v4  ;;  %v2180_v10 = vadd.f32 %v5772_v44, %v2179_v5  ;;  %v1781_v11 = vpop.f32.mrb[199].mxu0  ;;  %v2181_v12 = vpop.f32.mrb[199].mxu1 }
 0x2a1   :  { %v3903_v13 = vpack.c.bf16 %v2281_v6, %v2281_v6  ;;  %v4003_v14 = vpack.c.bf16 %v2381_v8, %v2381_v8  ;;  %v2282_v15 = vmax.f32 %v1780_v9, 0.0  ;;  %v2382_v16 = vmax.f32 %v2180_v10, 0.0 }
 0x2a3   :  { %3282 = vst.msk [vmem:[%s6075_s3 + $0x188] sm:$0xf] %vm3183_vm0, %v3903_v13  ;;  %3382 = vst.msk [vmem:[%s6075_s3 + $0x318] sm:$0xf] %vm3183_vm0, %v4003_v14  ;;  %v3904_v17 = vpack.c.bf16 %v2282_v15, %v2282_v15  ;;  %v4004_v18 = vpack.c.bf16 %v2382_v16, %v2382_v16 }
 0x2a5   :  { %3283 = vst.msk [vmem:[%s6075_s3 + $0x18c] sm:$0xf] %vm3183_vm0, %v3904_v17  ;;  %3383 = vst.msk [vmem:[%s6075_s3 + $0x31c] sm:$0xf] %vm3183_vm0, %v4004_v18 }

// kernel: icm_forward.3
= control target key start
LH: loop header
LB: loop body
LE: loop exit
PB: predicated region body
PF: predicated region fallthrough
CT: control target
= control target key end

     0   :  { %v10511_v62 = vmov 0.0   ;;  %vm10512_vm0 = vmmov 0   ;;  %vm756_vm1 = vcmask 1041408   ;;  %vm734_vm2 = vcmask 818176   ;;  %s13645_s3 = inlined_call_operand.vmem [shape: bf16[512,64], index: 3, kind: input, shape index: {}]   ;;  %s13646_s0 = inlined_call_operand.vmem [shape: bf16[100,512], index: 0, kind: input, shape index: {}]   ;;  %s13647_s1 = inlined_call_operand.vmem [shape: bf16[9,100,100], index: 1, kind: input, shape index: {}]   ;;  %s13648_s4 = inlined_call_operand.vmem [shape: f32[1,64], index: 4, kind: input, shape index: {}]   ;;  %s13649_s5 = inlined_call_operand.vmem [shape: bf16[576,64], index: 5, kind: input, shape index: {}]   ;;  %s13650_s7 = inlined_call_operand.vmem [shape: bf16[1600,512], index: 7, kind: input, shape index: {}]   ;;  %s13651_s6 = inlined_call_operand.vmem [shape: f32[1,64], index: 6, kind: input, shape index: {}]   ;;  %s13652_s9 = inlined_call_operand.vmem [shape: bf16[512,32], index: 9, kind: input, shape index: {}]   ;;  %s13653_s12 = inlined_call_operand.vmem [shape: bf16[7,512], index: 12, kind: input, shape index: {}]   ;;  %s13654_s8 = inlined_call_operand.vmem [shape: f32[1,512], index: 8, kind: input, shape index: {}]   ;;  %s13655_s2 = inlined_call_operand.vmem [shape: f32[2,7], index: 2, kind: input, shape index: {}]   ;;  %s13656_s11 = inlined_call_operand.vmem [shape: bf16[32,512], index: 11, kind: input, shape index: {}]   ;;  %s13657_s14 = inlined_call_operand.vmem [shape: bf16[512,32], index: 14, kind: input, shape index: {}]   ;;  %s13658_s10 = inlined_call_operand.vmem [shape: f32[1,32], index: 10, kind: input, shape index: {}]   ;;  %s13659_s17 = inlined_call_operand.vmem [shape: bf16[32,512], index: 17, kind: input, shape index: {}]   ;;  %s13660_s16 = inlined_call_operand.vmem [shape: bf16[32,512], index: 16, kind: input, shape index: {}]   ;;  %s13661_s19 = inlined_call_operand.vmem [shape: bf16[512,7], index: 19, kind: input, shape index: {}]   ;;  %s13662_s13 = inlined_call_operand.vmem [shape: f32[1,512], index: 13, kind: input, shape index: {}]   ;;  %s13663_s15 = inlined_call_operand.vmem [shape: f32[1,32], index: 15, kind: input, shape index: {}]   ;;  %s13664_s18 = inlined_call_operand.vmem [shape: f32[1,512], index: 18, kind: input, shape index: {}]   ;;  %s13665_s20 = inlined_call_operand.vmem [shape: f32[1,7], index: 20, kind: input, shape index: {}]   ;;  %s13666_s21 = inlined_call_operand.vmem [shape: f32[8,128], index: 21, kind: output, shape index: {}]  }
   0x1   :  { %13672 = sst [smem:[#allocation3_spill]] %s13645_s3  ;;  %vm2243_vm3 = vcmask 523264   ;;  %vm2949_vm4 = vcmask 519168   ;;  %vm2956_vm5 = vcmask 1043968   ;;  %vm6451_vm6 = vcmask 1042432   ;;  %7741 = vst [vmem:[%s13666_s21] sm:$0xff] %v10511_v62 }
   0x2   :  { %13673 = sst [smem:[#allocation4_spill]] %s13646_s0  ;;  %s13678_s26 = sld [smem:[#allocation3_spill]]  ;;  %vm6452_vm7 = vcmask 1043456   ;;  %vm6447_vm8 = vcmask 56320   ;;  %vm6589_vm9 = vcmask 261120   ;;  %vm7715_vm10 = vcmask 50176  }
   0x3   :  { %13674 = sst [smem:[#allocation5_spill]] %s13647_s1  ;;  %s13679_s22 = sld [smem:[#allocation4_spill]]  ;;  %vm7701_vm11 = vcmask 254976  }
   0x4   :  { %13675 = sst [smem:[#allocation6_spill]] %s13648_s4  ;;  %s13681_s30 = sld [smem:[#allocation5_spill]] }
   0x5   :  { %13676 = sst [smem:[#allocation7_spill]] %s13649_s5  ;;  %s13680_s29 = sld [smem:[#allocation6_spill]] }
   0x6   :  { %13677 = sst [smem:[#allocation8_spill]] %s13650_s7  ;;  %s13682_s0 = sld [smem:[#allocation7_spill]] }
   0x7   :  { %s10513_s1 = smov 64  }
   0x8   :  { %v9593_v0 = vld [vmem:[%s13678_s26 + $0x40] sm:$0xff]   ;;  %v9597_v4 = vld [vmem:[%s13678_s26 + $0x48] sm:$0xff]   ;;  %v9601_v8 = vld [vmem:[%s13678_s26 + $0x50] sm:$0xff]  }
   0x9   :  { %v9594_v1 = vld [vmem:[%s13678_s26 + $0xc0] sm:$0xff]   ;;  %8621 = vmatprep.subr.bf16.mxu0 %v9593_v0  ;;  %v9598_v5 = vld [vmem:[%s13678_s26 + $0xc8] sm:$0xff]   ;;  %v9602_v9 = vld [vmem:[%s13678_s26 + $0xd0] sm:$0xff]  }
   0xa   :  { %v9595_v2 = vld [vmem:[%s13678_s26] sm:$0xff]   ;;  %8679 = vmatprep.subr.bf16.mxu1 %v9594_v1  ;;  %v9599_v6 = vld [vmem:[%s13678_s26 + $0x8] sm:$0xff]   ;;  %v9603_v10 = vld [vmem:[%s13678_s26 + $0x10] sm:$0xff]  }
   0xb   :  { %v9596_v3 = vld [vmem:[%s13678_s26 + $0x80] sm:$0xff]   ;;  %8622 = vmatpush3.bf16.msra.mxu0 %v9595_v2  ;;  %v9600_v7 = vld [vmem:[%s13678_s26 + $0x88] sm:$0xff]   ;;  %v9604_v11 = vld [vmem:[%s13678_s26 + $0x90] sm:$0xff]  }
   0xc   :  { %8680 = vmatpush3.bf16.msra.mxu1 %v9596_v3  ;;  %8623 = vmatprep.subr.bf16.mxu0 %v9597_v4  ;;  %v9605_v12 = vld [vmem:[%s13678_s26 + $0x58] sm:$0xff]   ;;  %v9609_v16 = vld [vmem:[%s13678_s26 + $0x60] sm:$0xff]   ;;  %v9613_v20 = vld [vmem:[%s13678_s26 + $0x68] sm:$0xff]  }
   0xd   :  { %8681 = vmatprep.subr.bf16.mxu1 %v9598_v5  ;;  %v9606_v13 = vld [vmem:[%s13678_s26 + $0xd8] sm:$0xff]   ;;  %v9610_v17 = vld [vmem:[%s13678_s26 + $0xe0] sm:$0xff]   ;;  %v9614_v21 = vld [vmem:[%s13678_s26 + $0xe8] sm:$0xff]  }
   0xe   :  { %v9607_v14 = vld [vmem:[%s13678_s26 + $0x18] sm:$0xff]   ;;  %v9611_v18 = vld [vmem:[%s13678_s26 + $0x20] sm:$0xff]   ;;  %v9615_v22 = vld [vmem:[%s13678_s26 + $0x28] sm:$0xff]  }
   0xf   :  { %8624 = vmatpush3.bf16.msra.mxu0 %v9599_v6  ;;  %v9608_v15 = vld [vmem:[%s13678_s26 + $0x98] sm:$0xff]   ;;  %v9612_v19 = vld [vmem:[%s13678_s26 + $0xa0] sm:$0xff]   ;;  %v9616_v23 = vld [vmem:[%s13678_s26 + $0xa8] sm:$0xff]  }
  0x10   :  { %8682 = vmatpush3.bf16.msra.mxu1 %v9600_v7  ;;  %8625 = vmatprep.subr.bf16.mxu0 %v9601_v8  ;;  %v9617_v24 = vld [vmem:[%s13678_s26 + $0x70] sm:$0xff]   ;;  %v9621_v28 = vld [vmem:[%s13678_s26 + $0x78] sm:$0xff]   ;;  %v93_v54 = vld [vmem:[%s13679_s22 + $0xc0] sm:$0x33] }
  0x11   :  { %8683 = vmatprep.subr.bf16.mxu1 %v9602_v9  ;;  %v9618_v25 = vld [vmem:[%s13678_s26 + $0xf0] sm:$0xff]   ;;  %v9622_v29 = vld [vmem:[%s13678_s26 + $0xf8] sm:$0xff]   ;;  %v94_v55 = vld [vmem:[%s13679_s22 + $0xc8] sm:$0x33]  ;;  %v7775_v58 = vcombine.high %v93_v54, %v93_v54  ;;  %v7774_v60 = vcombine.low %v93_v54, %v93_v54 }
  0x12   :  { %v9619_v26 = vld [vmem:[%s13678_s26 + $0x30] sm:$0xff]   ;;  %v9623_v30 = vld [vmem:[%s13678_s26 + $0x38] sm:$0xff]   ;;  %v7777_v59 = vcombine.high %v94_v55, %v94_v55  ;;  %v7776_v61 = vcombine.low %v94_v55, %v94_v55  ;;  %v10809_v1 = vld [vmem:[%s13680_s29] ss:$0 sm:$0xff] }
  0x13   :  { %8626 = vmatpush3.bf16.msra.mxu0 %v9603_v10  ;;  %v9620_v27 = vld [vmem:[%s13678_s26 + $0xb0] sm:$0xff]   ;;  %v9624_v31 = vld [vmem:[%s13678_s26 + $0xb8] sm:$0xff]  }
  0x14   :  { %8684 = vmatpush3.bf16.msra.mxu1 %v9604_v11  ;;  %8627 = vmatprep.subr.bf16.mxu0 %v9605_v12  ;;  %v9625_v32 = vld [vmem:[%s13679_s22] ss:$16 sps:$4 sm:$0xff]   ;;  %v9627_v33 = vld [vmem:[%s13679_s22 + $0x4] ss:$16 sps:$4 sm:$0xff]   ;;  %v9628_v34 = vld [vmem:[%s13679_s22 + $0x8] ss:$16 sps:$4 sm:$0xff]  }
  0x15   :  { %8685 = vmatprep.subr.bf16.mxu1 %v9606_v13  ;;  %v9630_v35 = vld [vmem:[%s13679_s22 + $0xc] ss:$16 sps:$4 sm:$0xff]   ;;  %524 = vmatprep.mubr.bf16.mxu0 %v9627_v33  ;;  %v9631_v36 = vld [vmem:[%s13679_s22 + $0x24] ss:$16 sps:$4 sm:$0xff]   ;;  %v9635_v38 = vld [vmem:[%s13679_s22 + $0x20] ss:$16 sps:$4 sm:$0xff]  }
  0x16   :  { %612 = vmatprep.mubr.bf16.mxu1 %v9630_v35  ;;  %v9633_v37 = vld [vmem:[%s13679_s22 + $0x2c] ss:$16 sps:$4 sm:$0xff]   ;;  %v9636_v39 = vld [vmem:[%s13679_s22 + $0x28] ss:$16 sps:$4 sm:$0xff]   ;;  %v9637_v40 = vld [vmem:[%s13679_s22 + $0x44] ss:$16 sps:$4 sm:$0xff]  }
  0x17   :  { %8628 = vmatpush3.bf16.msra.mxu0 %v9607_v14  ;;  %v9639_v41 = vld [vmem:[%s13679_s22 + $0x4c] ss:$16 sps:$4 sm:$0xff]   ;;  %v9641_v42 = vld [vmem:[%s13679_s22 + $0x40] ss:$16 sps:$4 sm:$0xff]   ;;  %v9642_v43 = vld [vmem:[%s13679_s22 + $0x48] ss:$16 sps:$4 sm:$0xff]  }
  0x18   :  { %8686 = vmatpush3.bf16.msra.mxu1 %v9608_v15  ;;  %8629 = vmatprep.subr.bf16.mxu0 %v9609_v16  ;;  %v9643_v44 = vld [vmem:[%s13679_s22 + $0x64] ss:$16 sps:$4 sm:$0xff]   ;;  %v9645_v45 = vld [vmem:[%s13679_s22 + $0x6c] ss:$16 sps:$4 sm:$0xff]   ;;  %v9647_v46 = vld [vmem:[%s13679_s22 + $0x60] ss:$16 sps:$4 sm:$0xff]  }
  0x19   :  { %8687 = vmatprep.subr.bf16.mxu1 %v9610_v17  ;;  %v9648_v47 = vld [vmem:[%s13679_s22 + $0x68] ss:$16 sps:$4 sm:$0xff]   ;;  %v9649_v48 = vld [vmem:[%s13679_s22 + $0x84] ss:$16 sps:$4 sm:$0xff]   ;;  %v9651_v49 = vld [vmem:[%s13679_s22 + $0x8c] ss:$16 sps:$4 sm:$0xff]  }
  0x1a   :  { %v9653_v50 = vld [vmem:[%s13679_s22 + $0x80] ss:$16 sps:$4 sm:$0xff]   ;;  %v9654_v51 = vld [vmem:[%s13679_s22 + $0x88] ss:$16 sps:$4 sm:$0xff]   ;;  %v9655_v52 = vld [vmem:[%s13679_s22 + $0xa4] ss:$16 sps:$4 sm:$0xff]  }
  0x1b   :  { %8630 = vmatpush3.bf16.msra.mxu0 %v9611_v18  ;;  %v9657_v53 = vld [vmem:[%s13679_s22 + $0xac] ss:$16 sps:$4 sm:$0xff]   ;;  %v9659_v56 = vld [vmem:[%s13679_s22 + $0xa0] ss:$16 sps:$4 sm:$0xff]   ;;  %v9660_v57 = vld [vmem:[%s13679_s22 + $0xa8] ss:$16 sps:$4 sm:$0xff]  }
  0x1c   :  { %8688 = vmatpush3.bf16.msra.mxu1 %v9612_v19  ;;  %8631 = vmatprep.subr.bf16.mxu0 %v9613_v20 }
  0x1d   :  { %8689 = vmatprep.subr.bf16.mxu1 %v9614_v21 }
  0x1f   :  { %8632 = vmatpush3.bf16.msra.mxu0 %v9615_v22 }
  0x20   :  { %8690 = vmatpush3.bf16.msra.mxu1 %v9616_v23  ;;  %8633 = vmatprep.subr.bf16.mxu0 %v9617_v24 }
  0x21   :  { %8691 = vmatprep.subr.bf16.mxu1 %v9618_v25 }
  0x23   :  { %8634 = vmatpush3.bf16.msra.mxu0 %v9619_v26 }
  0x24   :  { %8692 = vmatpush3.bf16.msra.mxu1 %v9620_v27  ;;  %8635 = vmatprep.subr.bf16.mxu0 %v9621_v28 }
  0x25   :  { %8693 = vmatprep.subr.bf16.mxu1 %v9622_v29 }
  0x27   :  { %8636 = vmatpush3.bf16.msra.mxu0 %v9623_v30 }
  0x28   :  { %8694 = vmatpush3.bf16.msra.mxu1 %v9624_v31  ;;  %9122 = vmatprep.subr.bf16.mxu0 %v10511_v62 }
  0x29   :  { %9164 = vmatprep.subr.bf16.mxu1 %v10511_v62 }
  0x2a   :  { %525 = vmatmul.mubr.bf16.vlgmr.msra.gmra.mrb[0].mxu0 %v9625_v32 }
  0x2b   :  { %613 = vmatmul.mubr.bf16.vlgmr.msra.gmra.mrb[0].mxu1 %v9628_v34  ;;  %532 = vmatprep.mubr.bf16.mxu0 %v9631_v36 }
  0x2c   :  { %620 = vmatprep.mubr.bf16.mxu1 %v9633_v37 }
  0x32   :  { %533 = vmatmul.mubr.bf16.gmra.mrb[4].mxu0 %v9635_v38 }
  0x33   :  { %621 = vmatmul.mubr.bf16.gmra.mrb[4].mxu1 %v9636_v39  ;;  %540 = vmatprep.mubr.bf16.mxu0 %v9637_v40 }
  0x34   :  { %628 = vmatprep.mubr.bf16.mxu1 %v9639_v41 }
  0x3a   :  { %541 = vmatmul.mubr.bf16.gmra.mrb[8].mxu0 %v9641_v42 }
  0x3b   :  { %629 = vmatmul.mubr.bf16.gmra.mrb[8].mxu1 %v9642_v43  ;;  %548 = vmatprep.mubr.bf16.mxu0 %v9643_v44 }
  0x3c   :  { %636 = vmatprep.mubr.bf16.mxu1 %v9645_v45 }
  0x42   :  { %549 = vmatmul.mubr.bf16.gmra.mrb[12].mxu0 %v9647_v46 }
  0x43   :  { %637 = vmatmul.mubr.bf16.gmra.mrb[12].mxu1 %v9648_v47  ;;  %556 = vmatprep.mubr.bf16.mxu0 %v9649_v48 }
  0x44   :  { %644 = vmatprep.mubr.bf16.mxu1 %v9651_v49 }
  0x4a   :  { %557 = vmatmul.mubr.bf16.gmra.mrb[16].mxu0 %v9653_v50 }
  0x4b   :  { %645 = vmatmul.mubr.bf16.gmra.mrb[16].mxu1 %v9654_v51  ;;  %564 = vmatprep.mubr.bf16.mxu0 %v9655_v52 }
  0x4c   :  { %652 = vmatprep.mubr.bf16.mxu1 %v9657_v53 }
  0x52   :  { %565 = vmatmul.mubr.bf16.gmra.mrb[20].mxu0 %v9659_v56 }
  0x53   :  { %653 = vmatmul.mubr.bf16.gmra.mrb[20].mxu1 %v9660_v57  ;;  %572 = vmatprep.mubr.bf16.mxu0 %v7775_v58 }
  0x54   :  { %660 = vmatprep.mubr.bf16.mxu1 %v7777_v59 }
  0x5a   :  { %573 = vmatmul.mubr.bf16.gmra.mrb[24].mxu0 %v7774_v60 }
  0x5b   :  { %661 = vmatmul.mubr.bf16.gmra.mrb[24].mxu1 %v7776_v61  ;;  %9136 = vmatprep.mubr.msk.bf16.mxu0 %vm10512_vm0, %v10511_v62 }
  0x5c   :  { %9178 = vmatprep.mubr.msk.bf16.mxu1 %vm10512_vm0, %v10511_v62 }
  0xfd   :  { %v8637_v63 = vpop.f32.mrb[0].mxu0 }
  0xfe   :  { %v8695_v0 = vpop.f32.mrb[0].mxu1  ;;  %v8638_v2 = vpop.f32.mrb[1].mxu0 }
  0xff   :  { %v8639_v3 = vadd.f32 %v8638_v2, %v8637_v63  ;;  %v8696_v4 = vpop.f32.mrb[1].mxu1  ;;  %v8640_v5 = vpop.f32.mrb[2].mxu0 }
 0x100   :  { %v8697_v6 = vadd.f32 %v8696_v4, %v8695_v0  ;;  %v8698_v7 = vpop.f32.mrb[2].mxu1  ;;  %v8641_v8 = vpop.f32.mrb[3].mxu0 }
 0x101   :  { %v527_v9 = vadd.f32 %v8639_v3, %v10809_v1  ;;  %v8642_v10 = vadd.f32 %v8641_v8, %v8640_v5  ;;  %v8699_v11 = vpop.f32.mrb[3].mxu1 }
 0x102   :  { %v8700_v12 = vadd.f32 %v8699_v11, %v8698_v7 }
 0x103   :  { %v615_v13 = vadd.f32 %v8697_v6, %v527_v9  ;;  %v530_v14 = vadd.f32 %v8642_v10, %v10809_v1 }
 0x105   :  { %v618_v15 = vadd.f32 %v8700_v12, %v530_v14  ;;  %v8643_v16 = vpop.f32.mrb[4].mxu0  ;;  %v668_v19 = vmax.f32 %v615_v13, 0.0 }
 0x106   :  { %v8701_v17 = vpop.f32.mrb[4].mxu1  ;;  %v8644_v18 = vpop.f32.mrb[5].mxu0 }
 0x107   :  { %v669_v20 = vmax.f32 %v618_v15, 0.0  ;;  %v8645_v21 = vadd.f32 %v8644_v18, %v8643_v16  ;;  %v8702_v22 = vpop.f32.mrb[5].mxu1  ;;  %v8646_v23 = vpop.f32.mrb[6].mxu0 }
 0x108   :  { %v8703_v24 = vadd.f32 %v8702_v22, %v8701_v17  ;;  %v8704_v25 = vpop.f32.mrb[6].mxu1  ;;  %v8647_v26 = vpop.f32.mrb[7].mxu0 }
 0x109   :  { %v10813_v27 = vpack.c.bf16 %v669_v20, %v668_v19  ;;  %v535_v28 = vadd.f32 %v8645_v21, %v10809_v1  ;;  %v8648_v29 = vadd.f32 %v8647_v26, %v8646_v23  ;;  %v8705_v30 = vpop.f32.mrb[7].mxu1 }
 0x10a   :  { %v8706_v31 = vadd.f32 %v8705_v30, %v8704_v25 }
 0x10b   :  { %v623_v32 = vadd.f32 %v8703_v24, %v535_v28  ;;  %v538_v33 = vadd.f32 %v8648_v29, %v10809_v1  ;;  %9123 = vmatpush3.bf16.msra.mxu0 %v10813_v27  ;;  %9165 = vmatpush3.bf16.msra.mxu1 %v10813_v27 }
 0x10c   :  { %9124 = vmatprep.subr.bf16.mxu0 %v10511_v62  ;;  %9166 = vmatprep.subr.bf16.mxu1 %v10511_v62 }
 0x10d   :  { %v626_v34 = vadd.f32 %v8706_v31, %v538_v33  ;;  %v8649_v35 = vpop.f32.mrb[8].mxu0  ;;  %v670_v38 = vmax.f32 %v623_v32, 0.0 }
 0x10e   :  { %v8707_v36 = vpop.f32.mrb[8].mxu1  ;;  %v8650_v37 = vpop.f32.mrb[9].mxu0 }
 0x10f   :  { %v671_v39 = vmax.f32 %v626_v34, 0.0  ;;  %v8651_v40 = vadd.f32 %v8650_v37, %v8649_v35  ;;  %v8708_v41 = vpop.f32.mrb[9].mxu1  ;;  %v8652_v42 = vpop.f32.mrb[10].mxu0 }
 0x110   :  { %v8709_v43 = vadd.f32 %v8708_v41, %v8707_v36  ;;  %v8710_v44 = vpop.f32.mrb[10].mxu1  ;;  %v8653_v45 = vpop.f32.mrb[11].mxu0 }
 0x111   :  { %v10821_v46 = vpack.c.bf16 %v671_v39, %v670_v38  ;;  %v543_v47 = vadd.f32 %v8651_v40, %v10809_v1  ;;  %v8654_v48 = vadd.f32 %v8653_v45, %v8652_v42  ;;  %v8711_v49 = vpop.f32.mrb[11].mxu1 }
 0x112   :  { %v8712_v50 = vadd.f32 %v8711_v49, %v8710_v44 }
 0x113   :  { %v631_v51 = vadd.f32 %v8709_v43, %v543_v47  ;;  %v546_v52 = vadd.f32 %v8654_v48, %v10809_v1  ;;  %9125 = vmatpush3.bf16.msra.mxu0 %v10821_v46  ;;  %9167 = vmatpush3.bf16.msra.mxu1 %v10821_v46 }
 0x114   :  { %9126 = vmatprep.subr.bf16.mxu0 %v10511_v62  ;;  %9168 = vmatprep.subr.bf16.mxu1 %v10511_v62 }
 0x115   :  { %v634_v53 = vadd.f32 %v8712_v50, %v546_v52  ;;  %v8655_v54 = vpop.f32.mrb[12].mxu0  ;;  %v672_v57 = vmax.f32 %v631_v51, 0.0 }
 0x116   :  { %v8713_v55 = vpop.f32.mrb[12].mxu1  ;;  %v8656_v56 = vpop.f32.mrb[13].mxu0 }
 0x117   :  { %v673_v58 = vmax.f32 %v634_v53, 0.0  ;;  %v8657_v59 = vadd.f32 %v8656_v56, %v8655_v54  ;;  %v8714_v60 = vpop.f32.mrb[13].mxu1  ;;  %v8658_v61 = vpop.f32.mrb[14].mxu0 }
 0x118   :  { %v8715_v63 = vadd.f32 %v8714_v60, %v8713_v55  ;;  %v8716_v0 = vpop.f32.mrb[14].mxu1  ;;  %v8659_v2 = vpop.f32.mrb[15].mxu0 }
 0x119   :  { %v10829_v3 = vpack.c.bf16 %v673_v58, %v672_v57  ;;  %v551_v4 = vadd.f32 %v8657_v59, %v10809_v1  ;;  %v8660_v5 = vadd.f32 %v8659_v2, %v8658_v61  ;;  %v8717_v6 = vpop.f32.mrb[15].mxu1 }
 0x11a   :  { %v8718_v7 = vadd.f32 %v8717_v6, %v8716_v0 }
 0x11b   :  { %v639_v8 = vadd.f32 %v8715_v63, %v551_v4  ;;  %v554_v9 = vadd.f32 %v8660_v5, %v10809_v1  ;;  %9127 = vmatpush3.bf16.msra.mxu0 %v10829_v3  ;;  %9169 = vmatpush3.bf16.msra.mxu1 %v10829_v3 }
 0x11c   :  { %9128 = vmatprep.subr.bf16.mxu0 %v10511_v62  ;;  %9170 = vmatprep.subr.bf16.mxu1 %v10511_v62 }
 0x11d   :  { %v642_v10 = vadd.f32 %v8718_v7, %v554_v9  ;;  %v8661_v11 = vpop.f32.mrb[16].mxu0  ;;  %v674_v14 = vmax.f32 %v639_v8, 0.0  ;;  %v9666_v8 = vld [vmem:[%s13681_s30 + $0x34] sm:$0xff]   ;;  %v9667_v9 = vld [vmem:[%s13681_s30 + $0x8] sm:$0xff]  }
 0x11e   :  { %v8719_v12 = vpop.f32.mrb[16].mxu1  ;;  %v8662_v13 = vpop.f32.mrb[17].mxu0 }
 0x11f   :  { %v675_v15 = vmax.f32 %v642_v10, 0.0  ;;  %v8663_v16 = vadd.f32 %v8662_v13, %v8661_v11  ;;  %v8720_v17 = vpop.f32.mrb[17].mxu1  ;;  %v8664_v18 = vpop.f32.mrb[18].mxu0  ;;  %v9668_v10 = vld [vmem:[%s13681_s30 + $0x3c] sm:$0xff]   ;;  %v9669_v11 = vld [vmem:[%s13681_s30 + $0x10] sm:$0xff]  }
 0x120   :  { %v8721_v19 = vadd.f32 %v8720_v17, %v8719_v12  ;;  %v8722_v20 = vpop.f32.mrb[18].mxu1  ;;  %v8665_v21 = vpop.f32.mrb[19].mxu0  ;;  %v9670_v12 = vld [vmem:[%s13681_s30 + $0x44] sm:$0xff]   ;;  %v9671_v13 = vld [vmem:[%s13681_s30 + $0x18] sm:$0xff]  }
 0x121   :  { %v10837_v22 = vpack.c.bf16 %v675_v15, %v674_v14  ;;  %v559_v23 = vadd.f32 %v8663_v16, %v10809_v1  ;;  %v8666_v24 = vadd.f32 %v8665_v21, %v8664_v18  ;;  %v8723_v25 = vpop.f32.mrb[19].mxu1  ;;  %v9672_v14 = vld [vmem:[%s13681_s30 + $0x4c] sm:$0xff]   ;;  %v9673_v15 = vld [vmem:[%s13681_s30 + $0x20] sm:$0xff]   ;;  %v9674_v16 = vld [vmem:[%s13681_s30 + $0x54] sm:$0xff]  }
 0x122   :  { %v8724_v26 = vadd.f32 %v8723_v25, %v8722_v20  ;;  %v9675_v17 = vld [vmem:[%s13681_s30 + $0x28] sm:$0xff]   ;;  %v9676_v18 = vld [vmem:[%s13681_s30 + $0x5c] sm:$0xff]   ;;  %v9678_v20 = vld [vmem:[%s13681_s30 + $0x64] ss:$0 sps:$4 sm:$0x33]  }
 0x123   :  { %v647_v28 = vadd.f32 %v8721_v19, %v559_v23  ;;  %v562_v29 = vadd.f32 %v8666_v24, %v10809_v1  ;;  %9129 = vmatpush3.bf16.msra.mxu0 %v10837_v22  ;;  %9171 = vmatpush3.bf16.msra.mxu1 %v10837_v22  ;;  %v9677_v19 = vld [vmem:[%s13681_s30 + $0x30] ss:$0 sps:$4 sm:$0x33]   ;;  %v9679_v21 = vld [vmem:[%s13681_s30 + $0x68] sm:$0xff]   ;;  %v9680_v23 = vld [vmem:[%s13681_s30 + $0x9c] sm:$0xff]  }
 0x124   :  { %9130 = vmatprep.subr.bf16.mxu0 %v10511_v62  ;;  %9172 = vmatprep.subr.bf16.mxu1 %v10511_v62  ;;  %v9681_v24 = vld [vmem:[%s13681_s30 + $0x70] sm:$0xff]   ;;  %v9682_v25 = vld [vmem:[%s13681_s30 + $0xa4] sm:$0xff]  }
 0x125   :  { %v650_v30 = vadd.f32 %v8724_v26, %v562_v29  ;;  %v8667_v31 = vpop.f32.mrb[20].mxu0  ;;  %v676_v34 = vmax.f32 %v647_v28, 0.0  ;;  %v9683_v26 = vld [vmem:[%s13681_s30 + $0x78] sm:$0xff]   ;;  %v9684_v28 = vld [vmem:[%s13681_s30 + $0xac] sm:$0xff]   ;;  %v9685_v29 = vld [vmem:[%s13681_s30 + $0x80] sm:$0xff]  }
 0x126   :  { %v8725_v32 = vpop.f32.mrb[20].mxu1  ;;  %v8668_v33 = vpop.f32.mrb[21].mxu0 }
 0x127   :  { %v677_v35 = vmax.f32 %v650_v30, 0.0  ;;  %v8669_v36 = vadd.f32 %v8668_v33, %v8667_v31  ;;  %v8726_v37 = vpop.f32.mrb[21].mxu1  ;;  %v8670_v38 = vpop.f32.mrb[22].mxu0  ;;  %v9686_v30 = vld [vmem:[%s13681_s30 + $0xb4] sm:$0xff]   ;;  %v9687_v31 = vld [vmem:[%s13681_s30 + $0x88] sm:$0xff]  }
 0x128   :  { %v8727_v39 = vadd.f32 %v8726_v37, %v8725_v32  ;;  %v8728_v40 = vpop.f32.mrb[22].mxu1  ;;  %v8671_v41 = vpop.f32.mrb[23].mxu0  ;;  %v9688_v32 = vld [vmem:[%s13681_s30 + $0xbc] sm:$0xff]   ;;  %v9689_v33 = vld [vmem:[%s13681_s30 + $0x90] sm:$0xff]  }
 0x129   :  { %v10845_v42 = vpack.c.bf16 %v677_v35, %v676_v34  ;;  %v567_v43 = vadd.f32 %v8669_v36, %v10809_v1  ;;  %v8672_v44 = vadd.f32 %v8671_v41, %v8670_v38  ;;  %v8729_v45 = vpop.f32.mrb[23].mxu1  ;;  %v9690_v34 = vld [vmem:[%s13681_s30 + $0xc4] sm:$0xff]   ;;  %v9691_v35 = vld [vmem:[%s13681_s30 + $0x98] ss:$0 sps:$4 sm:$0x33]   ;;  %v9693_v37 = vld [vmem:[%s13681_s30 + $0xd0] sm:$0xff]  }
 0x12a   :  { %v8730_v47 = vadd.f32 %v8729_v45, %v8728_v40  ;;  %v9692_v36 = vld [vmem:[%s13681_s30 + $0xcc] ss:$0 sps:$4 sm:$0x33]   ;;  %v9694_v38 = vld [vmem:[%s13681_s30 + $0x104] sm:$0xff]   ;;  %v9700_v45 = vld [vmem:[%s13681_s30 + $0x11c] sm:$0xff]  }
 0x12b   :  { %v655_v48 = vadd.f32 %v8727_v39, %v567_v43  ;;  %v570_v49 = vadd.f32 %v8672_v44, %v10809_v1  ;;  %9131 = vmatpush3.bf16.msra.mxu0 %v10845_v42  ;;  %9173 = vmatpush3.bf16.msra.mxu1 %v10845_v42  ;;  %v9695_v39 = vld [vmem:[%s13681_s30 + $0xd8] sm:$0xff]   ;;  %v9696_v40 = vld [vmem:[%s13681_s30 + $0x10c] sm:$0xff]   ;;  %v9697_v41 = vld [vmem:[%s13681_s30 + $0xe0] sm:$0xff]  }
 0x12c   :  { %9132 = vmatprep.subr.bf16.mxu0 %v10511_v62  ;;  %9174 = vmatprep.subr.bf16.mxu1 %v10511_v62  ;;  %v9698_v43 = vld [vmem:[%s13681_s30 + $0x114] sm:$0xff]   ;;  %v9699_v44 = vld [vmem:[%s13681_s30 + $0xe8] sm:$0xff]  }
 0x12d   :  { %v658_v50 = vadd.f32 %v8730_v47, %v570_v49  ;;  %v8673_v51 = vpop.f32.mrb[24].mxu0  ;;  %v678_v54 = vmax.f32 %v655_v48, 0.0  ;;  %v9701_v47 = vld [vmem:[%s13681_s30 + $0xf0] sm:$0xff]   ;;  %v9702_v48 = vld [vmem:[%s13681_s30 + $0x124] sm:$0xff]   ;;  %v9703_v49 = vld [vmem:[%s13681_s30 + $0xf8] sm:$0xff]  }
 0x12e   :  { %v8731_v52 = vpop.f32.mrb[24].mxu1  ;;  %v8674_v53 = vpop.f32.mrb[25].mxu0 }
 0x12f   :  { %v679_v55 = vmax.f32 %v658_v50, 0.0  ;;  %v8675_v56 = vadd.f32 %v8674_v53, %v8673_v51  ;;  %v8732_v57 = vpop.f32.mrb[25].mxu1  ;;  %v8676_v58 = vpop.f32.mrb[26].mxu0  ;;  %v9704_v50 = vld [vmem:[%s13681_s30 + $0x12c] sm:$0xff]   ;;  %v9707_v53 = vld [vmem:[%s13681_s30 + $0x138] sm:$0xff]  }
 0x130   :  { %v8733_v59 = vadd.f32 %v8732_v57, %v8731_v52  ;;  %v8734_v60 = vpop.f32.mrb[26].mxu1  ;;  %v8677_v61 = vpop.f32.mrb[27].mxu0  ;;  %v9705_v51 = vld [vmem:[%s13681_s30 + $0x100] ss:$0 sps:$4 sm:$0x33]   ;;  %v9717_v57 = vld [vmem:[%s13681_s30 + $0x158] sm:$0xff]  }
 0x131   :  { %v10853_v63 = vpack.c.bf16 %v679_v55, %v678_v54  ;;  %v575_v0 = vadd.f32 %v8675_v56, %v10809_v1  ;;  %v8735_v2 = vpop.f32.mrb[27].mxu1  ;;  %v9665_v1 = vld [vmem:[%s13681_s30] sm:$0xff]   ;;  %v9706_v52 = vld [vmem:[%s13681_s30 + $0x134] ss:$0 sps:$4 sm:$0x33]   ;;  %v9708_v54 = vld [vmem:[%s13681_s30 + $0x16c] sm:$0xff]  }
 0x132   :  { %v9709_v55 = vld [vmem:[%s13681_s30 + $0x174] sm:$0xff]   ;;  %v9714_v56 = vld [vmem:[%s13681_s30 + $0x140] sm:$0xff]   ;;  %v9719_v2 = vld [vmem:[%s13681_s30 + $0x168] ss:$0 sps:$4 sm:$0x33]  }
 0x133   :  { %v663_v4 = vadd.f32 %v8733_v59, %v575_v0  ;;  %9133 = vmatpush3.bf16.msra.mxu0 %v10853_v63  ;;  %9175 = vmatpush3.bf16.msra.mxu1 %v10853_v63  ;;  %v9713_v58 = vld [vmem:[%s13681_s30 + $0x194] sm:$0xff]   ;;  %v9718_v59 = vld [vmem:[%s13681_s30 + $0x160] sm:$0xff]  }
 0x134   :  { %9134 = vmatprep.subr.bf16.mxu0 %v10511_v62  ;;  %9176 = vmatprep.subr.bf16.mxu1 %v10511_v62 }
 0x135   :  { %v680_v5 = vmax.f32 %v663_v4, 0.0 }
 0x137   :  { %v687_v6 = vpack.c.bf16 %v680_v5, %v680_v5 }
 0x139   :  { %v10861_v7 = vsel %vm756_vm1, %v687_v6, 0 }
 0x13a   :  { %9135 = vmatpush3.bf16.msra.mxu0 %v10861_v7  ;;  %9177 = vmatpush3.bf16.msra.mxu1 %v10861_v7 }
 0x13b   :  { %9206 = vmatprep.subr.bf16.mxu0 %v10511_v62  ;;  %9248 = vmatprep.subr.bf16.mxu1 %v10511_v62 }
 0x13d   :  { %9137 = vmatmul.mubr.msk.bf16.vlgmr.msra.gmra.mrb[28].mxu0 %vm734_vm2, %v9665_v1  ;;  %9179 = vmatmul.mubr.msk.bf16.vlgmr.msra.gmra.mrb[28].mxu1 %vm734_vm2, %v9666_v8 }
 0x13e   :  { %9207 = vmatpush3.bf16.msra.mxu0 %v10813_v27  ;;  %9249 = vmatpush3.bf16.msra.mxu1 %v10813_v27 }
 0x13f   :  { %9208 = vmatprep.subr.bf16.mxu0 %v10511_v62  ;;  %9250 = vmatprep.subr.bf16.mxu1 %v10511_v62 }
 0x140   :  { %9140 = vmatprep.mubr.msk.bf16.mxu0 %vm10512_vm0, %v10511_v62  ;;  %9182 = vmatprep.mubr.msk.bf16.mxu1 %vm10512_vm0, %v10511_v62 }
 0x142   :  { %9209 = vmatpush3.bf16.msra.mxu0 %v10821_v46  ;;  %9251 = vmatpush3.bf16.msra.mxu1 %v10821_v46 }
 0x143   :  { %9210 = vmatprep.subr.bf16.mxu0 %v10511_v62  ;;  %9252 = vmatprep.subr.bf16.mxu1 %v10511_v62 }
 0x145   :  { %9141 = vmatmul.mubr.msk.bf16.gmra.mrb[32].mxu0 %vm734_vm2, %v9667_v9  ;;  %9183 = vmatmul.mubr.msk.bf16.gmra.mrb[32].mxu1 %vm734_vm2, %v9668_v10 }
 0x146   :  { %9211 = vmatpush3.bf16.msra.mxu0 %v10829_v3  ;;  %9253 = vmatpush3.bf16.msra.mxu1 %v10829_v3 }
 0x147   :  { %9212 = vmatprep.subr.bf16.mxu0 %v10511_v62  ;;  %9254 = vmatprep.subr.bf16.mxu1 %v10511_v62 }
 0x148   :  { %9144 = vmatprep.mubr.msk.bf16.mxu0 %vm10512_vm0, %v10511_v62  ;;  %9186 = vmatprep.mubr.msk.bf16.mxu1 %vm10512_vm0, %v10511_v62 }
 0x14a   :  { %9213 = vmatpush3.bf16.msra.mxu0 %v10837_v22  ;;  %9255 = vmatpush3.bf16.msra.mxu1 %v10837_v22 }
 0x14b   :  { %9214 = vmatprep.subr.bf16.mxu0 %v10511_v62  ;;  %9256 = vmatprep.subr.bf16.mxu1 %v10511_v62 }
 0x14d   :  { %9145 = vmatmul.mubr.msk.bf16.gmra.mrb[36].mxu0 %vm734_vm2, %v9669_v11  ;;  %9187 = vmatmul.mubr.msk.bf16.gmra.mrb[36].mxu1 %vm734_vm2, %v9670_v12 }
 0x14e   :  { %9215 = vmatpush3.bf16.msra.mxu0 %v10845_v42  ;;  %9257 = vmatpush3.bf16.msra.mxu1 %v10845_v42 }
 0x14f   :  { %9216 = vmatprep.subr.bf16.mxu0 %v10511_v62  ;;  %9258 = vmatprep.subr.bf16.mxu1 %v10511_v62 }
 0x150   :  { %9148 = vmatprep.mubr.msk.bf16.mxu0 %vm10512_vm0, %v10511_v62  ;;  %9190 = vmatprep.mubr.msk.bf16.mxu1 %vm10512_vm0, %v10511_v62 }
 0x152   :  { %9217 = vmatpush3.bf16.msra.mxu0 %v10853_v63  ;;  %9259 = vmatpush3.bf16.msra.mxu1 %v10853_v63 }
 0x153   :  { %9218 = vmatprep.subr.bf16.mxu0 %v10511_v62  ;;  %9260 = vmatprep.subr.bf16.mxu1 %v10511_v62 }
 0x155   :  { %9149 = vmatmul.mubr.msk.bf16.gmra.mrb[40].mxu0 %vm734_vm2, %v9671_v13  ;;  %9191 = vmatmul.mubr.msk.bf16.gmra.mrb[40].mxu1 %vm734_vm2, %v9672_v14  ;;  %v9720_v13 = vld [vmem:[%s13681_s30 + $0x1a0] sm:$0xff]  }
 0x156   :  { %9219 = vmatpush3.bf16.msra.mxu0 %v10861_v7  ;;  %9261 = vmatpush3.bf16.msra.mxu1 %v10861_v7 }
 0x157   :  { %9152 = vmatprep.mubr.msk.bf16.mxu0 %vm10512_vm0, %v10511_v62  ;;  %9194 = vmatprep.mubr.msk.bf16.mxu1 %vm10512_vm0, %v10511_v62 }
 0x158   :  { %9290 = vmatprep.subr.bf16.mxu0 %v10511_v62  ;;  %9332 = vmatprep.subr.bf16.mxu1 %v10511_v62 }
 0x15d   :  { %9153 = vmatmul.mubr.msk.bf16.gmra.mrb[44].mxu0 %vm734_vm2, %v9673_v15  ;;  %9195 = vmatmul.mubr.msk.bf16.gmra.mrb[44].mxu1 %vm734_vm2, %v9674_v16 }
 0x15e   :  { %9156 = vmatprep.mubr.msk.bf16.mxu0 %vm10512_vm0, %v10511_v62  ;;  %9198 = vmatprep.mubr.msk.bf16.mxu1 %vm10512_vm0, %v10511_v62 }
 0x165   :  { %9157 = vmatmul.mubr.msk.bf16.gmra.mrb[48].mxu0 %vm734_vm2, %v9675_v17  ;;  %9199 = vmatmul.mubr.msk.bf16.gmra.mrb[48].mxu1 %vm734_vm2, %v9676_v18 }
 0x166   :  { %9160 = vmatprep.mubr.msk.bf16.mxu0 %vm10512_vm0, %v10511_v62  ;;  %9202 = vmatprep.mubr.msk.bf16.mxu1 %vm10512_vm0, %v10511_v62 }
 0x16d   :  { %9161 = vmatmul.mubr.msk.bf16.gmra.mrb[52].mxu0 %vm734_vm2, %v9677_v19  ;;  %9203 = vmatmul.mubr.msk.bf16.gmra.mrb[52].mxu1 %vm734_vm2, %v9678_v20 }
 0x16e   :  { %9220 = vmatprep.mubr.msk.bf16.mxu0 %vm10512_vm0, %v10511_v62  ;;  %9262 = vmatprep.mubr.msk.bf16.mxu1 %vm10512_vm0, %v10511_v62 }
 0x175   :  { %9221 = vmatmul.mubr.msk.bf16.vlgmr.msra.gmra.mrb[56].mxu0 %vm734_vm2, %v9679_v21  ;;  %9263 = vmatmul.mubr.msk.bf16.vlgmr.msra.gmra.mrb[56].mxu1 %vm734_vm2, %v9680_v23 }
 0x176   :  { %9291 = vmatpush3.bf16.msra.mxu0 %v10813_v27  ;;  %9333 = vmatpush3.bf16.msra.mxu1 %v10813_v27 }
 0x177   :  { %9292 = vmatprep.subr.bf16.mxu0 %v10511_v62  ;;  %9334 = vmatprep.subr.bf16.mxu1 %v10511_v62 }
 0x178   :  { %9224 = vmatprep.mubr.msk.bf16.mxu0 %vm10512_vm0, %v10511_v62  ;;  %9266 = vmatprep.mubr.msk.bf16.mxu1 %vm10512_vm0, %v10511_v62 }
 0x17a   :  { %9293 = vmatpush3.bf16.msra.mxu0 %v10821_v46  ;;  %9335 = vmatpush3.bf16.msra.mxu1 %v10821_v46 }
 0x17b   :  { %9294 = vmatprep.subr.bf16.mxu0 %v10511_v62  ;;  %9336 = vmatprep.subr.bf16.mxu1 %v10511_v62 }
 0x17d   :  { %9225 = vmatmul.mubr.msk.bf16.gmra.mrb[60].mxu0 %vm734_vm2, %v9681_v24  ;;  %9267 = vmatmul.mubr.msk.bf16.gmra.mrb[60].mxu1 %vm734_vm2, %v9682_v25  ;;  %v9721_v25 = vld [vmem:[%s13681_s30 + $0x1a8] sm:$0xff]  }
 0x17e   :  { %9295 = vmatpush3.bf16.msra.mxu0 %v10829_v3  ;;  %9337 = vmatpush3.bf16.msra.mxu1 %v10829_v3 }
 0x17f   :  { %9296 = vmatprep.subr.bf16.mxu0 %v10511_v62  ;;  %9338 = vmatprep.subr.bf16.mxu1 %v10511_v62 }
 0x180   :  { %9228 = vmatprep.mubr.msk.bf16.mxu0 %vm10512_vm0, %v10511_v62  ;;  %9270 = vmatprep.mubr.msk.bf16.mxu1 %vm10512_vm0, %v10511_v62 }
 0x182   :  { %9297 = vmatpush3.bf16.msra.mxu0 %v10837_v22  ;;  %9339 = vmatpush3.bf16.msra.mxu1 %v10837_v22 }
 0x183   :  { %9298 = vmatprep.subr.bf16.mxu0 %v10511_v62  ;;  %9340 = vmatprep.subr.bf16.mxu1 %v10511_v62 }
 0x185   :  { %9229 = vmatmul.mubr.msk.bf16.gmra.mrb[64].mxu0 %vm734_vm2, %v9683_v26  ;;  %9271 = vmatmul.mubr.msk.bf16.gmra.mrb[64].mxu1 %vm734_vm2, %v9684_v28 }
 0x186   :  { %9299 = vmatpush3.bf16.msra.mxu0 %v10845_v42  ;;  %9341 = vmatpush3.bf16.msra.mxu1 %v10845_v42 }
 0x187   :  { %9300 = vmatprep.subr.bf16.mxu0 %v10511_v62  ;;  %9342 = vmatprep.subr.bf16.mxu1 %v10511_v62 }
 0x188   :  { %9232 = vmatprep.mubr.msk.bf16.mxu0 %vm10512_vm0, %v10511_v62  ;;  %9274 = vmatprep.mubr.msk.bf16.mxu1 %vm10512_vm0, %v10511_v62 }
 0x18a   :  { %9301 = vmatpush3.bf16.msra.mxu0 %v10853_v63  ;;  %9343 = vmatpush3.bf16.msra.mxu1 %v10853_v63 }
 0x18b   :  { %9302 = vmatprep.subr.bf16.mxu0 %v10511_v62  ;;  %9344 = vmatprep.subr.bf16.mxu1 %v10511_v62 }
 0x18d   :  { %9233 = vmatmul.mubr.msk.bf16.gmra.mrb[68].mxu0 %vm734_vm2, %v9685_v29  ;;  %9275 = vmatmul.mubr.msk.bf16.gmra.mrb[68].mxu1 %vm734_vm2, %v9686_v30 }
 0x18e   :  { %9303 = vmatpush3.bf16.msra.mxu0 %v10861_v7  ;;  %9345 = vmatpush3.bf16.msra.mxu1 %v10861_v7 }
 0x18f   :  { %9236 = vmatprep.mubr.msk.bf16.mxu0 %vm10512_vm0, %v10511_v62  ;;  %9278 = vmatprep.mubr.msk.bf16.mxu1 %vm10512_vm0, %v10511_v62 }
 0x190   :  { %9374 = vmatprep.subr.bf16.mxu0 %v10511_v62  ;;  %9416 = vmatprep.subr.bf16.mxu1 %v10511_v62 }
 0x195   :  { %9237 = vmatmul.mubr.msk.bf16.gmra.mrb[72].mxu0 %vm734_vm2, %v9687_v31  ;;  %9279 = vmatmul.mubr.msk.bf16.gmra.mrb[72].mxu1 %vm734_vm2, %v9688_v32 }
 0x196   :  { %9240 = vmatprep.mubr.msk.bf16.mxu0 %vm10512_vm0, %v10511_v62  ;;  %9282 = vmatprep.mubr.msk.bf16.mxu1 %vm10512_vm0, %v10511_v62 }
 0x19d   :  { %9241 = vmatmul.mubr.msk.bf16.gmra.mrb[76].mxu0 %vm734_vm2, %v9689_v33  ;;  %9283 = vmatmul.mubr.msk.bf16.gmra.mrb[76].mxu1 %vm734_vm2, %v9690_v34  ;;  %v9726_v33 = vld [vmem:[%s13682_s0 + $0x40] sm:$0xff]  }
 0x19e   :  { %9244 = vmatprep.mubr.msk.bf16.mxu0 %vm10512_vm0, %v10511_v62  ;;  %9286 = vmatprep.mubr.msk.bf16.mxu1 %vm10512_vm0, %v10511_v62  ;;  %v9727_v34 = vld [vmem:[%s13682_s0] sm:$0xff]  }
 0x1a5   :  { %9245 = vmatmul.mubr.msk.bf16.gmra.mrb[80].mxu0 %vm734_vm2, %v9691_v35  ;;  %9287 = vmatmul.mubr.msk.bf16.gmra.mrb[80].mxu1 %vm734_vm2, %v9692_v36 }
 0x1a6   :  { %9304 = vmatprep.mubr.msk.bf16.mxu0 %vm10512_vm0, %v10511_v62  ;;  %9346 = vmatprep.mubr.msk.bf16.mxu1 %vm10512_vm0, %v10511_v62 }
 0x1ad   :  { %9305 = vmatmul.mubr.msk.bf16.vlgmr.msra.gmra.mrb[84].mxu0 %vm734_vm2, %v9693_v37  ;;  %9347 = vmatmul.mubr.msk.bf16.vlgmr.msra.gmra.mrb[84].mxu1 %vm734_vm2, %v9694_v38  ;;  %v9728_v37 = vld [vmem:[%s13682_s0 + $0x48] sm:$0xff]  }
 0x1ae   :  { %9375 = vmatpush3.bf16.msra.mxu0 %v10813_v27  ;;  %9417 = vmatpush3.bf16.msra.mxu1 %v10813_v27 }
 0x1af   :  { %9376 = vmatprep.subr.bf16.mxu0 %v10511_v62  ;;  %9418 = vmatprep.subr.bf16.mxu1 %v10511_v62 }
 0x1b0   :  { %9308 = vmatprep.mubr.msk.bf16.mxu0 %vm10512_vm0, %v10511_v62  ;;  %9350 = vmatprep.mubr.msk.bf16.mxu1 %vm10512_vm0, %v10511_v62 }
 0x1b2   :  { %9377 = vmatpush3.bf16.msra.mxu0 %v10821_v46  ;;  %9419 = vmatpush3.bf16.msra.mxu1 %v10821_v46 }
 0x1b3   :  { %9378 = vmatprep.subr.bf16.mxu0 %v10511_v62  ;;  %9420 = vmatprep.subr.bf16.mxu1 %v10511_v62 }
 0x1b5   :  { %9309 = vmatmul.mubr.msk.bf16.gmra.mrb[88].mxu0 %vm734_vm2, %v9695_v39  ;;  %9351 = vmatmul.mubr.msk.bf16.gmra.mrb[88].mxu1 %vm734_vm2, %v9696_v40  ;;  %v9722_v40 = vld [vmem:[%s13681_s30 + $0x1b0] sm:$0xff]  }
 0x1b6   :  { %9379 = vmatpush3.bf16.msra.mxu0 %v10829_v3  ;;  %9421 = vmatpush3.bf16.msra.mxu1 %v10829_v3 }
 0x1b7   :  { %9380 = vmatprep.subr.bf16.mxu0 %v10511_v62  ;;  %9422 = vmatprep.subr.bf16.mxu1 %v10511_v62 }
 0x1b8   :  { %9312 = vmatprep.mubr.msk.bf16.mxu0 %vm10512_vm0, %v10511_v62  ;;  %9354 = vmatprep.mubr.msk.bf16.mxu1 %vm10512_vm0, %v10511_v62 }
 0x1ba   :  { %9381 = vmatpush3.bf16.msra.mxu0 %v10837_v22  ;;  %9423 = vmatpush3.bf16.msra.mxu1 %v10837_v22 }
 0x1bb   :  { %9382 = vmatprep.subr.bf16.mxu0 %v10511_v62  ;;  %9424 = vmatprep.subr.bf16.mxu1 %v10511_v62 }
 0x1bd   :  { %9313 = vmatmul.mubr.msk.bf16.gmra.mrb[92].mxu0 %vm734_vm2, %v9697_v41  ;;  %9355 = vmatmul.mubr.msk.bf16.gmra.mrb[92].mxu1 %vm734_vm2, %v9698_v43  ;;  %v9729_v41 = vld [vmem:[%s13682_s0 + $0x8] sm:$0xff]  }
 0x1be   :  { %9383 = vmatpush3.bf16.msra.mxu0 %v10845_v42  ;;  %9425 = vmatpush3.bf16.msra.mxu1 %v10845_v42 }
 0x1bf   :  { %9384 = vmatprep.subr.bf16.mxu0 %v10511_v62  ;;  %9426 = vmatprep.subr.bf16.mxu1 %v10511_v62 }
 0x1c0   :  { %9316 = vmatprep.mubr.msk.bf16.mxu0 %vm10512_vm0, %v10511_v62  ;;  %9358 = vmatprep.mubr.msk.bf16.mxu1 %vm10512_vm0, %v10511_v62 }
 0x1c2   :  { %9385 = vmatpush3.bf16.msra.mxu0 %v10853_v63  ;;  %9427 = vmatpush3.bf16.msra.mxu1 %v10853_v63 }
 0x1c3   :  { %9386 = vmatprep.subr.bf16.mxu0 %v10511_v62  ;;  %9428 = vmatprep.subr.bf16.mxu1 %v10511_v62 }
 0x1c5   :  { %9317 = vmatmul.mubr.msk.bf16.gmra.mrb[96].mxu0 %vm734_vm2, %v9699_v44  ;;  %9359 = vmatmul.mubr.msk.bf16.gmra.mrb[96].mxu1 %vm734_vm2, %v9700_v45 }
 0x1c6   :  { %9387 = vmatpush3.bf16.msra.mxu0 %v10861_v7  ;;  %9429 = vmatpush3.bf16.msra.mxu1 %v10861_v7 }
 0x1c7   :  { %9320 = vmatprep.mubr.msk.bf16.mxu0 %vm10512_vm0, %v10511_v62  ;;  %9362 = vmatprep.mubr.msk.bf16.mxu1 %vm10512_vm0, %v10511_v62 }
 0x1c8   :  { %9458 = vmatprep.subr.bf16.mxu0 %v10511_v62  ;;  %8863 = vmatprep.subr.bf16.mxu1 %v9726_v33  ;;  %v9738_v33 = vld [vmem:[%s13681_s30 + $0x19c] ss:$0 sps:$4 sm:$0x33]  }
 0x1cd   :  { %9321 = vmatmul.mubr.msk.bf16.gmra.mrb[100].mxu0 %vm734_vm2, %v9701_v47  ;;  %9363 = vmatmul.mubr.msk.bf16.gmra.mrb[100].mxu1 %vm734_vm2, %v9702_v48 }
 0x1ce   :  { %9324 = vmatprep.mubr.msk.bf16.mxu0 %vm10512_vm0, %v10511_v62  ;;  %9366 = vmatprep.mubr.msk.bf16.mxu1 %vm10512_vm0, %v10511_v62 }
 0x1d5   :  { %9325 = vmatmul.mubr.msk.bf16.gmra.mrb[104].mxu0 %vm734_vm2, %v9703_v49  ;;  %9367 = vmatmul.mubr.msk.bf16.gmra.mrb[104].mxu1 %vm734_vm2, %v9704_v50  ;;  %v9730_v50 = vld [vmem:[%s13682_s0 + $0x50] sm:$0xff]  }
 0x1d6   :  { %9328 = vmatprep.mubr.msk.bf16.mxu0 %vm10512_vm0, %v10511_v62  ;;  %9370 = vmatprep.mubr.msk.bf16.mxu1 %vm10512_vm0, %v10511_v62 }
 0x1dd   :  { %9329 = vmatmul.mubr.msk.bf16.gmra.mrb[108].mxu0 %vm734_vm2, %v9705_v51  ;;  %9371 = vmatmul.mubr.msk.bf16.gmra.mrb[108].mxu1 %vm734_vm2, %v9706_v52  ;;  %v9731_v51 = vld [vmem:[%s13682_s0 + $0x10] sm:$0xff]   ;;  %v9732_v52 = vld [vmem:[%s13682_s0 + $0x58] sm:$0xff]  }
 0x1de   :  { %9388 = vmatprep.mubr.msk.bf16.mxu0 %vm10512_vm0, %v10511_v62  ;;  %9430 = vmatprep.mubr.msk.bf16.mxu1 %vm10512_vm0, %v10511_v62 }
 0x1e5   :  { %9389 = vmatmul.mubr.msk.bf16.vlgmr.msra.gmra.mrb[112].mxu0 %vm734_vm2, %v9707_v53  ;;  %9431 = vmatmul.mubr.msk.bf16.vlgmr.msra.gmra.mrb[112].mxu1 %vm734_vm2, %v9708_v54  ;;  %v9733_v53 = vld [vmem:[%s13682_s0 + $0x18] sm:$0xff]  }
 0x1e6   :  { %9459 = vmatpush3.bf16.msra.mxu0 %v10813_v27  ;;  %9434 = vmatprep.mubr.msk.bf16.mxu1 %vm10512_vm0, %v10511_v62  ;;  %v9710_v27 = vld [vmem:[%s13681_s30 + $0x17c] sm:$0xff]  }
 0x1e7   :  { %9460 = vmatprep.subr.bf16.mxu0 %v10511_v62  ;;  %9392 = vmatprep.mubr.msk.bf16.mxu0 %vm10512_vm0, %v10511_v62  ;;  %v9723_v54 = vld [vmem:[%s13681_s30 + $0x1b8] sm:$0xff]  }
 0x1e8   :  { %8864 = vmatpush3.bf16.msra.mxu1 %v9727_v34  ;;  %v9739_v34 = vld [vmem:[%s13682_s0 + $0x70] sm:$0xff]  }
 0x1e9   :  { %8865 = vmatprep.subr.bf16.mxu1 %v9728_v37  ;;  %v9740_v37 = vld [vmem:[%s13682_s0 + $0x30] sm:$0xff]  }
 0x1ea   :  { %9461 = vmatpush3.bf16.msra.mxu0 %v10821_v46  ;;  %v9715_v46 = vld [vmem:[%s13681_s30 + $0x148] sm:$0xff]  }
 0x1eb   :  { %9462 = vmatprep.subr.bf16.mxu0 %v10511_v62 }
 0x1ec   :  { %8866 = vmatpush3.bf16.msra.mxu1 %v9729_v41 }
 0x1ed   :  { %9435 = vmatmul.mubr.msk.bf16.gmra.mrb[116].mxu1 %vm734_vm2, %v9709_v55  ;;  %9393 = vmatmul.mubr.msk.bf16.gmra.mrb[116].mxu0 %vm734_vm2, %v9714_v56 }
 0x1ee   :  { %9463 = vmatpush3.bf16.msra.mxu0 %v10829_v3  ;;  %9438 = vmatprep.mubr.msk.bf16.mxu1 %vm10512_vm0, %v10511_v62  ;;  %v9711_v3 = vld [vmem:[%s13681_s30 + $0x184] sm:$0xff]  }
 0x1ef   :  { %9464 = vmatprep.subr.bf16.mxu0 %v10511_v62  ;;  %9396 = vmatprep.mubr.msk.bf16.mxu0 %vm10512_vm0, %v10511_v62 }
 0x1f0   :  { %8867 = vmatprep.subr.bf16.mxu1 %v9730_v50  ;;  %v9742_v50 = vld [vmem:[%s13682_s0 + $0x38] sm:$0xff]  }
 0x1f1   :  { %8868 = vmatpush3.bf16.msra.mxu1 %v9731_v51 }
 0x1f2   :  { %9465 = vmatpush3.bf16.msra.mxu0 %v10837_v22  ;;  %v9716_v22 = vld [vmem:[%s13681_s30 + $0x150] sm:$0xff]   ;;  %8869 = vmatprep.subr.bf16.mxu1 %v9732_v52 }
 0x1f3   :  { %9466 = vmatprep.subr.bf16.mxu0 %v10511_v62 }
 0x1f5   :  { %9439 = vmatmul.mubr.msk.bf16.gmra.mrb[120].mxu1 %vm734_vm2, %v9710_v27  ;;  %9397 = vmatmul.mubr.msk.bf16.gmra.mrb[120].mxu0 %vm734_vm2, %v9715_v46 }
 0x1f6   :  { %9467 = vmatpush3.bf16.msra.mxu0 %v10845_v42  ;;  %9442 = vmatprep.mubr.msk.bf16.mxu1 %vm10512_vm0, %v10511_v62  ;;  %v9712_v42 = vld [vmem:[%s13681_s30 + $0x18c] sm:$0xff]  }
 0x1f7   :  { %9468 = vmatprep.subr.bf16.mxu0 %v10511_v62  ;;  %9400 = vmatprep.mubr.msk.bf16.mxu0 %vm10512_vm0, %v10511_v62 }
 0x1f8   :  { %8870 = vmatpush3.bf16.msra.mxu1 %v9733_v53 }
 0x1fa   :  { %9469 = vmatpush3.bf16.msra.mxu0 %v10853_v63 }
 0x1fb   :  { %9470 = vmatprep.subr.bf16.mxu0 %v10511_v62 }
 0x1fd   :  { %9443 = vmatmul.mubr.msk.bf16.gmra.mrb[124].mxu1 %vm734_vm2, %v9711_v3  ;;  %9401 = vmatmul.mubr.msk.bf16.gmra.mrb[124].mxu0 %vm734_vm2, %v9716_v22 }
 0x1fe   :  { %9471 = vmatpush3.bf16.msra.mxu0 %v10861_v7  ;;  %9446 = vmatprep.mubr.msk.bf16.mxu1 %vm10512_vm0, %v10511_v62 }
 0x1ff   :  { %9404 = vmatprep.mubr.msk.bf16.mxu0 %vm10512_vm0, %v10511_v62 }
 0x205   :  { %9447 = vmatmul.mubr.msk.bf16.gmra.mrb[128].mxu1 %vm734_vm2, %v9712_v42  ;;  %9405 = vmatmul.mubr.msk.bf16.gmra.mrb[128].mxu0 %vm734_vm2, %v9717_v57  ;;  %v9734_v42 = vld [vmem:[%s13682_s0 + $0x60] sm:$0xff]  }
 0x206   :  { %9450 = vmatprep.mubr.msk.bf16.mxu1 %vm10512_vm0, %v10511_v62  ;;  %9408 = vmatprep.mubr.msk.bf16.mxu0 %vm10512_vm0, %v10511_v62 }
 0x207   :  { %8871 = vmatprep.subr.bf16.mxu1 %v9734_v42 }
 0x20d   :  { %9451 = vmatmul.mubr.msk.bf16.gmra.mrb[132].mxu1 %vm734_vm2, %v9713_v58  ;;  %9409 = vmatmul.mubr.msk.bf16.gmra.mrb[132].mxu0 %vm734_vm2, %v9718_v59 }
 0x20e   :  { %9412 = vmatprep.mubr.msk.bf16.mxu0 %vm10512_vm0, %v10511_v62  ;;  %9454 = vmatprep.mubr.msk.bf16.mxu1 %vm10512_vm0, %v10511_v62 }
 0x210   :  { %v11287_v60 = vpop.f32.mrb[28].mxu1  ;;  %v11289_v61 = vpop.f32.mrb[28].mxu0 }
 0x211   :  { %v9180_v63 = vpop.f32.mrb[29].mxu1  ;;  %v9138_v0 = vpop.f32.mrb[29].mxu0 }
 0x212   :  { %v11294_v4 = vpop.f32.mrb[30].mxu1  ;;  %v11296_v5 = vpop.f32.mrb[30].mxu0  ;;  %v9735_v0 = vld [vmem:[%s13682_s0 + $0x20] sm:$0xff]  }
 0x213   :  { %v1011_v6 = vpack.c.bf16 %v11294_v4, %v11287_v60  ;;  %v9181_v7 = vpop.f32.mrb[31].mxu1  ;;  %v848_v1 = vpack.c.bf16 %v11296_v5, %v11289_v61  ;;  %v9139_v8 = vpop.f32.mrb[31].mxu0  ;;  %8872 = vmatpush3.bf16.msra.mxu1 %v9735_v0 }
 0x214   :  { %v9736_v8 = vld [vmem:[%s13682_s0 + $0x68] sm:$0xff]  }
 0x215   :  { %9413 = vmatmul.mubr.msk.bf16.gmra.mrb[136].mxu0 %vm734_vm2, %v9719_v2  ;;  %8873 = vmatprep.subr.bf16.mxu1 %v9736_v8 }
 0x216   :  { %9472 = vmatprep.mubr.msk.bf16.mxu0 %vm10512_vm0, %v10511_v62  ;;  %9455 = vmatmul.mubr.msk.bf16.gmra.mrb[136].mxu1 %vm734_vm2, %v9738_v33 }
 0x218   :  { %v11305_v9 = vpop.f32.mrb[32].mxu1  ;;  %v11307_v10 = vpop.f32.mrb[32].mxu0 }
 0x219   :  { %v9184_v11 = vpop.f32.mrb[33].mxu1  ;;  %v9142_v12 = vpop.f32.mrb[33].mxu0 }
 0x21a   :  { %v11312_v14 = vpop.f32.mrb[34].mxu1  ;;  %v11314_v15 = vpop.f32.mrb[34].mxu0 }
 0x21b   :  { %v1012_v16 = vpack.c.bf16 %v11312_v14, %v11305_v9  ;;  %v9185_v17 = vpop.f32.mrb[35].mxu1  ;;  %v849_v18 = vpack.c.bf16 %v11314_v15, %v11307_v10  ;;  %v9143_v19 = vpop.f32.mrb[35].mxu0 }
 0x21c   :  { %v9737_v17 = vld [vmem:[%s13682_s0 + $0x28] sm:$0xff]  }
 0x21d   :  { %9473 = vmatmul.mubr.msk.bf16.vlgmr.msra.gmra.mrb[140].mxu0 %vm734_vm2, %v9720_v13  ;;  %v9724_v13 = vld [vmem:[%s13681_s30 + $0x1c0] sm:$0xff]   ;;  %8874 = vmatpush3.bf16.msra.mxu1 %v9737_v17 }
 0x21e   :  { %9476 = vmatprep.mubr.msk.bf16.mxu0 %vm10512_vm0, %v10511_v62  ;;  %8875 = vmatprep.subr.bf16.mxu1 %v9739_v34 }
 0x220   :  { %v11323_v20 = vpop.f32.mrb[36].mxu1  ;;  %v11325_v21 = vpop.f32.mrb[36].mxu0 }
 0x221   :  { %v9188_v23 = vpop.f32.mrb[37].mxu1  ;;  %v9146_v24 = vpop.f32.mrb[37].mxu0  ;;  %8876 = vmatpush3.bf16.msra.mxu1 %v9740_v37 }
 0x222   :  { %v11330_v26 = vpop.f32.mrb[38].mxu1  ;;  %v11332_v28 = vpop.f32.mrb[38].mxu0 }
 0x223   :  { %v1013_v29 = vpack.c.bf16 %v11330_v26, %v11323_v20  ;;  %v9189_v30 = vpop.f32.mrb[39].mxu1  ;;  %v850_v31 = vpack.c.bf16 %v11332_v28, %v11325_v21  ;;  %v9147_v32 = vpop.f32.mrb[39].mxu0 }
 0x225   :  { %9477 = vmatmul.mubr.msk.bf16.gmra.mrb[144].mxu0 %vm734_vm2, %v9721_v25 }
 0x226   :  { %9480 = vmatprep.mubr.msk.bf16.mxu0 %vm10512_vm0, %v10511_v62 }
 0x228   :  { %v11347_v35 = vpop.f32.mrb[40].mxu1  ;;  %v11349_v36 = vpop.f32.mrb[40].mxu0 }
 0x229   :  { %v9192_v38 = vpop.f32.mrb[41].mxu1  ;;  %v9150_v39 = vpop.f32.mrb[41].mxu0 }
 0x22a   :  { %v11360_v43 = vpop.f32.mrb[42].mxu1  ;;  %v11362_v44 = vpop.f32.mrb[42].mxu0 }
 0x22b   :  { %v1014_v45 = vpack.c.bf16 %v11360_v43, %v11347_v35  ;;  %v9193_v47 = vpop.f32.mrb[43].mxu1  ;;  %v9151_v49 = vpop.f32.mrb[43].mxu0 }
 0x22c   :  { %v9725_v49 = vld [vmem:[%s13681_s30 + $0x1c8] sm:$0xff]  }
 0x22d   :  { %9481 = vmatmul.mubr.msk.bf16.gmra.mrb[148].mxu0 %vm734_vm2, %v9722_v40  ;;  %v9741_v40 = vld [vmem:[%s13682_s0 + $0x78] sm:$0xff]  }
 0x22e   :  { %9484 = vmatprep.mubr.msk.bf16.mxu0 %vm10512_vm0, %v10511_v62  ;;  %8877 = vmatprep.subr.bf16.mxu1 %v9741_v40 }
 0x22f   :  { %8878 = vmatpush3.bf16.msra.mxu1 %v9742_v50 }
 0x230   :  { %v11386_v55 = vpop.f32.mrb[44].mxu1  ;;  %v11388_v56 = vpop.f32.mrb[44].mxu0  ;;  %9500 = vmatprep.subr.bf16.mxu1 %v10511_v62 }
 0x231   :  { %v9196_v27 = vpop.f32.mrb[45].mxu1  ;;  %v9154_v46 = vpop.f32.mrb[45].mxu0 }
 0x232   :  { %v11390_v3 = vpop.f32.mrb[46].mxu1  ;;  %v11392_v22 = vpop.f32.mrb[46].mxu0 }
 0x233   :  { %v1015_v57 = vpack.c.bf16 %v11390_v3, %v11386_v55  ;;  %v9197_v58 = vpop.f32.mrb[47].mxu1  ;;  %v9155_v63 = vpop.f32.mrb[47].mxu0 }
 0x235   :  { %9485 = vmatmul.mubr.msk.bf16.gmra.mrb[152].mxu0 %vm734_vm2, %v9723_v54 }
 0x236   :  { %9488 = vmatprep.mubr.msk.bf16.mxu0 %vm10512_vm0, %v10511_v62 }
 0x238   :  { %v11407_v2 = vpop.f32.mrb[48].mxu1  ;;  %v11409_v7 = vpop.f32.mrb[48].mxu0 }
 0x239   :  { %v9200_v11 = vpop.f32.mrb[49].mxu1  ;;  %v9158_v12 = vpop.f32.mrb[49].mxu0 }
 0x23a   :  { %v11420_v19 = vpop.f32.mrb[50].mxu1  ;;  %v11422_v23 = vpop.f32.mrb[50].mxu0 }
 0x23b   :  { %v1016_v24 = vpack.c.bf16 %v11420_v19, %v11407_v2  ;;  %v9201_v25 = vpop.f32.mrb[51].mxu1  ;;  %v9159_v32 = vpop.f32.mrb[51].mxu0 }
 0x23d   :  { %9489 = vmatmul.mubr.msk.bf16.gmra.mrb[156].mxu0 %vm734_vm2, %v9724_v13 }
 0x23e   :  { %9492 = vmatprep.mubr.msk.bf16.mxu0 %vm10512_vm0, %v10511_v62 }
 0x240   :  { %v11441_v38 = vpop.f32.mrb[52].mxu1  ;;  %v11443_v39 = vpop.f32.mrb[52].mxu0 }
 0x241   :  { %v9204_v41 = vpop.f32.mrb[53].mxu1  ;;  %v9162_v47 = vpop.f32.mrb[53].mxu0 }
 0x242   :  { %v1008_v51 = vpop.f32.mrb[54].mxu1  ;;  %v845_v52 = vpop.f32.mrb[54].mxu0 }
 0x243   :  { %v9205_v53 = vpop.f32.mrb[55].mxu1  ;;  %v9163_v54 = vpop.f32.mrb[55].mxu0 }
 0x245   :  { %9493 = vmatmul.mubr.msk.bf16.gmra.mrb[160].mxu0 %vm734_vm2, %v9725_v49 }
 0x246   :  { %9496 = vmatprep.mubr.msk.bf16.mxu0 %vm10512_vm0, %v10511_v62 }
 0x248   :  { %v1283_v27 = vpop.f32.mrb[56].mxu1  ;;  %v11458_v46 = vpop.f32.mrb[56].mxu0 }
 0x249   :  { %v9264_v42 = vpop.f32.mrb[57].mxu1  ;;  %v9222_v58 = vpop.f32.mrb[57].mxu0 }
 0x24a   :  { %v1286_v63 = vpop.f32.mrb[58].mxu1  ;;  %v11460_v0 = vpop.f32.mrb[58].mxu0 }
 0x24b   :  { %v1337_v8 = vpack.c.bf16 %v1286_v63, %v1283_v27  ;;  %v9265_v11 = vpop.f32.mrb[59].mxu1  ;;  %v1174_v12 = vpack.c.bf16 %v11460_v0, %v11458_v46  ;;  %v9223_v13 = vpop.f32.mrb[59].mxu0 }
 0x24d   :  { %2187 = vrot.lane.b32.xlu0 %v1337_v8, %s10513_s1 }
 0x250   :  { %v1291_v17 = vpop.f32.mrb[60].mxu1  ;;  %v11465_v25 = vpop.f32.mrb[60].mxu0 }
 0x251   :  { %2166 = vrot.lane.b32.xlu0 %v1011_v6, %s10513_s1  ;;  %v9268_v32 = vpop.f32.mrb[61].mxu1  ;;  %v9226_v33 = vpop.f32.mrb[61].mxu0 }
 0x252   :  { %v1294_v34 = vpop.f32.mrb[62].mxu1  ;;  %v11471_v37 = vpop.f32.mrb[62].mxu0  ;;  %v1017_v33 = vpack.c.bf16 %v11441_v38, %v11441_v38 }
 0x253   :  { %v1338_v40 = vpack.c.bf16 %v1294_v34, %v1291_v17  ;;  %v9269_v41 = vpop.f32.mrb[63].mxu1  ;;  %v1175_v47 = vpack.c.bf16 %v11471_v37, %v11465_v25  ;;  %v9227_v49 = vpop.f32.mrb[63].mxu0 }
 0x255   :  { %2189 = vrot.lane.b32.xlu1 %v1338_v40, %s10513_s1 }
 0x258   :  { %v1299_v50 = vpop.f32.mrb[64].mxu1  ;;  %v11476_v51 = vpop.f32.mrb[64].mxu0 }
 0x259   :  { %2168 = vrot.lane.b32.xlu1 %v1012_v16, %s10513_s1  ;;  %v9272_v60 = vpop.f32.mrb[65].mxu1  ;;  %v9230_v4 = vpop.f32.mrb[65].mxu0 }
 0x25a   :  { %v1302_v6 = vpop.f32.mrb[66].mxu1  ;;  %v11482_v52 = vpop.f32.mrb[66].mxu0 }
 0x25b   :  { %v1339_v53 = vpack.c.bf16 %v1302_v6, %v1299_v50  ;;  %v9273_v54 = vpop.f32.mrb[67].mxu1  ;;  %v1176_v27 = vpack.c.bf16 %v11482_v52, %v11476_v51  ;;  %v9231_v42 = vpop.f32.mrb[67].mxu0 }
 0x25d   :  { %2170 = vrot.lane.b32.xlu1 %v1013_v29, %s10513_s1  ;;  %2191 = vrot.lane.b32.xlu0 %v1339_v53, %s10513_s1 }
 0x260   :  { %v1307_v9 = vpop.f32.mrb[68].mxu1  ;;  %v11491_v14 = vpop.f32.mrb[68].mxu0 }
 0x261   :  { %2172 = vrot.lane.b32.xlu1 %v1014_v45, %s10513_s1  ;;  %v9276_v16 = vpop.f32.mrb[69].mxu1  ;;  %v9234_v58 = vpop.f32.mrb[69].mxu0 }
 0x262   :  { %v1310_v63 = vpop.f32.mrb[70].mxu1  ;;  %v11497_v8 = vpop.f32.mrb[70].mxu0 }
 0x263   :  { %v1340_v11 = vpack.c.bf16 %v1310_v63, %v1307_v9  ;;  %v9277_v13 = vpop.f32.mrb[71].mxu1  ;;  %v1177_v20 = vpack.c.bf16 %v11497_v8, %v11491_v14  ;;  %v9235_v26 = vpop.f32.mrb[71].mxu0 }
 0x264   :  { %v9743_v13 = vld [vmem:[%s13682_s0 + $0xc0] sm:$0xff]  }
 0x265   :  { %2174 = vrot.lane.b32.xlu1 %v1015_v57, %s10513_s1  ;;  %2193 = vrot.lane.b32.xlu0 %v1340_v11, %s10513_s1  ;;  %v9744_v26 = vld [vmem:[%s13682_s0 + $0x80] sm:$0xff]  }
 0x266   :  { %8921 = vmatprep.subr.bf16.mxu0 %v9743_v13 }
 0x267   :  { %8922 = vmatpush3.bf16.msra.mxu0 %v9744_v26  ;;  %v9751_v26 = vld [vmem:[%s13682_s0 + $0xd8] sm:$0xff]  }
 0x268   :  { %v1315_v29 = vpop.f32.mrb[72].mxu1  ;;  %v11506_v35 = vpop.f32.mrb[72].mxu0 }
 0x269   :  { %2176 = vrot.lane.b32.xlu1 %v1016_v24, %s10513_s1  ;;  %v9280_v43 = vpop.f32.mrb[73].mxu1  ;;  %v9238_v45 = vpop.f32.mrb[73].mxu0 }
 0x26a   :  { %v1318_v17 = vpop.f32.mrb[74].mxu1  ;;  %v11512_v32 = vpop.f32.mrb[74].mxu0  ;;  %v9746_v45 = vld [vmem:[%s13682_s0 + $0xc8] sm:$0xff]  }
 0x26b   :  { %v1341_v55 = vpack.c.bf16 %v1318_v17, %v1315_v29  ;;  %v9281_v3 = vpop.f32.mrb[75].mxu1  ;;  %v9239_v34 = vpop.f32.mrb[75].mxu0  ;;  %8923 = vmatprep.subr.bf16.mxu0 %v9746_v45 }
 0x26d   :  { %2178 = vrot.lane.b32.xlu1 %v1017_v33, %s10513_s1  ;;  %2195 = vrot.lane.b32.xlu0 %v1341_v55, %s10513_s1 }
 0x270   :  { %v1323_v2 = vpop.f32.mrb[76].mxu1  ;;  %v11520_v19 = vpop.f32.mrb[76].mxu0 }
 0x271   :  { %v9284_v24 = vpop.f32.mrb[77].mxu1  ;;  %v9242_v40 = vpop.f32.mrb[77].mxu0 }
 0x272   :  { %v1326_v41 = vpop.f32.mrb[78].mxu1  ;;  %v11522_v49 = vpop.f32.mrb[78].mxu0 }
 0x273   :  { %v1342_v50 = vpack.c.bf16 %v1326_v41, %v1323_v2  ;;  %v9285_v38 = vpop.f32.mrb[79].mxu1  ;;  %v9243_v4 = vpop.f32.mrb[79].mxu0  ;;  %v9747_v41 = vld [vmem:[%s13682_s0 + $0x88] sm:$0xff]  }
 0x274   :  { %8924 = vmatpush3.bf16.msra.mxu0 %v9747_v41 }
 0x275   :  { %2197 = vrot.lane.b32.xlu0 %v1342_v50, %s10513_s1  ;;  %v9748_v50 = vld [vmem:[%s13682_s0 + $0xd0] sm:$0xff]  }
 0x276   :  { %8925 = vmatprep.subr.bf16.mxu0 %v9748_v50 }
 0x278   :  { %v1331_v6 = vpop.f32.mrb[80].mxu1  ;;  %v11527_v53 = vpop.f32.mrb[80].mxu0 }
 0x279   :  { %v1343_v54 = vpack.c.bf16 %v1331_v6, %v1331_v6  ;;  %v9288_v42 = vpop.f32.mrb[81].mxu1  ;;  %v9246_v9 = vpop.f32.mrb[81].mxu0 }
 0x27a   :  { %v1334_v16 = vpop.f32.mrb[82].mxu1  ;;  %v1171_v58 = vpop.f32.mrb[82].mxu0  ;;  %v9749_v42 = vld [vmem:[%s13682_s0 + $0x90] sm:$0xff]  }
 0x27b   :  { %2199 = vrot.lane.b32.xlu0 %v1343_v54, %s10513_s1  ;;  %v9289_v63 = vpop.f32.mrb[83].mxu1  ;;  %v9247_v11 = vpop.f32.mrb[83].mxu0  ;;  %8926 = vmatpush3.bf16.msra.mxu0 %v9749_v42 }
 0x27c   :  { %8927 = vmatprep.subr.bf16.mxu0 %v9751_v26 }
 0x280   :  { %v1609_v29 = vpop.f32.mrb[84].mxu1  ;;  %v11536_v43 = vpop.f32.mrb[84].mxu0 }
 0x281   :  { %v9348_v17 = vpop.f32.mrb[85].mxu1  ;;  %v9306_v33 = vpop.f32.mrb[85].mxu0 }
 0x282   :  { %v1612_v55 = vpop.f32.mrb[86].mxu1  ;;  %v11541_v3 = vpop.f32.mrb[86].mxu0 }
 0x283   :  { %v1663_v34 = vpack.c.bf16 %v1612_v55, %v1609_v29  ;;  %v9349_v2 = vpop.f32.mrb[87].mxu1  ;;  %v9307_v40 = vpop.f32.mrb[87].mxu0  ;;  %v9752_v29 = vld [vmem:[%s13682_s0 + $0x98] sm:$0xff]  }
 0x284   :  { %8928 = vmatpush3.bf16.msra.mxu0 %v9752_v29 }
 0x285   :  { %2208 = vrot.lane.b32.xlu1 %v1663_v34, %s10513_s1 }
 0x288   :  { %v1617_v38 = vpop.f32.mrb[88].mxu1  ;;  %v11552_v4 = vpop.f32.mrb[88].mxu0 }
 0x289   :  { %v9352_v6 = vpop.f32.mrb[89].mxu1  ;;  %v9310_v54 = vpop.f32.mrb[89].mxu0 }
 0x28a   :  { %v1620_v9 = vpop.f32.mrb[90].mxu1  ;;  %v11557_v16 = vpop.f32.mrb[90].mxu0  ;;  %v9753_v6 = vld [vmem:[%s13682_s0 + $0xe0] sm:$0xff]  }
 0x28b   :  { %v1664_v58 = vpack.c.bf16 %v1620_v9, %v1617_v38  ;;  %v9353_v63 = vpop.f32.mrb[91].mxu1  ;;  %v9311_v13 = vpop.f32.mrb[91].mxu0  ;;  %v9754_v54 = vld [vmem:[%s13682_s0 + $0xa0] sm:$0xff]   ;;  %8929 = vmatprep.subr.bf16.mxu0 %v9753_v6  ;;  %v9758_v6 = vld [vmem:[%s13682_s0 + $0xf0] sm:$0xff]  }
 0x28c   :  { %8930 = vmatpush3.bf16.msra.mxu0 %v9754_v54  ;;  %v9759_v54 = vld [vmem:[%s13681_s30 + $0x1d0] ss:$0 sps:$4 sm:$0x33]   ;;  %s13694_s30 = sld [smem:[#allocation8_spill]] }
 0x28d   :  { %2210 = vrot.lane.b32.xlu1 %v1664_v58, %s10513_s1  ;;  %9497 = vmatmul.mubr.msk.bf16.gmra.mrb[164].mxu0 %vm734_vm2, %v9759_v54 }
 0x290   :  { %v1625_v45 = vpop.f32.mrb[92].mxu1  ;;  %v11568_v17 = vpop.f32.mrb[92].mxu0 }
 0x291   :  { %v9356_v33 = vpop.f32.mrb[93].mxu1  ;;  %v9314_v55 = vpop.f32.mrb[93].mxu0 }
 0x292   :  { %v1628_v34 = vpop.f32.mrb[94].mxu1  ;;  %v11570_v2 = vpop.f32.mrb[94].mxu0 }
 0x293   :  { %v1665_v40 = vpack.c.bf16 %v1628_v34, %v1625_v45  ;;  %v9357_v41 = vpop.f32.mrb[95].mxu1  ;;  %v9315_v38 = vpop.f32.mrb[95].mxu0  ;;  %v9756_v34 = vld [vmem:[%s13682_s0 + $0xe8] sm:$0xff]  }
 0x294   :  { %8931 = vmatprep.subr.bf16.mxu0 %v9756_v34  ;;  %v9761_v34 = vld [vmem:[%s13682_s0 + $0xf8] sm:$0xff]  }
 0x295   :  { %2212 = vrot.lane.b32.xlu1 %v1665_v40, %s10513_s1  ;;  %v9757_v40 = vld [vmem:[%s13682_s0 + $0xa8] sm:$0xff]  }
 0x296   :  { %8932 = vmatpush3.bf16.msra.mxu0 %v9757_v40 }
 0x297   :  { %8933 = vmatprep.subr.bf16.mxu0 %v9758_v6 }
 0x298   :  { %v1633_v42 = vpop.f32.mrb[96].mxu1  ;;  %v11581_v9 = vpop.f32.mrb[96].mxu0 }
 0x299   :  { %v9360_v58 = vpop.f32.mrb[97].mxu1  ;;  %v9318_v63 = vpop.f32.mrb[97].mxu0 }
 0x29a   :  { %v1636_v13 = vpop.f32.mrb[98].mxu1  ;;  %v11583_v26 = vpop.f32.mrb[98].mxu0 }
 0x29b   :  { %v1666_v29 = vpack.c.bf16 %v1636_v13, %v1633_v42  ;;  %v9361_v45 = vpop.f32.mrb[99].mxu1  ;;  %v9319_v55 = vpop.f32.mrb[99].mxu0 }
 0x29d   :  { %2214 = vrot.lane.b32.xlu1 %v1666_v29, %s10513_s1  ;;  %v9760_v29 = vld [vmem:[%s13682_s0 + $0xb0] sm:$0xff]  }
 0x29e   :  { %8934 = vmatpush3.bf16.msra.mxu0 %v9760_v29  ;;  %v9762_v29 = vld [vmem:[%s13682_s0 + $0xb8] sm:$0xff]  }
 0x29f   :  { %8935 = vmatprep.subr.bf16.mxu0 %v9761_v34 }
 0x2a0   :  { %v1641_v41 = vpop.f32.mrb[100].mxu1  ;;  %v11594_v38 = vpop.f32.mrb[100].mxu0 }
 0x2a1   :  { %v9364_v42 = vpop.f32.mrb[101].mxu1  ;;  %v9322_v58 = vpop.f32.mrb[101].mxu0 }
 0x2a2   :  { %v1644_v63 = vpop.f32.mrb[102].mxu1  ;;  %v11602_v13 = vpop.f32.mrb[102].mxu0  ;;  %8936 = vmatpush3.bf16.msra.mxu0 %v9762_v29 }
 0x2a3   :  { %v1667_v45 = vpack.c.bf16 %v1644_v63, %v1641_v41  ;;  %v9365_v55 = vpop.f32.mrb[103].mxu1  ;;  %v9323_v50 = vpop.f32.mrb[103].mxu0 }
 0x2a5   :  { %2216 = vrot.lane.b32.xlu1 %v1667_v45, %s10513_s1 }
 0x2a8   :  { %v1649_v40 = vpop.f32.mrb[104].mxu1  ;;  %v11614_v42 = vpop.f32.mrb[104].mxu0 }
 0x2a9   :  { %v9368_v41 = vpop.f32.mrb[105].mxu1  ;;  %v9326_v58 = vpop.f32.mrb[105].mxu0 }
 0x2aa   :  { %v1652_v63 = vpop.f32.mrb[106].mxu1  ;;  %v11616_v55 = vpop.f32.mrb[106].mxu0 }
 0x2ab   :  { %v1668_v50 = vpack.c.bf16 %v1652_v63, %v1649_v40  ;;  %v9369_v6 = vpop.f32.mrb[107].mxu1  ;;  %v9327_v33 = vpop.f32.mrb[107].mxu0 }
 0x2ad   :  { %2218 = vrot.lane.b32.xlu1 %v1668_v50, %s10513_s1 }
 0x2b0   :  { %v11624_v45 = vpop.f32.mrb[108].mxu1  ;;  %v11626_v34 = vpop.f32.mrb[108].mxu0 }
 0x2b1   :  { %v9372_v41 = vpop.f32.mrb[109].mxu1  ;;  %v9330_v58 = vpop.f32.mrb[109].mxu0 }
 0x2b2   :  { %v1660_v11 = vpop.f32.mrb[110].mxu1  ;;  %v1497_v40 = vpop.f32.mrb[110].mxu0 }
 0x2b3   :  { %v9373_v63 = vpop.f32.mrb[111].mxu1  ;;  %v9331_v6 = vpop.f32.mrb[111].mxu0 }
 0x2b8   :  { %v1935_v24 = vpop.f32.mrb[112].mxu1  ;;  %v11628_v54 = vpop.f32.mrb[112].mxu0 }
 0x2b9   :  { %v9432_v33 = vpop.f32.mrb[113].mxu1  ;;  %v9390_v50 = vpop.f32.mrb[113].mxu0 }
 0x2ba   :  { %v1938_v30 = vpop.f32.mrb[114].mxu1  ;;  %v11630_v60 = vpop.f32.mrb[114].mxu0 }
 0x2bb   :  { %v1989_v59 = vpack.c.bf16 %v1938_v30, %v1935_v24  ;;  %v9433_v57 = vpop.f32.mrb[115].mxu1  ;;  %v1826_v48 = vpack.c.bf16 %v11630_v60, %v11628_v54  ;;  %v9391_v29 = vpop.f32.mrb[115].mxu0  ;;  %v9745_v24 = vld [vmem:[%s13682_s0 + $0x100] sm:$0xff]   ;;  %v13689_v60 = vpack.c.bf16 %v11557_v16, %v11552_v4  ;;  %v13691_v16 = vpack.c.bf16 %v11583_v26, %v11581_v9 }
 0x2bc   :  { %v9750_v29 = vld [vmem:[%s13682_s0 + $0x108] sm:$0xff]   ;;  %v13693_v26 = vpack.c.bf16 %v11616_v55, %v11614_v42 }
 0x2bd   :  { %2229 = vrot.lane.b32.xlu0 %v1989_v59, %s10513_s1 }
 0x2bf   :  { %v2188_v11 = vpop.permute.xlu0 %2187 }
 0x2c0   :  { %v1943_v41 = vpop.f32.mrb[116].mxu1  ;;  %v2274_v58 = vsel %vm2243_vm3, %v1174_v12, %v2188_v11  ;;  %v11639_v40 = vpop.f32.mrb[116].mxu0 }
 0x2c1   :  { %v9436_v63 = vpop.f32.mrb[117].mxu1  ;;  %2704 = vmatprep.mubr.bf16.mxu1 %v2274_v58  ;;  %v9394_v30 = vpop.f32.mrb[117].mxu0 }
 0x2c2   :  { %v1946_v57 = vpop.f32.mrb[118].mxu1  ;;  %v11644_v6 = vpop.f32.mrb[118].mxu0 }
 0x2c3   :  { %v1990_v59 = vpack.c.bf16 %v1946_v57, %v1943_v41  ;;  %v2167_v33 = vpop.permute.xlu0 %2166  ;;  %v9437_v50 = vpop.f32.mrb[119].mxu1  ;;  %v1827_v46 = vpack.c.bf16 %v11644_v6, %v11639_v40  ;;  %v9755_v57 = vld [vmem:[%s13682_s0 + $0x110] sm:$0xff]   ;;  %v13690_v40 = vpack.c.bf16 %v11570_v2, %v11568_v17  ;;  %v13692_v2 = vpack.c.bf16 %v11602_v13, %v11594_v38 }
 0x2c4   :  { %v2246_v0 = vsel %vm2243_vm3, %v848_v1, %v2167_v33  ;;  %v9395_v12 = vpop.f32.mrb[119].mxu0  ;;  %v9763_v50 = vld [vmem:[%s13682_s0 + $0x118] sm:$0xff]  }
 0x2c5   :  { %2231 = vrot.lane.b32.xlu0 %v1990_v59, %s10513_s1  ;;  %2705 = vmatmul.mubr.bf16.vlgmr.msra.gmra.mrb[140].mxu1 %v2246_v0 }
 0x2c6   :  { %9501 = vmatpush3.bf16.msra.mxu1 %v9745_v24 }
 0x2c7   :  { %v2190_v11 = vpop.permute.xlu1 %2189  ;;  %9502 = vmatprep.subr.bf16.mxu1 %v10511_v62 }
 0x2c8   :  { %v1951_v41 = vpop.f32.mrb[120].mxu1  ;;  %v2278_v61 = vsel %vm2243_vm3, %v1175_v47, %v2190_v11  ;;  %v11661_v5 = vpop.f32.mrb[120].mxu0 }
 0x2c9   :  { %v9440_v1 = vpop.f32.mrb[121].mxu1  ;;  %2712 = vmatprep.mubr.bf16.mxu1 %v2278_v61  ;;  %v9398_v58 = vpop.f32.mrb[121].mxu0 }
 0x2ca   :  { %v1954_v63 = vpop.f32.mrb[122].mxu1  ;;  %v11663_v30 = vpop.f32.mrb[122].mxu0  ;;  %9503 = vmatpush3.bf16.msra.mxu1 %v9750_v29 }
 0x2cb   :  { %v1991_v24 = vpack.c.bf16 %v1954_v63, %v1951_v41  ;;  %v2169_v59 = vpop.permute.xlu1 %2168  ;;  %v9441_v33 = vpop.f32.mrb[123].mxu1  ;;  %v1828_v25 = vpack.c.bf16 %v11663_v30, %v11661_v5  ;;  %9504 = vmatprep.subr.bf16.mxu1 %v10511_v62 }
 0x2cc   :  { %v2250_v37 = vsel %vm2243_vm3, %v849_v18, %v2169_v59  ;;  %v9399_v47 = vpop.f32.mrb[123].mxu0 }
 0x2cd   :  { %2233 = vrot.lane.b32.xlu0 %v1991_v24, %s10513_s1  ;;  %2713 = vmatmul.mubr.bf16.gmra.mrb[144].mxu1 %v2250_v37 }
 0x2ce   :  { %9505 = vmatpush3.bf16.msra.mxu1 %v9755_v57 }
 0x2cf   :  { %v2171_v0 = vpop.permute.xlu1 %2170  ;;  %v2192_v12 = vpop.permute.xlu0 %2191  ;;  %9506 = vmatprep.subr.bf16.mxu1 %v10511_v62 }
 0x2d0   :  { %v1959_v29 = vpop.f32.mrb[124].mxu1  ;;  %v2282_v10 = vsel %vm2243_vm3, %v1176_v27, %v2192_v12  ;;  %v11684_v15 = vpop.f32.mrb[124].mxu0  ;;  %v2254_v51 = vsel %vm2243_vm3, %v850_v31, %v2171_v0  ;;  %v13683_v12 = vpack.c.bf16 %v11362_v44, %v11349_v36 }
 0x2d1   :  { %v9444_v18 = vpop.f32.mrb[125].mxu1  ;;  %2720 = vmatprep.mubr.bf16.mxu1 %v2282_v10  ;;  %v9402_v11 = vpop.f32.mrb[125].mxu0 }
 0x2d2   :  { %v1962_v41 = vpop.f32.mrb[126].mxu1  ;;  %v11686_v61 = vpop.f32.mrb[126].mxu0  ;;  %9507 = vmatpush3.bf16.msra.mxu1 %v9763_v50  ;;  %v13684_v18 = vpack.c.bf16 %v11512_v32, %v11506_v35 }
 0x2d3   :  { %v1992_v1 = vpack.c.bf16 %v1962_v41, %v1959_v29  ;;  %v9445_v58 = vpop.f32.mrb[127].mxu1  ;;  %v1829_v63 = vpack.c.bf16 %v11686_v61, %v11684_v15  ;;  %v9403_v52 = vpop.f32.mrb[127].mxu0 }
 0x2d4   :  { %v2173_v27 = vpop.permute.xlu1 %2172 }
 0x2d5   :  { %2235 = vrot.lane.b32.xlu0 %v1992_v1, %s10513_s1  ;;  %2721 = vmatmul.mubr.bf16.gmra.mrb[148].mxu1 %v2254_v51  ;;  %v2258_v14 = vsel %vm2243_vm3, %v13683_v12, %v2173_v27 }
 0x2d7   :  { %v2194_v57 = vpop.permute.xlu0 %2193 }
 0x2d8   :  { %v1967_v24 = vpop.f32.mrb[128].mxu1  ;;  %v2286_v59 = vsel %vm2243_vm3, %v1177_v20, %v2194_v57  ;;  %v11699_v33 = vpop.f32.mrb[128].mxu0 }
 0x2d9   :  { %v9448_v37 = vpop.f32.mrb[129].mxu1  ;;  %2728 = vmatprep.mubr.bf16.mxu1 %v2286_v59  ;;  %v9406_v47 = vpop.f32.mrb[129].mxu0  ;;  %v13686_v59 = vpack.c.bf16 %v11522_v49, %v11520_v19 }
 0x2da   :  { %v1970_v21 = vpop.f32.mrb[130].mxu1  ;;  %v11701_v28 = vpop.f32.mrb[130].mxu0 }
 0x2db   :  { %v1993_v31 = vpack.c.bf16 %v1970_v21, %v1967_v24  ;;  %v9449_v50 = vpop.f32.mrb[131].mxu1  ;;  %v1830_v0 = vpack.c.bf16 %v11701_v28, %v11699_v33  ;;  %v9407_v8 = vpop.f32.mrb[131].mxu0  ;;  %v13685_v24 = vpack.c.bf16 %v11392_v22, %v11388_v56  ;;  %v1180_v56 = vpack.c.bf16 %v11527_v53, %v11527_v53 }
 0x2dc   :  { %v2175_v20 = vpop.permute.xlu1 %2174  ;;  %v13687_v22 = vpack.c.bf16 %v11422_v23, %v11409_v7 }
 0x2dd   :  { %2237 = vrot.lane.b32.xlu0 %v1993_v31, %s10513_s1  ;;  %2729 = vmatmul.mubr.bf16.gmra.mrb[152].mxu1 %v2258_v14  ;;  %v2262_v35 = vsel %vm2243_vm3, %v13685_v24, %v2175_v20 }
 0x2df   :  { %v2196_v29 = vpop.permute.xlu0 %2195 }
 0x2e0   :  { %v1975_v10 = vpop.f32.mrb[132].mxu1  ;;  %v2290_v11 = vsel %vm2243_vm3, %v13684_v18, %v2196_v29  ;;  %v11714_v41 = vpop.f32.mrb[132].mxu0 }
 0x2e1   :  { %v9452_v1 = vpop.f32.mrb[133].mxu1  ;;  %2736 = vmatprep.mubr.bf16.mxu1 %v2290_v11  ;;  %v9410_v58 = vpop.f32.mrb[133].mxu0 }
 0x2e2   :  { %v1978_v36 = vpop.f32.mrb[134].mxu1  ;;  %v11716_v44 = vpop.f32.mrb[134].mxu0 }
 0x2e3   :  { %v1994_v51 = vpack.c.bf16 %v1978_v36, %v1975_v10  ;;  %v1831_v52 = vpack.c.bf16 %v11716_v44, %v11714_v41  ;;  %v9411_v27 = vpop.f32.mrb[135].mxu0  ;;  %v9453_v57 = vpop.f32.mrb[135].mxu1  ;;  %v854_v10 = vpack.c.bf16 %v11443_v39, %v11443_v39 }
 0x2e4   :  { %v2177_v21 = vpop.permute.xlu1 %2176 }
 0x2e5   :  { %2239 = vrot.lane.b32.xlu0 %v1994_v51, %s10513_s1  ;;  %2737 = vmatmul.mubr.bf16.gmra.mrb[156].mxu1 %v2262_v35  ;;  %v2266_v14 = vsel %vm2243_vm3, %v13687_v22, %v2177_v21 }
 0x2e7   :  { %v2198_v32 = vpop.permute.xlu0 %2197 }
 0x2e8   :  { %v2294_v37 = vsel %vm2243_vm3, %v13686_v59, %v2198_v32  ;;  %v11729_v47 = vpop.f32.mrb[136].mxu0  ;;  %v2179_v20 = vpop.permute.xlu1 %2178 }
 0x2e9   :  { %2744 = vmatprep.mubr.bf16.mxu1 %v2294_v37  ;;  %v9414_v31 = vpop.f32.mrb[137].mxu0  ;;  %v2270_v53 = vsel %vm2243_vm3, %v854_v10, %v2179_v20 }
 0x2ea   :  { %v1823_v50 = vpop.f32.mrb[138].mxu0 }
 0x2eb   :  { %v9415_v12 = vpop.f32.mrb[139].mxu0 }
 0x2ec   :  { %v11752_v12 = vpop.f32.mrb[136].mxu1 }
 0x2ed   :  { %v2200_v8 = vpop.permute.xlu0 %2199  ;;  %2745 = vmatmul.mubr.bf16.gmra.mrb[160].mxu1 %v2266_v14  ;;  %v9456_v22 = vpop.f32.mrb[137].mxu1 }
 0x2ee   :  { %v2298_v19 = vsel %vm2243_vm3, %v1180_v56, %v2200_v8  ;;  %v1986_v8 = vpop.f32.mrb[138].mxu1 }
 0x2ef   :  { %2752 = vmatprep.mubr.bf16.mxu1 %v2298_v19  ;;  %v9457_v20 = vpop.f32.mrb[139].mxu1 }
 0x2f0   :  { %v2098_v49 = vpop.f32.mrb[140].mxu0 }
 0x2f1   :  { %v9474_v29 = vpop.f32.mrb[141].mxu0 }
 0x2f2   :  { %v2101_v18 = vpop.f32.mrb[142].mxu0 }
 0x2f3   :  { %v2152_v11 = vpack.c.bf16 %v2101_v18, %v2098_v49  ;;  %v9475_v1 = vpop.f32.mrb[143].mxu0 }
 0x2f5   :  { %2753 = vmatmul.mubr.bf16.gmra.mrb[164].mxu1 %v2270_v53 }
 0x2f6   :  { %9508 = vmatprep.mubr.msk.bf16.mxu1 %vm10512_vm0, %v10511_v62 }
 0x2f7   :  { %v2209_v53 = vpop.permute.xlu1 %2208 }
 0x2f8   :  { %v2106_v7 = vpop.f32.mrb[144].mxu0 }
 0x2f9   :  { %v9478_v23 = vpop.f32.mrb[145].mxu0 }
 0x2fa   :  { %v2109_v58 = vpop.f32.mrb[146].mxu0 }
 0x2fb   :  { %v2153_v36 = vpack.c.bf16 %v2109_v58, %v2106_v7  ;;  %v9479_v51 = vpop.f32.mrb[147].mxu0  ;;  %v13688_v58 = vpack.c.bf16 %v11541_v3, %v11536_v43 }
 0x2fd   :  { %9509 = vmatmul.mubr.msk.bf16.vlgmr.msra.gmra.mrb[168].mxu1 %vm2243_vm3, %v2152_v11 }
 0x2fe   :  { %9512 = vmatprep.mubr.msk.bf16.mxu1 %vm10512_vm0, %v10511_v62 }
 0x2ff   :  { %v2211_v51 = vpop.permute.xlu1 %2210 }
 0x300   :  { %v2114_v39 = vpop.f32.mrb[148].mxu0 }
 0x301   :  { %v9482_v27 = vpop.f32.mrb[149].mxu0 }
 0x302   :  { %v2117_v57 = vpop.f32.mrb[150].mxu0 }
 0x303   :  { %v2154_v24 = vpack.c.bf16 %v2117_v57, %v2114_v39  ;;  %v9483_v35 = vpop.f32.mrb[151].mxu0 }
 0x305   :  { %9513 = vmatmul.mubr.msk.bf16.gmra.mrb[172].mxu1 %vm2243_vm3, %v2153_v36  ;;  %v2302_v36 = vsel %vm2243_vm3, %v13688_v58, %v2209_v53 }
 0x306   :  { %9516 = vmatprep.mubr.msk.bf16.mxu1 %vm10512_vm0, %v10511_v62 }
 0x307   :  { %v2213_v54 = vpop.permute.xlu1 %2212 }
 0x308   :  { %v2122_v32 = vpop.f32.mrb[152].mxu0  ;;  %v2310_v6 = vsel %vm2243_vm3, %v13690_v40, %v2213_v54  ;;  %v9770_v54 = vld [vmem:[%s13694_s30 + $0x20] ss:$16 sps:$4 sm:$0xff]   ;;  %v9773_v40 = vld [vmem:[%s13694_s30 + $0x28] ss:$16 sps:$4 sm:$0xff]  }
 0x309   :  { %v9486_v59 = vpop.f32.mrb[153].mxu0 }
 0x30a   :  { %v2125_v37 = vpop.f32.mrb[154].mxu0 }
 0x30b   :  { %v2155_v21 = vpack.c.bf16 %v2125_v37, %v2122_v32  ;;  %v9487_v31 = vpop.f32.mrb[155].mxu0 }
 0x30d   :  { %9517 = vmatmul.mubr.msk.bf16.gmra.mrb[176].mxu1 %vm2243_vm3, %v2154_v24 }
 0x30e   :  { %9520 = vmatprep.mubr.msk.bf16.mxu1 %vm10512_vm0, %v10511_v62 }
 0x310   :  { %v2130_v50 = vpop.f32.mrb[156].mxu0 }
 0x311   :  { %v9490_v56 = vpop.f32.mrb[157].mxu0 }
 0x312   :  { %v2133_v14 = vpop.f32.mrb[158].mxu0 }
 0x313   :  { %v2156_v19 = vpack.c.bf16 %v2133_v14, %v2130_v50  ;;  %v9491_v49 = vpop.f32.mrb[159].mxu0 }
 0x315   :  { %9521 = vmatmul.mubr.msk.bf16.gmra.mrb[180].mxu1 %vm2243_vm3, %v2155_v21 }
 0x316   :  { %9524 = vmatprep.mubr.msk.bf16.mxu1 %vm10512_vm0, %v10511_v62 }
 0x318   :  { %v2138_v29 = vpop.f32.mrb[160].mxu0 }
 0x319   :  { %v9494_v10 = vpop.f32.mrb[161].mxu0 }
 0x31a   :  { %v2141_v18 = vpop.f32.mrb[162].mxu0 }
 0x31b   :  { %v2157_v11 = vpack.c.bf16 %v2141_v18, %v2138_v29  ;;  %v9495_v1 = vpop.f32.mrb[163].mxu0 }
 0x31d   :  { %9525 = vmatmul.mubr.msk.bf16.gmra.mrb[184].mxu1 %vm2243_vm3, %v2156_v19 }
 0x31e   :  { %9528 = vmatprep.mubr.msk.bf16.mxu1 %vm10512_vm0, %v10511_v62 }
 0x325   :  { %9529 = vmatmul.mubr.msk.bf16.gmra.mrb[188].mxu1 %vm2243_vm3, %v2157_v11 }
 0x326   :  { %9532 = vmatprep.mubr.msk.bf16.mxu1 %vm10512_vm0, %v10511_v62 }
 0x32f   :  { %v2230_v7 = vpop.permute.xlu0 %2229 }
 0x330   :  { %v2330_v23 = vsel %vm2243_vm3, %v1826_v48, %v2230_v7  ;;  %v2306_v48 = vsel %vm2243_vm3, %v13689_v60, %v2211_v51  ;;  %v9767_v60 = vld [vmem:[%s13694_s30 + $0x8] ss:$16 sps:$4 sm:$0xff]  }
 0x331   :  { %2792 = vmatprep.mubr.bf16.mxu0 %v2330_v23 }
 0x332   :  { %2793 = vmatmul.mubr.bf16.vlgmr.msra.gmra.mrb[168].mxu0 %v2302_v36 }
 0x337   :  { %v2232_v39 = vpop.permute.xlu0 %2231 }
 0x338   :  { %v2334_v27 = vsel %vm2243_vm3, %v1827_v46, %v2232_v39  ;;  %v2215_v46 = vpop.permute.xlu1 %2214  ;;  %v9764_v39 = vld [vmem:[%s13694_s30] ss:$16 sps:$4 sm:$0xff]  }
 0x339   :  { %2800 = vmatprep.mubr.bf16.mxu0 %v2334_v27  ;;  %v2314_v5 = vsel %vm2243_vm3, %v13691_v16, %v2215_v46  ;;  %v9766_v27 = vld [vmem:[%s13694_s30 + $0x4] ss:$16 sps:$4 sm:$0xff]   ;;  %v9775_v46 = vld [vmem:[%s13694_s30 + $0x2c] ss:$16 sps:$4 sm:$0xff]  }
 0x33a   :  { %2801 = vmatmul.mubr.bf16.gmra.mrb[172].mxu0 %v2306_v48  ;;  %v9769_v48 = vld [vmem:[%s13694_s30 + $0xc] ss:$16 sps:$4 sm:$0xff]   ;;  %5499 = vmatprep.subr.bf16.mxu0 %v9766_v27  ;;  %v9778_v16 = vld [vmem:[%s13694_s30 + $0x44] ss:$16 sps:$4 sm:$0xff]  }
 0x33b   :  { %5786 = vmatprep.subr.bf16.mxu1 %v9769_v48  ;;  %5500 = vmatpush1.bf16.msra.mxu0 %v9764_v39  ;;  %v9809_v39 = vld [vmem:[%s13694_s30 + $0xe8] ss:$16 sps:$4 sm:$0xff]  }
 0x33c   :  { %v2217_v30 = vpop.permute.xlu1 %2216  ;;  %5787 = vmatpush1.bf16.msra.mxu1 %v9767_v60  ;;  %v9814_v60 = vld [vmem:[%s13694_s30 + $0x104] ss:$16 sps:$4 sm:$0xff]  }
 0x33d   :  { %v2318_v15 = vsel %vm2243_vm3, %v13692_v2, %v2217_v30  ;;  %5788 = vmatprep.subr.bf16.mxu1 %v9775_v46  ;;  %v9776_v30 = vld [vmem:[%s13694_s30 + $0x40] ss:$16 sps:$4 sm:$0xff]   ;;  %v9779_v2 = vld [vmem:[%s13694_s30 + $0x48] ss:$16 sps:$4 sm:$0xff]  }
 0x33e   :  { %v9818_v46 = vld [vmem:[%s13694_s30 + $0x120] ss:$16 sps:$4 sm:$0xff]  }
 0x33f   :  { %v2234_v43 = vpop.permute.xlu0 %2233 }
 0x340   :  { %v2338_v3 = vsel %vm2243_vm3, %v1828_v25, %v2234_v43  ;;  %v2219_v61 = vpop.permute.xlu1 %2218  ;;  %v9772_v43 = vld [vmem:[%s13694_s30 + $0x24] ss:$16 sps:$4 sm:$0xff]   ;;  %5789 = vmatpush1.bf16.msra.mxu1 %v9773_v40  ;;  %v9815_v40 = vld [vmem:[%s13694_s30 + $0x108] ss:$16 sps:$4 sm:$0xff]  }
 0x341   :  { %2808 = vmatprep.mubr.bf16.mxu0 %v2338_v3  ;;  %v2322_v33 = vsel %vm2243_vm3, %v13693_v26, %v2219_v61  ;;  %5501 = vmatprep.subr.bf16.mxu0 %v9772_v43  ;;  %v9787_v61 = vld [vmem:[%s13694_s30 + $0x6c] ss:$16 sps:$4 sm:$0xff]   ;;  %v9785_v26 = vld [vmem:[%s13694_s30 + $0x68] ss:$16 sps:$4 sm:$0xff]  }
 0x342   :  { %2809 = vmatmul.mubr.bf16.gmra.mrb[176].mxu0 %v2310_v6 }
 0x343   :  { %5502 = vmatpush1.bf16.msra.mxu0 %v9770_v54  ;;  %v9817_v54 = vld [vmem:[%s13694_s30 + $0x10c] ss:$16 sps:$4 sm:$0xff]  }
 0x344   :  { %5503 = vmatprep.subr.bf16.mxu0 %v9778_v16  ;;  %v9821_v16 = vld [vmem:[%s13694_s30 + $0x128] ss:$16 sps:$4 sm:$0xff]  }
 0x347   :  { %v2236_v57 = vpop.permute.xlu0 %2235  ;;  %5504 = vmatpush1.bf16.msra.mxu0 %v9776_v30 }
 0x348   :  { %v2342_v4 = vsel %vm2243_vm3, %v1829_v63, %v2236_v57 }
 0x349   :  { %2816 = vmatprep.mubr.bf16.mxu0 %v2342_v4 }
 0x34a   :  { %2817 = vmatmul.mubr.bf16.gmra.mrb[180].mxu0 %v2314_v5 }
 0x34f   :  { %v2238_v25 = vpop.permute.xlu0 %2237 }
 0x350   :  { %v2346_v17 = vsel %vm2243_vm3, %v1830_v0, %v2238_v25  ;;  %v9781_v25 = vld [vmem:[%s13694_s30 + $0x4c] ss:$16 sps:$4 sm:$0xff]  }
 0x351   :  { %2824 = vmatprep.mubr.bf16.mxu0 %v2346_v17  ;;  %5790 = vmatprep.subr.bf16.mxu1 %v9781_v25  ;;  %v9829_v25 = vld [vmem:[%s13694_s30 + $0x14c] ss:$16 sps:$4 sm:$0xff]  }
 0x352   :  { %2825 = vmatmul.mubr.bf16.gmra.mrb[184].mxu0 %v2318_v15  ;;  %v9784_v15 = vld [vmem:[%s13694_s30 + $0x64] ss:$16 sps:$4 sm:$0xff]   ;;  %5791 = vmatpush1.bf16.msra.mxu1 %v9779_v2 }
 0x353   :  { %5505 = vmatprep.subr.bf16.mxu0 %v9784_v15  ;;  %5792 = vmatprep.subr.bf16.mxu1 %v9787_v61  ;;  %v9824_v61 = vld [vmem:[%s13694_s30 + $0x140] ss:$16 sps:$4 sm:$0xff]  }
 0x356   :  { %5793 = vmatpush1.bf16.msra.mxu1 %v9785_v26  ;;  %v9832_v26 = vld [vmem:[%s13694_s30 + $0x164] ss:$16 sps:$4 sm:$0xff]  }
 0x357   :  { %v2240_v63 = vpop.permute.xlu0 %2239 }
 0x358   :  { %v2350_v9 = vsel %vm2243_vm3, %v1831_v52, %v2240_v63  ;;  %v9782_v63 = vld [vmem:[%s13694_s30 + $0x60] ss:$16 sps:$4 sm:$0xff]  }
 0x359   :  { %2832 = vmatprep.mubr.bf16.mxu0 %v2350_v9  ;;  %5506 = vmatpush1.bf16.msra.mxu0 %v9782_v63 }
 0x35a   :  { %2833 = vmatmul.mubr.bf16.gmra.mrb[188].mxu0 %v2322_v33 }
 0x360   :  { %v2146_v28 = vpop.f32.mrb[164].mxu0 }
 0x361   :  { %v2158_v0 = vpack.c.bf16 %v2146_v28, %v2146_v28  ;;  %v9498_v38 = vpop.f32.mrb[165].mxu0  ;;  %v9790_v28 = vld [vmem:[%s13694_s30 + $0x84] ss:$16 sps:$4 sm:$0xff]  }
 0x362   :  { %v2149_v13 = vpop.f32.mrb[166].mxu0  ;;  %5507 = vmatprep.subr.bf16.mxu0 %v9790_v28  ;;  %v9830_v28 = vld [vmem:[%s13694_s30 + $0x160] ss:$16 sps:$4 sm:$0xff]  }
 0x363   :  { %v9499_v24 = vpop.f32.mrb[167].mxu0  ;;  %9533 = vmatmul.mubr.msk.bf16.gmra.mrb[192].mxu1 %vm2243_vm3, %v2158_v0  ;;  %v9793_v13 = vld [vmem:[%s13694_s30 + $0x8c] ss:$16 sps:$4 sm:$0xff]  }
 0x364   :  { %v11893_v24 = vld [vmem:[%s13651_s6] ss:$0 sm:$0xff]  ;;  %5794 = vmatprep.subr.bf16.mxu1 %v9793_v13 }
 0x398   :  { %v8879_v35 = vpop.f32.mrb[140].mxu1 }
 0x399   :  { %v8880_v32 = vpop.f32.mrb[141].mxu1 }
 0x39a   :  { %v11812_v59 = vadd.f32 %v8880_v32, %v8879_v35  ;;  %v8882_v41 = vpop.f32.mrb[142].mxu1  ;;  %v9788_v32 = vld [vmem:[%s13694_s30 + $0x80] ss:$16 sps:$4 sm:$0xff]  }
 0x39b   :  { %v8883_v44 = vpop.f32.mrb[143].mxu1  ;;  %5508 = vmatpush1.bf16.msra.mxu0 %v9788_v32 }
 0x39c   :  { %v11814_v52 = vadd.f32 %v8883_v44, %v8882_v41  ;;  %v9791_v44 = vld [vmem:[%s13694_s30 + $0x88] ss:$16 sps:$4 sm:$0xff]  }
 0x39d   :  { %5795 = vmatpush1.bf16.msra.mxu1 %v9791_v44 }
 0x3a0   :  { %v8885_v37 = vpop.f32.mrb[144].mxu1 }
 0x3a1   :  { %v8886_v42 = vpop.f32.mrb[145].mxu1 }
 0x3a2   :  { %v11816_v55 = vadd.f32 %v8886_v42, %v8885_v37  ;;  %v8888_v21 = vpop.f32.mrb[146].mxu1  ;;  %v9796_v37 = vld [vmem:[%s13694_s30 + $0xa4] ss:$16 sps:$4 sm:$0xff]   ;;  %v9799_v42 = vld [vmem:[%s13694_s30 + $0xac] ss:$16 sps:$4 sm:$0xff]  }
 0x3a3   :  { %v8889_v31 = vpop.f32.mrb[147].mxu1  ;;  %5509 = vmatprep.subr.bf16.mxu0 %v9796_v37  ;;  %5796 = vmatprep.subr.bf16.mxu1 %v9799_v42  ;;  %v9836_v37 = vld [vmem:[%s13694_s30 + $0x180] ss:$16 sps:$4 sm:$0xff]  }
 0x3a4   :  { %v11818_v50 = vadd.f32 %v8889_v31, %v8888_v21  ;;  %v9794_v21 = vld [vmem:[%s13694_s30 + $0xa0] ss:$16 sps:$4 sm:$0xff]  }
 0x3a5   :  { %5510 = vmatpush1.bf16.msra.mxu0 %v9794_v21  ;;  %v9839_v21 = vld [vmem:[%s13694_s30 + $0x188] ss:$16 sps:$4 sm:$0xff]  }
 0x3a8   :  { %v8891_v56 = vpop.f32.mrb[148].mxu1 }
 0x3a9   :  { %v8892_v22 = vpop.f32.mrb[149].mxu1 }
 0x3aa   :  { %v11820_v14 = vadd.f32 %v8892_v22, %v8891_v56  ;;  %v8894_v8 = vpop.f32.mrb[150].mxu1  ;;  %v9797_v56 = vld [vmem:[%s13694_s30 + $0xa8] ss:$16 sps:$4 sm:$0xff]  }
 0x3ab   :  { %v8895_v19 = vpop.f32.mrb[151].mxu1  ;;  %5797 = vmatpush1.bf16.msra.mxu1 %v9797_v56 }
 0x3ac   :  { %v11822_v49 = vadd.f32 %v8895_v19, %v8894_v8  ;;  %v9802_v8 = vld [vmem:[%s13694_s30 + $0xc4] ss:$16 sps:$4 sm:$0xff]  }
 0x3ad   :  { %5511 = vmatprep.subr.bf16.mxu0 %v9802_v8 }
 0x3b0   :  { %v8897_v20 = vpop.f32.mrb[152].mxu1 }
 0x3b1   :  { %v8898_v29 = vpop.f32.mrb[153].mxu1 }
 0x3b2   :  { %v11824_v10 = vadd.f32 %v8898_v29, %v8897_v20  ;;  %v8900_v18 = vpop.f32.mrb[154].mxu1  ;;  %v9805_v20 = vld [vmem:[%s13694_s30 + $0xcc] ss:$16 sps:$4 sm:$0xff]  }
 0x3b3   :  { %v8901_v11 = vpop.f32.mrb[155].mxu1  ;;  %5798 = vmatprep.subr.bf16.mxu1 %v9805_v20 }
 0x3b4   :  { %v11826_v1 = vadd.f32 %v8901_v11, %v8900_v18  ;;  %v9800_v18 = vld [vmem:[%s13694_s30 + $0xc0] ss:$16 sps:$4 sm:$0xff]   ;;  %v9803_v11 = vld [vmem:[%s13694_s30 + $0xc8] ss:$16 sps:$4 sm:$0xff]  }
 0x3b5   :  { %5512 = vmatpush1.bf16.msra.mxu0 %v9800_v18  ;;  %5799 = vmatpush1.bf16.msra.mxu1 %v9803_v11 }
 0x3b8   :  { %v8903_v53 = vpop.f32.mrb[156].mxu1 }
 0x3b9   :  { %v8904_v7 = vpop.f32.mrb[157].mxu1 }
 0x3ba   :  { %v11828_v23 = vadd.f32 %v8904_v7, %v8903_v53  ;;  %v8906_v58 = vpop.f32.mrb[158].mxu1  ;;  %v9808_v53 = vld [vmem:[%s13694_s30 + $0xe4] ss:$16 sps:$4 sm:$0xff]   ;;  %v9811_v7 = vld [vmem:[%s13694_s30 + $0xec] ss:$16 sps:$4 sm:$0xff]  }
 0x3bb   :  { %v8907_v36 = vpop.f32.mrb[159].mxu1  ;;  %5513 = vmatprep.subr.bf16.mxu0 %v9808_v53  ;;  %5800 = vmatprep.subr.bf16.mxu1 %v9811_v7 }
 0x3bc   :  { %v11830_v51 = vadd.f32 %v8907_v36, %v8906_v58  ;;  %v9806_v58 = vld [vmem:[%s13694_s30 + $0xe0] ss:$16 sps:$4 sm:$0xff]   ;;  %5801 = vmatpush1.bf16.msra.mxu1 %v9809_v39  ;;  %v9847_v39 = vld [vmem:[%s13694_s30 + $0x1ac] ss:$16 sps:$4 sm:$0xff]  }
 0x3bd   :  { %5514 = vmatpush1.bf16.msra.mxu0 %v9806_v58  ;;  %5802 = vmatprep.subr.bf16.mxu1 %v9817_v54  ;;  %v9844_v58 = vld [vmem:[%s13694_s30 + $0x1a4] ss:$16 sps:$4 sm:$0xff]   ;;  %v9845_v54 = vld [vmem:[%s13694_s30 + $0x1a8] ss:$16 sps:$4 sm:$0xff]  }
 0x3be   :  { %5515 = vmatprep.subr.bf16.mxu0 %v9814_v60  ;;  %v9842_v60 = vld [vmem:[%s13694_s30 + $0x1a0] ss:$16 sps:$4 sm:$0xff]  }
 0x3c0   :  { %v8909_v3 = vpop.f32.mrb[160].mxu1  ;;  %5803 = vmatpush1.bf16.msra.mxu1 %v9815_v40 }
 0x3c1   :  { %v8910_v6 = vpop.f32.mrb[161].mxu1 }
 0x3c2   :  { %v11856_v57 = vadd.f32 %v8910_v6, %v8909_v3  ;;  %v8912_v4 = vpop.f32.mrb[162].mxu1  ;;  %v9812_v3 = vld [vmem:[%s13694_s30 + $0x100] ss:$16 sps:$4 sm:$0xff]   ;;  %v9820_v6 = vld [vmem:[%s13694_s30 + $0x124] ss:$16 sps:$4 sm:$0xff]  }
 0x3c3   :  { %v8913_v5 = vpop.f32.mrb[163].mxu1  ;;  %5516 = vmatpush1.bf16.msra.mxu0 %v9812_v3 }
 0x3c4   :  { %v11867_v17 = vadd.f32 %v8913_v5, %v8912_v4  ;;  %v9823_v4 = vld [vmem:[%s13694_s30 + $0x12c] ss:$16 sps:$4 sm:$0xff]   ;;  %v9826_v5 = vld [vmem:[%s13694_s30 + $0x144] ss:$16 sps:$4 sm:$0xff]   ;;  %5517 = vmatprep.subr.bf16.mxu0 %v9820_v6 }
 0x3c5   :  { %5804 = vmatprep.subr.bf16.mxu1 %v9823_v4 }
 0x3c6   :  { %5805 = vmatpush1.bf16.msra.mxu1 %v9821_v16 }
 0x3c7   :  { %5518 = vmatpush1.bf16.msra.mxu0 %v9818_v46  ;;  %5806 = vmatprep.subr.bf16.mxu1 %v9829_v25  ;;  %v2710_v46 = vadd.f32 %v11814_v52, %v11893_v24  ;;  %v9851_v25 = vld [vmem:[%s13694_s30 + $0x1c8] ss:$16 sps:$4 sm:$0xff]  }
 0x3c8   :  { %v8915_v9 = vpop.f32.mrb[164].mxu1  ;;  %5519 = vmatprep.subr.bf16.mxu0 %v9826_v5  ;;  %v9848_v5 = vld [vmem:[%s13694_s30 + $0x1c0] ss:$16 sps:$4 sm:$0xff]  }
 0x3c9   :  { %v8916_v33 = vpop.f32.mrb[165].mxu1 }
 0x3ca   :  { %v8917_v0 = vadd.f32 %v8916_v33, %v8915_v9  ;;  %v8918_v38 = vpop.f32.mrb[166].mxu1  ;;  %v9827_v9 = vld [vmem:[%s13694_s30 + $0x148] ss:$16 sps:$4 sm:$0xff]   ;;  %v9835_v33 = vld [vmem:[%s13694_s30 + $0x16c] ss:$16 sps:$4 sm:$0xff]  }
 0x3cb   :  { %v8919_v35 = vpop.f32.mrb[167].mxu1  ;;  %v9838_v38 = vld [vmem:[%s13694_s30 + $0x184] ss:$16 sps:$4 sm:$0xff]   ;;  %5520 = vmatpush1.bf16.msra.mxu0 %v9824_v61  ;;  %5807 = vmatpush1.bf16.msra.mxu1 %v9827_v9 }
 0x3cc   :  { %v11899_v41 = vadd.f32 %v8917_v0, %v11893_v24  ;;  %v9833_v0 = vld [vmem:[%s13694_s30 + $0x168] ss:$16 sps:$4 sm:$0xff]   ;;  %v9841_v35 = vld [vmem:[%s13694_s30 + $0x18c] ss:$16 sps:$4 sm:$0xff]   ;;  %5521 = vmatprep.subr.bf16.mxu0 %v9832_v26  ;;  %5808 = vmatprep.subr.bf16.mxu1 %v9835_v33  ;;  %v9856_v33 = vld [vmem:[%s13694_s30 + $0x1e4] ss:$16 sps:$4 sm:$0xff]  }
 0x3cf   :  { %5522 = vmatpush1.bf16.msra.mxu0 %v9830_v28  ;;  %5809 = vmatpush1.bf16.msra.mxu1 %v9833_v0  ;;  %v9859_v28 = vld [vmem:[%s13694_s30 + $0x1ec] ss:$16 sps:$4 sm:$0xff]  }
 0x3d0   :  { %v11913_v31 = vpop.f32.mrb[168].mxu1  ;;  %5523 = vmatprep.subr.bf16.mxu0 %v9838_v38  ;;  %5810 = vmatprep.subr.bf16.mxu1 %v9841_v35  ;;  %v9857_v38 = vld [vmem:[%s13694_s30 + $0x1e8] ss:$16 sps:$4 sm:$0xff]  }
 0x3d1   :  { %v9510_v22 = vpop.f32.mrb[169].mxu1 }
 0x3d2   :  { %v11921_v19 = vpop.f32.mrb[170].mxu1 }
 0x3d3   :  { %v9511_v29 = vpop.f32.mrb[171].mxu1  ;;  %5524 = vmatpush1.bf16.msra.mxu0 %v9836_v37  ;;  %5811 = vmatpush1.bf16.msra.mxu1 %v9839_v21  ;;  %v2718_v21 = vadd.f32 %v11818_v50, %v11893_v24  ;;  %v1995_v50 = vpack.c.bf16 %v11752_v12, %v11752_v12  ;;  %v2723_v12 = vadd.f32 %v11820_v14, %v11893_v24 }
 0x3d4   :  { %5525 = vmatprep.subr.bf16.mxu0 %v9844_v58  ;;  %5812 = vmatprep.subr.bf16.mxu1 %v9847_v39 }
 0x3d7   :  { %5526 = vmatpush1.bf16.msra.mxu0 %v9842_v60  ;;  %5813 = vmatpush1.bf16.msra.mxu1 %v9845_v54 }
 0x3d8   :  { %v11941_v36 = vpop.f32.mrb[172].mxu1 }
 0x3d9   :  { %v9514_v27 = vpop.f32.mrb[173].mxu1 }
 0x3da   :  { %v11949_v48 = vpop.f32.mrb[174].mxu1 }
 0x3db   :  { %v9515_v43 = vpop.f32.mrb[175].mxu1 }
 0x3dc   :  { %v2707_v43 = vadd.f32 %v11812_v59, %v11893_v24  ;;  %v9850_v59 = vld [vmem:[%s13694_s30 + $0x1c4] ss:$16 sps:$4 sm:$0xff]  }
 0x3dd   :  { %5527 = vmatprep.subr.bf16.mxu0 %v9850_v59 }
 0x3de   :  { %5528 = vmatpush1.bf16.msra.mxu0 %v9848_v5 }
 0x3df   :  { %5529 = vmatprep.subr.bf16.mxu0 %v9856_v33 }
 0x3e0   :  { %v11975_v30 = vpop.f32.mrb[176].mxu1 }
 0x3e1   :  { %v9518_v2 = vpop.f32.mrb[177].mxu1 }
 0x3e2   :  { %v11980_v15 = vpop.f32.mrb[178].mxu1  ;;  %v9853_v2 = vld [vmem:[%s13694_s30 + $0x1cc] ss:$16 sps:$4 sm:$0xff]  }
 0x3e3   :  { %v9519_v63 = vpop.f32.mrb[179].mxu1  ;;  %5814 = vmatprep.subr.bf16.mxu1 %v9853_v2 }
 0x3e4   :  { %5815 = vmatpush1.bf16.msra.mxu1 %v9851_v25 }
 0x3e5   :  { %5816 = vmatprep.subr.bf16.mxu1 %v9859_v28 }
 0x3e8   :  { %v12003_v13 = vpop.f32.mrb[180].mxu1  ;;  %5817 = vmatpush1.bf16.msra.mxu1 %v9857_v38 }
 0x3e9   :  { %v9522_v32 = vpop.f32.mrb[181].mxu1 }
 0x3ea   :  { %v12008_v44 = vpop.f32.mrb[182].mxu1 }
 0x3eb   :  { %v9523_v42 = vpop.f32.mrb[183].mxu1 }
 0x3f0   :  { %v12016_v56 = vpop.f32.mrb[184].mxu1 }
 0x3f1   :  { %v9526_v22 = vpop.f32.mrb[185].mxu1 }
 0x3f2   :  { %v12018_v8 = vpop.f32.mrb[186].mxu1 }
 0x3f3   :  { %v9527_v20 = vpop.f32.mrb[187].mxu1 }
 0x3f8   :  { %v12020_v29 = vpop.f32.mrb[188].mxu1 }
 0x3f9   :  { %v9530_v18 = vpop.f32.mrb[189].mxu1 }
 0x3fa   :  { %v12022_v11 = vpop.f32.mrb[190].mxu1 }
 0x3fb   :  { %v9531_v53 = vpop.f32.mrb[191].mxu1 }
 0x3fc   :  { %v9863_v53 = vld [vmem:[%s13694_s30 + $0x204] ss:$16 sps:$4 sm:$0xff]  }
 0x405   :  { %v8937_v7 = vpop.f32.mrb[168].mxu0 }
 0x406   :  { %v8938_v27 = vpop.f32.mrb[169].mxu0 }
 0x407   :  { %v8939_v3 = vadd.f32 %v8938_v27, %v8937_v7  ;;  %v8940_v40 = vpop.f32.mrb[170].mxu0  ;;  %v9866_v7 = vld [vmem:[%s13694_s30 + $0x20c] ss:$16 sps:$4 sm:$0xff]   ;;  %v1669_v27 = vpack.c.bf16 %v11624_v45, %v11624_v45  ;;  %v2726_v45 = vadd.f32 %v11822_v49, %v11893_v24  ;;  %v2731_v49 = vadd.f32 %v11824_v10, %v11893_v24 }
 0x408   :  { %v8941_v6 = vpop.f32.mrb[171].mxu0  ;;  %5827 = vmatprep.subr.bf16.mxu1 %v9866_v7 }
 0x409   :  { %v8942_v4 = vadd.f32 %v8941_v6, %v8940_v40  ;;  %v2795_v16 = vadd.f32 %v8939_v3, %v2707_v43 }
 0x40b   :  { %v2883_v52 = vadd.f32 %v11913_v31, %v2795_v16  ;;  %v2798_v61 = vadd.f32 %v8942_v4, %v2710_v46  ;;  %v9854_v31 = vld [vmem:[%s13694_s30 + $0x1e0] ss:$16 sps:$4 sm:$0xff]  }
 0x40c   :  { %5530 = vmatpush1.bf16.msra.mxu0 %v9854_v31 }
 0x40d   :  { %v2936_v63 = vmax.f32 %v2883_v52, 0.0  ;;  %v2886_v9 = vadd.f32 %v11921_v19, %v2798_v61  ;;  %v8943_v26 = vpop.f32.mrb[172].mxu0  ;;  %v2715_v19 = vadd.f32 %v11816_v55, %v11893_v24  ;;  %5540 = vmatprep.subr.bf16.mxu0 %v9863_v53 }
 0x40e   :  { %v8944_v0 = vpop.f32.mrb[173].mxu0 }
 0x40f   :  { %2950 = vst.msk [vmem:[#allocation2] sm:$0xf] %vm2949_vm4, %v2936_v63  ;;  %v2952_v35 = vcombine.high %v2936_v63, %v2936_v63  ;;  %v2937_v32 = vmax.f32 %v2886_v9, 0.0  ;;  %v8945_v37 = vadd.f32 %v8944_v0, %v8943_v26  ;;  %v8946_v42 = vpop.f32.mrb[174].mxu0 }
 0x410   :  { %v8947_v22 = vpop.f32.mrb[175].mxu0 }
 0x411   :  { %2958 = vst.msk [vmem:[#allocation2 + $0x4] sm:$0xf] %vm2949_vm4, %v2937_v32  ;;  %v2960_v20 = vcombine.high %v2937_v32, %v2937_v32  ;;  %v8948_v18 = vadd.f32 %v8947_v22, %v8946_v42  ;;  %2953 = vrot.lane.b32.xlu0 %v2952_v35, %s10513_s1  ;;  %v2803_v55 = vadd.f32 %v8945_v37, %v2715_v19 }
 0x413   :  { %v2891_v58 = vadd.f32 %v11941_v36, %v2803_v55  ;;  %2961 = vrot.lane.b32.xlu1 %v2960_v20, %s10513_s1  ;;  %v2806_v39 = vadd.f32 %v8948_v18, %v2718_v21 }
 0x415   :  { %v2938_v60 = vmax.f32 %v2891_v58, 0.0  ;;  %v2894_v54 = vadd.f32 %v11949_v48, %v2806_v39  ;;  %v8949_v43 = vpop.f32.mrb[176].mxu0  ;;  %2241 = vrot.lane.b32.xlu0 %v1995_v50, %s10513_s1 }
 0x416   :  { %v8950_v3 = vpop.f32.mrb[177].mxu0 }
 0x417   :  { %2965 = vst.msk [vmem:[#allocation2 + $0x8] sm:$0xf] %vm2949_vm4, %v2938_v60  ;;  %v2967_v36 = vcombine.high %v2938_v60, %v2938_v60  ;;  %v2939_v40 = vmax.f32 %v2894_v54, 0.0  ;;  %v8951_v6 = vadd.f32 %v8950_v3, %v8949_v43  ;;  %v8952_v46 = vpop.f32.mrb[178].mxu0  ;;  %2220 = vrot.lane.b32.xlu1 %v1669_v27, %s10513_s1 }
 0x418   :  { %v8953_v4 = vpop.f32.mrb[179].mxu0 }
 0x419   :  { %2972 = vst.msk [vmem:[#allocation2 + $0xc] sm:$0xf] %vm2949_vm4, %v2939_v40  ;;  %v2974_v48 = vcombine.high %v2939_v40, %v2939_v40  ;;  %v8954_v16 = vadd.f32 %v8953_v4, %v8952_v46  ;;  %2968 = vrot.lane.b32.xlu0 %v2967_v36, %s10513_s1  ;;  %v2811_v5 = vadd.f32 %v8951_v6, %v2723_v12 }
 0x41b   :  { %v2899_v14 = vadd.f32 %v11975_v30, %v2811_v5  ;;  %2975 = vrot.lane.b32.xlu1 %v2974_v48, %s10513_s1  ;;  %v2814_v59 = vadd.f32 %v8954_v16, %v2726_v45  ;;  %v2734_v30 = vadd.f32 %v11826_v1, %v11893_v24  ;;  %v2739_v1 = vadd.f32 %v11828_v23, %v11893_v24 }
 0x41d   :  { %v2940_v25 = vmax.f32 %v2899_v14, 0.0  ;;  %v2902_v2 = vadd.f32 %v11980_v15, %v2814_v59  ;;  %v8955_v52 = vpop.f32.mrb[180].mxu0  ;;  %v1832_v59 = vpack.c.bf16 %v11729_v47, %v11729_v47 }
 0x41e   :  { %v8956_v61 = vpop.f32.mrb[181].mxu0 }
 0x41f   :  { %2979 = vst.msk [vmem:[#allocation2 + $0x10] sm:$0xf] %vm2949_vm4, %v2940_v25  ;;  %v2981_v63 = vcombine.high %v2940_v25, %v2940_v25  ;;  %v2941_v9 = vmax.f32 %v2902_v2, 0.0  ;;  %v8957_v26 = vadd.f32 %v8956_v61, %v8955_v52  ;;  %v8958_v33 = vpop.f32.mrb[182].mxu0  ;;  %v1506_v2 = vpack.c.bf16 %v11626_v34, %v11626_v34  ;;  %v9861_v34 = vld [vmem:[%s13694_s30 + $0x200] ss:$16 sps:$4 sm:$0xff]  }
 0x420   :  { %v8959_v28 = vpop.f32.mrb[183].mxu0 }
 0x421   :  { %2986 = vst.msk [vmem:[#allocation2 + $0x14] sm:$0xf] %vm2949_vm4, %v2941_v9  ;;  %v2988_v0 = vcombine.high %v2941_v9, %v2941_v9  ;;  %v8960_v31 = vadd.f32 %v8959_v28, %v8958_v33  ;;  %2982 = vrot.lane.b32.xlu0 %v2981_v63, %s10513_s1  ;;  %v2819_v15 = vadd.f32 %v8957_v26, %v2731_v49  ;;  %v9864_v28 = vld [vmem:[%s13694_s30 + $0x208] ss:$16 sps:$4 sm:$0xff]  }
 0x423   :  { %v2907_v38 = vadd.f32 %v12003_v13, %v2819_v15  ;;  %2989 = vrot.lane.b32.xlu1 %v2988_v0, %s10513_s1  ;;  %v2822_v10 = vadd.f32 %v8960_v31, %v2734_v30  ;;  %v2742_v13 = vadd.f32 %v11830_v51, %v11893_v24  ;;  %v2747_v51 = vadd.f32 %v11856_v57, %v11893_v24  ;;  %v9869_v0 = vld [vmem:[%s13694_s30 + $0x224] ss:$16 sps:$4 sm:$0xff]   ;;  %v9872_v31 = vld [vmem:[%s13694_s30 + $0x22c] ss:$16 sps:$4 sm:$0xff]  }
 0x425   :  { %v2942_v19 = vmax.f32 %v2907_v38, 0.0  ;;  %v2910_v35 = vadd.f32 %v12008_v44, %v2822_v10  ;;  %v8961_v32 = vpop.f32.mrb[184].mxu0  ;;  %v9867_v38 = vld [vmem:[%s13694_s30 + $0x220] ss:$16 sps:$4 sm:$0xff]   ;;  %v9870_v10 = vld [vmem:[%s13694_s30 + $0x228] ss:$16 sps:$4 sm:$0xff]  }
 0x426   :  { %v8962_v37 = vpop.f32.mrb[185].mxu0 }
 0x427   :  { %2993 = vst.msk [vmem:[#allocation2 + $0x18] sm:$0xf] %vm2949_vm4, %v2942_v19  ;;  %v2995_v42 = vcombine.high %v2942_v19, %v2942_v19  ;;  %v2943_v21 = vmax.f32 %v2910_v35, 0.0  ;;  %v8963_v22 = vadd.f32 %v8962_v37, %v8961_v32  ;;  %v8964_v20 = vpop.f32.mrb[186].mxu0  ;;  %v9875_v35 = vld [vmem:[%s13694_s30 + $0x244] ss:$16 sps:$4 sm:$0xff]  }
 0x428   :  { %v8965_v18 = vpop.f32.mrb[187].mxu0  ;;  %v9879_v37 = vld [vmem:[%s13694_s30 + $0x24c] ss:$16 sps:$4 sm:$0xff]  }
 0x429   :  { %3000 = vst.msk [vmem:[#allocation2 + $0x1c] sm:$0xf] %vm2949_vm4, %v2943_v21  ;;  %v3002_v55 = vcombine.high %v2943_v21, %v2943_v21  ;;  %v8966_v53 = vadd.f32 %v8965_v18, %v8964_v20  ;;  %2996 = vrot.lane.b32.xlu0 %v2995_v42, %s10513_s1  ;;  %v2827_v44 = vadd.f32 %v8963_v22, %v2739_v1  ;;  %v9873_v42 = vld [vmem:[%s13694_s30 + $0x240] ss:$16 sps:$4 sm:$0xff]   ;;  %v9877_v22 = vld [vmem:[%s13694_s30 + $0x248] ss:$16 sps:$4 sm:$0xff]  }
 0x42a   :  { %v9882_v20 = vld [vmem:[%s13694_s30 + $0x264] ss:$16 sps:$4 sm:$0xff]   ;;  %v9885_v18 = vld [vmem:[%s13694_s30 + $0x26c] ss:$16 sps:$4 sm:$0xff]  }
 0x42b   :  { %v2915_v7 = vadd.f32 %v12016_v56, %v2827_v44  ;;  %3003 = vrot.lane.b32.xlu1 %v3002_v55, %s10513_s1  ;;  %v2830_v23 = vadd.f32 %v8966_v53, %v2742_v13  ;;  %v2750_v56 = vadd.f32 %v11867_v17, %v11893_v24  ;;  %v9880_v55 = vld [vmem:[%s13694_s30 + $0x260] ss:$16 sps:$4 sm:$0xff]   ;;  %v9883_v53 = vld [vmem:[%s13694_s30 + $0x268] ss:$16 sps:$4 sm:$0xff]  }
 0x42d   :  { %v2944_v50 = vmax.f32 %v2915_v7, 0.0  ;;  %v2918_v58 = vadd.f32 %v12018_v8, %v2830_v23  ;;  %v8967_v39 = vpop.f32.mrb[188].mxu0  ;;  %v9888_v7 = vld [vmem:[%s13694_s30 + $0x284] ss:$16 sps:$4 sm:$0xff]   ;;  %v9891_v23 = vld [vmem:[%s13694_s30 + $0x28c] ss:$16 sps:$4 sm:$0xff]  }
 0x42e   :  { %v8968_v27 = vpop.f32.mrb[189].mxu0 }
 0x42f   :  { %3007 = vst.msk [vmem:[#allocation2 + $0x20] sm:$0xf] %vm2949_vm4, %v2944_v50  ;;  %v3009_v60 = vcombine.high %v2944_v50, %v2944_v50  ;;  %v2945_v54 = vmax.f32 %v2918_v58, 0.0  ;;  %v8969_v43 = vadd.f32 %v8968_v27, %v8967_v39  ;;  %v8970_v3 = vpop.f32.mrb[190].mxu0  ;;  %v9886_v50 = vld [vmem:[%s13694_s30 + $0x280] ss:$16 sps:$4 sm:$0xff]  }
 0x430   :  { %v8971_v12 = vpop.f32.mrb[191].mxu0  ;;  %v9889_v58 = vld [vmem:[%s13694_s30 + $0x288] ss:$16 sps:$4 sm:$0xff]   ;;  %v9894_v39 = vld [vmem:[%s13694_s30 + $0x2a4] ss:$16 sps:$4 sm:$0xff]  }
 0x431   :  { %3014 = vst.msk [vmem:[#allocation2 + $0x24] sm:$0xf] %vm2949_vm4, %v2945_v54  ;;  %v3016_v36 = vcombine.high %v2945_v54, %v2945_v54  ;;  %v8972_v40 = vadd.f32 %v8971_v12, %v8970_v3  ;;  %3010 = vrot.lane.b32.xlu0 %v3009_v60, %s10513_s1  ;;  %v2835_v8 = vadd.f32 %v8969_v43, %v2747_v51  ;;  %v9897_v27 = vld [vmem:[%s13694_s30 + $0x2ac] ss:$16 sps:$4 sm:$0xff]   ;;  %v9892_v60 = vld [vmem:[%s13694_s30 + $0x2a0] ss:$16 sps:$4 sm:$0xff]  }
 0x432   :  { %v9895_v54 = vld [vmem:[%s13694_s30 + $0x2a8] ss:$16 sps:$4 sm:$0xff]   ;;  %v9900_v3 = vld [vmem:[%s13694_s30 + $0x2c4] ss:$16 sps:$4 sm:$0xff]   ;;  %v9903_v12 = vld [vmem:[%s13694_s30 + $0x2cc] ss:$16 sps:$4 sm:$0xff]  }
 0x433   :  { %v2923_v6 = vadd.f32 %v12020_v29, %v2835_v8  ;;  %3017 = vrot.lane.b32.xlu1 %v3016_v36, %s10513_s1  ;;  %v2838_v57 = vadd.f32 %v8972_v40, %v2750_v56  ;;  %v9898_v56 = vld [vmem:[%s13694_s30 + $0x2c0] ss:$16 sps:$4 sm:$0xff]   ;;  %v9901_v36 = vld [vmem:[%s13694_s30 + $0x2c8] ss:$16 sps:$4 sm:$0xff]   ;;  %v9906_v40 = vld [vmem:[%s13694_s30 + $0x2e4] ss:$16 sps:$4 sm:$0xff]  }
 0x434   :  { %v9909_v8 = vld [vmem:[%s13694_s30 + $0x2ec] ss:$16 sps:$4 sm:$0xff]  }
 0x435   :  { %v2946_v46 = vmax.f32 %v2923_v6, 0.0  ;;  %v2926_v4 = vadd.f32 %v12022_v11, %v2838_v57  ;;  %v9904_v57 = vld [vmem:[%s13694_s30 + $0x2e0] ss:$16 sps:$4 sm:$0xff]  }
 0x436   :  { %v12132_v24 = vpop.f32.mrb[192].mxu1 }
 0x437   :  { %3021 = vst.msk [vmem:[#allocation2 + $0x28] sm:$0xf] %vm2949_vm4, %v2946_v46  ;;  %v3023_v45 = vcombine.high %v2946_v46, %v2946_v46  ;;  %v2947_v48 = vmax.f32 %v2926_v4, 0.0  ;;  %v9534_v29 = vpop.f32.mrb[193].mxu1  ;;  %v9907_v46 = vld [vmem:[%s13694_s30 + $0x2e8] ss:$16 sps:$4 sm:$0xff]  }
 0x438   :  { %v2933_v16 = vpop.f32.mrb[194].mxu1  ;;  %v9913_v29 = vld [vmem:[%s13694_s30 + $0x308] ss:$16 sps:$4 sm:$0xff]  }
 0x439   :  { %3028 = vst.msk [vmem:[#allocation2 + $0x2c] sm:$0xf] %vm2949_vm4, %v2947_v48  ;;  %v3030_v17 = vcombine.high %v2947_v48, %v2947_v48  ;;  %3024 = vrot.lane.b32.xlu0 %v3023_v45, %s10513_s1  ;;  %v9535_v5 = vpop.f32.mrb[195].mxu1  ;;  %v9912_v45 = vld [vmem:[%s13694_s30 + $0x304] ss:$16 sps:$4 sm:$0xff]  }
 0x43a   :  { %v9915_v48 = vld [vmem:[%s13694_s30 + $0x30c] ss:$16 sps:$4 sm:$0xff]   ;;  %v9918_v16 = vld [vmem:[%s13694_s30 + $0x324] ss:$16 sps:$4 sm:$0xff]  }
 0x43b   :  { %3031 = vrot.lane.b32.xlu1 %v3030_v17, %s10513_s1  ;;  %v9910_v17 = vld [vmem:[%s13694_s30 + $0x300] ss:$16 sps:$4 sm:$0xff]   ;;  %v9921_v5 = vld [vmem:[%s13694_s30 + $0x32c] ss:$16 sps:$4 sm:$0xff]  }
 0x483   :  { %v2954_v14 = vpop.permute.xlu0 %2953 }
 0x484   :  { %2957 = vst.msk [vmem:[#allocation2] sm:$0xf] %vm2956_vm5, %v2954_v14  ;;  %v9916_v14 = vld [vmem:[%s13694_s30 + $0x320] ss:$16 sps:$4 sm:$0xff]  }
 0x485   :  { %v2962_v11 = vpop.permute.xlu1 %2961 }
 0x486   :  { %2964 = vst.msk [vmem:[#allocation2 + $0x4] sm:$0xf] %vm2956_vm5, %v2962_v11  ;;  %v9919_v11 = vld [vmem:[%s13694_s30 + $0x328] ss:$16 sps:$4 sm:$0xff]  }
 0x487   :  { %v2242_v25 = vpop.permute.xlu0 %2241 }
 0x488   :  { %v2354_v52 = vsel %vm2243_vm3, %v1832_v59, %v2242_v25  ;;  %v9924_v59 = vld [vmem:[%s13694_s30 + $0x344] ss:$16 sps:$4 sm:$0xff]   ;;  %v9927_v25 = vld [vmem:[%s13694_s30 + $0x34c] ss:$16 sps:$4 sm:$0xff]  }
 0x489   :  { %v2221_v61 = vpop.permute.xlu1 %2220  ;;  %2840 = vmatprep.mubr.bf16.mxu0 %v2354_v52  ;;  %v9925_v52 = vld [vmem:[%s13694_s30 + $0x348] ss:$16 sps:$4 sm:$0xff]  }
 0x48a   :  { %v2326_v49 = vsel %vm2243_vm3, %v1506_v2, %v2221_v61  ;;  %v9922_v2 = vld [vmem:[%s13694_s30 + $0x340] ss:$16 sps:$4 sm:$0xff]   ;;  %v9930_v61 = vld [vmem:[%s13694_s30 + $0x364] ss:$16 sps:$4 sm:$0xff]  }
 0x48b   :  { %2841 = vmatmul.mubr.bf16.gmra.mrb[192].mxu0 %v2326_v49  ;;  %v2969_v63 = vpop.permute.xlu0 %2968  ;;  %v9933_v49 = vld [vmem:[%s13694_s30 + $0x36c] ss:$16 sps:$4 sm:$0xff]  }
 0x48c   :  { %2971 = vst.msk [vmem:[#allocation2 + $0x8] sm:$0xf] %vm2956_vm5, %v2969_v63  ;;  %v9928_v63 = vld [vmem:[%s13694_s30 + $0x360] ss:$16 sps:$4 sm:$0xff]  }
 0x48d   :  { %v2976_v9 = vpop.permute.xlu1 %2975  ;;  %v3036_v26 = vld [vmem:[#allocation2] sm:$0xff] }
 0x48e   :  { %2978 = vst.msk [vmem:[#allocation2 + $0xc] sm:$0xf] %vm2956_vm5, %v2976_v9  ;;  %v3049_v47 = vcombine.high %v3036_v26, %v3036_v26  ;;  %v3061_v30 = vpack.c.bf16 %v3036_v26, %v3036_v26  ;;  %v9931_v9 = vld [vmem:[%s13694_s30 + $0x368] ss:$16 sps:$4 sm:$0xff]   ;;  %v9936_v26 = vld [vmem:[%s13694_s30 + $0x384] ss:$16 sps:$4 sm:$0xff]  }
 0x490   :  { %v3062_v33 = vpack.c.bf16 %v3049_v47, %v3049_v47  ;;  %v9939_v47 = vld [vmem:[%s13694_s30 + $0x38c] ss:$16 sps:$4 sm:$0xff]  }
 0x492   :  { %5531 = vmatprep.mubr.bf16.mxu0 %v3062_v33  ;;  %5818 = vmatprep.mubr.bf16.mxu1 %v3062_v33  ;;  %v9934_v33 = vld [vmem:[%s13694_s30 + $0x380] ss:$16 sps:$4 sm:$0xff]  }
 0x493   :  { %v2983_v15 = vpop.permute.xlu0 %2982  ;;  %5532 = vmatmul.mubr.bf16.vlgmr.msra.gmra.mrb[196].mxu0 %v3061_v30  ;;  %5819 = vmatmul.mubr.bf16.vlgmr.msra.gmra.mrb[196].mxu1 %v3061_v30  ;;  %v9945_v30 = vld [vmem:[%s13694_s30 + $0x3ac] ss:$16 sps:$4 sm:$0xff]  }
 0x494   :  { %2985 = vst.msk [vmem:[#allocation2 + $0x10] sm:$0xf] %vm2956_vm5, %v2983_v15  ;;  %5541 = vmatpush1.bf16.msra.mxu0 %v9861_v34  ;;  %5828 = vmatpush1.bf16.msra.mxu1 %v9864_v28  ;;  %v9937_v34 = vld [vmem:[%s13694_s30 + $0x388] ss:$16 sps:$4 sm:$0xff]   ;;  %v9942_v28 = vld [vmem:[%s13694_s30 + $0x3a4] ss:$16 sps:$4 sm:$0xff]  }
 0x495   :  { %v2990_v19 = vpop.permute.xlu1 %2989  ;;  %5542 = vmatprep.subr.bf16.mxu0 %v9869_v0  ;;  %5829 = vmatprep.subr.bf16.mxu1 %v9872_v31  ;;  %v12166_v32 = vld [vmem:[#allocation2 + $0x8] sm:$0xff]  ;;  %v9940_v0 = vld [vmem:[%s13694_s30 + $0x3a0] ss:$16 sps:$4 sm:$0xff]   ;;  %v9948_v15 = vld [vmem:[%s13694_s30 + $0x3c4] ss:$16 sps:$4 sm:$0xff]  }
 0x496   :  { %2992 = vst.msk [vmem:[#allocation2 + $0x14] sm:$0xf] %vm2956_vm5, %v2990_v19  ;;  %v3050_v1 = vcombine.high %v12166_v32, %v12166_v32  ;;  %v9943_v31 = vld [vmem:[%s13694_s30 + $0x3a8] ss:$16 sps:$4 sm:$0xff]  }
 0x497   :  { %v9949_v19 = vld [vmem:[%s13694_s30 + $0x3c8] ss:$16 sps:$4 sm:$0xff]  }
 0x498   :  { %5543 = vmatpush1.bf16.msra.mxu0 %v9867_v38  ;;  %5830 = vmatpush1.bf16.msra.mxu1 %v9870_v10  ;;  %v3064_v21 = vpack.c.bf16 %v3050_v1, %v3050_v1  ;;  %v9951_v38 = vld [vmem:[%s13694_s30 + $0x3cc] ss:$16 sps:$4 sm:$0xff]   ;;  %v9946_v10 = vld [vmem:[%s13694_s30 + $0x3c0] ss:$16 sps:$4 sm:$0xff]  }
 0x499   :  { %5544 = vmatprep.subr.bf16.mxu0 %v9875_v35  ;;  %5831 = vmatprep.subr.bf16.mxu1 %v9879_v37  ;;  %v9954_v35 = vld [vmem:[%s13694_s30 + $0x3e4] ss:$16 sps:$4 sm:$0xff]   ;;  %v9957_v37 = vld [vmem:[%s13694_s30 + $0x3ec] ss:$16 sps:$4 sm:$0xff]  }
 0x49a   :  { %5572 = vmatprep.mubr.bf16.mxu0 %v3064_v21  ;;  %5859 = vmatprep.mubr.bf16.mxu1 %v3064_v21  ;;  %v9955_v21 = vld [vmem:[%s13694_s30 + $0x3e8] ss:$16 sps:$4 sm:$0xff]  }
 0x49b   :  { %v2997_v13 = vpop.permute.xlu0 %2996 }
 0x49c   :  { %2999 = vst.msk [vmem:[#allocation2 + $0x18] sm:$0xf] %vm2956_vm5, %v2997_v13  ;;  %5545 = vmatpush1.bf16.msra.mxu0 %v9873_v42  ;;  %5832 = vmatpush1.bf16.msra.mxu1 %v9877_v22  ;;  %v9952_v42 = vld [vmem:[%s13694_s30 + $0x3e0] ss:$16 sps:$4 sm:$0xff]   ;;  %v9960_v22 = vld [vmem:[%s13694_s30 + $0x404] ss:$16 sps:$4 sm:$0xff]  }
 0x49d   :  { %v3004_v44 = vpop.permute.xlu1 %3003  ;;  %5546 = vmatprep.subr.bf16.mxu0 %v9882_v20  ;;  %5833 = vmatprep.subr.bf16.mxu1 %v9885_v18  ;;  %v12336_v1 = vld [vmem:[#allocation2 + $0x10] sm:$0xff]  ;;  %v9963_v20 = vld [vmem:[%s13694_s30 + $0x40c] ss:$16 sps:$4 sm:$0xff]  }
 0x49e   :  { %3006 = vst.msk [vmem:[#allocation2 + $0x1c] sm:$0xf] %vm2956_vm5, %v3004_v44  ;;  %v3051_v18 = vcombine.high %v12336_v1, %v12336_v1  ;;  %v9958_v13 = vld [vmem:[%s13694_s30 + $0x400] ss:$16 sps:$4 sm:$0xff]  }
 0x4a0   :  { %5547 = vmatpush1.bf16.msra.mxu0 %v9880_v55  ;;  %5834 = vmatpush1.bf16.msra.mxu1 %v9883_v53  ;;  %v3063_v55 = vpack.c.bf16 %v12166_v32, %v12166_v32  ;;  %v9961_v53 = vld [vmem:[%s13694_s30 + $0x408] ss:$16 sps:$4 sm:$0xff]   ;;  %v3066_v44 = vpack.c.bf16 %v3051_v18, %v3051_v18  ;;  %v9965_v32 = vld [vmem:[%s13694_s30 + $0x420] ss:$16 sps:$4 sm:$0xff]  }
 0x4a1   :  { %5548 = vmatprep.subr.bf16.mxu0 %v9888_v7  ;;  %5835 = vmatprep.subr.bf16.mxu1 %v9891_v23  ;;  %v9967_v7 = vld [vmem:[%s13694_s30 + $0x424] ss:$16 sps:$4 sm:$0xff]   ;;  %v9970_v23 = vld [vmem:[%s13694_s30 + $0x42c] ss:$16 sps:$4 sm:$0xff]   ;;  %v10046_v18 = vld [vmem:[%s13694_s30 + $0x5c8] ss:$16 sps:$4 sm:$0xff]  }
 0x4a3   :  { %v3011_v51 = vpop.permute.xlu0 %3010 }
 0x4a4   :  { %3013 = vst.msk [vmem:[#allocation2 + $0x20] sm:$0xf] %vm2956_vm5, %v3011_v51  ;;  %5549 = vmatpush1.bf16.msra.mxu0 %v9886_v50  ;;  %5836 = vmatpush1.bf16.msra.mxu1 %v9889_v58  ;;  %v9968_v50 = vld [vmem:[%s13694_s30 + $0x428] ss:$16 sps:$4 sm:$0xff]   ;;  %v9973_v58 = vld [vmem:[%s13694_s30 + $0x444] ss:$16 sps:$4 sm:$0xff]  }
 0x4a5   :  { %v3018_v43 = vpop.permute.xlu1 %3017  ;;  %5550 = vmatprep.subr.bf16.mxu0 %v9894_v39  ;;  %5837 = vmatprep.subr.bf16.mxu1 %v9897_v27  ;;  %v9976_v39 = vld [vmem:[%s13694_s30 + $0x44c] ss:$16 sps:$4 sm:$0xff]   ;;  %v9971_v27 = vld [vmem:[%s13694_s30 + $0x440] ss:$16 sps:$4 sm:$0xff]   ;;  %v9974_v51 = vld [vmem:[%s13694_s30 + $0x448] ss:$16 sps:$4 sm:$0xff]  }
 0x4a6   :  { %3020 = vst.msk [vmem:[#allocation2 + $0x24] sm:$0xf] %vm2956_vm5, %v3018_v43  ;;  %v9977_v43 = vld [vmem:[%s13694_s30 + $0x460] ss:$16 sps:$4 sm:$0xff]  }
 0x4a8   :  { %5551 = vmatpush1.bf16.msra.mxu0 %v9892_v60  ;;  %5838 = vmatpush1.bf16.msra.mxu1 %v9895_v54  ;;  %v9979_v60 = vld [vmem:[%s13694_s30 + $0x464] ss:$16 sps:$4 sm:$0xff]   ;;  %v9982_v54 = vld [vmem:[%s13694_s30 + $0x46c] ss:$16 sps:$4 sm:$0xff]  }
 0x4a9   :  { %5552 = vmatprep.subr.bf16.mxu0 %v9900_v3  ;;  %5839 = vmatprep.subr.bf16.mxu1 %v9903_v12  ;;  %v9980_v3 = vld [vmem:[%s13694_s30 + $0x468] ss:$16 sps:$4 sm:$0xff]   ;;  %v9985_v12 = vld [vmem:[%s13694_s30 + $0x484] ss:$16 sps:$4 sm:$0xff]  }
 0x4ab   :  { %v3025_v6 = vpop.permute.xlu0 %3024 }
 0x4ac   :  { %3027 = vst.msk [vmem:[#allocation2 + $0x28] sm:$0xf] %vm2956_vm5, %v3025_v6  ;;  %5553 = vmatpush1.bf16.msra.mxu0 %v9898_v56  ;;  %5840 = vmatpush1.bf16.msra.mxu1 %v9901_v36  ;;  %v9988_v56 = vld [vmem:[%s13694_s30 + $0x48c] ss:$16 sps:$4 sm:$0xff]   ;;  %v9983_v36 = vld [vmem:[%s13694_s30 + $0x480] ss:$16 sps:$4 sm:$0xff]  }
 0x4ad   :  { %v3032_v4 = vpop.permute.xlu1 %3031  ;;  %5554 = vmatprep.subr.bf16.mxu0 %v9906_v40  ;;  %5841 = vmatprep.subr.bf16.mxu1 %v9909_v8  ;;  %v9986_v40 = vld [vmem:[%s13694_s30 + $0x488] ss:$16 sps:$4 sm:$0xff]   ;;  %v9991_v8 = vld [vmem:[%s13694_s30 + $0x4a4] ss:$16 sps:$4 sm:$0xff]   ;;  %v9994_v6 = vld [vmem:[%s13694_s30 + $0x4ac] ss:$16 sps:$4 sm:$0xff]  }
 0x4ae   :  { %3034 = vst.msk [vmem:[#allocation2 + $0x2c] sm:$0xf] %vm2956_vm5, %v3032_v4  ;;  %v9997_v4 = vld [vmem:[%s13694_s30 + $0x4c4] ss:$16 sps:$4 sm:$0xff]  }
 0x4b0   :  { %5555 = vmatpush1.bf16.msra.mxu0 %v9904_v57  ;;  %5842 = vmatpush1.bf16.msra.mxu1 %v9907_v46  ;;  %v9989_v57 = vld [vmem:[%s13694_s30 + $0x4a0] ss:$16 sps:$4 sm:$0xff]   ;;  %v9992_v46 = vld [vmem:[%s13694_s30 + $0x4a8] ss:$16 sps:$4 sm:$0xff]  }
 0x4b1   :  { %5556 = vmatprep.subr.bf16.mxu0 %v9912_v45  ;;  %5843 = vmatprep.subr.bf16.mxu1 %v9915_v48  ;;  %v10000_v45 = vld [vmem:[%s13694_s30 + $0x4cc] ss:$16 sps:$4 sm:$0xff]   ;;  %v9995_v48 = vld [vmem:[%s13694_s30 + $0x4c0] ss:$16 sps:$4 sm:$0xff]  }
 0x4b4   :  { %5557 = vmatpush1.bf16.msra.mxu0 %v9910_v17  ;;  %5844 = vmatpush1.bf16.msra.mxu1 %v9913_v29  ;;  %v9998_v17 = vld [vmem:[%s13694_s30 + $0x4c8] ss:$16 sps:$4 sm:$0xff]   ;;  %v10003_v29 = vld [vmem:[%s13694_s30 + $0x4e4] ss:$16 sps:$4 sm:$0xff]  }
 0x4b5   :  { %5558 = vmatprep.subr.bf16.mxu0 %v9918_v16  ;;  %5845 = vmatprep.subr.bf16.mxu1 %v9921_v5  ;;  %v10006_v16 = vld [vmem:[%s13694_s30 + $0x4ec] ss:$16 sps:$4 sm:$0xff]   ;;  %v10001_v5 = vld [vmem:[%s13694_s30 + $0x4e0] ss:$16 sps:$4 sm:$0xff]  }
 0x4b8   :  { %5559 = vmatpush1.bf16.msra.mxu0 %v9916_v14  ;;  %5846 = vmatpush1.bf16.msra.mxu1 %v9919_v11  ;;  %v10004_v14 = vld [vmem:[%s13694_s30 + $0x4e8] ss:$16 sps:$4 sm:$0xff]   ;;  %v10009_v11 = vld [vmem:[%s13694_s30 + $0x504] ss:$16 sps:$4 sm:$0xff]  }
 0x4b9   :  { %5560 = vmatprep.subr.bf16.mxu0 %v9924_v59  ;;  %5847 = vmatprep.subr.bf16.mxu1 %v9927_v25  ;;  %v10012_v59 = vld [vmem:[%s13694_s30 + $0x50c] ss:$16 sps:$4 sm:$0xff]   ;;  %v10007_v25 = vld [vmem:[%s13694_s30 + $0x500] ss:$16 sps:$4 sm:$0xff]  }
 0x4bc   :  { %5561 = vmatpush1.bf16.msra.mxu0 %v9922_v2  ;;  %5848 = vmatpush1.bf16.msra.mxu1 %v9925_v52  ;;  %v10010_v2 = vld [vmem:[%s13694_s30 + $0x508] ss:$16 sps:$4 sm:$0xff]   ;;  %v10015_v52 = vld [vmem:[%s13694_s30 + $0x524] ss:$16 sps:$4 sm:$0xff]  }
 0x4bd   :  { %5562 = vmatprep.subr.bf16.mxu0 %v9930_v61  ;;  %5849 = vmatprep.subr.bf16.mxu1 %v9933_v49  ;;  %v10018_v61 = vld [vmem:[%s13694_s30 + $0x52c] ss:$16 sps:$4 sm:$0xff]   ;;  %v10013_v49 = vld [vmem:[%s13694_s30 + $0x520] ss:$16 sps:$4 sm:$0xff]  }
 0x4c0   :  { %5563 = vmatpush1.bf16.msra.mxu0 %v9928_v63  ;;  %5850 = vmatpush1.bf16.msra.mxu1 %v9931_v9  ;;  %v10016_v63 = vld [vmem:[%s13694_s30 + $0x528] ss:$16 sps:$4 sm:$0xff]   ;;  %v10021_v9 = vld [vmem:[%s13694_s30 + $0x544] ss:$16 sps:$4 sm:$0xff]  }
 0x4c1   :  { %5564 = vmatprep.subr.bf16.mxu0 %v9936_v26  ;;  %5851 = vmatprep.subr.bf16.mxu1 %v9939_v47  ;;  %v10024_v26 = vld [vmem:[%s13694_s30 + $0x54c] ss:$16 sps:$4 sm:$0xff]   ;;  %v10019_v47 = vld [vmem:[%s13694_s30 + $0x540] ss:$16 sps:$4 sm:$0xff]  }
 0x4c4   :  { %5565 = vmatpush1.bf16.msra.mxu0 %v9934_v33  ;;  %5852 = vmatpush1.bf16.msra.mxu1 %v9937_v34  ;;  %v10022_v33 = vld [vmem:[%s13694_s30 + $0x548] ss:$16 sps:$4 sm:$0xff]   ;;  %v10027_v34 = vld [vmem:[%s13694_s30 + $0x564] ss:$16 sps:$4 sm:$0xff]  }
 0x4c5   :  { %5566 = vmatprep.subr.bf16.mxu0 %v9942_v28  ;;  %5853 = vmatprep.subr.bf16.mxu1 %v9945_v30  ;;  %v10030_v28 = vld [vmem:[%s13694_s30 + $0x56c] ss:$16 sps:$4 sm:$0xff]   ;;  %v10025_v30 = vld [vmem:[%s13694_s30 + $0x560] ss:$16 sps:$4 sm:$0xff]  }
 0x4c8   :  { %5567 = vmatpush1.bf16.msra.mxu0 %v9940_v0  ;;  %5854 = vmatpush1.bf16.msra.mxu1 %v9943_v31  ;;  %v10028_v0 = vld [vmem:[%s13694_s30 + $0x568] ss:$16 sps:$4 sm:$0xff]   ;;  %v10033_v31 = vld [vmem:[%s13694_s30 + $0x584] ss:$16 sps:$4 sm:$0xff]  }
 0x4c9   :  { %5568 = vmatprep.subr.bf16.mxu0 %v9948_v15  ;;  %5855 = vmatprep.subr.bf16.mxu1 %v9951_v38  ;;  %v10036_v15 = vld [vmem:[%s13694_s30 + $0x58c] ss:$16 sps:$4 sm:$0xff]   ;;  %v10031_v38 = vld [vmem:[%s13694_s30 + $0x580] ss:$16 sps:$4 sm:$0xff]  }
 0x4cc   :  { %5569 = vmatpush1.bf16.msra.mxu0 %v9946_v10  ;;  %5856 = vmatpush1.bf16.msra.mxu1 %v9949_v19  ;;  %v10034_v10 = vld [vmem:[%s13694_s30 + $0x588] ss:$16 sps:$4 sm:$0xff]   ;;  %v10039_v19 = vld [vmem:[%s13694_s30 + $0x5a4] ss:$16 sps:$4 sm:$0xff]  }
 0x4cd   :  { %5570 = vmatprep.subr.bf16.mxu0 %v9954_v35  ;;  %5857 = vmatprep.subr.bf16.mxu1 %v9957_v37  ;;  %v10042_v35 = vld [vmem:[%s13694_s30 + $0x5ac] ss:$16 sps:$4 sm:$0xff]   ;;  %v10037_v37 = vld [vmem:[%s13694_s30 + $0x5a0] ss:$16 sps:$4 sm:$0xff]  }
 0x4d0   :  { %5571 = vmatpush1.bf16.msra.mxu0 %v9952_v42  ;;  %5858 = vmatpush1.bf16.msra.mxu1 %v9955_v21  ;;  %v10040_v42 = vld [vmem:[%s13694_s30 + $0x5a8] ss:$16 sps:$4 sm:$0xff]   ;;  %v10045_v21 = vld [vmem:[%s13694_s30 + $0x5c4] ss:$16 sps:$4 sm:$0xff]  }
 0x4d1   :  { %5581 = vmatprep.subr.bf16.mxu0 %v9960_v22  ;;  %5868 = vmatprep.subr.bf16.mxu1 %v9963_v20  ;;  %v10048_v22 = vld [vmem:[%s13694_s30 + $0x5cc] ss:$16 sps:$4 sm:$0xff]   ;;  %v10043_v20 = vld [vmem:[%s13694_s30 + $0x5c0] ss:$16 sps:$4 sm:$0xff]  }
 0x4d3   :  { %5573 = vmatmul.mubr.bf16.vlgmr.msra.gmra.mrb[196].mxu0 %v3063_v55  ;;  %5860 = vmatmul.mubr.bf16.vlgmr.msra.gmra.mrb[196].mxu1 %v3063_v55  ;;  %v10054_v55 = vld [vmem:[%s13694_s30 + $0x5ec] ss:$16 sps:$4 sm:$0xff]  }
 0x4d4   :  { %5582 = vmatpush1.bf16.msra.mxu0 %v9958_v13  ;;  %5613 = vmatprep.mubr.bf16.mxu0 %v3066_v44  ;;  %v10051_v13 = vld [vmem:[%s13694_s30 + $0x5e4] ss:$16 sps:$4 sm:$0xff]  }
 0x4d5   :  { %5869 = vmatpush1.bf16.msra.mxu1 %v9961_v53  ;;  %5900 = vmatprep.mubr.bf16.mxu1 %v3066_v44  ;;  %v10049_v53 = vld [vmem:[%s13694_s30 + $0x5e0] ss:$16 sps:$4 sm:$0xff]   ;;  %v12537_v44 = vld [vmem:[#allocation2 + $0x18] sm:$0xff] }
 0x4d6   :  { %5583 = vmatprep.subr.bf16.mxu0 %v9967_v7  ;;  %5870 = vmatprep.subr.bf16.mxu1 %v9970_v23  ;;  %v10052_v7 = vld [vmem:[%s13694_s30 + $0x5e8] ss:$16 sps:$4 sm:$0xff]   ;;  %v10057_v23 = vld [vmem:[%s13694_s30 + $0x604] ss:$16 sps:$4 sm:$0xff]  }
 0x4d8   :  { %5584 = vmatpush1.bf16.msra.mxu0 %v9965_v32  ;;  %v10060_v32 = vld [vmem:[%s13694_s30 + $0x60c] ss:$16 sps:$4 sm:$0xff]  }
 0x4d9   :  { %5871 = vmatpush1.bf16.msra.mxu1 %v9968_v50  ;;  %5585 = vmatprep.subr.bf16.mxu0 %v9973_v58  ;;  %v3052_v50 = vcombine.high %v12537_v44, %v12537_v44  ;;  %v10055_v58 = vld [vmem:[%s13694_s30 + $0x600] ss:$16 sps:$4 sm:$0xff]  }
 0x4da   :  { %5872 = vmatprep.subr.bf16.mxu1 %v9976_v39  ;;  %v3065_v39 = vpack.c.bf16 %v12336_v1, %v12336_v1  ;;  %v10062_v1 = vld [vmem:[%s13694_s30 + $0x620] ss:$16 sps:$4 sm:$0xff]  }
 0x4dc   :  { %5586 = vmatpush1.bf16.msra.mxu0 %v9971_v27  ;;  %v10058_v27 = vld [vmem:[%s13694_s30 + $0x608] ss:$16 sps:$4 sm:$0xff]  }
 0x4dd   :  { %5873 = vmatpush1.bf16.msra.mxu1 %v9974_v51  ;;  %5587 = vmatprep.subr.bf16.mxu0 %v9979_v60  ;;  %v10064_v51 = vld [vmem:[%s13694_s30 + $0x624] ss:$16 sps:$4 sm:$0xff]   ;;  %v3068_v60 = vpack.c.bf16 %v3052_v50, %v3052_v50  ;;  %v10143_v50 = vld [vmem:[%s13694_s30 + $0x7c8] ss:$16 sps:$4 sm:$0xff]  }
 0x4de   :  { %5874 = vmatprep.subr.bf16.mxu1 %v9982_v54  ;;  %v10067_v54 = vld [vmem:[%s13694_s30 + $0x62c] ss:$16 sps:$4 sm:$0xff]  }
 0x4e0   :  { %5588 = vmatpush1.bf16.msra.mxu0 %v9977_v43  ;;  %v10065_v43 = vld [vmem:[%s13694_s30 + $0x628] ss:$16 sps:$4 sm:$0xff]  }
 0x4e1   :  { %5875 = vmatpush1.bf16.msra.mxu1 %v9980_v3  ;;  %5589 = vmatprep.subr.bf16.mxu0 %v9985_v12  ;;  %v10070_v3 = vld [vmem:[%s13694_s30 + $0x644] ss:$16 sps:$4 sm:$0xff]   ;;  %v10073_v12 = vld [vmem:[%s13694_s30 + $0x64c] ss:$16 sps:$4 sm:$0xff]  }
 0x4e2   :  { %5876 = vmatprep.subr.bf16.mxu1 %v9988_v56  ;;  %v10068_v56 = vld [vmem:[%s13694_s30 + $0x640] ss:$16 sps:$4 sm:$0xff]  }
 0x4e4   :  { %5590 = vmatpush1.bf16.msra.mxu0 %v9983_v36  ;;  %v10071_v36 = vld [vmem:[%s13694_s30 + $0x648] ss:$16 sps:$4 sm:$0xff]  }
 0x4e5   :  { %5877 = vmatpush1.bf16.msra.mxu1 %v9986_v40  ;;  %5591 = vmatprep.subr.bf16.mxu0 %v9991_v8  ;;  %v10076_v40 = vld [vmem:[%s13694_s30 + $0x664] ss:$16 sps:$4 sm:$0xff]   ;;  %v10079_v8 = vld [vmem:[%s13694_s30 + $0x66c] ss:$16 sps:$4 sm:$0xff]  }
 0x4e6   :  { %5878 = vmatprep.subr.bf16.mxu1 %v9994_v6  ;;  %v10074_v6 = vld [vmem:[%s13694_s30 + $0x660] ss:$16 sps:$4 sm:$0xff]  }
 0x4e8   :  { %5592 = vmatpush1.bf16.msra.mxu0 %v9989_v57  ;;  %v10077_v57 = vld [vmem:[%s13694_s30 + $0x668] ss:$16 sps:$4 sm:$0xff]  }
 0x4e9   :  { %5879 = vmatpush1.bf16.msra.mxu1 %v9992_v46  ;;  %5593 = vmatprep.subr.bf16.mxu0 %v9997_v4  ;;  %v10082_v46 = vld [vmem:[%s13694_s30 + $0x684] ss:$16 sps:$4 sm:$0xff]   ;;  %v10085_v4 = vld [vmem:[%s13694_s30 + $0x68c] ss:$16 sps:$4 sm:$0xff]  }
 0x4ea   :  { %5880 = vmatprep.subr.bf16.mxu1 %v10000_v45  ;;  %v10080_v45 = vld [vmem:[%s13694_s30 + $0x680] ss:$16 sps:$4 sm:$0xff]  }
 0x4ec   :  { %5594 = vmatpush1.bf16.msra.mxu0 %v9995_v48  ;;  %v10083_v48 = vld [vmem:[%s13694_s30 + $0x688] ss:$16 sps:$4 sm:$0xff]  }
 0x4ed   :  { %5881 = vmatpush1.bf16.msra.mxu1 %v9998_v17  ;;  %5595 = vmatprep.subr.bf16.mxu0 %v10003_v29  ;;  %v10088_v17 = vld [vmem:[%s13694_s30 + $0x6a4] ss:$16 sps:$4 sm:$0xff]   ;;  %v10091_v29 = vld [vmem:[%s13694_s30 + $0x6ac] ss:$16 sps:$4 sm:$0xff]  }
 0x4ee   :  { %5882 = vmatprep.subr.bf16.mxu1 %v10006_v16  ;;  %v10086_v16 = vld [vmem:[%s13694_s30 + $0x6a0] ss:$16 sps:$4 sm:$0xff]  }
 0x4f0   :  { %5596 = vmatpush1.bf16.msra.mxu0 %v10001_v5  ;;  %v10089_v5 = vld [vmem:[%s13694_s30 + $0x6a8] ss:$16 sps:$4 sm:$0xff]  }
 0x4f1   :  { %5883 = vmatpush1.bf16.msra.mxu1 %v10004_v14  ;;  %5597 = vmatprep.subr.bf16.mxu0 %v10009_v11  ;;  %v10094_v14 = vld [vmem:[%s13694_s30 + $0x6c4] ss:$16 sps:$4 sm:$0xff]   ;;  %v10097_v11 = vld [vmem:[%s13694_s30 + $0x6cc] ss:$16 sps:$4 sm:$0xff]  }
 0x4f2   :  { %5884 = vmatprep.subr.bf16.mxu1 %v10012_v59  ;;  %v10092_v59 = vld [vmem:[%s13694_s30 + $0x6c0] ss:$16 sps:$4 sm:$0xff]  }
 0x4f4   :  { %5598 = vmatpush1.bf16.msra.mxu0 %v10007_v25  ;;  %v10095_v25 = vld [vmem:[%s13694_s30 + $0x6c8] ss:$16 sps:$4 sm:$0xff]  }
 0x4f5   :  { %5885 = vmatpush1.bf16.msra.mxu1 %v10010_v2  ;;  %5599 = vmatprep.subr.bf16.mxu0 %v10015_v52  ;;  %v10100_v2 = vld [vmem:[%s13694_s30 + $0x6e4] ss:$16 sps:$4 sm:$0xff]   ;;  %v10103_v52 = vld [vmem:[%s13694_s30 + $0x6ec] ss:$16 sps:$4 sm:$0xff]  }
 0x4f6   :  { %5886 = vmatprep.subr.bf16.mxu1 %v10018_v61  ;;  %v10098_v61 = vld [vmem:[%s13694_s30 + $0x6e0] ss:$16 sps:$4 sm:$0xff]  }
 0x4f8   :  { %5600 = vmatpush1.bf16.msra.mxu0 %v10013_v49  ;;  %v10101_v49 = vld [vmem:[%s13694_s30 + $0x6e8] ss:$16 sps:$4 sm:$0xff]  }
 0x4f9   :  { %5887 = vmatpush1.bf16.msra.mxu1 %v10016_v63  ;;  %5601 = vmatprep.subr.bf16.mxu0 %v10021_v9  ;;  %v10106_v63 = vld [vmem:[%s13694_s30 + $0x704] ss:$16 sps:$4 sm:$0xff]   ;;  %v10109_v9 = vld [vmem:[%s13694_s30 + $0x70c] ss:$16 sps:$4 sm:$0xff]  }
 0x4fa   :  { %5888 = vmatprep.subr.bf16.mxu1 %v10024_v26  ;;  %v10104_v26 = vld [vmem:[%s13694_s30 + $0x700] ss:$16 sps:$4 sm:$0xff]  }
 0x4fc   :  { %5602 = vmatpush1.bf16.msra.mxu0 %v10019_v47  ;;  %v10107_v47 = vld [vmem:[%s13694_s30 + $0x708] ss:$16 sps:$4 sm:$0xff]  }
 0x4fd   :  { %5889 = vmatpush1.bf16.msra.mxu1 %v10022_v33  ;;  %5603 = vmatprep.subr.bf16.mxu0 %v10027_v34  ;;  %v10112_v33 = vld [vmem:[%s13694_s30 + $0x724] ss:$16 sps:$4 sm:$0xff]   ;;  %v10115_v34 = vld [vmem:[%s13694_s30 + $0x72c] ss:$16 sps:$4 sm:$0xff]  }
 0x4fe   :  { %5890 = vmatprep.subr.bf16.mxu1 %v10030_v28  ;;  %v10110_v28 = vld [vmem:[%s13694_s30 + $0x720] ss:$16 sps:$4 sm:$0xff]  }
 0x500   :  { %5604 = vmatpush1.bf16.msra.mxu0 %v10025_v30  ;;  %v10113_v30 = vld [vmem:[%s13694_s30 + $0x728] ss:$16 sps:$4 sm:$0xff]  }
 0x501   :  { %5891 = vmatpush1.bf16.msra.mxu1 %v10028_v0  ;;  %5605 = vmatprep.subr.bf16.mxu0 %v10033_v31  ;;  %v10118_v0 = vld [vmem:[%s13694_s30 + $0x744] ss:$16 sps:$4 sm:$0xff]   ;;  %v10121_v31 = vld [vmem:[%s13694_s30 + $0x74c] ss:$16 sps:$4 sm:$0xff]  }
 0x502   :  { %5892 = vmatprep.subr.bf16.mxu1 %v10036_v15  ;;  %v10116_v15 = vld [vmem:[%s13694_s30 + $0x740] ss:$16 sps:$4 sm:$0xff]  }
 0x504   :  { %5606 = vmatpush1.bf16.msra.mxu0 %v10031_v38  ;;  %v10119_v38 = vld [vmem:[%s13694_s30 + $0x748] ss:$16 sps:$4 sm:$0xff]  }
 0x505   :  { %5893 = vmatpush1.bf16.msra.mxu1 %v10034_v10  ;;  %5607 = vmatprep.subr.bf16.mxu0 %v10039_v19  ;;  %v10124_v10 = vld [vmem:[%s13694_s30 + $0x764] ss:$16 sps:$4 sm:$0xff]   ;;  %v10127_v19 = vld [vmem:[%s13694_s30 + $0x76c] ss:$16 sps:$4 sm:$0xff]  }
 0x506   :  { %5894 = vmatprep.subr.bf16.mxu1 %v10042_v35  ;;  %v10122_v35 = vld [vmem:[%s13694_s30 + $0x760] ss:$16 sps:$4 sm:$0xff]  }
 0x508   :  { %5608 = vmatpush1.bf16.msra.mxu0 %v10037_v37  ;;  %v10125_v37 = vld [vmem:[%s13694_s30 + $0x768] ss:$16 sps:$4 sm:$0xff]  }
 0x509   :  { %5895 = vmatpush1.bf16.msra.mxu1 %v10040_v42  ;;  %5609 = vmatprep.subr.bf16.mxu0 %v10045_v21  ;;  %v10130_v42 = vld [vmem:[%s13694_s30 + $0x784] ss:$16 sps:$4 sm:$0xff]   ;;  %v10133_v21 = vld [vmem:[%s13694_s30 + $0x78c] ss:$16 sps:$4 sm:$0xff]  }
 0x50a   :  { %5896 = vmatprep.subr.bf16.mxu1 %v10048_v22  ;;  %v10128_v22 = vld [vmem:[%s13694_s30 + $0x780] ss:$16 sps:$4 sm:$0xff]  }
 0x50c   :  { %5610 = vmatpush1.bf16.msra.mxu0 %v10043_v20  ;;  %v10131_v20 = vld [vmem:[%s13694_s30 + $0x788] ss:$16 sps:$4 sm:$0xff]  }
 0x50d   :  { %5897 = vmatpush1.bf16.msra.mxu1 %v10046_v18  ;;  %5611 = vmatprep.subr.bf16.mxu0 %v10051_v13  ;;  %v10136_v18 = vld [vmem:[%s13694_s30 + $0x7a4] ss:$16 sps:$4 sm:$0xff]   ;;  %v10139_v13 = vld [vmem:[%s13694_s30 + $0x7ac] ss:$16 sps:$4 sm:$0xff]  }
 0x50e   :  { %5898 = vmatprep.subr.bf16.mxu1 %v10054_v55  ;;  %v10134_v55 = vld [vmem:[%s13694_s30 + $0x7a0] ss:$16 sps:$4 sm:$0xff]  }
 0x510   :  { %5612 = vmatpush1.bf16.msra.mxu0 %v10049_v53  ;;  %v10137_v53 = vld [vmem:[%s13694_s30 + $0x7a8] ss:$16 sps:$4 sm:$0xff]  }
 0x511   :  { %5899 = vmatpush1.bf16.msra.mxu1 %v10052_v7  ;;  %5622 = vmatprep.subr.bf16.mxu0 %v10057_v23  ;;  %v10142_v7 = vld [vmem:[%s13694_s30 + $0x7c4] ss:$16 sps:$4 sm:$0xff]   ;;  %v10145_v23 = vld [vmem:[%s13694_s30 + $0x7cc] ss:$16 sps:$4 sm:$0xff]  }
 0x512   :  { %5909 = vmatprep.subr.bf16.mxu1 %v10060_v32  ;;  %v10140_v32 = vld [vmem:[%s13694_s30 + $0x7c0] ss:$16 sps:$4 sm:$0xff]  }
 0x513   :  { %5614 = vmatmul.mubr.bf16.vlgmr.msra.gmra.mrb[196].mxu0 %v3065_v39 }
 0x514   :  { %5901 = vmatmul.mubr.bf16.vlgmr.msra.gmra.mrb[196].mxu1 %v3065_v39  ;;  %5623 = vmatpush1.bf16.msra.mxu0 %v10055_v58  ;;  %v10148_v58 = vld [vmem:[%s13694_s30 + $0x7e4] ss:$16 sps:$4 sm:$0xff]   ;;  %v10151_v39 = vld [vmem:[%s13694_s30 + $0x7ec] ss:$16 sps:$4 sm:$0xff]  }
 0x515   :  { %5654 = vmatprep.mubr.bf16.mxu0 %v3068_v60  ;;  %5910 = vmatpush1.bf16.msra.mxu1 %v10058_v27  ;;  %v10146_v27 = vld [vmem:[%s13694_s30 + $0x7e0] ss:$16 sps:$4 sm:$0xff]  }
 0x516   :  { %5941 = vmatprep.mubr.bf16.mxu1 %v3068_v60  ;;  %5624 = vmatprep.subr.bf16.mxu0 %v10064_v51  ;;  %v12735_v51 = vld [vmem:[#allocation2 + $0x20] sm:$0xff]  ;;  %v10149_v60 = vld [vmem:[%s13694_s30 + $0x7e8] ss:$16 sps:$4 sm:$0xff]  }
 0x517   :  { %5911 = vmatprep.subr.bf16.mxu1 %v10067_v54  ;;  %v10154_v54 = vld [vmem:[%s13694_s30 + $0x804] ss:$16 sps:$4 sm:$0xff]  }
 0x518   :  { %5625 = vmatpush1.bf16.msra.mxu0 %v10062_v1  ;;  %v10157_v1 = vld [vmem:[%s13694_s30 + $0x80c] ss:$16 sps:$4 sm:$0xff]  }
 0x519   :  { %5912 = vmatpush1.bf16.msra.mxu1 %v10065_v43  ;;  %5626 = vmatprep.subr.bf16.mxu0 %v10070_v3  ;;  %v3053_v43 = vcombine.high %v12735_v51, %v12735_v51  ;;  %v10152_v3 = vld [vmem:[%s13694_s30 + $0x800] ss:$16 sps:$4 sm:$0xff]  }
 0x51a   :  { %5913 = vmatprep.subr.bf16.mxu1 %v10073_v12  ;;  %v3067_v12 = vpack.c.bf16 %v12537_v44, %v12537_v44  ;;  %v10159_v44 = vld [vmem:[%s13694_s30 + $0x820] ss:$16 sps:$4 sm:$0xff]  }
 0x51c   :  { %5627 = vmatpush1.bf16.msra.mxu0 %v10068_v56  ;;  %v10155_v56 = vld [vmem:[%s13694_s30 + $0x808] ss:$16 sps:$4 sm:$0xff]  }
 0x51d   :  { %5914 = vmatpush1.bf16.msra.mxu1 %v10071_v36  ;;  %5628 = vmatprep.subr.bf16.mxu0 %v10076_v40  ;;  %v10161_v36 = vld [vmem:[%s13694_s30 + $0x824] ss:$16 sps:$4 sm:$0xff]   ;;  %v3070_v40 = vpack.c.bf16 %v3053_v43, %v3053_v43  ;;  %v10236_v43 = vld [vmem:[%s13694_s30 + $0x9ac] ss:$16 sps:$4 sm:$0xff]  }
 0x51e   :  { %5915 = vmatprep.subr.bf16.mxu1 %v10079_v8  ;;  %v10164_v8 = vld [vmem:[%s13694_s30 + $0x82c] ss:$16 sps:$4 sm:$0xff]  }
 0x520   :  { %5629 = vmatpush1.bf16.msra.mxu0 %v10074_v6  ;;  %v10162_v6 = vld [vmem:[%s13694_s30 + $0x828] ss:$16 sps:$4 sm:$0xff]  }
 0x521   :  { %5916 = vmatpush1.bf16.msra.mxu1 %v10077_v57  ;;  %5630 = vmatprep.subr.bf16.mxu0 %v10082_v46  ;;  %v10167_v57 = vld [vmem:[%s13694_s30 + $0x844] ss:$16 sps:$4 sm:$0xff]   ;;  %v10170_v46 = vld [vmem:[%s13694_s30 + $0x84c] ss:$16 sps:$4 sm:$0xff]  }
 0x522   :  { %5917 = vmatprep.subr.bf16.mxu1 %v10085_v4  ;;  %v10165_v4 = vld [vmem:[%s13694_s30 + $0x840] ss:$16 sps:$4 sm:$0xff]  }
 0x524   :  { %5631 = vmatpush1.bf16.msra.mxu0 %v10080_v45  ;;  %v10168_v45 = vld [vmem:[%s13694_s30 + $0x848] ss:$16 sps:$4 sm:$0xff]  }
 0x525   :  { %5918 = vmatpush1.bf16.msra.mxu1 %v10083_v48  ;;  %5632 = vmatprep.subr.bf16.mxu0 %v10088_v17  ;;  %v10173_v48 = vld [vmem:[%s13694_s30 + $0x864] ss:$16 sps:$4 sm:$0xff]   ;;  %v10176_v17 = vld [vmem:[%s13694_s30 + $0x86c] ss:$16 sps:$4 sm:$0xff]  }
 0x526   :  { %5919 = vmatprep.subr.bf16.mxu1 %v10091_v29  ;;  %v10171_v29 = vld [vmem:[%s13694_s30 + $0x860] ss:$16 sps:$4 sm:$0xff]  }
 0x528   :  { %5633 = vmatpush1.bf16.msra.mxu0 %v10086_v16  ;;  %v10174_v16 = vld [vmem:[%s13694_s30 + $0x868] ss:$16 sps:$4 sm:$0xff]  }
 0x529   :  { %5920 = vmatpush1.bf16.msra.mxu1 %v10089_v5  ;;  %5634 = vmatprep.subr.bf16.mxu0 %v10094_v14  ;;  %v10179_v5 = vld [vmem:[%s13694_s30 + $0x884] ss:$16 sps:$4 sm:$0xff]  }
 0x52a   :  { %5921 = vmatprep.subr.bf16.mxu1 %v10097_v11  ;;  %v10182_v11 = vld [vmem:[%s13694_s30 + $0x88c] ss:$16 sps:$4 sm:$0xff]  }
 0x52c   :  { %5635 = vmatpush1.bf16.msra.mxu0 %v10092_v59 }
 0x52d   :  { %5922 = vmatpush1.bf16.msra.mxu1 %v10095_v25  ;;  %5636 = vmatprep.subr.bf16.mxu0 %v10100_v2 }
 0x52e   :  { %5923 = vmatprep.subr.bf16.mxu1 %v10103_v52  ;;  %v10177_v52 = vld [vmem:[%s13694_s30 + $0x880] ss:$16 sps:$4 sm:$0xff]  }
 0x530   :  { %5637 = vmatpush1.bf16.msra.mxu0 %v10098_v61 }
 0x531   :  { %5924 = vmatpush1.bf16.msra.mxu1 %v10101_v49  ;;  %5638 = vmatprep.subr.bf16.mxu0 %v10106_v63  ;;  %v10180_v49 = vld [vmem:[%s13694_s30 + $0x888] ss:$16 sps:$4 sm:$0xff]   ;;  %v10185_v63 = vld [vmem:[%s13694_s30 + $0x8a4] ss:$16 sps:$4 sm:$0xff]  }
 0x532   :  { %5925 = vmatprep.subr.bf16.mxu1 %v10109_v9 }
 0x534   :  { %5639 = vmatpush1.bf16.msra.mxu0 %v10104_v26  ;;  %v10188_v26 = vld [vmem:[%s13694_s30 + $0x8ac] ss:$16 sps:$4 sm:$0xff]  }
 0x535   :  { %5926 = vmatpush1.bf16.msra.mxu1 %v10107_v47  ;;  %5640 = vmatprep.subr.bf16.mxu0 %v10112_v33  ;;  %v10183_v33 = vld [vmem:[%s13694_s30 + $0x8a0] ss:$16 sps:$4 sm:$0xff]  }
 0x536   :  { %5927 = vmatprep.subr.bf16.mxu1 %v10115_v34  ;;  %v10186_v34 = vld [vmem:[%s13694_s30 + $0x8a8] ss:$16 sps:$4 sm:$0xff]  }
 0x538   :  { %5641 = vmatpush1.bf16.msra.mxu0 %v10110_v28  ;;  %v10194_v28 = vld [vmem:[%s13694_s30 + $0x8cc] ss:$16 sps:$4 sm:$0xff]  }
 0x539   :  { %5928 = vmatpush1.bf16.msra.mxu1 %v10113_v30  ;;  %5642 = vmatprep.subr.bf16.mxu0 %v10118_v0  ;;  %v10189_v30 = vld [vmem:[%s13694_s30 + $0x8c0] ss:$16 sps:$4 sm:$0xff]   ;;  %v10192_v0 = vld [vmem:[%s13694_s30 + $0x8c8] ss:$16 sps:$4 sm:$0xff]  }
 0x53a   :  { %5929 = vmatprep.subr.bf16.mxu1 %v10121_v31  ;;  %v10197_v31 = vld [vmem:[%s13694_s30 + $0x8e4] ss:$16 sps:$4 sm:$0xff]  }
 0x53c   :  { %5643 = vmatpush1.bf16.msra.mxu0 %v10116_v15  ;;  %v10200_v15 = vld [vmem:[%s13694_s30 + $0x8ec] ss:$16 sps:$4 sm:$0xff]  }
 0x53d   :  { %5930 = vmatpush1.bf16.msra.mxu1 %v10119_v38  ;;  %5644 = vmatprep.subr.bf16.mxu0 %v10124_v10  ;;  %v10195_v38 = vld [vmem:[%s13694_s30 + $0x8e0] ss:$16 sps:$4 sm:$0xff]   ;;  %v10198_v10 = vld [vmem:[%s13694_s30 + $0x8e8] ss:$16 sps:$4 sm:$0xff]  }
 0x53e   :  { %5931 = vmatprep.subr.bf16.mxu1 %v10127_v19  ;;  %v10203_v19 = vld [vmem:[%s13694_s30 + $0x904] ss:$16 sps:$4 sm:$0xff]  }
 0x540   :  { %5645 = vmatpush1.bf16.msra.mxu0 %v10122_v35  ;;  %v10206_v35 = vld [vmem:[%s13694_s30 + $0x90c] ss:$16 sps:$4 sm:$0xff]  }
 0x541   :  { %5932 = vmatpush1.bf16.msra.mxu1 %v10125_v37  ;;  %5646 = vmatprep.subr.bf16.mxu0 %v10130_v42  ;;  %v10201_v37 = vld [vmem:[%s13694_s30 + $0x900] ss:$16 sps:$4 sm:$0xff]   ;;  %v10204_v42 = vld [vmem:[%s13694_s30 + $0x908] ss:$16 sps:$4 sm:$0xff]  }
 0x542   :  { %5933 = vmatprep.subr.bf16.mxu1 %v10133_v21  ;;  %v10209_v21 = vld [vmem:[%s13694_s30 + $0x924] ss:$16 sps:$4 sm:$0xff]  }
 0x544   :  { %5647 = vmatpush1.bf16.msra.mxu0 %v10128_v22  ;;  %v10212_v22 = vld [vmem:[%s13694_s30 + $0x92c] ss:$16 sps:$4 sm:$0xff]  }
 0x545   :  { %5934 = vmatpush1.bf16.msra.mxu1 %v10131_v20  ;;  %5648 = vmatprep.subr.bf16.mxu0 %v10136_v18  ;;  %v10207_v20 = vld [vmem:[%s13694_s30 + $0x920] ss:$16 sps:$4 sm:$0xff]   ;;  %v10210_v18 = vld [vmem:[%s13694_s30 + $0x928] ss:$16 sps:$4 sm:$0xff]  }
 0x546   :  { %5935 = vmatprep.subr.bf16.mxu1 %v10139_v13  ;;  %v10215_v13 = vld [vmem:[%s13694_s30 + $0x944] ss:$16 sps:$4 sm:$0xff]  }
 0x548   :  { %5649 = vmatpush1.bf16.msra.mxu0 %v10134_v55  ;;  %v10218_v55 = vld [vmem:[%s13694_s30 + $0x94c] ss:$16 sps:$4 sm:$0xff]  }
 0x549   :  { %5936 = vmatpush1.bf16.msra.mxu1 %v10137_v53  ;;  %5650 = vmatprep.subr.bf16.mxu0 %v10142_v7  ;;  %v10213_v53 = vld [vmem:[%s13694_s30 + $0x940] ss:$16 sps:$4 sm:$0xff]   ;;  %v10216_v7 = vld [vmem:[%s13694_s30 + $0x948] ss:$16 sps:$4 sm:$0xff]  }
 0x54a   :  { %5937 = vmatprep.subr.bf16.mxu1 %v10145_v23  ;;  %v10221_v23 = vld [vmem:[%s13694_s30 + $0x964] ss:$16 sps:$4 sm:$0xff]  }
 0x54c   :  { %5651 = vmatpush1.bf16.msra.mxu0 %v10140_v32  ;;  %v10224_v32 = vld [vmem:[%s13694_s30 + $0x96c] ss:$16 sps:$4 sm:$0xff]  }
 0x54d   :  { %5938 = vmatpush1.bf16.msra.mxu1 %v10143_v50  ;;  %5652 = vmatprep.subr.bf16.mxu0 %v10148_v58  ;;  %v10219_v50 = vld [vmem:[%s13694_s30 + $0x960] ss:$16 sps:$4 sm:$0xff]   ;;  %v10222_v58 = vld [vmem:[%s13694_s30 + $0x968] ss:$16 sps:$4 sm:$0xff]  }
 0x54e   :  { %5939 = vmatprep.subr.bf16.mxu1 %v10151_v39  ;;  %v10227_v39 = vld [vmem:[%s13694_s30 + $0x984] ss:$16 sps:$4 sm:$0xff]  }
 0x550   :  { %5653 = vmatpush1.bf16.msra.mxu0 %v10146_v27  ;;  %v10230_v27 = vld [vmem:[%s13694_s30 + $0x98c] ss:$16 sps:$4 sm:$0xff]  }
 0x551   :  { %5940 = vmatpush1.bf16.msra.mxu1 %v10149_v60  ;;  %5663 = vmatprep.subr.bf16.mxu0 %v10154_v54  ;;  %v10225_v60 = vld [vmem:[%s13694_s30 + $0x980] ss:$16 sps:$4 sm:$0xff]   ;;  %v10228_v54 = vld [vmem:[%s13694_s30 + $0x988] ss:$16 sps:$4 sm:$0xff]  }
 0x552   :  { %5950 = vmatprep.subr.bf16.mxu1 %v10157_v1  ;;  %v10233_v1 = vld [vmem:[%s13694_s30 + $0x9a4] ss:$16 sps:$4 sm:$0xff]  }
 0x553   :  { %5655 = vmatmul.mubr.bf16.vlgmr.msra.gmra.mrb[196].mxu0 %v3067_v12 }
 0x554   :  { %5942 = vmatmul.mubr.bf16.vlgmr.msra.gmra.mrb[196].mxu1 %v3067_v12  ;;  %5664 = vmatpush1.bf16.msra.mxu0 %v10152_v3  ;;  %v10231_v3 = vld [vmem:[%s13694_s30 + $0x9a0] ss:$16 sps:$4 sm:$0xff]   ;;  %v10234_v12 = vld [vmem:[%s13694_s30 + $0x9a8] ss:$16 sps:$4 sm:$0xff]  }
 0x555   :  { %5695 = vmatprep.mubr.bf16.mxu0 %v3070_v40  ;;  %5951 = vmatpush1.bf16.msra.mxu1 %v10155_v56  ;;  %v10239_v56 = vld [vmem:[%s13694_s30 + $0x9c4] ss:$16 sps:$4 sm:$0xff]  }
 0x556   :  { %5982 = vmatprep.mubr.bf16.mxu1 %v3070_v40  ;;  %5665 = vmatprep.subr.bf16.mxu0 %v10161_v36  ;;  %v10242_v36 = vld [vmem:[%s13694_s30 + $0x9cc] ss:$16 sps:$4 sm:$0xff]   ;;  %v10237_v40 = vld [vmem:[%s13694_s30 + $0x9c0] ss:$16 sps:$4 sm:$0xff]  }
 0x557   :  { %5952 = vmatprep.subr.bf16.mxu1 %v10164_v8  ;;  %v10240_v8 = vld [vmem:[%s13694_s30 + $0x9c8] ss:$16 sps:$4 sm:$0xff]  }
 0x558   :  { %5666 = vmatpush1.bf16.msra.mxu0 %v10159_v44  ;;  %v10245_v44 = vld [vmem:[%s13694_s30 + $0x9e4] ss:$16 sps:$4 sm:$0xff]  }
 0x559   :  { %5953 = vmatpush1.bf16.msra.mxu1 %v10162_v6  ;;  %5667 = vmatprep.subr.bf16.mxu0 %v10167_v57  ;;  %v10248_v6 = vld [vmem:[%s13694_s30 + $0x9ec] ss:$16 sps:$4 sm:$0xff]   ;;  %v10243_v57 = vld [vmem:[%s13694_s30 + $0x9e0] ss:$16 sps:$4 sm:$0xff]  }
 0x55a   :  { %5954 = vmatprep.subr.bf16.mxu1 %v10170_v46  ;;  %v12936_v46 = vld [vmem:[#allocation2 + $0x28] sm:$0xff] }
 0x55c   :  { %5668 = vmatpush1.bf16.msra.mxu0 %v10165_v4  ;;  %v10246_v4 = vld [vmem:[%s13694_s30 + $0x9e8] ss:$16 sps:$4 sm:$0xff]  }
 0x55d   :  { %5955 = vmatpush1.bf16.msra.mxu1 %v10168_v45  ;;  %5669 = vmatprep.subr.bf16.mxu0 %v10173_v48  ;;  %v10251_v45 = vld [vmem:[%s13694_s30 + $0xa04] ss:$16 sps:$4 sm:$0xff]   ;;  %v10254_v48 = vld [vmem:[%s13694_s30 + $0xa0c] ss:$16 sps:$4 sm:$0xff]  }
 0x55e   :  { %v8973_v14 = vpop.f32.mrb[192].mxu0  ;;  %5956 = vmatprep.subr.bf16.mxu1 %v10176_v17  ;;  %v3054_v17 = vcombine.high %v12936_v46, %v12936_v46 }
 0x55f   :  { %v8974_v59 = vpop.f32.mrb[193].mxu0 }
 0x560   :  { %v8975_v25 = vadd.f32 %v8974_v59, %v8973_v14  ;;  %5670 = vmatpush1.bf16.msra.mxu0 %v10171_v29  ;;  %v8976_v2 = vpop.f32.mrb[194].mxu0  ;;  %v10249_v29 = vld [vmem:[%s13694_s30 + $0xa00] ss:$16 sps:$4 sm:$0xff]   ;;  %v10258_v14 = vld [vmem:[%s13694_s30 + $0xa24] ss:$16 sps:$4 sm:$0xff]  }
 0x561   :  { %5957 = vmatpush1.bf16.msra.mxu1 %v10174_v16  ;;  %v8977_v61 = vpop.f32.mrb[195].mxu0  ;;  %5671 = vmatprep.subr.bf16.mxu0 %v10179_v5  ;;  %v3069_v16 = vpack.c.bf16 %v12735_v51, %v12735_v51  ;;  %v10252_v5 = vld [vmem:[%s13694_s30 + $0xa08] ss:$16 sps:$4 sm:$0xff]   ;;  %v10261_v59 = vld [vmem:[%s13694_s30 + $0xa2c] ss:$16 sps:$4 sm:$0xff]  }
 0x562   :  { %v2843_v9 = vadd.f32 %v8975_v25, %v11899_v41  ;;  %5958 = vmatprep.subr.bf16.mxu1 %v10182_v11  ;;  %v10191_v41 = vld [vmem:[%s13694_s30 + $0x8c4] ss:$16 sps:$4 sm:$0xff]   ;;  %v3072_v11 = vpack.c.bf16 %v3054_v17, %v3054_v17  ;;  %v10256_v51 = vld [vmem:[%s13694_s30 + $0xa20] ss:$16 sps:$4 sm:$0xff]   ;;  %v10259_v25 = vld [vmem:[%s13694_s30 + $0xa28] ss:$16 sps:$4 sm:$0xff]  }
 0x563   :  { %v10264_v2 = vld [vmem:[%s13694_s30 + $0xa44] ss:$16 sps:$4 sm:$0xff]   ;;  %v10262_v61 = vld [vmem:[%s13694_s30 + $0xa40] ss:$16 sps:$4 sm:$0xff]   ;;  %v10345_v17 = vld [vmem:[%s13694_s30 + $0xbec] ss:$16 sps:$4 sm:$0xff]  }
 0x564   :  { %v2931_v47 = vadd.f32 %v12132_v24, %v2843_v9  ;;  %5672 = vmatpush1.bf16.msra.mxu0 %v10177_v52  ;;  %v10267_v52 = vld [vmem:[%s13694_s30 + $0xa4c] ss:$16 sps:$4 sm:$0xff]  }
 0x565   :  { %5959 = vmatpush1.bf16.msra.mxu1 %v10180_v49  ;;  %5673 = vmatprep.subr.bf16.mxu0 %v10185_v63  ;;  %v10265_v49 = vld [vmem:[%s13694_s30 + $0xa48] ss:$16 sps:$4 sm:$0xff]   ;;  %v10270_v63 = vld [vmem:[%s13694_s30 + $0xa64] ss:$16 sps:$4 sm:$0xff]   ;;  %v10273_v9 = vld [vmem:[%s13694_s30 + $0xa6c] ss:$16 sps:$4 sm:$0xff]  }
 0x566   :  { %v2948_v24 = vmax.f32 %v2931_v47, 0.0  ;;  %5960 = vmatprep.subr.bf16.mxu1 %v10188_v26  ;;  %v10268_v26 = vld [vmem:[%s13694_s30 + $0xa60] ss:$16 sps:$4 sm:$0xff]   ;;  %v10271_v47 = vld [vmem:[%s13694_s30 + $0xa68] ss:$16 sps:$4 sm:$0xff]  }
 0x568   :  { %3035 = vst.msk [vmem:[#allocation2 + $0x30] sm:$0xf] %vm2949_vm4, %v2948_v24  ;;  %5674 = vmatpush1.bf16.msra.mxu0 %v10183_v33  ;;  %v10276_v33 = vld [vmem:[%s13694_s30 + $0xa84] ss:$16 sps:$4 sm:$0xff]  }
 0x569   :  { %5961 = vmatpush1.bf16.msra.mxu1 %v10186_v34  ;;  %5675 = vmatprep.subr.bf16.mxu0 %v10191_v41  ;;  %v10279_v34 = vld [vmem:[%s13694_s30 + $0xa8c] ss:$16 sps:$4 sm:$0xff]   ;;  %v10274_v41 = vld [vmem:[%s13694_s30 + $0xa80] ss:$16 sps:$4 sm:$0xff]   ;;  %v10282_v24 = vld [vmem:[%s13694_s30 + $0xaa4] ss:$16 sps:$4 sm:$0xff]  }
 0x56a   :  { %5962 = vmatprep.subr.bf16.mxu1 %v10194_v28  ;;  %v10277_v28 = vld [vmem:[%s13694_s30 + $0xa88] ss:$16 sps:$4 sm:$0xff]  }
 0x56c   :  { %5676 = vmatpush1.bf16.msra.mxu0 %v10189_v30  ;;  %v10285_v30 = vld [vmem:[%s13694_s30 + $0xaac] ss:$16 sps:$4 sm:$0xff]  }
 0x56d   :  { %5963 = vmatpush1.bf16.msra.mxu1 %v10192_v0  ;;  %5677 = vmatprep.subr.bf16.mxu0 %v10197_v31  ;;  %v10280_v0 = vld [vmem:[%s13694_s30 + $0xaa0] ss:$16 sps:$4 sm:$0xff]   ;;  %v10283_v31 = vld [vmem:[%s13694_s30 + $0xaa8] ss:$16 sps:$4 sm:$0xff]  }
 0x56e   :  { %5964 = vmatprep.subr.bf16.mxu1 %v10200_v15  ;;  %v10288_v15 = vld [vmem:[%s13694_s30 + $0xac4] ss:$16 sps:$4 sm:$0xff]  }
 0x570   :  { %5678 = vmatpush1.bf16.msra.mxu0 %v10195_v38  ;;  %v10291_v38 = vld [vmem:[%s13694_s30 + $0xacc] ss:$16 sps:$4 sm:$0xff]  }
 0x571   :  { %5965 = vmatpush1.bf16.msra.mxu1 %v10198_v10  ;;  %5679 = vmatprep.subr.bf16.mxu0 %v10203_v19  ;;  %v10286_v10 = vld [vmem:[%s13694_s30 + $0xac0] ss:$16 sps:$4 sm:$0xff]   ;;  %v10289_v19 = vld [vmem:[%s13694_s30 + $0xac8] ss:$16 sps:$4 sm:$0xff]  }
 0x572   :  { %5966 = vmatprep.subr.bf16.mxu1 %v10206_v35  ;;  %v10294_v35 = vld [vmem:[%s13694_s30 + $0xae4] ss:$16 sps:$4 sm:$0xff]  }
 0x574   :  { %5680 = vmatpush1.bf16.msra.mxu0 %v10201_v37  ;;  %v10297_v37 = vld [vmem:[%s13694_s30 + $0xaec] ss:$16 sps:$4 sm:$0xff]  }
 0x575   :  { %5967 = vmatpush1.bf16.msra.mxu1 %v10204_v42  ;;  %5681 = vmatprep.subr.bf16.mxu0 %v10209_v21  ;;  %v10292_v42 = vld [vmem:[%s13694_s30 + $0xae0] ss:$16 sps:$4 sm:$0xff]   ;;  %v10295_v21 = vld [vmem:[%s13694_s30 + $0xae8] ss:$16 sps:$4 sm:$0xff]  }
 0x576   :  { %5968 = vmatprep.subr.bf16.mxu1 %v10212_v22  ;;  %v10300_v22 = vld [vmem:[%s13694_s30 + $0xb04] ss:$16 sps:$4 sm:$0xff]  }
 0x578   :  { %5682 = vmatpush1.bf16.msra.mxu0 %v10207_v20  ;;  %v10303_v20 = vld [vmem:[%s13694_s30 + $0xb0c] ss:$16 sps:$4 sm:$0xff]  }
 0x579   :  { %5969 = vmatpush1.bf16.msra.mxu1 %v10210_v18  ;;  %5683 = vmatprep.subr.bf16.mxu0 %v10215_v13  ;;  %v10298_v18 = vld [vmem:[%s13694_s30 + $0xb00] ss:$16 sps:$4 sm:$0xff]   ;;  %v10301_v13 = vld [vmem:[%s13694_s30 + $0xb08] ss:$16 sps:$4 sm:$0xff]  }
 0x57a   :  { %5970 = vmatprep.subr.bf16.mxu1 %v10218_v55  ;;  %v10306_v55 = vld [vmem:[%s13694_s30 + $0xb24] ss:$16 sps:$4 sm:$0xff]  }
 0x57c   :  { %5684 = vmatpush1.bf16.msra.mxu0 %v10213_v53  ;;  %v10309_v53 = vld [vmem:[%s13694_s30 + $0xb2c] ss:$16 sps:$4 sm:$0xff]  }
 0x57d   :  { %5971 = vmatpush1.bf16.msra.mxu1 %v10216_v7  ;;  %5685 = vmatprep.subr.bf16.mxu0 %v10221_v23  ;;  %v10304_v7 = vld [vmem:[%s13694_s30 + $0xb20] ss:$16 sps:$4 sm:$0xff]   ;;  %v10307_v23 = vld [vmem:[%s13694_s30 + $0xb28] ss:$16 sps:$4 sm:$0xff]  }
 0x57e   :  { %5972 = vmatprep.subr.bf16.mxu1 %v10224_v32  ;;  %v10312_v32 = vld [vmem:[%s13694_s30 + $0xb44] ss:$16 sps:$4 sm:$0xff]  }
 0x580   :  { %5686 = vmatpush1.bf16.msra.mxu0 %v10219_v50  ;;  %v10315_v50 = vld [vmem:[%s13694_s30 + $0xb4c] ss:$16 sps:$4 sm:$0xff]  }
 0x581   :  { %5973 = vmatpush1.bf16.msra.mxu1 %v10222_v58  ;;  %5687 = vmatprep.subr.bf16.mxu0 %v10227_v39  ;;  %v10310_v58 = vld [vmem:[%s13694_s30 + $0xb40] ss:$16 sps:$4 sm:$0xff]   ;;  %v10313_v39 = vld [vmem:[%s13694_s30 + $0xb48] ss:$16 sps:$4 sm:$0xff]  }
 0x582   :  { %5974 = vmatprep.subr.bf16.mxu1 %v10230_v27  ;;  %v10318_v27 = vld [vmem:[%s13694_s30 + $0xb64] ss:$16 sps:$4 sm:$0xff]  }
 0x584   :  { %5688 = vmatpush1.bf16.msra.mxu0 %v10225_v60  ;;  %v10321_v60 = vld [vmem:[%s13694_s30 + $0xb6c] ss:$16 sps:$4 sm:$0xff]  }
 0x585   :  { %5975 = vmatpush1.bf16.msra.mxu1 %v10228_v54  ;;  %5689 = vmatprep.subr.bf16.mxu0 %v10233_v1  ;;  %v10316_v54 = vld [vmem:[%s13694_s30 + $0xb60] ss:$16 sps:$4 sm:$0xff]   ;;  %v10319_v1 = vld [vmem:[%s13694_s30 + $0xb68] ss:$16 sps:$4 sm:$0xff]  }
 0x586   :  { %5976 = vmatprep.subr.bf16.mxu1 %v10236_v43  ;;  %v10324_v43 = vld [vmem:[%s13694_s30 + $0xb84] ss:$16 sps:$4 sm:$0xff]  }
 0x588   :  { %5690 = vmatpush1.bf16.msra.mxu0 %v10231_v3  ;;  %v10327_v3 = vld [vmem:[%s13694_s30 + $0xb8c] ss:$16 sps:$4 sm:$0xff]  }
 0x589   :  { %5977 = vmatpush1.bf16.msra.mxu1 %v10234_v12  ;;  %5691 = vmatprep.subr.bf16.mxu0 %v10239_v56  ;;  %v10322_v12 = vld [vmem:[%s13694_s30 + $0xb80] ss:$16 sps:$4 sm:$0xff]   ;;  %v10325_v56 = vld [vmem:[%s13694_s30 + $0xb88] ss:$16 sps:$4 sm:$0xff]  }
 0x58a   :  { %5978 = vmatprep.subr.bf16.mxu1 %v10242_v36  ;;  %v10330_v36 = vld [vmem:[%s13694_s30 + $0xba4] ss:$16 sps:$4 sm:$0xff]  }
 0x58c   :  { %5692 = vmatpush1.bf16.msra.mxu0 %v10237_v40  ;;  %v10333_v40 = vld [vmem:[%s13694_s30 + $0xbac] ss:$16 sps:$4 sm:$0xff]  }
 0x58d   :  { %5979 = vmatpush1.bf16.msra.mxu1 %v10240_v8  ;;  %5693 = vmatprep.subr.bf16.mxu0 %v10245_v44  ;;  %v10328_v8 = vld [vmem:[%s13694_s30 + $0xba0] ss:$16 sps:$4 sm:$0xff]   ;;  %v10331_v44 = vld [vmem:[%s13694_s30 + $0xba8] ss:$16 sps:$4 sm:$0xff]  }
 0x58e   :  { %5980 = vmatprep.subr.bf16.mxu1 %v10248_v6  ;;  %v10336_v6 = vld [vmem:[%s13694_s30 + $0xbc4] ss:$16 sps:$4 sm:$0xff]  }
 0x590   :  { %5694 = vmatpush1.bf16.msra.mxu0 %v10243_v57  ;;  %v10339_v57 = vld [vmem:[%s13694_s30 + $0xbcc] ss:$16 sps:$4 sm:$0xff]  }
 0x591   :  { %5981 = vmatpush1.bf16.msra.mxu1 %v10246_v4  ;;  %5704 = vmatprep.subr.bf16.mxu0 %v10251_v45  ;;  %v10334_v4 = vld [vmem:[%s13694_s30 + $0xbc0] ss:$16 sps:$4 sm:$0xff]   ;;  %v10337_v45 = vld [vmem:[%s13694_s30 + $0xbc8] ss:$16 sps:$4 sm:$0xff]  }
 0x592   :  { %5991 = vmatprep.subr.bf16.mxu1 %v10254_v48  ;;  %v10342_v48 = vld [vmem:[%s13694_s30 + $0xbe4] ss:$16 sps:$4 sm:$0xff]  }
 0x593   :  { %5696 = vmatmul.mubr.bf16.vlgmr.msra.gmra.mrb[196].mxu0 %v3069_v16 }
 0x594   :  { %5983 = vmatmul.mubr.bf16.vlgmr.msra.gmra.mrb[196].mxu1 %v3069_v16  ;;  %5705 = vmatpush1.bf16.msra.mxu0 %v10249_v29  ;;  %v10340_v29 = vld [vmem:[%s13694_s30 + $0xbe0] ss:$16 sps:$4 sm:$0xff]   ;;  %v10343_v16 = vld [vmem:[%s13694_s30 + $0xbe8] ss:$16 sps:$4 sm:$0xff]  }
 0x595   :  { %5736 = vmatprep.mubr.bf16.mxu0 %v3072_v11  ;;  %5992 = vmatpush1.bf16.msra.mxu1 %v10252_v5  ;;  %v10348_v5 = vld [vmem:[%s13694_s30 + $0xc04] ss:$16 sps:$4 sm:$0xff]  }
 0x596   :  { %6023 = vmatprep.mubr.bf16.mxu1 %v3072_v11  ;;  %5706 = vmatprep.subr.bf16.mxu0 %v10258_v14  ;;  %v10351_v14 = vld [vmem:[%s13694_s30 + $0xc0c] ss:$16 sps:$4 sm:$0xff]   ;;  %v10346_v11 = vld [vmem:[%s13694_s30 + $0xc00] ss:$16 sps:$4 sm:$0xff]  }
 0x597   :  { %5993 = vmatprep.subr.bf16.mxu1 %v10261_v59  ;;  %v3071_v59 = vpack.c.bf16 %v12936_v46, %v12936_v46  ;;  %v10352_v46 = vld [vmem:[%s13694_s30 + $0xc20] ss:$16 sps:$4 sm:$0xff]  }
 0x598   :  { %5707 = vmatpush1.bf16.msra.mxu0 %v10256_v51  ;;  %v10349_v51 = vld [vmem:[%s13694_s30 + $0xc08] ss:$16 sps:$4 sm:$0xff]  }
 0x599   :  { %5994 = vmatpush1.bf16.msra.mxu1 %v10259_v25  ;;  %5708 = vmatprep.subr.bf16.mxu0 %v10264_v2  ;;  %v10354_v25 = vld [vmem:[%s13694_s30 + $0xc24] ss:$16 sps:$4 sm:$0xff]   ;;  %v10357_v2 = vld [vmem:[%s13694_s30 + $0xc2c] ss:$16 sps:$4 sm:$0xff]  }
 0x59a   :  { %5995 = vmatprep.subr.bf16.mxu1 %v10267_v52  ;;  %v10355_v52 = vld [vmem:[%s13694_s30 + $0xc28] ss:$16 sps:$4 sm:$0xff]  }
 0x59c   :  { %5709 = vmatpush1.bf16.msra.mxu0 %v10262_v61  ;;  %v10360_v61 = vld [vmem:[%s13694_s30 + $0xc44] ss:$16 sps:$4 sm:$0xff]  }
 0x59d   :  { %5996 = vmatpush1.bf16.msra.mxu1 %v10265_v49  ;;  %5710 = vmatprep.subr.bf16.mxu0 %v10270_v63  ;;  %v10363_v49 = vld [vmem:[%s13694_s30 + $0xc4c] ss:$16 sps:$4 sm:$0xff]   ;;  %v10514_v63 = vmov 0  }
 0x59e   :  { %5997 = vmatprep.subr.bf16.mxu1 %v10273_v9  ;;  %v10358_v9 = vld [vmem:[%s13694_s30 + $0xc40] ss:$16 sps:$4 sm:$0xff]  }
 0x5a0   :  { %5711 = vmatpush1.bf16.msra.mxu0 %v10268_v26  ;;  %v10361_v26 = vld [vmem:[%s13694_s30 + $0xc48] ss:$16 sps:$4 sm:$0xff]  }
 0x5a1   :  { %5998 = vmatpush1.bf16.msra.mxu1 %v10271_v47  ;;  %5712 = vmatprep.subr.bf16.mxu0 %v10276_v33  ;;  %v10366_v47 = vld [vmem:[%s13694_s30 + $0xc64] ss:$16 sps:$4 sm:$0xff]   ;;  %v10369_v33 = vld [vmem:[%s13694_s30 + $0xc6c] ss:$16 sps:$4 sm:$0xff]  }
 0x5a2   :  { %5999 = vmatprep.subr.bf16.mxu1 %v10279_v34  ;;  %v10364_v34 = vld [vmem:[%s13694_s30 + $0xc60] ss:$16 sps:$4 sm:$0xff]  }
 0x5a4   :  { %5713 = vmatpush1.bf16.msra.mxu0 %v10274_v41  ;;  %v10367_v41 = vld [vmem:[%s13694_s30 + $0xc68] ss:$16 sps:$4 sm:$0xff]  }
 0x5a5   :  { %6000 = vmatpush1.bf16.msra.mxu1 %v10277_v28  ;;  %5714 = vmatprep.subr.bf16.mxu0 %v10282_v24  ;;  %v10370_v28 = vld [vmem:[%s13652_s9 + $0x40] sm:$0xff]   ;;  %v3042_v24 = vld [vmem:[#allocation2 + $0x30] sm:$0xf] }
 0x5a6   :  { %6001 = vmatprep.subr.bf16.mxu1 %v10285_v30  ;;  %v10371_v30 = vld [vmem:[%s13652_s9 + $0xc0] sm:$0xff]  }
 0x5a8   :  { %5715 = vmatpush1.bf16.msra.mxu0 %v10280_v0  ;;  %v10372_v0 = vld [vmem:[%s13652_s9] sm:$0xff]  }
 0x5a9   :  { %6002 = vmatpush1.bf16.msra.mxu1 %v10283_v31  ;;  %5716 = vmatprep.subr.bf16.mxu0 %v10288_v15  ;;  %v3073_v31 = vpack.c.bf16 %v3042_v24, %v3042_v24  ;;  %v10373_v15 = vld [vmem:[%s13652_s9 + $0x80] sm:$0xff]  }
 0x5aa   :  { %6003 = vmatprep.subr.bf16.mxu1 %v10291_v38  ;;  %v10374_v38 = vld [vmem:[%s13652_s9 + $0x48] sm:$0xff]  }
 0x5ac   :  { %5717 = vmatpush1.bf16.msra.mxu0 %v10286_v10  ;;  %v10375_v10 = vld [vmem:[%s13652_s9 + $0xc8] sm:$0xff]  }
 0x5ad   :  { %6004 = vmatpush1.bf16.msra.mxu1 %v10289_v19  ;;  %5718 = vmatprep.subr.bf16.mxu0 %v10294_v35  ;;  %v10376_v19 = vld [vmem:[%s13652_s9 + $0x8] sm:$0xff]  }
 0x5ae   :  { %6005 = vmatprep.subr.bf16.mxu1 %v10297_v37  ;;  %v10377_v35 = vld [vmem:[%s13652_s9 + $0x88] sm:$0xff]   ;;  %v10378_v37 = vld [vmem:[%s13652_s9 + $0x50] sm:$0xff]  }
 0x5b0   :  { %5719 = vmatpush1.bf16.msra.mxu0 %v10292_v42  ;;  %v10379_v42 = vld [vmem:[%s13652_s9 + $0xd0] sm:$0xff]  }
 0x5b1   :  { %6006 = vmatpush1.bf16.msra.mxu1 %v10295_v21  ;;  %5720 = vmatprep.subr.bf16.mxu0 %v10300_v22  ;;  %v10380_v21 = vld [vmem:[%s13652_s9 + $0x10] sm:$0xff]  }
 0x5b2   :  { %6007 = vmatprep.subr.bf16.mxu1 %v10303_v20  ;;  %v10381_v22 = vld [vmem:[%s13652_s9 + $0x90] sm:$0xff]   ;;  %v10382_v20 = vld [vmem:[%s13652_s9 + $0x58] sm:$0xff]  }
 0x5b4   :  { %5721 = vmatpush1.bf16.msra.mxu0 %v10298_v18  ;;  %v10383_v18 = vld [vmem:[%s13652_s9 + $0xd8] sm:$0xff]  }
 0x5b5   :  { %6008 = vmatpush1.bf16.msra.mxu1 %v10301_v13  ;;  %5722 = vmatprep.subr.bf16.mxu0 %v10306_v55  ;;  %v10384_v13 = vld [vmem:[%s13652_s9 + $0x18] sm:$0xff]  }
 0x5b6   :  { %6009 = vmatprep.subr.bf16.mxu1 %v10309_v53  ;;  %v10385_v55 = vld [vmem:[%s13652_s9 + $0x98] sm:$0xff]   ;;  %v10386_v53 = vld [vmem:[%s13652_s9 + $0x60] sm:$0xff]  }
 0x5b8   :  { %5723 = vmatpush1.bf16.msra.mxu0 %v10304_v7  ;;  %v10387_v7 = vld [vmem:[%s13652_s9 + $0xe0] sm:$0xff]  }
 0x5b9   :  { %6010 = vmatpush1.bf16.msra.mxu1 %v10307_v23  ;;  %5724 = vmatprep.subr.bf16.mxu0 %v10312_v32  ;;  %v10388_v23 = vld [vmem:[%s13652_s9 + $0x20] sm:$0xff]  }
 0x5ba   :  { %6011 = vmatprep.subr.bf16.mxu1 %v10315_v50  ;;  %v10389_v32 = vld [vmem:[%s13652_s9 + $0xa0] sm:$0xff]   ;;  %v10390_v50 = vld [vmem:[%s13652_s9 + $0x68] sm:$0xff]  }
 0x5bc   :  { %5725 = vmatpush1.bf16.msra.mxu0 %v10310_v58  ;;  %v10391_v58 = vld [vmem:[%s13652_s9 + $0xe8] sm:$0xff]  }
 0x5bd   :  { %6012 = vmatpush1.bf16.msra.mxu1 %v10313_v39  ;;  %5726 = vmatprep.subr.bf16.mxu0 %v10318_v27  ;;  %v10392_v39 = vld [vmem:[%s13652_s9 + $0x28] sm:$0xff]  }
 0x5be   :  { %6013 = vmatprep.subr.bf16.mxu1 %v10321_v60  ;;  %v10393_v27 = vld [vmem:[%s13652_s9 + $0xa8] sm:$0xff]   ;;  %v10394_v60 = vld [vmem:[%s13652_s9 + $0x70] sm:$0xff]  }
 0x5c0   :  { %5727 = vmatpush1.bf16.msra.mxu0 %v10316_v54  ;;  %v10395_v54 = vld [vmem:[%s13652_s9 + $0xf0] sm:$0xff]  }
 0x5c1   :  { %6014 = vmatpush1.bf16.msra.mxu1 %v10319_v1  ;;  %5728 = vmatprep.subr.bf16.mxu0 %v10324_v43  ;;  %v10396_v1 = vld [vmem:[%s13652_s9 + $0x30] sm:$0xff]  }
 0x5c2   :  { %6015 = vmatprep.subr.bf16.mxu1 %v10327_v3  ;;  %v10397_v43 = vld [vmem:[%s13652_s9 + $0xb0] sm:$0xff]   ;;  %v10398_v3 = vld [vmem:[%s13652_s9 + $0x78] sm:$0xff]  }
 0x5c4   :  { %5729 = vmatpush1.bf16.msra.mxu0 %v10322_v12  ;;  %v10399_v12 = vld [vmem:[%s13652_s9 + $0xf8] sm:$0xff]  }
 0x5c5   :  { %6016 = vmatpush1.bf16.msra.mxu1 %v10325_v56  ;;  %5730 = vmatprep.subr.bf16.mxu0 %v10330_v36  ;;  %v10400_v56 = vld [vmem:[%s13652_s9 + $0x38] sm:$0xff]  }
 0x5c6   :  { %6017 = vmatprep.subr.bf16.mxu1 %v10333_v40  ;;  %v10401_v36 = vld [vmem:[%s13652_s9 + $0xb8] sm:$0xff]   ;;  %v6435_v40 = vld [vmem:[%s13653_s12] sm:$0xff] }
 0x5c8   :  { %5731 = vmatpush1.bf16.msra.mxu0 %v10328_v8  ;;  %v10515_v8 = vmov 65535  }
 0x5c9   :  { %6018 = vmatpush1.bf16.msra.mxu1 %v10331_v44  ;;  %5732 = vmatprep.subr.bf16.mxu0 %v10336_v6  ;;  %v6453_v44 = vsel %vm6451_vm6, 4294967295, %v10515_v8  ;;  %v6436_v6 = vld [vmem:[%s13653_s12 + $0x8] sm:$0xff] }
 0x5ca   :  { %6019 = vmatprep.subr.bf16.mxu1 %v10339_v57  ;;  %v8519_v57 = vcombine.low %v6435_v40, %v6435_v40 }
 0x5cc   :  { %5733 = vmatpush1.bf16.msra.mxu0 %v10334_v4  ;;  %v8520_v4 = vcombine.high %v6435_v40, %v6435_v40 }
 0x5cd   :  { %6020 = vmatpush1.bf16.msra.mxu1 %v10337_v45  ;;  %5734 = vmatprep.subr.bf16.mxu0 %v10342_v48  ;;  %v6454_v45 = vsel %vm6452_vm7, %v6453_v44, 0  ;;  %v8521_v48 = vcombine.low %v6436_v6, %v6436_v6 }
 0x5ce   :  { %6021 = vmatprep.subr.bf16.mxu1 %v10345_v17  ;;  %v8522_v17 = vcombine.high %v6436_v6, %v6436_v6 }
 0x5d0   :  { %5735 = vmatpush1.bf16.msra.mxu0 %v10340_v29  ;;  %v6459_v29 = vand.u32 %v8520_v4, %v6454_v45 }
 0x5d1   :  { %6022 = vmatpush1.bf16.msra.mxu1 %v10343_v16  ;;  %5745 = vmatprep.subr.bf16.mxu0 %v10348_v5  ;;  %v6456_v16 = vand.u32 %v8519_v57, %v6454_v45  ;;  %v6462_v5 = vand.u32 %v8521_v48, %v6454_v45  ;;  %v10420_v48 = vld [vmem:[%s13657_s14] sm:$0xff]  }
 0x5d2   :  { %6032 = vmatprep.subr.bf16.mxu1 %v10351_v14  ;;  %v6465_v14 = vand.u32 %v8522_v17, %v6454_v45  ;;  %v10421_v17 = vld [vmem:[%s13657_s14 + $0x80] sm:$0xff]  }
 0x5d3   :  { %5737 = vmatmul.mubr.bf16.vlgmr.msra.gmra.mrb[196].mxu0 %v3071_v59 }
 0x5d4   :  { %6024 = vmatmul.mubr.bf16.vlgmr.msra.gmra.mrb[196].mxu1 %v3071_v59  ;;  %5746 = vmatpush1.bf16.msra.mxu0 %v10346_v11  ;;  %v3476_v11 = vlaneseq }
 0x5d5   :  { %6033 = vmatpush1.bf16.msra.mxu1 %v10349_v51  ;;  %5747 = vmatprep.subr.bf16.mxu0 %v10354_v25  ;;  %v3474_v25 = vld [vmem:[%s13654_s8] sm:$0xf] }
 0x5d6   :  { %6034 = vmatprep.subr.bf16.mxu1 %v10357_v2  ;;  %5777 = vmatprep.mubr.bf16.mxu0 %v10514_v63  ;;  %v3477_v59 = vshrl.u32 %v3476_v11, 7  ;;  %v10425_v11 = vld [vmem:[%s13657_s14 + $0x88] sm:$0xff]  }
 0x5d7   :  { %6064 = vmatprep.mubr.bf16.mxu1 %v10514_v63 }
 0x5d8   :  { %5748 = vmatpush1.bf16.msra.mxu0 %v10352_v46  ;;  %v13293_v51 = vsub.s32 0, %v3477_v59  ;;  %v13298_v2 = vsub.s32 2, %v3477_v59  ;;  %v13300_v46 = vsub.s32 1, %v3477_v59 }
 0x5d9   :  { %6035 = vmatpush1.bf16.msra.mxu1 %v10355_v52  ;;  %5749 = vmatprep.subr.bf16.mxu0 %v10360_v61  ;;  %v13302_v52 = vsub.s32 3, %v3477_v59  ;;  %v10426_v59 = vld [vmem:[%s13657_s14 + $0x50] sm:$0xff]  }
 0x5da   :  { %6036 = vmatprep.subr.bf16.mxu1 %v10363_v49  ;;  %v3479_v61 = vrot.slane %v3474_v25, %v13293_v51  ;;  %v3487_v49 = vrot.slane %v3474_v25, %v13298_v2 }
 0x5dc   :  { %5750 = vmatpush1.bf16.msra.mxu0 %v10358_v9  ;;  %v3483_v9 = vrot.slane %v3474_v25, %v13300_v46 }
 0x5dd   :  { %6037 = vmatpush1.bf16.msra.mxu1 %v10361_v26  ;;  %5751 = vmatprep.subr.bf16.mxu0 %v10366_v47  ;;  %v3491_v26 = vrot.slane %v3474_v25, %v13302_v52  ;;  %v10427_v25 = vld [vmem:[%s13657_s14 + $0xd0] sm:$0xff]  }
 0x5de   :  { %6038 = vmatprep.subr.bf16.mxu1 %v10369_v33 }
 0x5e0   :  { %5752 = vmatpush1.bf16.msra.mxu0 %v10364_v34 }
 0x5e1   :  { %6039 = vmatpush1.bf16.msra.mxu1 %v10367_v41  ;;  %8990 = vmatprep.subr.bf16.mxu0 %v10370_v28 }
 0x5e2   :  { %9012 = vmatprep.subr.bf16.mxu1 %v10371_v30 }
 0x5e3   :  { %8484 = vmatmul.mubr.msk.bf16.vlgmr.msra.gmra.mrb[196].mxu0 %vm2243_vm3, %v3073_v31 }
 0x5e4   :  { %8485 = vmatmul.mubr.msk.bf16.vlgmr.msra.gmra.mrb[196].mxu1 %vm2243_vm3, %v3073_v31  ;;  %8991 = vmatpush3.bf16.msra.mxu0 %v10372_v0 }
 0x5e5   :  { %9013 = vmatpush3.bf16.msra.mxu1 %v10373_v15  ;;  %8992 = vmatprep.subr.bf16.mxu0 %v10374_v38 }
 0x5e6   :  { %9014 = vmatprep.subr.bf16.mxu1 %v10375_v10 }
 0x5e8   :  { %8993 = vmatpush3.bf16.msra.mxu0 %v10376_v19 }
 0x5e9   :  { %9015 = vmatpush3.bf16.msra.mxu1 %v10377_v35  ;;  %8994 = vmatprep.subr.bf16.mxu0 %v10378_v37 }
 0x5ea   :  { %9016 = vmatprep.subr.bf16.mxu1 %v10379_v42 }
 0x5ec   :  { %8995 = vmatpush3.bf16.msra.mxu0 %v10380_v21 }
 0x5ed   :  { %9017 = vmatpush3.bf16.msra.mxu1 %v10381_v22  ;;  %8996 = vmatprep.subr.bf16.mxu0 %v10382_v20 }
 0x5ee   :  { %9018 = vmatprep.subr.bf16.mxu1 %v10383_v18 }
 0x5f0   :  { %8997 = vmatpush3.bf16.msra.mxu0 %v10384_v13  ;;  %v6424_v13 = vld [vmem:[%s13655_s2] sm:$0x3] }
 0x5f1   :  { %9019 = vmatpush3.bf16.msra.mxu1 %v10385_v55  ;;  %8998 = vmatprep.subr.bf16.mxu0 %v10386_v53  ;;  %v6434_v55 = vpack.c.bf16 %v6424_v13, %v6424_v13  ;;  %v10406_v53 = vld [vmem:[%s13656_s11] ss:$16 sps:$4 sm:$0xff]  }
 0x5f2   :  { %9020 = vmatprep.subr.bf16.mxu1 %v10387_v7  ;;  %v10408_v7 = vld [vmem:[%s13656_s11 + $0x4] ss:$16 sps:$4 sm:$0xff]  }
 0x5f3   :  { %v10444_v13 = vld [vmem:[%s13657_s14 + $0x30] sm:$0xff]  }
 0x5f4   :  { %8999 = vmatpush3.bf16.msra.mxu0 %v10388_v23  ;;  %v10409_v23 = vld [vmem:[%s13656_s11 + $0x8] ss:$16 sps:$4 sm:$0xff]  }
 0x5f5   :  { %9021 = vmatpush3.bf16.msra.mxu1 %v10389_v32  ;;  %9000 = vmatprep.subr.bf16.mxu0 %v10390_v50  ;;  %v10411_v32 = vld [vmem:[%s13656_s11 + $0xc] ss:$16 sps:$4 sm:$0xff]   ;;  %v10414_v50 = vld [vmem:[%s13656_s11 + $0x24] ss:$16 sps:$4 sm:$0xff]  }
 0x5f6   :  { %9022 = vmatprep.subr.bf16.mxu1 %v10391_v58  ;;  %v10417_v58 = vld [vmem:[%s13656_s11 + $0x2c] ss:$16 sps:$4 sm:$0xff]  }
 0x5f8   :  { %9001 = vmatpush3.bf16.msra.mxu0 %v10392_v39  ;;  %v10412_v39 = vld [vmem:[%s13656_s11 + $0x20] ss:$16 sps:$4 sm:$0xff]  }
 0x5f9   :  { %9023 = vmatpush3.bf16.msra.mxu1 %v10393_v27  ;;  %9002 = vmatprep.subr.bf16.mxu0 %v10394_v60  ;;  %v10415_v27 = vld [vmem:[%s13656_s11 + $0x28] ss:$16 sps:$4 sm:$0xff]   ;;  %v10418_v60 = vld [vmem:[%s13657_s14 + $0x40] sm:$0xff]  }
 0x5fa   :  { %9024 = vmatprep.subr.bf16.mxu1 %v10395_v54  ;;  %v10419_v54 = vld [vmem:[%s13657_s14 + $0xc0] sm:$0xff]  }
 0x5fc   :  { %9003 = vmatpush3.bf16.msra.mxu0 %v10396_v1 }
 0x5fd   :  { %9025 = vmatpush3.bf16.msra.mxu1 %v10397_v43  ;;  %9004 = vmatprep.subr.bf16.mxu0 %v10398_v3  ;;  %v8486_v3 = vld [vmem:[%s13658_s10] ss:$0 sm:$0xff] }
 0x5fe   :  { %9026 = vmatprep.subr.bf16.mxu1 %v10399_v12 }
 0x600   :  { %9005 = vmatpush3.bf16.msra.mxu0 %v10400_v56 }
 0x601   :  { %9027 = vmatpush3.bf16.msra.mxu1 %v10401_v36  ;;  %6467 = vmatprep.subr.bf16.mxu0 %v6459_v29 }
 0x602   :  { %6508 = vmatprep.subr.bf16.mxu1 %v6465_v14  ;;  %v10424_v14 = vld [vmem:[%s13657_s14 + $0x8] sm:$0xff]  }
 0x6b6   :  { %v5779_v47 = vpop.f32.mrb[196].mxu0 }
 0x6b7   :  { %v9536_v33 = vadd.f32 %v5779_v47, %v3479_v61  ;;  %v6066_v34 = vpop.f32.mrb[196].mxu1  ;;  %v5781_v41 = vpop.f32.mrb[197].mxu0  ;;  %v10428_v61 = vld [vmem:[%s13657_s14 + $0x10] sm:$0xff]   ;;  %v10432_v47 = vld [vmem:[%s13657_s14 + $0x18] sm:$0xff]  }
 0x6b8   :  { %v9538_v28 = vadd.f32 %v6066_v34, %v3487_v49  ;;  %v9537_v24 = vadd.f32 %v5781_v41, %v3483_v9  ;;  %v6068_v30 = vpop.f32.mrb[197].mxu1  ;;  %v5783_v0 = vpop.f32.mrb[198].mxu0  ;;  %v10429_v49 = vld [vmem:[%s13657_s14 + $0x90] sm:$0xff]   ;;  %v10430_v9 = vld [vmem:[%s13657_s14 + $0x58] sm:$0xff]   ;;  %v10434_v34 = vld [vmem:[%s13657_s14 + $0x60] sm:$0xff]  }
 0x6b9   :  { %v6073_v31 = vmax.f32 %v9536_v33, 0.0  ;;  %v9539_v15 = vadd.f32 %v6068_v30, %v3491_v26  ;;  %v6070_v38 = vpop.f32.mrb[198].mxu1  ;;  %v5784_v10 = vpop.f32.mrb[199].mxu0  ;;  %v10431_v26 = vld [vmem:[%s13657_s14 + $0xd8] sm:$0xff]   ;;  %v10435_v41 = vld [vmem:[%s13657_s14 + $0xe0] sm:$0xff]   ;;  %v10438_v30 = vld [vmem:[%s13657_s14 + $0x68] sm:$0xff]  }
 0x6ba   :  { %v6075_v19 = vmax.f32 %v9538_v28, 0.0  ;;  %v6074_v35 = vmax.f32 %v9537_v24, 0.0  ;;  %v6071_v37 = vpop.f32.mrb[199].mxu1  ;;  %v10433_v33 = vld [vmem:[%s13657_s14 + $0x98] sm:$0xff]   ;;  %v10436_v28 = vld [vmem:[%s13657_s14 + $0x20] sm:$0xff]   ;;  %v10439_v0 = vld [vmem:[%s13657_s14 + $0xe8] sm:$0xff]  }
 0x6bb   :  { %v6076_v42 = vmax.f32 %v9539_v15, 0.0  ;;  %v6077_v22 = vpack.c.bf16 %v6073_v31, %v6073_v31  ;;  %v10437_v24 = vld [vmem:[%s13657_s14 + $0xa0] sm:$0xff]  }
 0x6bc   :  { %v6078_v21 = vpack.c.bf16 %v6074_v35, %v6074_v35  ;;  %v6079_v18 = vpack.c.bf16 %v6075_v19, %v6075_v19 }
 0x6bd   :  { %v6080_v20 = vpack.c.bf16 %v6076_v42, %v6076_v42 }
 0x6be   :  { %6376 = vmatprep.mubr.bf16.mxu0 %v6078_v21  ;;  %v10440_v21 = vld [vmem:[%s13657_s14 + $0x28] sm:$0xff]  }
 0x6bf   :  { %6416 = vmatprep.mubr.bf16.mxu1 %v6080_v20  ;;  %6377 = vmatmul.mubr.bf16.vlgmr.msra.gmra.mrb[200].mxu0 %v6077_v22  ;;  %v10441_v22 = vld [vmem:[%s13657_s14 + $0xa8] sm:$0xff]   ;;  %v10442_v20 = vld [vmem:[%s13657_s14 + $0x70] sm:$0xff]  }
 0x6c0   :  { %6417 = vmatmul.mubr.bf16.vlgmr.msra.gmra.mrb[200].mxu1 %v6079_v18  ;;  %6468 = vmatpush1.bf16.msra.mxu0 %v6456_v16  ;;  %v10422_v16 = vld [vmem:[%s13657_s14 + $0x48] sm:$0xff]   ;;  %v10443_v18 = vld [vmem:[%s13657_s14 + $0xf0] sm:$0xff]  }
 0x6c1   :  { %6509 = vmatpush1.bf16.msra.mxu1 %v6462_v5  ;;  %6499 = vmatprep.mubr.bf16.mxu0 %v10514_v63  ;;  %v10423_v5 = vld [vmem:[%s13657_s14 + $0xc8] sm:$0xff]  }
 0x6c2   :  { %6540 = vmatprep.mubr.bf16.mxu1 %v10514_v63  ;;  %6593 = vmatprep.subr.bf16.mxu0 %v10408_v7  ;;  %v10447_v7 = vld [vmem:[%s13657_s14 + $0xf8] sm:$0xff]  }
 0x6c3   :  { %6634 = vmatprep.subr.bf16.mxu1 %v10411_v32  ;;  %v10449_v32 = vld [vmem:[%s13657_s14 + $0xb8] sm:$0xff]  }
 0x6c7   :  { %8523 = vmatmul.mubr.msk.bf16.vlgmr.msra.gmra.mrb[204].mxu0 %vm6447_vm8, %v6434_v55 }
 0x6c8   :  { %8524 = vmatmul.mubr.msk.bf16.vlgmr.msra.gmra.mrb[204].mxu1 %vm6447_vm8, %v6434_v55  ;;  %6625 = vmatprep.mubr.bf16.mxu0 %v10514_v63  ;;  %v10445_v55 = vld [vmem:[%s13657_s14 + $0xb0] sm:$0xff]  }
 0x6c9   :  { %6666 = vmatprep.mubr.bf16.mxu1 %v10514_v63  ;;  %6594 = vmatpush1.bf16.msra.mxu0 %v10406_v53  ;;  %v10446_v53 = vld [vmem:[%s13657_s14 + $0x78] sm:$0xff]  }
 0x6ca   :  { %6635 = vmatpush1.bf16.msra.mxu1 %v10409_v23  ;;  %6595 = vmatprep.subr.bf16.mxu0 %v10414_v50  ;;  %v10448_v23 = vld [vmem:[%s13657_s14 + $0x38] sm:$0xff]   ;;  %v10452_v50 = vld [vmem:[%s13659_s17 + $0x4] ss:$16 sps:$4 sm:$0xff]  }
 0x6cb   :  { %6636 = vmatprep.subr.bf16.mxu1 %v10417_v58  ;;  %v10455_v58 = vld [vmem:[%s13659_s17 + $0xc] ss:$16 sps:$4 sm:$0xff]  }
 0x6cd   :  { %6596 = vmatpush1.bf16.msra.mxu0 %v10412_v39  ;;  %v6675_v39 = vld [vmem:[%s13662_s13] sm:$0xf] }
 0x6ce   :  { %6637 = vmatpush1.bf16.msra.mxu1 %v10415_v27  ;;  %9034 = vmatprep.subr.bf16.mxu0 %v10418_v60  ;;  %v6680_v27 = vrot.slane %v6675_v39, %v13293_v51  ;;  %v6688_v60 = vrot.slane %v6675_v39, %v13298_v2 }
 0x6cf   :  { %9056 = vmatprep.subr.bf16.mxu1 %v10419_v54 }
 0x792   :  { %v9006_v1 = vpop.f32.mrb[200].mxu0 }
 0x793   :  { %v9028_v43 = vpop.f32.mrb[200].mxu1  ;;  %v9007_v12 = vpop.f32.mrb[201].mxu0 }
 0x794   :  { %v9008_v56 = vadd.f32 %v9007_v12, %v9006_v1  ;;  %v9029_v36 = vpop.f32.mrb[201].mxu1  ;;  %v9009_v40 = vpop.f32.mrb[202].mxu0 }
 0x795   :  { %v9030_v8 = vadd.f32 %v9029_v36, %v9028_v43  ;;  %v9031_v44 = vpop.f32.mrb[202].mxu1  ;;  %v9010_v6 = vpop.f32.mrb[203].mxu0  ;;  %v6684_v43 = vrot.slane %v6675_v39, %v13300_v46 }
 0x796   :  { %v6379_v57 = vadd.f32 %v9008_v56, %v8486_v3  ;;  %v9032_v4 = vpop.f32.mrb[203].mxu1  ;;  %v6692_v3 = vrot.slane %v6675_v39, %v13302_v52  ;;  %v10488_v39 = vld [vmem:[%s13661_s19 + $0x18] sm:$0xff]  }
 0x798   :  { %v13348_v45 = vadd.f32 %v9030_v8, %v6379_v57 }
 0x79a   :  { %v13358_v29 = vpack.c.bf16 %v13348_v45, %v13348_v45  ;;  %v6501_v31 = vpop.f32.mrb[204].mxu0 }
 0x79b   :  { %v6542_v15 = vpop.f32.mrb[204].mxu1  ;;  %v6503_v38 = vpop.f32.mrb[205].mxu0 }
 0x79c   :  { %8533 = vmatmul.mubr.msk.bf16.vlgmr.msra.gmra.mrb[208].mxu0 %vm6589_vm9, %v13358_v29  ;;  %8534 = vmatmul.mubr.msk.bf16.vlgmr.msra.gmra.mrb[208].mxu1 %vm6589_vm9, %v13358_v29  ;;  %v6544_v10 = vpop.f32.mrb[205].mxu1  ;;  %v6505_v19 = vpop.f32.mrb[206].mxu0 }
 0x79d   :  { %9035 = vmatpush3.bf16.msra.mxu0 %v10420_v48  ;;  %9057 = vmatpush3.bf16.msra.mxu1 %v10421_v17  ;;  %v6546_v35 = vpop.f32.mrb[206].mxu1  ;;  %v6506_v37 = vpop.f32.mrb[207].mxu0  ;;  %v10470_v19 = vld [vmem:[%s13660_s16 + $0x24] ss:$16 sps:$4 sm:$0xff]  }
 0x79e   :  { %9036 = vmatprep.subr.bf16.mxu0 %v10422_v16  ;;  %9058 = vmatprep.subr.bf16.mxu1 %v10423_v5  ;;  %v6547_v42 = vpop.f32.mrb[207].mxu1  ;;  %v10473_v35 = vld [vmem:[%s13660_s16 + $0x2c] ss:$16 sps:$4 sm:$0xff]   ;;  %v10468_v37 = vld [vmem:[%s13660_s16 + $0x20] ss:$16 sps:$4 sm:$0xff]  }
 0x79f   :  { %v10471_v42 = vld [vmem:[%s13660_s16 + $0x28] ss:$16 sps:$4 sm:$0xff]  }
 0x7a1   :  { %9037 = vmatpush3.bf16.msra.mxu0 %v10424_v14  ;;  %9059 = vmatpush3.bf16.msra.mxu1 %v10425_v11 }
 0x7a2   :  { %9038 = vmatprep.subr.bf16.mxu0 %v10426_v59  ;;  %9060 = vmatprep.subr.bf16.mxu1 %v10427_v25 }
 0x7a5   :  { %9039 = vmatpush3.bf16.msra.mxu0 %v10428_v61  ;;  %9061 = vmatpush3.bf16.msra.mxu1 %v10429_v49 }
 0x7a6   :  { %9040 = vmatprep.subr.bf16.mxu0 %v10430_v9  ;;  %9062 = vmatprep.subr.bf16.mxu1 %v10431_v26  ;;  %v10450_v26 = vld [vmem:[%s13659_s17] ss:$16 sps:$4 sm:$0xff]  }
 0x7a9   :  { %9041 = vmatpush3.bf16.msra.mxu0 %v10432_v47  ;;  %9063 = vmatpush3.bf16.msra.mxu1 %v10433_v33  ;;  %v10453_v47 = vld [vmem:[%s13659_s17 + $0x8] ss:$16 sps:$4 sm:$0xff]  }
 0x7aa   :  { %9042 = vmatprep.subr.bf16.mxu0 %v10434_v34  ;;  %9064 = vmatprep.subr.bf16.mxu1 %v10435_v41  ;;  %v10458_v41 = vld [vmem:[%s13659_s17 + $0x24] ss:$16 sps:$4 sm:$0xff]  }
 0x7ad   :  { %9043 = vmatpush3.bf16.msra.mxu0 %v10436_v28  ;;  %9065 = vmatpush3.bf16.msra.mxu1 %v10437_v24  ;;  %v10461_v28 = vld [vmem:[%s13659_s17 + $0x2c] ss:$16 sps:$4 sm:$0xff]   ;;  %v10456_v24 = vld [vmem:[%s13659_s17 + $0x20] ss:$16 sps:$4 sm:$0xff]  }
 0x7ae   :  { %9044 = vmatprep.subr.bf16.mxu0 %v10438_v30  ;;  %9066 = vmatprep.subr.bf16.mxu1 %v10439_v0  ;;  %v10459_v30 = vld [vmem:[%s13659_s17 + $0x28] ss:$16 sps:$4 sm:$0xff]   ;;  %v10464_v0 = vld [vmem:[%s13660_s16 + $0x4] ss:$16 sps:$4 sm:$0xff]  }
 0x7b1   :  { %9045 = vmatpush3.bf16.msra.mxu0 %v10440_v21  ;;  %9067 = vmatpush3.bf16.msra.mxu1 %v10441_v22  ;;  %v10474_v21 = vld [vmem:[%s13661_s19 + $0x40] sm:$0xff]  }
 0x7b2   :  { %9046 = vmatprep.subr.bf16.mxu0 %v10442_v20  ;;  %9068 = vmatprep.subr.bf16.mxu1 %v10443_v18  ;;  %v10475_v22 = vld [vmem:[%s13661_s19 + $0xc0] sm:$0xff]  }
 0x7b3   :  { %v10476_v20 = vld [vmem:[%s13661_s19] sm:$0xff]  }
 0x7b4   :  { %v10477_v18 = vld [vmem:[%s13661_s19 + $0x80] sm:$0xff]  }
 0x7b5   :  { %9047 = vmatpush3.bf16.msra.mxu0 %v10444_v13  ;;  %9069 = vmatpush3.bf16.msra.mxu1 %v10445_v55  ;;  %v10478_v13 = vld [vmem:[%s13661_s19 + $0x48] sm:$0xff]  }
 0x7b6   :  { %9048 = vmatprep.subr.bf16.mxu0 %v10446_v53  ;;  %9070 = vmatprep.subr.bf16.mxu1 %v10447_v7  ;;  %v10480_v55 = vld [vmem:[%s13661_s19 + $0x8] sm:$0xff]   ;;  %v10482_v7 = vld [vmem:[%s13661_s19 + $0x50] sm:$0xff]  }
 0x7b7   :  { %v10481_v53 = vld [vmem:[%s13661_s19 + $0x88] sm:$0xff]  }
 0x7b9   :  { %9049 = vmatpush3.bf16.msra.mxu0 %v10448_v23  ;;  %9071 = vmatpush3.bf16.msra.mxu1 %v10449_v32  ;;  %v10484_v23 = vld [vmem:[%s13661_s19 + $0x10] sm:$0xff]  }
 0x7ba   :  { %7114 = vmatprep.subr.bf16.mxu0 %v10452_v50  ;;  %7155 = vmatprep.subr.bf16.mxu1 %v10455_v58  ;;  %v10485_v32 = vld [vmem:[%s13661_s19 + $0x90] sm:$0xff]   ;;  %v10486_v50 = vld [vmem:[%s13661_s19 + $0x58] sm:$0xff]  }
 0x7bb   :  { %v10487_v58 = vld [vmem:[%s13661_s19 + $0xd8] sm:$0xff]  }
 0x86f   :  { %v6627_v54 = vpop.f32.mrb[208].mxu0  ;;  %v6668_v1 = vpop.f32.mrb[208].mxu1 }
 0x870   :  { %v6628_v12 = vadd.f32 %v6627_v54, %v6501_v31  ;;  %v6669_v56 = vadd.f32 %v6668_v1, %v6542_v15  ;;  %v6629_v36 = vpop.f32.mrb[209].mxu0  ;;  %v6670_v40 = vpop.f32.mrb[209].mxu1  ;;  %v10467_v31 = vld [vmem:[%s13660_s16 + $0xc] ss:$16 sps:$4 sm:$0xff]   ;;  %v10462_v15 = vld [vmem:[%s13660_s16] ss:$16 sps:$4 sm:$0xff]  }
 0x871   :  { %v6630_v8 = vadd.f32 %v6629_v36, %v6503_v38  ;;  %v6671_v44 = vadd.f32 %v6670_v40, %v6544_v10  ;;  %v6631_v6 = vpop.f32.mrb[210].mxu0  ;;  %v6672_v57 = vpop.f32.mrb[210].mxu1  ;;  %v10465_v38 = vld [vmem:[%s13660_s16 + $0x8] ss:$16 sps:$4 sm:$0xff]   ;;  %v7070_v10 = vrot.slane %v13358_v29, 1  ;;  %v10491_v54 = vld [vmem:[%s13661_s19 + $0xe0] sm:$0xff]  }
 0x872   :  { %v6697_v4 = vadd.f32 %v6680_v27, %v6628_v12  ;;  %v6699_v48 = vadd.f32 %v6688_v60, %v6669_v56  ;;  %v6632_v17 = vpop.f32.mrb[211].mxu0  ;;  %v6673_v16 = vpop.f32.mrb[211].mxu1  ;;  %v10489_v27 = vld [vmem:[%s13661_s19 + $0x98] sm:$0xff]   ;;  %v10490_v60 = vld [vmem:[%s13661_s19 + $0x60] sm:$0xff]   ;;  %v10495_v12 = vld [vmem:[%s13661_s19 + $0xe8] sm:$0xff]  }
 0x873   :  { %v6698_v5 = vadd.f32 %v6684_v43, %v6630_v8  ;;  %v6700_v14 = vadd.f32 %v6692_v3, %v6671_v44  ;;  %v10492_v1 = vld [vmem:[%s13661_s19 + $0x20] sm:$0xff]   ;;  %v10494_v3 = vld [vmem:[%s13661_s19 + $0x68] sm:$0xff]   ;;  %v10498_v40 = vld [vmem:[%s13661_s19 + $0x70] sm:$0xff]  }
 0x874   :  { %v6701_v11 = vmax.f32 %v6697_v4, 0.0  ;;  %v6703_v59 = vmax.f32 %v6699_v48, 0.0  ;;  %v10493_v43 = vld [vmem:[%s13661_s19 + $0xa0] sm:$0xff]   ;;  %v10496_v56 = vld [vmem:[%s13661_s19 + $0x28] sm:$0xff]   ;;  %v10499_v8 = vld [vmem:[%s13661_s19 + $0xf0] sm:$0xff]  }
 0x875   :  { %v6702_v25 = vmax.f32 %v6698_v5, 0.0  ;;  %v6704_v61 = vmax.f32 %v6700_v14, 0.0  ;;  %v10497_v36 = vld [vmem:[%s13661_s19 + $0xa8] sm:$0xff]   ;;  %v10500_v44 = vld [vmem:[%s13661_s19 + $0x30] sm:$0xff]   ;;  %v10502_v57 = vld [vmem:[%s13661_s19 + $0x78] sm:$0xff]  }
 0x876   :  { %v6705_v33 = vpack.c.bf16 %v6701_v11, %v6701_v11  ;;  %v6707_v34 = vpack.c.bf16 %v6703_v59, %v6703_v59  ;;  %v10501_v6 = vld [vmem:[%s13661_s19 + $0xb0] sm:$0xff]   ;;  %v10503_v4 = vld [vmem:[%s13661_s19 + $0xf8] sm:$0xff]   ;;  %v8535_v14 = vld [vmem:[%s13663_s15] ss:$0 sm:$0xff] }
 0x877   :  { %v6706_v49 = vpack.c.bf16 %v6702_v25, %v6702_v25  ;;  %v6708_v9 = vpack.c.bf16 %v6704_v61, %v6704_v61  ;;  %v10504_v48 = vld [vmem:[%s13661_s19 + $0x38] sm:$0xff]  }
 0x878   :  { %v10505_v17 = vld [vmem:[%s13661_s19 + $0xb8] sm:$0xff]  }
 0x879   :  { %7004 = vmatprep.mubr.bf16.mxu0 %v6706_v49  ;;  %7044 = vmatprep.mubr.bf16.mxu1 %v6708_v9 }
 0x87a   :  { %7005 = vmatmul.mubr.bf16.vlgmr.msra.gmra.mrb[212].mxu0 %v6705_v33  ;;  %7045 = vmatmul.mubr.bf16.vlgmr.msra.gmra.mrb[212].mxu1 %v6707_v34 }
 0x87b   :  { %7115 = vmatpush1.bf16.msra.mxu0 %v10450_v26  ;;  %7156 = vmatpush1.bf16.msra.mxu1 %v10453_v47 }
 0x87c   :  { %7116 = vmatprep.subr.bf16.mxu0 %v10458_v41  ;;  %7157 = vmatprep.subr.bf16.mxu1 %v10461_v28  ;;  %v7697_v41 = vrot.slane %v13348_v45, 2 }
 0x87d   :  { %7146 = vmatprep.mubr.bf16.mxu0 %v10514_v63  ;;  %7187 = vmatprep.mubr.bf16.mxu1 %v10514_v63 }
 0x87f   :  { %7117 = vmatpush1.bf16.msra.mxu0 %v10456_v24  ;;  %7158 = vmatpush1.bf16.msra.mxu1 %v10459_v30 }
 0x880   :  { %7236 = vmatprep.subr.bf16.mxu0 %v10464_v0  ;;  %7277 = vmatprep.subr.bf16.mxu1 %v10467_v31 }
 0x882   :  { %8576 = vmatmul.mubr.msk.bf16.vlgmr.msra.gmra.mrb[216].mxu0 %vm6589_vm9, %v7070_v10  ;;  %8577 = vmatmul.mubr.msk.bf16.vlgmr.msra.gmra.mrb[216].mxu1 %vm6589_vm9, %v7070_v10 }
 0x883   :  { %7237 = vmatpush1.bf16.msra.mxu0 %v10462_v15  ;;  %7278 = vmatpush1.bf16.msra.mxu1 %v10465_v38 }
 0x884   :  { %7238 = vmatprep.subr.bf16.mxu0 %v10470_v19  ;;  %7279 = vmatprep.subr.bf16.mxu1 %v10473_v35 }
 0x885   :  { %7268 = vmatprep.mubr.bf16.mxu0 %v10514_v63  ;;  %7309 = vmatprep.mubr.bf16.mxu1 %v10514_v63  ;;  %v10479_v63 = vld [vmem:[%s13661_s19 + $0xc8] sm:$0xff]  }
 0x887   :  { %7239 = vmatpush1.bf16.msra.mxu0 %v10468_v37  ;;  %7280 = vmatpush1.bf16.msra.mxu1 %v10471_v42  ;;  %v7318_v37 = vld [vmem:[%s13664_s18] sm:$0xf] }
 0x888   :  { %9078 = vmatprep.subr.bf16.mxu0 %v10474_v21  ;;  %9100 = vmatprep.subr.bf16.mxu1 %v10475_v22  ;;  %v7323_v42 = vrot.slane %v7318_v37, %v13293_v51  ;;  %v7331_v21 = vrot.slane %v7318_v37, %v13298_v2 }
 0x88a   :  { %8586 = vmatmul.mubr.msk.bf16.vlgmr.msra.gmra.mrb[220].mxu0 %vm6589_vm9, %v13358_v29  ;;  %8587 = vmatmul.mubr.msk.bf16.vlgmr.msra.gmra.mrb[220].mxu1 %vm6589_vm9, %v13358_v29  ;;  %v10483_v29 = vld [vmem:[%s13661_s19 + $0xd0] sm:$0xff]  }
 0x88b   :  { %9079 = vmatpush3.bf16.msra.mxu0 %v10476_v20  ;;  %9101 = vmatpush3.bf16.msra.mxu1 %v10477_v18  ;;  %v7327_v20 = vrot.slane %v7318_v37, %v13300_v46  ;;  %v7335_v18 = vrot.slane %v7318_v37, %v13302_v52 }
 0x88c   :  { %9080 = vmatprep.subr.bf16.mxu0 %v10478_v13  ;;  %9102 = vmatprep.subr.bf16.mxu1 %v10479_v63 }
 0x88f   :  { %9081 = vmatpush3.bf16.msra.mxu0 %v10480_v55  ;;  %9103 = vmatpush3.bf16.msra.mxu1 %v10481_v53 }
 0x890   :  { %9082 = vmatprep.subr.bf16.mxu0 %v10482_v7  ;;  %9104 = vmatprep.subr.bf16.mxu1 %v10483_v29 }
 0x893   :  { %9083 = vmatpush3.bf16.msra.mxu0 %v10484_v23  ;;  %9105 = vmatpush3.bf16.msra.mxu1 %v10485_v32 }
 0x894   :  { %9084 = vmatprep.subr.bf16.mxu0 %v10486_v50  ;;  %9106 = vmatprep.subr.bf16.mxu1 %v10487_v58 }
 0x897   :  { %9085 = vmatpush3.bf16.msra.mxu0 %v10488_v39  ;;  %9107 = vmatpush3.bf16.msra.mxu1 %v10489_v27 }
 0x898   :  { %9086 = vmatprep.subr.bf16.mxu0 %v10490_v60  ;;  %9108 = vmatprep.subr.bf16.mxu1 %v10491_v54 }
 0x89b   :  { %9087 = vmatpush3.bf16.msra.mxu0 %v10492_v1  ;;  %9109 = vmatpush3.bf16.msra.mxu1 %v10493_v43 }
 0x89c   :  { %9088 = vmatprep.subr.bf16.mxu0 %v10494_v3  ;;  %9110 = vmatprep.subr.bf16.mxu1 %v10495_v12 }
 0x89f   :  { %9089 = vmatpush3.bf16.msra.mxu0 %v10496_v56  ;;  %9111 = vmatpush3.bf16.msra.mxu1 %v10497_v36 }
 0x8a0   :  { %9090 = vmatprep.subr.bf16.mxu0 %v10498_v40  ;;  %9112 = vmatprep.subr.bf16.mxu1 %v10499_v8  ;;  %v8588_v40 = vld [vmem:[%s13665_s20] ss:$0 sm:$0xff] }
 0x8a3   :  { %9091 = vmatpush3.bf16.msra.mxu0 %v10500_v44  ;;  %9113 = vmatpush3.bf16.msra.mxu1 %v10501_v6 }
 0x8a4   :  { %9092 = vmatprep.subr.bf16.mxu0 %v10502_v57  ;;  %9114 = vmatprep.subr.bf16.mxu1 %v10503_v4 }
 0x8a7   :  { %9093 = vmatpush3.bf16.msra.mxu0 %v10504_v48  ;;  %9115 = vmatpush3.bf16.msra.mxu1 %v10505_v17 }
 0x94d   :  { %v9050_v16 = vpop.f32.mrb[212].mxu0  ;;  %v9072_v5 = vpop.f32.mrb[212].mxu1 }
 0x94e   :  { %v9051_v11 = vpop.f32.mrb[213].mxu0  ;;  %v9073_v59 = vpop.f32.mrb[213].mxu1 }
 0x94f   :  { %v9052_v25 = vadd.f32 %v9051_v11, %v9050_v16  ;;  %v9074_v61 = vadd.f32 %v9073_v59, %v9072_v5  ;;  %v9053_v49 = vpop.f32.mrb[214].mxu0  ;;  %v9075_v9 = vpop.f32.mrb[214].mxu1 }
 0x950   :  { %v9054_v26 = vpop.f32.mrb[215].mxu0  ;;  %v9076_v47 = vpop.f32.mrb[215].mxu1 }
 0x951   :  { %v7007_v33 = vadd.f32 %v9052_v25, %v8535_v14 }
 0x953   :  { %v7047_v34 = vadd.f32 %v9074_v61, %v7007_v33 }
 0x955   :  { %v7052_v28 = vmax.f32 %v7047_v34, 0.0  ;;  %v7148_v24 = vpop.f32.mrb[216].mxu0  ;;  %v7189_v30 = vpop.f32.mrb[216].mxu1 }
 0x956   :  { %v7150_v0 = vpop.f32.mrb[217].mxu0  ;;  %v7191_v31 = vpop.f32.mrb[217].mxu1 }
 0x957   :  { %v7152_v15 = vpop.f32.mrb[218].mxu0  ;;  %v7193_v38 = vpop.f32.mrb[218].mxu1  ;;  %v7699_v10 = vsub.f32 %v7052_v28, %v7697_v41 }
 0x958   :  { %v7153_v19 = vpop.f32.mrb[219].mxu0  ;;  %v7194_v35 = vpop.f32.mrb[219].mxu1 }
 0x959   :  { %v7700_v25 = vmul.f32 %v7699_v10, %v7699_v10 }
 0x95b   :  { %v7702_v61 = vsel %vm7701_vm11, %v7700_v25, 0.0 }
 0x95d   :  { %v7270_v22 = vpop.f32.mrb[220].mxu0  ;;  %v7311_v45 = vpop.f32.mrb[220].mxu1 }
 0x95e   :  { %v7271_v13 = vadd.f32 %v7270_v22, %v7148_v24  ;;  %v7312_v63 = vadd.f32 %v7311_v45, %v7189_v30  ;;  %v7272_v55 = vpop.f32.mrb[221].mxu0  ;;  %v7313_v53 = vpop.f32.mrb[221].mxu1 }
 0x95f   :  { %v7273_v7 = vadd.f32 %v7272_v55, %v7150_v0  ;;  %v7314_v29 = vadd.f32 %v7313_v53, %v7191_v31  ;;  %v7274_v23 = vpop.f32.mrb[222].mxu0  ;;  %v7315_v32 = vpop.f32.mrb[222].mxu1 }
 0x960   :  { %v7340_v50 = vadd.f32 %v7323_v42, %v7271_v13  ;;  %v7342_v58 = vadd.f32 %v7331_v21, %v7312_v63  ;;  %v7275_v39 = vpop.f32.mrb[223].mxu0  ;;  %v7316_v51 = vpop.f32.mrb[223].mxu1  ;;  %v10510_v21 = vld [vmem:[%s13655_s2] sm:$0x3] }
 0x961   :  { %v7341_v27 = vadd.f32 %v7327_v20, %v7273_v7  ;;  %v7343_v2 = vadd.f32 %v7335_v18, %v7314_v29 }
 0x962   :  { %v7344_v60 = vmax.f32 %v7340_v50, 0.0  ;;  %v7346_v54 = vmax.f32 %v7342_v58, 0.0 }
 0x963   :  { %v7345_v1 = vmax.f32 %v7341_v27, 0.0  ;;  %v7347_v46 = vmax.f32 %v7343_v2, 0.0 }
 0x964   :  { %v7348_v3 = vpack.c.bf16 %v7344_v60, %v7344_v60  ;;  %v7350_v12 = vpack.c.bf16 %v7346_v54, %v7346_v54 }
 0x965   :  { %v7349_v43 = vpack.c.bf16 %v7345_v1, %v7345_v1  ;;  %v7351_v52 = vpack.c.bf16 %v7347_v46, %v7347_v46 }
 0x967   :  { %7647 = vmatprep.mubr.bf16.mxu0 %v7349_v43  ;;  %7687 = vmatprep.mubr.bf16.mxu1 %v7351_v52 }
 0x968   :  { %7648 = vmatmul.mubr.bf16.vlgmr.msra.gmra.mrb[224].mxu0 %v7348_v3  ;;  %7688 = vmatmul.mubr.bf16.vlgmr.msra.gmra.mrb[224].mxu1 %v7350_v12 }
 0xa3b   :  { %v9094_v56 = vpop.f32.mrb[224].mxu0  ;;  %v9116_v36 = vpop.f32.mrb[224].mxu1 }
 0xa3c   :  { %v9095_v8 = vpop.f32.mrb[225].mxu0  ;;  %v9117_v44 = vpop.f32.mrb[225].mxu1 }
 0xa3d   :  { %v9096_v6 = vadd.f32 %v9095_v8, %v9094_v56  ;;  %v9118_v57 = vadd.f32 %v9117_v44, %v9116_v36  ;;  %v9097_v4 = vpop.f32.mrb[226].mxu0  ;;  %v9119_v48 = vpop.f32.mrb[226].mxu1 }
 0xa3e   :  { %v9098_v17 = vpop.f32.mrb[227].mxu0  ;;  %v9120_v16 = vpop.f32.mrb[227].mxu1 }
 0xa3f   :  { %v7650_v5 = vadd.f32 %v9096_v6, %v8588_v40 }
 0xa41   :  { %v7690_v14 = vadd.f32 %v9118_v57, %v7650_v5 }
 0xa43   :  { %v7695_v11 = vmax.f32 %v7690_v14, 0.0 }
 0xa45   :  { %v7716_v59 = vsel %vm7715_vm10, %v7695_v11, -inf }
 0xa46   :  { %7717 = vmax.xlane.f32.xlu0 %v7716_v59 }
 0xa4a   :  { %7703 = vadd.xlane.f32.xlu0 %v7702_v61 }
 0xad3   :  { %v7718_v49 = vpop.xlane.xlu0 %7717 }
 0xad4   :  { %v7719_v9 = vsub.f32 %v7695_v11, %v7718_v49 }
 0xad6   :  { %v7720_v26 = vmul.f32 1.442695, %v7719_v9 }
 0xad7   :  { %v7704_v47 = vpop.xlane.xlu0 %7703 }
 0xad8   :  { %10506 = vpow2.f32 %v7720_v26  ;;  %v7705_v33 = vmul.f32 0.03125, %v7704_v47 }
 0xada   :  { %v7706_v34 = vmul.f32 0.5, %v7705_v33  ;;  %v7707_v41 = vsel %vm756_vm1, %v7705_v33, 0.0 }
 0xadb   :  { %v7708_v28 = vrot.slane %v7707_v41, 4 }
 0xadc   :  { %7744 = vst [vmem:[%s13666_s21 + $0x2] sm:$0x3] %v7706_v34 }
 0xadd   :  { %v7709_v24 = vadd.f32 %v7708_v28, %v7707_v41 }
 0xadf   :  { %v7710_v30 = vrot.slane %v7709_v24, 2 }
 0xae1   :  { %v7711_v0 = vadd.f32 %v7710_v30, %v7709_v24 }
 0xae2   :  { %v10507_v31 = vpop.eup %10506 }
 0xae3   :  { %v7712_v15 = vrot.slane %v7711_v0, 1  ;;  %v7722_v62 = vsel %vm7715_vm10, %v10507_v31, 0.0 }
 0xae4   :  { %7723 = vadd.xlane.f32.xlu1 %v7722_v62 }
 0xae5   :  { %v7713_v38 = vadd.f32 %v7712_v15, %v7711_v0 }
 0xae7   :  { %v7714_v10 = vmul.f32 0.5, %v7713_v38 }
 0xae9   :  { %7742 = vst [vmem:[%s13666_s21] sm:$0x1] %v7714_v10 }
 0xb71   :  { %v7724_v19 = vpop.xlane.xlu1 %7723 }
 0xb72   :  { %10508 = vlog2.f32 %v7724_v19 }
 0xb7c   :  { %v10509_v35 = vpop.eup %10508 }
 0xb7d   :  { %v7726_v37 = vmul.f32 0.6931472, %v10509_v35 }
 0xb7f   :  { %v7727_v42 = vsub.f32 %v7719_v9, %v7726_v37 }
 0xb81   :  { %v7728_v22 = vmul.f32 %v10510_v21, %v7727_v42 }
 0xb83   :  { %v7729_v45 = vsel %vm7715_vm10, %v7728_v22, 0.0 }
 0xb84   :  { %7730 = vadd.xlane.f32.xlu0 %v7729_v45 }
 0xc11   :  { %v7731_v20 = vpop.xlane.xlu0 %7730 }
 0xc12   :  { %v7732_v18 = vsub.f32 0.0, %v7731_v20 }
 0xc14   :  { %v7733_v13 = vsel %vm756_vm1, %v7732_v18, 0.0 }
 0xc15   :  { %v7734_v63 = vrot.slane %v7733_v13, 4 }
 0xc17   :  { %v7735_v55 = vadd.f32 %v7734_v63, %v7733_v13 }
 0xc19   :  { %v7736_v53 = vrot.slane %v7735_v55, 2 }
 0xc1b   :  { %v7737_v7 = vadd.f32 %v7736_v53, %v7735_v55 }
 0xc1d   :  { %v7738_v29 = vrot.slane %v7737_v7, 1 }
 0xc1f   :  { %v7739_v23 = vadd.f32 %v7738_v29, %v7737_v7 }
 0xc21   :  { %v7740_v32 = vmul.f32 0.5, %v7739_v23 }
 0xc23   :  { %7743 = vst [vmem:[%s13666_s21 + $0x1] sm:$0x1] %v7740_v32 }

</bundles_post_ra>
